<compile_context>
chip_gen: v7x
topology: tpu7x:2x2x1
jax: 0.10.0
libtpu: 0.0.40
codegen_flags: <defaults>
</compile_context>

<pallas_src>
import functools

import jax
import jax.numpy as jnp
from jax import lax
from jax.experimental import pallas as pl
from jax.experimental.pallas import tpu as pltpu

EPS = 1e-5            # PyTorch BatchNorm2d default eps
LEAKY_SLOPE = 0.2
VMEM_LIMIT = 64 * 1024 * 1024


# ----------------------------------------------------------------------------
# Kernel 1: fully connected layer  y = z @ W^T + b   (bf16 MXU, f32 accumulate)
# ----------------------------------------------------------------------------
def _linear_kernel(x_ref, w_ref, b_ref, o_ref):
    o_ref[...] = (jnp.dot(x_ref[...], w_ref[...],
                          preferred_element_type=jnp.float32) + b_ref[...])


def _pick_tile(n, cap=2048):
    t = min(n, cap)
    while n % t:
        t -= 128
    return t


def linear(z_bf16, w_t_bf16, bias_f32):
    B, K = z_bf16.shape
    N = w_t_bf16.shape[1]
    tn = _pick_tile(N)
    return pl.pallas_call(
        _linear_kernel,
        out_shape=jax.ShapeDtypeStruct((B, N), jnp.float32),
        grid=(N // tn,),
        in_specs=[
            pl.BlockSpec((B, K), lambda j: (0, 0)),
            pl.BlockSpec((K, tn), lambda j: (0, j)),
            pl.BlockSpec((1, tn), lambda j: (0, j)),
        ],
        out_specs=pl.BlockSpec((B, tn), lambda j: (0, j)),
        compiler_params=pltpu.CompilerParams(
            dimension_semantics=("parallel",),
            vmem_limit_bytes=VMEM_LIMIT),
    )(z_bf16, w_t_bf16, bias_f32.reshape(1, N))


# ----------------------------------------------------------------------------
# Kernel 2: per-image channel sum / sum-of-squares (for the first BatchNorm)
# ----------------------------------------------------------------------------
def _stats_kernel(x_ref, o_ref):
    x = x_ref[0]                                        # (M, C)
    o_ref[0, 0:1, :] = jnp.sum(x, axis=0, keepdims=True)
    o_ref[0, 1:2, :] = jnp.sum(x * x, axis=0, keepdims=True)


def channel_stats(x_bmc):
    B, M, C = x_bmc.shape
    return pl.pallas_call(
        _stats_kernel,
        out_shape=jax.ShapeDtypeStruct((B, 2, C), jnp.float32),
        grid=(B,),
        in_specs=[pl.BlockSpec((1, M, C), lambda b: (b, 0, 0))],
        out_specs=pl.BlockSpec((1, 2, C), lambda b: (b, 0, 0)),
        compiler_params=pltpu.CompilerParams(
            dimension_semantics=("parallel",),
            vmem_limit_bytes=VMEM_LIMIT),
    )(x_bmc)


def bn_affine(partial_stats, count, gamma, beta):
    """Combine per-image (sum, sumsq) into a BatchNorm affine: x*scale + shift."""
    tot = jnp.sum(partial_stats, axis=0)                # (2, C)
    mean = tot[0] / count
    var = jnp.maximum(tot[1] / count - mean * mean, 0.0)    # biased var (training mode)
    scale = gamma * lax.rsqrt(var + EPS)
    shift = beta - mean * scale
    return scale.reshape(1, -1), shift.reshape(1, -1)


# ----------------------------------------------------------------------------
# Kernel 3: fused  [BN affine (+LeakyReLU)] -> (implicit Upsample2x) -> Conv3x3
#                  -> +bias -> (Tanh)  and per-channel sum/sumsq epilogue.
#
# The (optional) nearest-neighbour upsample is folded into the weights host-side:
# for each output row-parity `a` the kernel does ONE long-K matmul
#   (Hl*(Wl+2), 9*Cin) @ (9*Cin, n_cp*Cout)
# over the flattened zero-padded low-res image held in VMEM.  Output is written as
# (B, n_rp*Hl, Wl, n_cp*Cout) which reshapes (metadata only) to NHWC (B,Hout,Wout,Cout).
# ----------------------------------------------------------------------------
def _conv_kernel(x_ref, scale_ref, shift_ref, w_ref, b_ref, y_ref, s_ref,
                 pad_ref, lhs_ref, acc_ref, *, n_rp, pre_leaky, use_tanh):
    Hl, Wl, Cin = x_ref.shape[1], x_ref.shape[2], x_ref.shape[3]
    Wp = Wl + 2
    Mw = Hl * Wp
    nC = w_ref.shape[2]
    Cout = nC // n_rp

    # ---- fused input transform: BatchNorm affine (+ optional LeakyReLU) ----
    x = x_ref[0]                                              # (Hl, Wl, Cin) f32
    sc = scale_ref[...].reshape(1, 1, Cin)
    sh = shift_ref[...].reshape(1, 1, Cin)
    t = x * sc + sh
    if pre_leaky:
        t = jnp.where(t > 0, t, LEAKY_SLOPE * t)

    # ---- zero-padded image, flattened row-major, built in VMEM (no HBM pad) ----
    pad_ref[...] = jnp.zeros_like(pad_ref)
    for r in range(Hl):
        base = (r + 1) * Wp + 1
        pad_ref[base:base + Wl, :] = t[r]

    # ---- in-VMEM im2col: 9 shifted views packed into one long-K operand ----
    for u in range(3):
        for v in range(3):
            tap = u * 3 + v
            off = u * Wp + v
            lhs_ref[:, tap * Cin:(tap + 1) * Cin] = (
                pad_ref[off:off + Mw, :].astype(jnp.bfloat16))
    lhs = lhs_ref[...]                                        # (Mw, 9*Cin) bf16

    # ---- one long-K MXU matmul per output row-parity, bias, optional tanh ----
    for a in range(n_rp):
        acc = jnp.dot(lhs, w_ref[a], preferred_element_type=jnp.float32)
        acc = acc + b_ref[...]
        if use_tanh:
            acc = jnp.tanh(acc)
        acc_ref[...] = acc                                    # (Mw, nC) f32
        for i in range(Hl):
            y_ref[0, n_rp * i + a, :, :] = acc_ref[i * Wp:i * Wp + Wl, :]

    # ---- epilogue: per-channel sum / sum-of-squares for the NEXT BatchNorm ----
    y = y_ref[0]                                              # (Hout, Wl, nC) f32
    s1 = jnp.sum(jnp.sum(y, axis=0), axis=0, keepdims=True)        # (1, nC)
    s2 = jnp.sum(jnp.sum(y * y, axis=0), axis=0, keepdims=True)    # (1, nC)
    if n_rp == 2:                                             # fold the two width parities
        s1 = s1[:, :Cout] + s1[:, Cout:]
        s2 = s2[:, :Cout] + s2[:, Cout:]
    s_ref[0, 0:1, :] = s1
    s_ref[0, 1:2, :] = s2


def conv_block(x_nhwc, scale, shift, w_fold, bias_t, *, pre_leaky, use_tanh):
    B, Hl, Wl, Cin = x_nhwc.shape
    n_rp, k_dim, nC = w_fold.shape
    assert k_dim == 9 * Cin
    Cout = nC // n_rp
    Wp = Wl + 2
    Mw = Hl * Wp
    Hout = n_rp * Hl
    kern = functools.partial(_conv_kernel, n_rp=n_rp,
                             pre_leaky=pre_leaky, use_tanh=use_tanh)
    return pl.pallas_call(
        kern,
        out_shape=(jax.ShapeDtypeStruct((B, Hout, Wl, nC), jnp.float32),
                   jax.ShapeDtypeStruct((B, 2, Cout), jnp.float32)),
        grid=(B,),
        in_specs=[
            pl.BlockSpec((1, Hl, Wl, Cin), lambda b: (b, 0, 0, 0)),
            pl.BlockSpec((1, Cin), lambda b: (0, 0)),
            pl.BlockSpec((1, Cin), lambda b: (0, 0)),
            pl.BlockSpec((n_rp, 9 * Cin, nC), lambda b: (0, 0, 0)),
            pl.BlockSpec((1, nC), lambda b: (0, 0)),
        ],
        out_specs=(
            pl.BlockSpec((1, Hout, Wl, nC), lambda b: (b, 0, 0, 0)),
            pl.BlockSpec((1, 2, Cout), lambda b: (b, 0, 0)),
        ),
        scratch_shapes=[
            pltpu.VMEM(((Hl + 3) * Wp, Cin), jnp.float32),    # flat zero-padded image
            pltpu.VMEM((Mw, 9 * Cin), jnp.bfloat16),          # long-K operand
            pltpu.VMEM((Mw, nC), jnp.float32),                # matmul result
        ],
        compiler_params=pltpu.CompilerParams(
            dimension_semantics=("parallel",),
            vmem_limit_bytes=VMEM_LIMIT),
    )(x_nhwc, scale, shift, w_fold, bias_t)


# ----------------------------------------------------------------------------
# Host-side parameter preparation (one-time): weight folding / permutation / bf16
# ----------------------------------------------------------------------------
def fold_upsample_weight(w_hwio):
    """Fold nearest-neighbour 2x upsample into a 3x3 conv weight.

    Returns (2 row-parities, 9*Cin, 2*Cout): for each output row parity `a`, a
    long-K weight over the 9 low-res taps (di,dj) in {-1,0,1}^2; output columns
    are [width-parity 0 channels | width-parity 1 channels]."""
    _, _, cin, cout = w_hwio.shape
    V = jnp.zeros((2, 3, 3, cin, 2, cout), w_hwio.dtype)
    for a in range(2):
        for b in range(2):
            for dh in range(3):
                for dw in range(3):
                    di = (a + dh - 1) // 2
                    dj = (b + dw - 1) // 2
                    V = V.at[a, di + 1, dj + 1, :, b, :].add(w_hwio[dh, dw])
    return V.reshape(2, 9 * cin, 2 * cout)


def init_raw_params(key, in_features, img_channels, img_size):
    s0 = img_size // 4
    fc_out = 128 * s0 * s0
    ks = jax.random.split(key, 8)
    f32 = jnp.float32
    return {
        "fc_w": 0.05 * jax.random.normal(ks[0], (fc_out, in_features), f32),  # (out, in)
        "fc_b": 0.05 * jax.random.normal(ks[1], (fc_out,), f32),
        "bn0_g": jnp.ones((128,), f32), "bn0_b": jnp.zeros((128,), f32),
        "c1_w": 0.05 * jax.random.normal(ks[2], (128, 128, 3, 3), f32),       # OIHW
        "c1_b": 0.05 * jax.random.normal(ks[3], (128,), f32),
        "bn1_g": jnp.ones((128,), f32), "bn1_b": jnp.zeros((128,), f32),
        "c2_w": 0.05 * jax.random.normal(ks[4], (64, 128, 3, 3), f32),
        "c2_b": 0.05 * jax.random.normal(ks[5], (64,), f32),
        "bn2_g": jnp.ones((64,), f32), "bn2_b": jnp.zeros((64,), f32),
        "c3_w": 0.05 * jax.random.normal(ks[6], (img_channels, 64, 3, 3), f32),
        "c3_b": 0.05 * jax.random.normal(ks[7], (img_channels,), f32),
    }


def prepare_params(raw, img_channels, img_size):
    s0 = img_size // 4
    fc_out = 128 * s0 * s0
    # FC: permute output rows (c,i,j)->(i,j,c) so the matmul emits NHWC-flat directly.
    perm = jnp.arange(fc_out).reshape(128, s0, s0).transpose(1, 2, 0).reshape(-1)
    w_perm = raw["fc_w"][perm]
    b_perm = raw["fc_b"][perm]

    def to_hwio(w):                      # (O, I, kh, kw) -> (kh, kw, I, O)
        return jnp.transpose(w, (2, 3, 1, 0))

    c1 = fold_upsample_weight(to_hwio(raw["c1_w"]))           # (2, 1152, 256)
    c2 = fold_upsample_weight(to_hwio(raw["c2_w"]))           # (2, 1152, 128)
    w3 = to_hwio(raw["c3_w"])                                 # (3,3,64,img_channels)
    w3 = jnp.pad(w3, ((0, 0), (0, 0), (0, 0), (0, 128 - img_channels)))
    c3 = w3.reshape(1, 9 * 64, 128)                           # lane-dense final conv
    b3 = jnp.pad(raw["c3_b"], (0, 128 - img_channels))

    return {
        "fc_w_t": w_perm.T.astype(jnp.bfloat16),              # (in, fc_out)
        "fc_b": b_perm.astype(jnp.float32),
        "bn0_g": raw["bn0_g"], "bn0_b": raw["bn0_b"],
        "c1_wf": c1.astype(jnp.bfloat16),
        "c1_bt": jnp.tile(raw["c1_b"], 2).reshape(1, 256).astype(jnp.float32),
        "bn1_g": raw["bn1_g"], "bn1_b": raw["bn1_b"],
        "c2_wf": c2.astype(jnp.bfloat16),
        "c2_bt": jnp.tile(raw["c2_b"], 2).reshape(1, 128).astype(jnp.float32),
        "bn2_g": raw["bn2_g"], "bn2_b": raw["bn2_b"],
        "c3_wf": c3.astype(jnp.bfloat16),
        "c3_bt": b3.reshape(1, 128).astype(jnp.float32),
    }


# ----------------------------------------------------------------------------
# Generator forward
# ----------------------------------------------------------------------------
def generator_forward(z, p, *, img_size, img_channels):
    B = z.shape[0]
    s0 = img_size // 4
    # Linear (bf16 MXU); output columns already NHWC-ordered -> view is metadata only.
    h = linear(z.astype(jnp.bfloat16), p["fc_w_t"], p["fc_b"])        # (B, 128*s0*s0) f32
    # BatchNorm2d(128) batch statistics of the fc feature map.
    st0 = channel_stats(h.reshape(B, s0 * s0, 128))
    sc0, sh0 = bn_affine(st0, B * s0 * s0, p["bn0_g"], p["bn0_b"])
    # Block 1: BN0 -> Upsample2x -> Conv3x3(128->128)  (+ fused stats for BN1)
    y1, st1 = conv_block(h.reshape(B, s0, s0, 128), sc0, sh0,
                         p["c1_wf"], p["c1_bt"], pre_leaky=False, use_tanh=False)
    sc1, sh1 = bn_affine(st1, B * (2 * s0) ** 2, p["bn1_g"], p["bn1_b"])
    # Block 2: BN1 -> LeakyReLU -> Upsample2x -> Conv3x3(128->64)  (+ stats for BN2)
    y2, st2 = conv_block(y1.reshape(B, 2 * s0, 2 * s0, 128), sc1, sh1,
                         p["c2_wf"], p["c2_bt"], pre_leaky=True, use_tanh=False)
    sc2, sh2 = bn_affine(st2, B * (4 * s0) ** 2, p["bn2_g"], p["bn2_b"])
    # Final: BN2 -> LeakyReLU -> Conv3x3(64->img_channels, lane-padded to 128) -> Tanh
    y3, _ = conv_block(y2.reshape(B, 4 * s0, 4 * s0, 64), sc2, sh2,
                       p["c3_wf"], p["c3_bt"], pre_leaky=True, use_tanh=True)
    img = y3[..., :img_channels]                                      # drop lane padding
    return jnp.transpose(img, (0, 3, 1, 2))                           # NHWC -> NCHW


if __name__ == "__main__":
    B, in_features, img_channels, img_size = 2, 32, 1, 16   # small but structure-preserving
    key = jax.random.PRNGKey(0)
    kp, kz = jax.random.split(key)
    raw = init_raw_params(kp, in_features, img_channels, img_size)
    params = prepare_params(raw, img_channels, img_size)
    z = jax.random.normal(kz, (B, in_features), jnp.float32)

    fwd = jax.jit(functools.partial(generator_forward,
                                    img_size=img_size, img_channels=img_channels))
    out = jax.block_until_ready(fwd(z, params))

    assert out.shape == (B, img_channels, img_size, img_size), out.shape
    assert bool(jnp.all(jnp.isfinite(out))) and bool(jnp.all(jnp.abs(out) <= 1.0))
    print("KERNEL_OK")
</pallas_src>

<mosaic_0001>
module attributes {stable_mosaic.version = 11 : i64} {
  func.func @_stats_kernel(%arg0: i32, %arg1: memref<1x16x128xf32, #tpu.memory_space<vmem>>, %arg2: memref<1x2x128xf32, #tpu.memory_space<vmem>>) attributes {dimension_semantics = [#tpu.dimension_semantics<parallel>], iteration_bounds = array<i64: 2>, scalar_prefetch = 0 : i64, scratch_operands = 0 : i64, tpu.core_type = #tpu.core_type<tc>, window_params = [{transform_indices = @transform_0, window_bounds = array<i64: 1, 16, 128>}, {transform_indices = @transform_1, window_bounds = array<i64: 1, 2, 128>}]} {
    %c0 = arith.constant 0 : index
    %c0_0 = arith.constant 0 : index
    %c0_1 = arith.constant 0 : index
    %0 = vector.load %arg1[%c0, %c0_0, %c0_1] : memref<1x16x128xf32, #tpu.memory_space<vmem>>, vector<1x16x128xf32>
    %1 = vector.shape_cast %0 : vector<1x16x128xf32> to vector<16x128xf32>
    %cst = arith.constant dense<0.000000e+00> : vector<128xf32>
    %2 = vector.multi_reduction <add>, %1, %cst [0] : vector<16x128xf32> to vector<128xf32>
    %3 = vector.shape_cast %2 : vector<128xf32> to vector<1x128xf32>
    %c0_2 = arith.constant 0 : index
    %c0_3 = arith.constant 0 : index
    %c0_4 = arith.constant 0 : index
    %4 = vector.load %arg2[%c0_2, %c0_3, %c0_4] : memref<1x2x128xf32, #tpu.memory_space<vmem>>, vector<1x1x128xf32>
    %5 = vector.shape_cast %4 : vector<1x1x128xf32> to vector<1x128xf32>
    %6 = vector.shape_cast %3 : vector<1x128xf32> to vector<1x1x128xf32>
    tpu.vector_store %arg2[%c0_2, %c0_3, %c0_4], %6 {strides = array<i32>} : memref<1x2x128xf32, #tpu.memory_space<vmem>>, vector<1x1x128xf32>,
    %7 = arith.mulf %1, %1 : vector<16x128xf32>
    %cst_5 = arith.constant dense<0.000000e+00> : vector<128xf32>
    %8 = vector.multi_reduction <add>, %7, %cst_5 [0] : vector<16x128xf32> to vector<128xf32>
    %9 = vector.shape_cast %8 : vector<128xf32> to vector<1x128xf32>
    %c0_6 = arith.constant 0 : index
    %c1 = arith.constant 1 : index
    %c0_7 = arith.constant 0 : index
    %10 = vector.load %arg2[%c0_6, %c1, %c0_7] : memref<1x2x128xf32, #tpu.memory_space<vmem>>, vector<1x1x128xf32>
    %11 = vector.shape_cast %10 : vector<1x1x128xf32> to vector<1x128xf32>
    %12 = vector.shape_cast %9 : vector<1x128xf32> to vector<1x1x128xf32>
    tpu.vector_store %arg2[%c0_6, %c1, %c0_7], %12 {strides = array<i32>} : memref<1x2x128xf32, #tpu.memory_space<vmem>>, vector<1x1x128xf32>,
    return
  }
  func.func @transform_0(%arg0: i32) -> (i32, i32, i32) {
    %c0_i32 = arith.constant 0 : i32
    %c0_i32_0 = arith.constant 0 : i32
    %c0_i32_1 = arith.constant 0 : i32
    return %arg0, %c0_i32, %c0_i32_0 : i32, i32, i32
  }
  func.func @transform_1(%arg0: i32) -> (i32, i32, i32) {
    %c0_i32 = arith.constant 0 : i32
    %c0_i32_0 = arith.constant 0 : i32
    %c0_i32_1 = arith.constant 0 : i32
    return %arg0, %c0_i32, %c0_i32_0 : i32, i32, i32
  }
}

module attributes {stable_mosaic.version = 11 : i64} {
  func.func @_linear_kernel(%arg0: i32, %arg1: memref<2x32xbf16, #tpu.memory_space<vmem>>, %arg2: memref<32x2048xbf16, #tpu.memory_space<vmem>>, %arg3: memref<1x2048xf32, #tpu.memory_space<vmem>>, %arg4: memref<2x2048xf32, #tpu.memory_space<vmem>>) attributes {dimension_semantics = [#tpu.dimension_semantics<parallel>], iteration_bounds = array<i64: 1>, scalar_prefetch = 0 : i64, scratch_operands = 0 : i64, tpu.core_type = #tpu.core_type<tc>, window_params = [{pipeline_mode = #tpu.pipeline_mode<synchronous>, transform_indices = @transform_0, window_bounds = array<i64: 2, 32>}, {transform_indices = @transform_1, window_bounds = array<i64: 32, 2048>}, {transform_indices = @transform_2, window_bounds = array<i64: 1, 2048>}, {transform_indices = @transform_3, window_bounds = array<i64: 2, 2048>}]} {
    %c0 = arith.constant 0 : index
    %c0_0 = arith.constant 0 : index
    %0 = vector.load %arg1[%c0, %c0_0] : memref<2x32xbf16, #tpu.memory_space<vmem>>, vector<2x32xbf16>
    %c0_1 = arith.constant 0 : index
    %c0_2 = arith.constant 0 : index
    %1 = vector.load %arg2[%c0_1, %c0_2] : memref<32x2048xbf16, #tpu.memory_space<vmem>>, vector<32x2048xbf16>
    %cst = arith.constant dense<0.000000e+00> : vector<2x2048xf32>
    %2 = tpu.matmul %0, %1, %cst {dimension_numbers = #tpu.dot_dimension_numbers<[1], [0], [0], [1], [0, 0, 1, 1], [], []>} : vector<2x32xbf16>, vector<32x2048xbf16>, vector<2x2048xf32> -> vector<2x2048xf32>
    %c0_3 = arith.constant 0 : index
    %c0_4 = arith.constant 0 : index
    %3 = vector.load %arg3[%c0_3, %c0_4] : memref<1x2048xf32, #tpu.memory_space<vmem>>, vector<1x2048xf32>
    %4 = vector.broadcast %3 : vector<1x2048xf32> to vector<2x2048xf32>
    %5 = arith.addf %2, %4 : vector<2x2048xf32>
    %c0_5 = arith.constant 0 : index
    %c0_6 = arith.constant 0 : index
    %6 = vector.load %arg4[%c0_5, %c0_6] : memref<2x2048xf32, #tpu.memory_space<vmem>>, vector<2x2048xf32>
    tpu.vector_store %arg4[%c0_5, %c0_6], %5 {strides = array<i32>} : memref<2x2048xf32, #tpu.memory_space<vmem>>, vector<2x2048xf32>,
    return
  }
  func.func @transform_0(%arg0: i32) -> (i32, i32) {
    %c0_i32 = arith.constant 0 : i32
    %c0_i32_0 = arith.constant 0 : i32
    %c0_i32_1 = arith.constant 0 : i32
    return %c0_i32, %c0_i32_0 : i32, i32
  }
  func.func @transform_1(%arg0: i32) -> (i32, i32) {
    %c0_i32 = arith.constant 0 : i32
    %c0_i32_0 = arith.constant 0 : i32
    return %c0_i32, %arg0 : i32, i32
  }
  func.func @transform_2(%arg0: i32) -> (i32, i32) {
    %c0_i32 = arith.constant 0 : i32
    %c0_i32_0 = arith.constant 0 : i32
    return %c0_i32, %arg0 : i32, i32
  }
  func.func @transform_3(%arg0: i32) -> (i32, i32) {
    %c0_i32 = arith.constant 0 : i32
    %c0_i32_0 = arith.constant 0 : i32
    return %c0_i32, %arg0 : i32, i32
  }
}

module attributes {stable_mosaic.version = 11 : i64} {
  func.func @_conv_kernel(%arg0: i32, %arg1: memref<1x8x8x128xf32, #tpu.memory_space<vmem>>, %arg2: memref<1x128xf32, #tpu.memory_space<vmem>>, %arg3: memref<1x128xf32, #tpu.memory_space<vmem>>, %arg4: memref<2x1152x128xbf16, #tpu.memory_space<vmem>>, %arg5: memref<1x128xf32, #tpu.memory_space<vmem>>, %arg6: memref<1x16x8x128xf32, #tpu.memory_space<vmem>>, %arg7: memref<1x2x64xf32, #tpu.memory_space<vmem>>, %arg8: memref<110x128xf32, #tpu.memory_space<vmem>>, %arg9: memref<80x1152xbf16, #tpu.memory_space<vmem>>, %arg10: memref<80x128xf32, #tpu.memory_space<vmem>>) attributes {dimension_semantics = [#tpu.dimension_semantics<parallel>], iteration_bounds = array<i64: 2>, scalar_prefetch = 0 : i64, scratch_operands = 3 : i64, tpu.core_type = #tpu.core_type<tc>, window_params = [{transform_indices = @transform_0, window_bounds = array<i64: 1, 8, 8, 128>}, {pipeline_mode = #tpu.pipeline_mode<synchronous>, transform_indices = @transform_1, window_bounds = array<i64: 1, 128>}, {pipeline_mode = #tpu.pipeline_mode<synchronous>, transform_indices = @transform_2, window_bounds = array<i64: 1, 128>}, {pipeline_mode = #tpu.pipeline_mode<synchronous>, transform_indices = @transform_3, window_bounds = array<i64: 2, 1152, 128>}, {pipeline_mode = #tpu.pipeline_mode<synchronous>, transform_indices = @transform_4, window_bounds = array<i64: 1, 128>}, {transform_indices = @transform_5, window_bounds = array<i64: 1, 16, 8, 128>}, {transform_indices = @transform_6, window_bounds = array<i64: 1, 2, 64>}]} {
    %c0 = arith.constant 0 : index
    %c0_0 = arith.constant 0 : index
    %c0_1 = arith.constant 0 : index
    %c0_2 = arith.constant 0 : index
    %0 = vector.load %arg1[%c0, %c0_0, %c0_1, %c0_2] : memref<1x8x8x128xf32, #tpu.memory_space<vmem>>, vector<1x8x8x128xf32>
    %1 = vector.shape_cast %0 : vector<1x8x8x128xf32> to vector<8x8x128xf32>
    %c0_3 = arith.constant 0 : index
    %c0_4 = arith.constant 0 : index
    %2 = vector.load %arg2[%c0_3, %c0_4] : memref<1x128xf32, #tpu.memory_space<vmem>>, vector<1x128xf32>
    %3 = vector.shape_cast %2 : vector<1x128xf32> to vector<1x1x128xf32>
    %c0_5 = arith.constant 0 : index
    %c0_6 = arith.constant 0 : index
    %4 = vector.load %arg3[%c0_5, %c0_6] : memref<1x128xf32, #tpu.memory_space<vmem>>, vector<1x128xf32>
    %5 = vector.shape_cast %4 : vector<1x128xf32> to vector<1x1x128xf32>
    %6 = vector.broadcast %3 : vector<1x1x128xf32> to vector<8x8x128xf32>
    %7 = arith.mulf %1, %6 : vector<8x8x128xf32>
    %8 = vector.broadcast %5 : vector<1x1x128xf32> to vector<8x8x128xf32>
    %9 = arith.addf %7, %8 : vector<8x8x128xf32>
    %cst = arith.constant 0.000000e+00 : f32
    %10 = vector.broadcast %cst : f32 to vector<8x8x128xf32>
    %11 = arith.cmpf ogt, %9, %10 : vector<8x8x128xf32>
    %cst_7 = arith.constant 2.000000e-01 : f32
    %12 = vector.broadcast %cst_7 : f32 to vector<8x8x128xf32>
    %13 = arith.mulf %12, %9 : vector<8x8x128xf32>
    %14 = arith.select %11, %9, %13 : vector<8x8x128xi1>, vector<8x8x128xf32>
    %cst_8 = arith.constant 0.000000e+00 : f32
    %15 = vector.broadcast %cst_8 : f32 to vector<110x128xf32>
    %c0_9 = arith.constant 0 : index
    %c0_10 = arith.constant 0 : index
    %16 = vector.load %arg8[%c0_9, %c0_10] : memref<110x128xf32, #tpu.memory_space<vmem>>, vector<110x128xf32>
    tpu.vector_store %arg8[%c0_9, %c0_10], %15 {strides = array<i32>} : memref<110x128xf32, #tpu.memory_space<vmem>>, vector<110x128xf32>,
    %17 = vector.extract_strided_slice %14 {offsets = [0, 0, 0], sizes = [1, 8, 128], strides = [1, 1, 1]} : vector<8x8x128xf32> to vector<1x8x128xf32>
    %18 = vector.shape_cast %17 : vector<1x8x128xf32> to vector<8x128xf32>
    %c11 = arith.constant 11 : index
    %c0_11 = arith.constant 0 : index
    %19 = vector.load %arg8[%c11, %c0_11] : memref<110x128xf32, #tpu.memory_space<vmem>>, vector<8x128xf32>
    tpu.vector_store %arg8[%c11, %c0_11], %18 {strides = array<i32>} : memref<110x128xf32, #tpu.memory_space<vmem>>, vector<8x128xf32>,
    %20 = vector.extract_strided_slice %14 {offsets = [1, 0, 0], sizes = [1, 8, 128], strides = [1, 1, 1]} : vector<8x8x128xf32> to vector<1x8x128xf32>
    %21 = vector.shape_cast %20 : vector<1x8x128xf32> to vector<8x128xf32>
    %c21 = arith.constant 21 : index
    %c0_12 = arith.constant 0 : index
    %22 = vector.load %arg8[%c21, %c0_12] : memref<110x128xf32, #tpu.memory_space<vmem>>, vector<8x128xf32>
    tpu.vector_store %arg8[%c21, %c0_12], %21 {strides = array<i32>} : memref<110x128xf32, #tpu.memory_space<vmem>>, vector<8x128xf32>,
    %23 = vector.extract_strided_slice %14 {offsets = [2, 0, 0], sizes = [1, 8, 128], strides = [1, 1, 1]} : vector<8x8x128xf32> to vector<1x8x128xf32>
    %24 = vector.shape_cast %23 : vector<1x8x128xf32> to vector<8x128xf32>
    %c31 = arith.constant 31 : index
    %c0_13 = arith.constant 0 : index
    %25 = vector.load %arg8[%c31, %c0_13] : memref<110x128xf32, #tpu.memory_space<vmem>>, vector<8x128xf32>
    tpu.vector_store %arg8[%c31, %c0_13], %24 {strides = array<i32>} : memref<110x128xf32, #tpu.memory_space<vmem>>, vector<8x128xf32>,
    %26 = vector.extract_strided_slice %14 {offsets = [3, 0, 0], sizes = [1, 8, 128], strides = [1, 1, 1]} : vector<8x8x128xf32> to vector<1x8x128xf32>
    %27 = vector.shape_cast %26 : vector<1x8x128xf32> to vector<8x128xf32>
    %c41 = arith.constant 41 : index
    %c0_14 = arith.constant 0 : index
    %28 = vector.load %arg8[%c41, %c0_14] : memref<110x128xf32, #tpu.memory_space<vmem>>, vector<8x128xf32>
    tpu.vector_store %arg8[%c41, %c0_14], %27 {strides = array<i32>} : memref<110x128xf32, #tpu.memory_space<vmem>>, vector<8x128xf32>,
    %29 = vector.extract_strided_slice %14 {offsets = [4, 0, 0], sizes = [1, 8, 128], strides = [1, 1, 1]} : vector<8x8x128xf32> to vector<1x8x128xf32>
    %30 = vector.shape_cast %29 : vector<1x8x128xf32> to vector<8x128xf32>
    %c51 = arith.constant 51 : index
    %c0_15 = arith.constant 0 : index
    %31 = vector.load %arg8[%c51, %c0_15] : memref<110x128xf32, #tpu.memory_space<vmem>>, vector<8x128xf32>
    tpu.vector_store %arg8[%c51, %c0_15], %30 {strides = array<i32>} : memref<110x128xf32, #tpu.memory_space<vmem>>, vector<8x128xf32>,
    %32 = vector.extract_strided_slice %14 {offsets = [5, 0, 0], sizes = [1, 8, 128], strides = [1, 1, 1]} : vector<8x8x128xf32> to vector<1x8x128xf32>
    %33 = vector.shape_cast %32 : vector<1x8x128xf32> to vector<8x128xf32>
    %c61 = arith.constant 61 : index
    %c0_16 = arith.constant 0 : index
    %34 = vector.load %arg8[%c61, %c0_16] : memref<110x128xf32, #tpu.memory_space<vmem>>, vector<8x128xf32>
    tpu.vector_store %arg8[%c61, %c0_16], %33 {strides = array<i32>} : memref<110x128xf32, #tpu.memory_space<vmem>>, vector<8x128xf32>,
    %35 = vector.extract_strided_slice %14 {offsets = [6, 0, 0], sizes = [1, 8, 128], strides = [1, 1, 1]} : vector<8x8x128xf32> to vector<1x8x128xf32>
    %36 = vector.shape_cast %35 : vector<1x8x128xf32> to vector<8x128xf32>
    %c71 = arith.constant 71 : index
    %c0_17 = arith.constant 0 : index
    %37 = vector.load %arg8[%c71, %c0_17] : memref<110x128xf32, #tpu.memory_space<vmem>>, vector<8x128xf32>
    tpu.vector_store %arg8[%c71, %c0_17], %36 {strides = array<i32>} : memref<110x128xf32, #tpu.memory_space<vmem>>, vector<8x128xf32>,
    %38 = vector.extract_strided_slice %14 {offsets = [7, 0, 0], sizes = [1, 8, 128], strides = [1, 1, 1]} : vector<8x8x128xf32> to vector<1x8x128xf32>
    %39 = vector.shape_cast %38 : vector<1x8x128xf32> to vector<8x128xf32>
    %c81 = arith.constant 81 : index
    %c0_18 = arith.constant 0 : index
    %40 = vector.load %arg8[%c81, %c0_18] : memref<110x128xf32, #tpu.memory_space<vmem>>, vector<8x128xf32>
    tpu.vector_store %arg8[%c81, %c0_18], %39 {strides = array<i32>} : memref<110x128xf32, #tpu.memory_space<vmem>>, vector<8x128xf32>,
    %c0_19 = arith.constant 0 : index
    %c0_20 = arith.constant 0 : index
    %41 = vector.load %arg8[%c0_19, %c0_20] : memref<110x128xf32, #tpu.memory_space<vmem>>, vector<80x128xf32>
    %42 = arith.truncf %41 : vector<80x128xf32> to vector<80x128xbf16>
    %c0_21 = arith.constant 0 : index
    %c0_22 = arith.constant 0 : index
    %43 = vector.load %arg9[%c0_21, %c0_22] : memref<80x1152xbf16, #tpu.memory_space<vmem>>, vector<80x128xbf16>
    tpu.vector_store %arg9[%c0_21, %c0_22], %42 {strides = array<i32>} : memref<80x1152xbf16, #tpu.memory_space<vmem>>, vector<80x128xbf16>,
    %c1 = arith.constant 1 : index
    %c0_23 = arith.constant 0 : index
    %44 = vector.load %arg8[%c1, %c0_23] : memref<110x128xf32, #tpu.memory_space<vmem>>, vector<80x128xf32>
    %45 = arith.truncf %44 : vector<80x128xf32> to vector<80x128xbf16>
    %c0_24 = arith.constant 0 : index
    %c128 = arith.constant 128 : index
    %46 = vector.load %arg9[%c0_24, %c128] : memref<80x1152xbf16, #tpu.memory_space<vmem>>, vector<80x128xbf16>
    tpu.vector_store %arg9[%c0_24, %c128], %45 {strides = array<i32>} : memref<80x1152xbf16, #tpu.memory_space<vmem>>, vector<80x128xbf16>,
    %c2 = arith.constant 2 : index
    %c0_25 = arith.constant 0 : index
    %47 = vector.load %arg8[%c2, %c0_25] : memref<110x128xf32, #tpu.memory_space<vmem>>, vector<80x128xf32>
    %48 = arith.truncf %47 : vector<80x128xf32> to vector<80x128xbf16>
    %c0_26 = arith.constant 0 : index
    %c256 = arith.constant 256 : index
    %49 = vector.load %arg9[%c0_26, %c256] : memref<80x1152xbf16, #tpu.memory_space<vmem>>, vector<80x128xbf16>
    tpu.vector_store %arg9[%c0_26, %c256], %48 {strides = array<i32>} : memref<80x1152xbf16, #tpu.memory_space<vmem>>, vector<80x128xbf16>,
    %c10 = arith.constant 10 : index
    %c0_27 = arith.constant 0 : index
    %50 = vector.load %arg8[%c10, %c0_27] : memref<110x128xf32, #tpu.memory_space<vmem>>, vector<80x128xf32>
    %51 = arith.truncf %50 : vector<80x128xf32> to vector<80x128xbf16>
    %c0_28 = arith.constant 0 : index
    %c384 = arith.constant 384 : index
    %52 = vector.load %arg9[%c0_28, %c384] : memref<80x1152xbf16, #tpu.memory_space<vmem>>, vector<80x128xbf16>
    tpu.vector_store %arg9[%c0_28, %c384], %51 {strides = array<i32>} : memref<80x1152xbf16, #tpu.memory_space<vmem>>, vector<80x128xbf16>,
    %c11_29 = arith.constant 11 : index
    %c0_30 = arith.constant 0 : index
    %53 = vector.load %arg8[%c11_29, %c0_30] : memref<110x128xf32, #tpu.memory_space<vmem>>, vector<80x128xf32>
    %54 = arith.truncf %53 : vector<80x128xf32> to vector<80x128xbf16>
    %c0_31 = arith.constant 0 : index
    %c512 = arith.constant 512 : index
    %55 = vector.load %arg9[%c0_31, %c512] : memref<80x1152xbf16, #tpu.memory_space<vmem>>, vector<80x128xbf16>
    tpu.vector_store %arg9[%c0_31, %c512], %54 {strides = array<i32>} : memref<80x1152xbf16, #tpu.memory_space<vmem>>, vector<80x128xbf16>,
    %c12 = arith.constant 12 : index
    %c0_32 = arith.constant 0 : index
    %56 = vector.load %arg8[%c12, %c0_32] : memref<110x128xf32, #tpu.memory_space<vmem>>, vector<80x128xf32>
    %57 = arith.truncf %56 : vector<80x128xf32> to vector<80x128xbf16>
    %c0_33 = arith.constant 0 : index
    %c640 = arith.constant 640 : index
    %58 = vector.load %arg9[%c0_33, %c640] : memref<80x1152xbf16, #tpu.memory_space<vmem>>, vector<80x128xbf16>
    tpu.vector_store %arg9[%c0_33, %c640], %57 {strides = array<i32>} : memref<80x1152xbf16, #tpu.memory_space<vmem>>, vector<80x128xbf16>,
    %c20 = arith.constant 20 : index
    %c0_34 = arith.constant 0 : index
    %59 = vector.load %arg8[%c20, %c0_34] : memref<110x128xf32, #tpu.memory_space<vmem>>, vector<80x128xf32>
    %60 = arith.truncf %59 : vector<80x128xf32> to vector<80x128xbf16>
    %c0_35 = arith.constant 0 : index
    %c768 = arith.constant 768 : index
    %61 = vector.load %arg9[%c0_35, %c768] : memref<80x1152xbf16, #tpu.memory_space<vmem>>, vector<80x128xbf16>
    tpu.vector_store %arg9[%c0_35, %c768], %60 {strides = array<i32>} : memref<80x1152xbf16, #tpu.memory_space<vmem>>, vector<80x128xbf16>,
    %c21_36 = arith.constant 21 : index
    %c0_37 = arith.constant 0 : index
    %62 = vector.load %arg8[%c21_36, %c0_37] : memref<110x128xf32, #tpu.memory_space<vmem>>, vector<80x128xf32>
    %63 = arith.truncf %62 : vector<80x128xf32> to vector<80x128xbf16>
    %c0_38 = arith.constant 0 : index
    %c896 = arith.constant 896 : index
    %64 = vector.load %arg9[%c0_38, %c896] : memref<80x1152xbf16, #tpu.memory_space<vmem>>, vector<80x128xbf16>
    tpu.vector_store %arg9[%c0_38, %c896], %63 {strides = array<i32>} : memref<80x1152xbf16, #tpu.memory_space<vmem>>, vector<80x128xbf16>,
    %c22 = arith.constant 22 : index
    %c0_39 = arith.constant 0 : index
    %65 = vector.load %arg8[%c22, %c0_39] : memref<110x128xf32, #tpu.memory_space<vmem>>, vector<80x128xf32>
    %66 = arith.truncf %65 : vector<80x128xf32> to vector<80x128xbf16>
    %c0_40 = arith.constant 0 : index
    %c1024 = arith.constant 1024 : index
    %67 = vector.load %arg9[%c0_40, %c1024] : memref<80x1152xbf16, #tpu.memory_space<vmem>>, vector<80x128xbf16>
    tpu.vector_store %arg9[%c0_40, %c1024], %66 {strides = array<i32>} : memref<80x1152xbf16, #tpu.memory_space<vmem>>, vector<80x128xbf16>,
    %c0_41 = arith.constant 0 : index
    %c0_42 = arith.constant 0 : index
    %68 = vector.load %arg9[%c0_41, %c0_42] : memref<80x1152xbf16, #tpu.memory_space<vmem>>, vector<80x1152xbf16>
    %c0_43 = arith.constant 0 : index
    %c0_44 = arith.constant 0 : index
    %c0_45 = arith.constant 0 : index
    %69 = vector.load %arg4[%c0_43, %c0_44, %c0_45] : memref<2x1152x128xbf16, #tpu.memory_space<vmem>>, vector<1x1152x128xbf16>
    %70 = vector.shape_cast %69 : vector<1x1152x128xbf16> to vector<1152x128xbf16>
    %cst_46 = arith.constant dense<0.000000e+00> : vector<80x128xf32>
    %71 = tpu.matmul %68, %70, %cst_46 {dimension_numbers = #tpu.dot_dimension_numbers<[1], [0], [0], [1], [0, 0, 1, 1], [], []>} : vector<80x1152xbf16>, vector<1152x128xbf16>, vector<80x128xf32> -> vector<80x128xf32>
    %c0_47 = arith.constant 0 : index
    %c0_48 = arith.constant 0 : index
    %72 = vector.load %arg5[%c0_47, %c0_48] : memref<1x128xf32, #tpu.memory_space<vmem>>, vector<1x128xf32>
    %73 = vector.broadcast %72 : vector<1x128xf32> to vector<80x128xf32>
    %74 = arith.addf %71, %73 : vector<80x128xf32>
    %c0_49 = arith.constant 0 : index
    %c0_50 = arith.constant 0 : index
    %75 = vector.load %arg10[%c0_49, %c0_50] : memref<80x128xf32, #tpu.memory_space<vmem>>, vector<80x128xf32>
    tpu.vector_store %arg10[%c0_49, %c0_50], %74 {strides = array<i32>} : memref<80x128xf32, #tpu.memory_space<vmem>>, vector<80x128xf32>,
    %c0_51 = arith.constant 0 : index
    %c0_52 = arith.constant 0 : index
    %76 = vector.load %arg10[%c0_51, %c0_52] : memref<80x128xf32, #tpu.memory_space<vmem>>, vector<8x128xf32>
    %c0_53 = arith.constant 0 : index
    %c0_54 = arith.constant 0 : index
    %c0_55 = arith.constant 0 : index
    %c0_56 = arith.constant 0 : index
    %77 = vector.load %arg6[%c0_53, %c0_54, %c0_55, %c0_56] : memref<1x16x8x128xf32, #tpu.memory_space<vmem>>, vector<1x1x8x128xf32>
    %78 = vector.shape_cast %77 : vector<1x1x8x128xf32> to vector<8x128xf32>
    %79 = vector.shape_cast %76 : vector<8x128xf32> to vector<1x1x8x128xf32>
    tpu.vector_store %arg6[%c0_53, %c0_54, %c0_55, %c0_56], %79 {strides = array<i32>} : memref<1x16x8x128xf32, #tpu.memory_space<vmem>>, vector<1x1x8x128xf32>,
    %c10_57 = arith.constant 10 : index
    %c0_58 = arith.constant 0 : index
    %80 = vector.load %arg10[%c10_57, %c0_58] : memref<80x128xf32, #tpu.memory_space<vmem>>, vector<8x128xf32>
    %c0_59 = arith.constant 0 : index
    %c2_60 = arith.constant 2 : index
    %c0_61 = arith.constant 0 : index
    %c0_62 = arith.constant 0 : index
    %81 = vector.load %arg6[%c0_59, %c2_60, %c0_61, %c0_62] : memref<1x16x8x128xf32, #tpu.memory_space<vmem>>, vector<1x1x8x128xf32>
    %82 = vector.shape_cast %81 : vector<1x1x8x128xf32> to vector<8x128xf32>
    %83 = vector.shape_cast %80 : vector<8x128xf32> to vector<1x1x8x128xf32>
    tpu.vector_store %arg6[%c0_59, %c2_60, %c0_61, %c0_62], %83 {strides = array<i32>} : memref<1x16x8x128xf32, #tpu.memory_space<vmem>>, vector<1x1x8x128xf32>,
    %c20_63 = arith.constant 20 : index
    %c0_64 = arith.constant 0 : index
    %84 = vector.load %arg10[%c20_63, %c0_64] : memref<80x128xf32, #tpu.memory_space<vmem>>, vector<8x128xf32>
    %c0_65 = arith.constant 0 : index
    %c4 = arith.constant 4 : index
    %c0_66 = arith.constant 0 : index
    %c0_67 = arith.constant 0 : index
    %85 = vector.load %arg6[%c0_65, %c4, %c0_66, %c0_67] : memref<1x16x8x128xf32, #tpu.memory_space<vmem>>, vector<1x1x8x128xf32>
    %86 = vector.shape_cast %85 : vector<1x1x8x128xf32> to vector<8x128xf32>
    %87 = vector.shape_cast %84 : vector<8x128xf32> to vector<1x1x8x128xf32>
    tpu.vector_store %arg6[%c0_65, %c4, %c0_66, %c0_67], %87 {strides = array<i32>} : memref<1x16x8x128xf32, #tpu.memory_space<vmem>>, vector<1x1x8x128xf32>,
    %c30 = arith.constant 30 : index
    %c0_68 = arith.constant 0 : index
    %88 = vector.load %arg10[%c30, %c0_68] : memref<80x128xf32, #tpu.memory_space<vmem>>, vector<8x128xf32>
    %c0_69 = arith.constant 0 : index
    %c6 = arith.constant 6 : index
    %c0_70 = arith.constant 0 : index
    %c0_71 = arith.constant 0 : index
    %89 = vector.load %arg6[%c0_69, %c6, %c0_70, %c0_71] : memref<1x16x8x128xf32, #tpu.memory_space<vmem>>, vector<1x1x8x128xf32>
    %90 = vector.shape_cast %89 : vector<1x1x8x128xf32> to vector<8x128xf32>
    %91 = vector.shape_cast %88 : vector<8x128xf32> to vector<1x1x8x128xf32>
    tpu.vector_store %arg6[%c0_69, %c6, %c0_70, %c0_71], %91 {strides = array<i32>} : memref<1x16x8x128xf32, #tpu.memory_space<vmem>>, vector<1x1x8x128xf32>,
    %c40 = arith.constant 40 : index
    %c0_72 = arith.constant 0 : index
    %92 = vector.load %arg10[%c40, %c0_72] : memref<80x128xf32, #tpu.memory_space<vmem>>, vector<8x128xf32>
    %c0_73 = arith.constant 0 : index
    %c8 = arith.constant 8 : index
    %c0_74 = arith.constant 0 : index
    %c0_75 = arith.constant 0 : index
    %93 = vector.load %arg6[%c0_73, %c8, %c0_74, %c0_75] : memref<1x16x8x128xf32, #tpu.memory_space<vmem>>, vector<1x1x8x128xf32>
    %94 = vector.shape_cast %93 : vector<1x1x8x128xf32> to vector<8x128xf32>
    %95 = vector.shape_cast %92 : vector<8x128xf32> to vector<1x1x8x128xf32>
    tpu.vector_store %arg6[%c0_73, %c8, %c0_74, %c0_75], %95 {strides = array<i32>} : memref<1x16x8x128xf32, #tpu.memory_space<vmem>>, vector<1x1x8x128xf32>,
    %c50 = arith.constant 50 : index
    %c0_76 = arith.constant 0 : index
    %96 = vector.load %arg10[%c50, %c0_76] : memref<80x128xf32, #tpu.memory_space<vmem>>, vector<8x128xf32>
    %c0_77 = arith.constant 0 : index
    %c10_78 = arith.constant 10 : index
    %c0_79 = arith.constant 0 : index
    %c0_80 = arith.constant 0 : index
    %97 = vector.load %arg6[%c0_77, %c10_78, %c0_79, %c0_80] : memref<1x16x8x128xf32, #tpu.memory_space<vmem>>, vector<1x1x8x128xf32>
    %98 = vector.shape_cast %97 : vector<1x1x8x128xf32> to vector<8x128xf32>
    %99 = vector.shape_cast %96 : vector<8x128xf32> to vector<1x1x8x128xf32>
    tpu.vector_store %arg6[%c0_77, %c10_78, %c0_79, %c0_80], %99 {strides = array<i32>} : memref<1x16x8x128xf32, #tpu.memory_space<vmem>>, vector<1x1x8x128xf32>,
    %c60 = arith.constant 60 : index
    %c0_81 = arith.constant 0 : index
    %100 = vector.load %arg10[%c60, %c0_81] : memref<80x128xf32, #tpu.memory_space<vmem>>, vector<8x128xf32>
    %c0_82 = arith.constant 0 : index
    %c12_83 = arith.constant 12 : index
    %c0_84 = arith.constant 0 : index
    %c0_85 = arith.constant 0 : index
    %101 = vector.load %arg6[%c0_82, %c12_83, %c0_84, %c0_85] : memref<1x16x8x128xf32, #tpu.memory_space<vmem>>, vector<1x1x8x128xf32>
    %102 = vector.shape_cast %101 : vector<1x1x8x128xf32> to vector<8x128xf32>
    %103 = vector.shape_cast %100 : vector<8x128xf32> to vector<1x1x8x128xf32>
    tpu.vector_store %arg6[%c0_82, %c12_83, %c0_84, %c0_85], %103 {strides = array<i32>} : memref<1x16x8x128xf32, #tpu.memory_space<vmem>>, vector<1x1x8x128xf32>,
    %c70 = arith.constant 70 : index
    %c0_86 = arith.constant 0 : index
    %104 = vector.load %arg10[%c70, %c0_86] : memref<80x128xf32, #tpu.memory_space<vmem>>, vector<8x128xf32>
    %c0_87 = arith.constant 0 : index
    %c14 = arith.constant 14 : index
    %c0_88 = arith.constant 0 : index
    %c0_89 = arith.constant 0 : index
    %105 = vector.load %arg6[%c0_87, %c14, %c0_88, %c0_89] : memref<1x16x8x128xf32, #tpu.memory_space<vmem>>, vector<1x1x8x128xf32>
    %106 = vector.shape_cast %105 : vector<1x1x8x128xf32> to vector<8x128xf32>
    %107 = vector.shape_cast %104 : vector<8x128xf32> to vector<1x1x8x128xf32>
    tpu.vector_store %arg6[%c0_87, %c14, %c0_88, %c0_89], %107 {strides = array<i32>} : memref<1x16x8x128xf32, #tpu.memory_space<vmem>>, vector<1x1x8x128xf32>,
    %c1_90 = arith.constant 1 : index
    %c0_91 = arith.constant 0 : index
    %c0_92 = arith.constant 0 : index
    %108 = vector.load %arg4[%c1_90, %c0_91, %c0_92] : memref<2x1152x128xbf16, #tpu.memory_space<vmem>>, vector<1x1152x128xbf16>
    %109 = vector.shape_cast %108 : vector<1x1152x128xbf16> to vector<1152x128xbf16>
    %cst_93 = arith.constant dense<0.000000e+00> : vector<80x128xf32>
    %110 = tpu.matmul %68, %109, %cst_93 {dimension_numbers = #tpu.dot_dimension_numbers<[1], [0], [0], [1], [0, 0, 1, 1], [], []>} : vector<80x1152xbf16>, vector<1152x128xbf16>, vector<80x128xf32> -> vector<80x128xf32>
    %c0_94 = arith.constant 0 : index
    %c0_95 = arith.constant 0 : index
    %111 = vector.load %arg5[%c0_94, %c0_95] : memref<1x128xf32, #tpu.memory_space<vmem>>, vector<1x128xf32>
    %112 = vector.broadcast %111 : vector<1x128xf32> to vector<80x128xf32>
    %113 = arith.addf %110, %112 : vector<80x128xf32>
    %c0_96 = arith.constant 0 : index
    %c0_97 = arith.constant 0 : index
    %114 = vector.load %arg10[%c0_96, %c0_97] : memref<80x128xf32, #tpu.memory_space<vmem>>, vector<80x128xf32>
    tpu.vector_store %arg10[%c0_96, %c0_97], %113 {strides = array<i32>} : memref<80x128xf32, #tpu.memory_space<vmem>>, vector<80x128xf32>,
    %c0_98 = arith.constant 0 : index
    %c0_99 = arith.constant 0 : index
    %115 = vector.load %arg10[%c0_98, %c0_99] : memref<80x128xf32, #tpu.memory_space<vmem>>, vector<8x128xf32>
    %c0_100 = arith.constant 0 : index
    %c1_101 = arith.constant 1 : index
    %c0_102 = arith.constant 0 : index
    %c0_103 = arith.constant 0 : index
    %116 = vector.load %arg6[%c0_100, %c1_101, %c0_102, %c0_103] : memref<1x16x8x128xf32, #tpu.memory_space<vmem>>, vector<1x1x8x128xf32>
    %117 = vector.shape_cast %116 : vector<1x1x8x128xf32> to vector<8x128xf32>
    %118 = vector.shape_cast %115 : vector<8x128xf32> to vector<1x1x8x128xf32>
    tpu.vector_store %arg6[%c0_100, %c1_101, %c0_102, %c0_103], %118 {strides = array<i32>} : memref<1x16x8x128xf32, #tpu.memory_space<vmem>>, vector<1x1x8x128xf32>,
    %c10_104 = arith.constant 10 : index
    %c0_105 = arith.constant 0 : index
    %119 = vector.load %arg10[%c10_104, %c0_105] : memref<80x128xf32, #tpu.memory_space<vmem>>, vector<8x128xf32>
    %c0_106 = arith.constant 0 : index
    %c3 = arith.constant 3 : index
    %c0_107 = arith.constant 0 : index
    %c0_108 = arith.constant 0 : index
    %120 = vector.load %arg6[%c0_106, %c3, %c0_107, %c0_108] : memref<1x16x8x128xf32, #tpu.memory_space<vmem>>, vector<1x1x8x128xf32>
    %121 = vector.shape_cast %120 : vector<1x1x8x128xf32> to vector<8x128xf32>
    %122 = vector.shape_cast %119 : vector<8x128xf32> to vector<1x1x8x128xf32>
    tpu.vector_store %arg6[%c0_106, %c3, %c0_107, %c0_108], %122 {strides = array<i32>} : memref<1x16x8x128xf32, #tpu.memory_space<vmem>>, vector<1x1x8x128xf32>,
    %c20_109 = arith.constant 20 : index
    %c0_110 = arith.constant 0 : index
    %123 = vector.load %arg10[%c20_109, %c0_110] : memref<80x128xf32, #tpu.memory_space<vmem>>, vector<8x128xf32>
    %c0_111 = arith.constant 0 : index
    %c5 = arith.constant 5 : index
    %c0_112 = arith.constant 0 : index
    %c0_113 = arith.constant 0 : index
    %124 = vector.load %arg6[%c0_111, %c5, %c0_112, %c0_113] : memref<1x16x8x128xf32, #tpu.memory_space<vmem>>, vector<1x1x8x128xf32>
    %125 = vector.shape_cast %124 : vector<1x1x8x128xf32> to vector<8x128xf32>
    %126 = vector.shape_cast %123 : vector<8x128xf32> to vector<1x1x8x128xf32>
    tpu.vector_store %arg6[%c0_111, %c5, %c0_112, %c0_113], %126 {strides = array<i32>} : memref<1x16x8x128xf32, #tpu.memory_space<vmem>>, vector<1x1x8x128xf32>,
    %c30_114 = arith.constant 30 : index
    %c0_115 = arith.constant 0 : index
    %127 = vector.load %arg10[%c30_114, %c0_115] : memref<80x128xf32, #tpu.memory_space<vmem>>, vector<8x128xf32>
    %c0_116 = arith.constant 0 : index
    %c7 = arith.constant 7 : index
    %c0_117 = arith.constant 0 : index
    %c0_118 = arith.constant 0 : index
    %128 = vector.load %arg6[%c0_116, %c7, %c0_117, %c0_118] : memref<1x16x8x128xf32, #tpu.memory_space<vmem>>, vector<1x1x8x128xf32>
    %129 = vector.shape_cast %128 : vector<1x1x8x128xf32> to vector<8x128xf32>
    %130 = vector.shape_cast %127 : vector<8x128xf32> to vector<1x1x8x128xf32>
    tpu.vector_store %arg6[%c0_116, %c7, %c0_117, %c0_118], %130 {strides = array<i32>} : memref<1x16x8x128xf32, #tpu.memory_space<vmem>>, vector<1x1x8x128xf32>,
    %c40_119 = arith.constant 40 : index
    %c0_120 = arith.constant 0 : index
    %131 = vector.load %arg10[%c40_119, %c0_120] : memref<80x128xf32, #tpu.memory_space<vmem>>, vector<8x128xf32>
    %c0_121 = arith.constant 0 : index
    %c9 = arith.constant 9 : index
    %c0_122 = arith.constant 0 : index
    %c0_123 = arith.constant 0 : index
    %132 = vector.load %arg6[%c0_121, %c9, %c0_122, %c0_123] : memref<1x16x8x128xf32, #tpu.memory_space<vmem>>, vector<1x1x8x128xf32>
    %133 = vector.shape_cast %132 : vector<1x1x8x128xf32> to vector<8x128xf32>
    %134 = vector.shape_cast %131 : vector<8x128xf32> to vector<1x1x8x128xf32>
    tpu.vector_store %arg6[%c0_121, %c9, %c0_122, %c0_123], %134 {strides = array<i32>} : memref<1x16x8x128xf32, #tpu.memory_space<vmem>>, vector<1x1x8x128xf32>,
    %c50_124 = arith.constant 50 : index
    %c0_125 = arith.constant 0 : index
    %135 = vector.load %arg10[%c50_124, %c0_125] : memref<80x128xf32, #tpu.memory_space<vmem>>, vector<8x128xf32>
    %c0_126 = arith.constant 0 : index
    %c11_127 = arith.constant 11 : index
    %c0_128 = arith.constant 0 : index
    %c0_129 = arith.constant 0 : index
    %136 = vector.load %arg6[%c0_126, %c11_127, %c0_128, %c0_129] : memref<1x16x8x128xf32, #tpu.memory_space<vmem>>, vector<1x1x8x128xf32>
    %137 = vector.shape_cast %136 : vector<1x1x8x128xf32> to vector<8x128xf32>
    %138 = vector.shape_cast %135 : vector<8x128xf32> to vector<1x1x8x128xf32>
    tpu.vector_store %arg6[%c0_126, %c11_127, %c0_128, %c0_129], %138 {strides = array<i32>} : memref<1x16x8x128xf32, #tpu.memory_space<vmem>>, vector<1x1x8x128xf32>,
    %c60_130 = arith.constant 60 : index
    %c0_131 = arith.constant 0 : index
    %139 = vector.load %arg10[%c60_130, %c0_131] : memref<80x128xf32, #tpu.memory_space<vmem>>, vector<8x128xf32>
    %c0_132 = arith.constant 0 : index
    %c13 = arith.constant 13 : index
    %c0_133 = arith.constant 0 : index
    %c0_134 = arith.constant 0 : index
    %140 = vector.load %arg6[%c0_132, %c13, %c0_133, %c0_134] : memref<1x16x8x128xf32, #tpu.memory_space<vmem>>, vector<1x1x8x128xf32>
    %141 = vector.shape_cast %140 : vector<1x1x8x128xf32> to vector<8x128xf32>
    %142 = vector.shape_cast %139 : vector<8x128xf32> to vector<1x1x8x128xf32>
    tpu.vector_store %arg6[%c0_132, %c13, %c0_133, %c0_134], %142 {strides = array<i32>} : memref<1x16x8x128xf32, #tpu.memory_space<vmem>>, vector<1x1x8x128xf32>,
    %c70_135 = arith.constant 70 : index
    %c0_136 = arith.constant 0 : index
    %143 = vector.load %arg10[%c70_135, %c0_136] : memref<80x128xf32, #tpu.memory_space<vmem>>, vector<8x128xf32>
    %c0_137 = arith.constant 0 : index
    %c15 = arith.constant 15 : index
    %c0_138 = arith.constant 0 : index
    %c0_139 = arith.constant 0 : index
    %144 = vector.load %arg6[%c0_137, %c15, %c0_138, %c0_139] : memref<1x16x8x128xf32, #tpu.memory_space<vmem>>, vector<1x1x8x128xf32>
    %145 = vector.shape_cast %144 : vector<1x1x8x128xf32> to vector<8x128xf32>
    %146 = vector.shape_cast %143 : vector<8x128xf32> to vector<1x1x8x128xf32>
    tpu.vector_store %arg6[%c0_137, %c15, %c0_138, %c0_139], %146 {strides = array<i32>} : memref<1x16x8x128xf32, #tpu.memory_space<vmem>>, vector<1x1x8x128xf32>,
    %c0_140 = arith.constant 0 : index
    %c0_141 = arith.constant 0 : index
    %c0_142 = arith.constant 0 : index
    %c0_143 = arith.constant 0 : index
    %147 = vector.load %arg6[%c0_140, %c0_141, %c0_142, %c0_143] : memref<1x16x8x128xf32, #tpu.memory_space<vmem>>, vector<1x16x8x128xf32>
    %148 = vector.shape_cast %147 : vector<1x16x8x128xf32> to vector<16x8x128xf32>
    %cst_144 = arith.constant dense<0.000000e+00> : vector<8x128xf32>
    %149 = vector.multi_reduction <add>, %148, %cst_144 [0] : vector<16x8x128xf32> to vector<8x128xf32>
    %cst_145 = arith.constant dense<0.000000e+00> : vector<128xf32>
    %150 = vector.multi_reduction <add>, %149, %cst_145 [0] : vector<8x128xf32> to vector<128xf32>
    %151 = vector.shape_cast %150 : vector<128xf32> to vector<1x128xf32>
    %152 = arith.mulf %148, %148 : vector<16x8x128xf32>
    %cst_146 = arith.constant dense<0.000000e+00> : vector<8x128xf32>
    %153 = vector.multi_reduction <add>, %152, %cst_146 [0] : vector<16x8x128xf32> to vector<8x128xf32>
    %cst_147 = arith.constant dense<0.000000e+00> : vector<128xf32>
    %154 = vector.multi_reduction <add>, %153, %cst_147 [0] : vector<8x128xf32> to vector<128xf32>
    %155 = vector.shape_cast %154 : vector<128xf32> to vector<1x128xf32>
    %156 = vector.extract_strided_slice %151 {offsets = [0, 0], sizes = [1, 64], strides = [1, 1]} : vector<1x128xf32> to vector<1x64xf32>
    %157 = vector.extract_strided_slice %151 {offsets = [0, 64], sizes = [1, 64], strides = [1, 1]} : vector<1x128xf32> to vector<1x64xf32>
    %158 = arith.addf %156, %157 : vector<1x64xf32>
    %159 = vector.extract_strided_slice %155 {offsets = [0, 0], sizes = [1, 64], strides = [1, 1]} : vector<1x128xf32> to vector<1x64xf32>
    %160 = vector.extract_strided_slice %155 {offsets = [0, 64], sizes = [1, 64], strides = [1, 1]} : vector<1x128xf32> to vector<1x64xf32>
    %161 = arith.addf %159, %160 : vector<1x64xf32>
    %c0_148 = arith.constant 0 : index
    %c0_149 = arith.constant 0 : index
    %c0_150 = arith.constant 0 : index
    %162 = vector.load %arg7[%c0_148, %c0_149, %c0_150] : memref<1x2x64xf32, #tpu.memory_space<vmem>>, vector<1x1x64xf32>
    %163 = vector.shape_cast %162 : vector<1x1x64xf32> to vector<1x64xf32>
    %164 = vector.shape_cast %158 : vector<1x64xf32> to vector<1x1x64xf32>
    tpu.vector_store %arg7[%c0_148, %c0_149, %c0_150], %164 {strides = array<i32>} : memref<1x2x64xf32, #tpu.memory_space<vmem>>, vector<1x1x64xf32>,
    %c0_151 = arith.constant 0 : index
    %c1_152 = arith.constant 1 : index
    %c0_153 = arith.constant 0 : index
    %165 = vector.load %arg7[%c0_151, %c1_152, %c0_153] : memref<1x2x64xf32, #tpu.memory_space<vmem>>, vector<1x1x64xf32>
    %166 = vector.shape_cast %165 : vector<1x1x64xf32> to vector<1x64xf32>
    %167 = vector.shape_cast %161 : vector<1x64xf32> to vector<1x1x64xf32>
    tpu.vector_store %arg7[%c0_151, %c1_152, %c0_153], %167 {strides = array<i32>} : memref<1x2x64xf32, #tpu.memory_space<vmem>>, vector<1x1x64xf32>,
    return
  }
  func.func @transform_0(%arg0: i32) -> (i32, i32, i32, i32) {
    %c0_i32 = arith.constant 0 : i32
    %c0_i32_0 = arith.constant 0 : i32
    %c0_i32_1 = arith.constant 0 : i32
    %c0_i32_2 = arith.constant 0 : i32
    return %arg0, %c0_i32, %c0_i32_0, %c0_i32_1 : i32, i32, i32, i32
  }
  func.func @transform_1(%arg0: i32) -> (i32, i32) {
    %c0_i32 = arith.constant 0 : i32
    %c0_i32_0 = arith.constant 0 : i32
    %c0_i32_1 = arith.constant 0 : i32
    return %c0_i32, %c0_i32_0 : i32, i32
  }
  func.func @transform_2(%arg0: i32) -> (i32, i32) {
    %c0_i32 = arith.constant 0 : i32
    %c0_i32_0 = arith.constant 0 : i32
    %c0_i32_1 = arith.constant 0 : i32
    return %c0_i32, %c0_i32_0 : i32, i32
  }
  func.func @transform_3(%arg0: i32) -> (i32, i32, i32) {
    %c0_i32 = arith.constant 0 : i32
    %c0_i32_0 = arith.constant 0 : i32
    %c0_i32_1 = arith.constant 0 : i32
    %c0_i32_2 = arith.constant 0 : i32
    return %c0_i32, %c0_i32_0, %c0_i32_1 : i32, i32, i32
  }
  func.func @transform_4(%arg0: i32) -> (i32, i32) {
    %c0_i32 = arith.constant 0 : i32
    %c0_i32_0 = arith.constant 0 : i32
    %c0_i32_1 = arith.constant 0 : i32
    return %c0_i32, %c0_i32_0 : i32, i32
  }
  func.func @transform_5(%arg0: i32) -> (i32, i32, i32, i32) {
    %c0_i32 = arith.constant 0 : i32
    %c0_i32_0 = arith.constant 0 : i32
    %c0_i32_1 = arith.constant 0 : i32
    %c0_i32_2 = arith.constant 0 : i32
    return %arg0, %c0_i32, %c0_i32_0, %c0_i32_1 : i32, i32, i32, i32
  }
  func.func @transform_6(%arg0: i32) -> (i32, i32, i32) {
    %c0_i32 = arith.constant 0 : i32
    %c0_i32_0 = arith.constant 0 : i32
    %c0_i32_1 = arith.constant 0 : i32
    return %arg0, %c0_i32, %c0_i32_0 : i32, i32, i32
  }
}

module attributes {stable_mosaic.version = 11 : i64} {
  func.func @_conv_kernel(%arg0: i32, %arg1: memref<1x4x4x128xf32, #tpu.memory_space<vmem>>, %arg2: memref<1x128xf32, #tpu.memory_space<vmem>>, %arg3: memref<1x128xf32, #tpu.memory_space<vmem>>, %arg4: memref<2x1152x256xbf16, #tpu.memory_space<vmem>>, %arg5: memref<1x256xf32, #tpu.memory_space<vmem>>, %arg6: memref<1x8x4x256xf32, #tpu.memory_space<vmem>>, %arg7: memref<1x2x128xf32, #tpu.memory_space<vmem>>, %arg8: memref<42x128xf32, #tpu.memory_space<vmem>>, %arg9: memref<24x1152xbf16, #tpu.memory_space<vmem>>, %arg10: memref<24x256xf32, #tpu.memory_space<vmem>>) attributes {dimension_semantics = [#tpu.dimension_semantics<parallel>], iteration_bounds = array<i64: 2>, scalar_prefetch = 0 : i64, scratch_operands = 3 : i64, tpu.core_type = #tpu.core_type<tc>, window_params = [{transform_indices = @transform_0, window_bounds = array<i64: 1, 4, 4, 128>}, {pipeline_mode = #tpu.pipeline_mode<synchronous>, transform_indices = @transform_1, window_bounds = array<i64: 1, 128>}, {pipeline_mode = #tpu.pipeline_mode<synchronous>, transform_indices = @transform_2, window_bounds = array<i64: 1, 128>}, {pipeline_mode = #tpu.pipeline_mode<synchronous>, transform_indices = @transform_3, window_bounds = array<i64: 2, 1152, 256>}, {pipeline_mode = #tpu.pipeline_mode<synchronous>, transform_indices = @transform_4, window_bounds = array<i64: 1, 256>}, {transform_indices = @transform_5, window_bounds = array<i64: 1, 8, 4, 256>}, {transform_indices = @transform_6, window_bounds = array<i64: 1, 2, 128>}]} {
    %c0 = arith.constant 0 : index
    %c0_0 = arith.constant 0 : index
    %c0_1 = arith.constant 0 : index
    %c0_2 = arith.constant 0 : index
    %0 = vector.load %arg1[%c0, %c0_0, %c0_1, %c0_2] : memref<1x4x4x128xf32, #tpu.memory_space<vmem>>, vector<1x4x4x128xf32>
    %1 = vector.shape_cast %0 : vector<1x4x4x128xf32> to vector<4x4x128xf32>
    %c0_3 = arith.constant 0 : index
    %c0_4 = arith.constant 0 : index
    %2 = vector.load %arg2[%c0_3, %c0_4] : memref<1x128xf32, #tpu.memory_space<vmem>>, vector<1x128xf32>
    %3 = vector.shape_cast %2 : vector<1x128xf32> to vector<1x1x128xf32>
    %c0_5 = arith.constant 0 : index
    %c0_6 = arith.constant 0 : index
    %4 = vector.load %arg3[%c0_5, %c0_6] : memref<1x128xf32, #tpu.memory_space<vmem>>, vector<1x128xf32>
    %5 = vector.shape_cast %4 : vector<1x128xf32> to vector<1x1x128xf32>
    %6 = vector.broadcast %3 : vector<1x1x128xf32> to vector<4x4x128xf32>
    %7 = arith.mulf %1, %6 : vector<4x4x128xf32>
    %8 = vector.broadcast %5 : vector<1x1x128xf32> to vector<4x4x128xf32>
    %9 = arith.addf %7, %8 : vector<4x4x128xf32>
    %cst = arith.constant 0.000000e+00 : f32
    %10 = vector.broadcast %cst : f32 to vector<42x128xf32>
    %c0_7 = arith.constant 0 : index
    %c0_8 = arith.constant 0 : index
    %11 = vector.load %arg8[%c0_7, %c0_8] : memref<42x128xf32, #tpu.memory_space<vmem>>, vector<42x128xf32>
    tpu.vector_store %arg8[%c0_7, %c0_8], %10 {strides = array<i32>} : memref<42x128xf32, #tpu.memory_space<vmem>>, vector<42x128xf32>,
    %12 = vector.extract_strided_slice %9 {offsets = [0, 0, 0], sizes = [1, 4, 128], strides = [1, 1, 1]} : vector<4x4x128xf32> to vector<1x4x128xf32>
    %13 = vector.shape_cast %12 : vector<1x4x128xf32> to vector<4x128xf32>
    %c7 = arith.constant 7 : index
    %c0_9 = arith.constant 0 : index
    %14 = vector.load %arg8[%c7, %c0_9] : memref<42x128xf32, #tpu.memory_space<vmem>>, vector<4x128xf32>
    tpu.vector_store %arg8[%c7, %c0_9], %13 {strides = array<i32>} : memref<42x128xf32, #tpu.memory_space<vmem>>, vector<4x128xf32>,
    %15 = vector.extract_strided_slice %9 {offsets = [1, 0, 0], sizes = [1, 4, 128], strides = [1, 1, 1]} : vector<4x4x128xf32> to vector<1x4x128xf32>
    %16 = vector.shape_cast %15 : vector<1x4x128xf32> to vector<4x128xf32>
    %c13 = arith.constant 13 : index
    %c0_10 = arith.constant 0 : index
    %17 = vector.load %arg8[%c13, %c0_10] : memref<42x128xf32, #tpu.memory_space<vmem>>, vector<4x128xf32>
    tpu.vector_store %arg8[%c13, %c0_10], %16 {strides = array<i32>} : memref<42x128xf32, #tpu.memory_space<vmem>>, vector<4x128xf32>,
    %18 = vector.extract_strided_slice %9 {offsets = [2, 0, 0], sizes = [1, 4, 128], strides = [1, 1, 1]} : vector<4x4x128xf32> to vector<1x4x128xf32>
    %19 = vector.shape_cast %18 : vector<1x4x128xf32> to vector<4x128xf32>
    %c19 = arith.constant 19 : index
    %c0_11 = arith.constant 0 : index
    %20 = vector.load %arg8[%c19, %c0_11] : memref<42x128xf32, #tpu.memory_space<vmem>>, vector<4x128xf32>
    tpu.vector_store %arg8[%c19, %c0_11], %19 {strides = array<i32>} : memref<42x128xf32, #tpu.memory_space<vmem>>, vector<4x128xf32>,
    %21 = vector.extract_strided_slice %9 {offsets = [3, 0, 0], sizes = [1, 4, 128], strides = [1, 1, 1]} : vector<4x4x128xf32> to vector<1x4x128xf32>
    %22 = vector.shape_cast %21 : vector<1x4x128xf32> to vector<4x128xf32>
    %c25 = arith.constant 25 : index
    %c0_12 = arith.constant 0 : index
    %23 = vector.load %arg8[%c25, %c0_12] : memref<42x128xf32, #tpu.memory_space<vmem>>, vector<4x128xf32>
    tpu.vector_store %arg8[%c25, %c0_12], %22 {strides = array<i32>} : memref<42x128xf32, #tpu.memory_space<vmem>>, vector<4x128xf32>,
    %c0_13 = arith.constant 0 : index
    %c0_14 = arith.constant 0 : index
    %24 = vector.load %arg8[%c0_13, %c0_14] : memref<42x128xf32, #tpu.memory_space<vmem>>, vector<24x128xf32>
    %25 = arith.truncf %24 : vector<24x128xf32> to vector<24x128xbf16>
    %c0_15 = arith.constant 0 : index
    %c0_16 = arith.constant 0 : index
    %26 = vector.load %arg9[%c0_15, %c0_16] : memref<24x1152xbf16, #tpu.memory_space<vmem>>, vector<24x128xbf16>
    tpu.vector_store %arg9[%c0_15, %c0_16], %25 {strides = array<i32>} : memref<24x1152xbf16, #tpu.memory_space<vmem>>, vector<24x128xbf16>,
    %c1 = arith.constant 1 : index
    %c0_17 = arith.constant 0 : index
    %27 = vector.load %arg8[%c1, %c0_17] : memref<42x128xf32, #tpu.memory_space<vmem>>, vector<24x128xf32>
    %28 = arith.truncf %27 : vector<24x128xf32> to vector<24x128xbf16>
    %c0_18 = arith.constant 0 : index
    %c128 = arith.constant 128 : index
    %29 = vector.load %arg9[%c0_18, %c128] : memref<24x1152xbf16, #tpu.memory_space<vmem>>, vector<24x128xbf16>
    tpu.vector_store %arg9[%c0_18, %c128], %28 {strides = array<i32>} : memref<24x1152xbf16, #tpu.memory_space<vmem>>, vector<24x128xbf16>,
    %c2 = arith.constant 2 : index
    %c0_19 = arith.constant 0 : index
    %30 = vector.load %arg8[%c2, %c0_19] : memref<42x128xf32, #tpu.memory_space<vmem>>, vector<24x128xf32>
    %31 = arith.truncf %30 : vector<24x128xf32> to vector<24x128xbf16>
    %c0_20 = arith.constant 0 : index
    %c256 = arith.constant 256 : index
    %32 = vector.load %arg9[%c0_20, %c256] : memref<24x1152xbf16, #tpu.memory_space<vmem>>, vector<24x128xbf16>
    tpu.vector_store %arg9[%c0_20, %c256], %31 {strides = array<i32>} : memref<24x1152xbf16, #tpu.memory_space<vmem>>, vector<24x128xbf16>,
    %c6 = arith.constant 6 : index
    %c0_21 = arith.constant 0 : index
    %33 = vector.load %arg8[%c6, %c0_21] : memref<42x128xf32, #tpu.memory_space<vmem>>, vector<24x128xf32>
    %34 = arith.truncf %33 : vector<24x128xf32> to vector<24x128xbf16>
    %c0_22 = arith.constant 0 : index
    %c384 = arith.constant 384 : index
    %35 = vector.load %arg9[%c0_22, %c384] : memref<24x1152xbf16, #tpu.memory_space<vmem>>, vector<24x128xbf16>
    tpu.vector_store %arg9[%c0_22, %c384], %34 {strides = array<i32>} : memref<24x1152xbf16, #tpu.memory_space<vmem>>, vector<24x128xbf16>,
    %c7_23 = arith.constant 7 : index
    %c0_24 = arith.constant 0 : index
    %36 = vector.load %arg8[%c7_23, %c0_24] : memref<42x128xf32, #tpu.memory_space<vmem>>, vector<24x128xf32>
    %37 = arith.truncf %36 : vector<24x128xf32> to vector<24x128xbf16>
    %c0_25 = arith.constant 0 : index
    %c512 = arith.constant 512 : index
    %38 = vector.load %arg9[%c0_25, %c512] : memref<24x1152xbf16, #tpu.memory_space<vmem>>, vector<24x128xbf16>
    tpu.vector_store %arg9[%c0_25, %c512], %37 {strides = array<i32>} : memref<24x1152xbf16, #tpu.memory_space<vmem>>, vector<24x128xbf16>,
    %c8 = arith.constant 8 : index
    %c0_26 = arith.constant 0 : index
    %39 = vector.load %arg8[%c8, %c0_26] : memref<42x128xf32, #tpu.memory_space<vmem>>, vector<24x128xf32>
    %40 = arith.truncf %39 : vector<24x128xf32> to vector<24x128xbf16>
    %c0_27 = arith.constant 0 : index
    %c640 = arith.constant 640 : index
    %41 = vector.load %arg9[%c0_27, %c640] : memref<24x1152xbf16, #tpu.memory_space<vmem>>, vector<24x128xbf16>
    tpu.vector_store %arg9[%c0_27, %c640], %40 {strides = array<i32>} : memref<24x1152xbf16, #tpu.memory_space<vmem>>, vector<24x128xbf16>,
    %c12 = arith.constant 12 : index
    %c0_28 = arith.constant 0 : index
    %42 = vector.load %arg8[%c12, %c0_28] : memref<42x128xf32, #tpu.memory_space<vmem>>, vector<24x128xf32>
    %43 = arith.truncf %42 : vector<24x128xf32> to vector<24x128xbf16>
    %c0_29 = arith.constant 0 : index
    %c768 = arith.constant 768 : index
    %44 = vector.load %arg9[%c0_29, %c768] : memref<24x1152xbf16, #tpu.memory_space<vmem>>, vector<24x128xbf16>
    tpu.vector_store %arg9[%c0_29, %c768], %43 {strides = array<i32>} : memref<24x1152xbf16, #tpu.memory_space<vmem>>, vector<24x128xbf16>,
    %c13_30 = arith.constant 13 : index
    %c0_31 = arith.constant 0 : index
    %45 = vector.load %arg8[%c13_30, %c0_31] : memref<42x128xf32, #tpu.memory_space<vmem>>, vector<24x128xf32>
    %46 = arith.truncf %45 : vector<24x128xf32> to vector<24x128xbf16>
    %c0_32 = arith.constant 0 : index
    %c896 = arith.constant 896 : index
    %47 = vector.load %arg9[%c0_32, %c896] : memref<24x1152xbf16, #tpu.memory_space<vmem>>, vector<24x128xbf16>
    tpu.vector_store %arg9[%c0_32, %c896], %46 {strides = array<i32>} : memref<24x1152xbf16, #tpu.memory_space<vmem>>, vector<24x128xbf16>,
    %c14 = arith.constant 14 : index
    %c0_33 = arith.constant 0 : index
    %48 = vector.load %arg8[%c14, %c0_33] : memref<42x128xf32, #tpu.memory_space<vmem>>, vector<24x128xf32>
    %49 = arith.truncf %48 : vector<24x128xf32> to vector<24x128xbf16>
    %c0_34 = arith.constant 0 : index
    %c1024 = arith.constant 1024 : index
    %50 = vector.load %arg9[%c0_34, %c1024] : memref<24x1152xbf16, #tpu.memory_space<vmem>>, vector<24x128xbf16>
    tpu.vector_store %arg9[%c0_34, %c1024], %49 {strides = array<i32>} : memref<24x1152xbf16, #tpu.memory_space<vmem>>, vector<24x128xbf16>,
    %c0_35 = arith.constant 0 : index
    %c0_36 = arith.constant 0 : index
    %51 = vector.load %arg9[%c0_35, %c0_36] : memref<24x1152xbf16, #tpu.memory_space<vmem>>, vector<24x1152xbf16>
    %c0_37 = arith.constant 0 : index
    %c0_38 = arith.constant 0 : index
    %c0_39 = arith.constant 0 : index
    %52 = vector.load %arg4[%c0_37, %c0_38, %c0_39] : memref<2x1152x256xbf16, #tpu.memory_space<vmem>>, vector<1x1152x256xbf16>
    %53 = vector.shape_cast %52 : vector<1x1152x256xbf16> to vector<1152x256xbf16>
    %cst_40 = arith.constant dense<0.000000e+00> : vector<24x256xf32>
    %54 = tpu.matmul %51, %53, %cst_40 {dimension_numbers = #tpu.dot_dimension_numbers<[1], [0], [0], [1], [0, 0, 1, 1], [], []>} : vector<24x1152xbf16>, vector<1152x256xbf16>, vector<24x256xf32> -> vector<24x256xf32>
    %c0_41 = arith.constant 0 : index
    %c0_42 = arith.constant 0 : index
    %55 = vector.load %arg5[%c0_41, %c0_42] : memref<1x256xf32, #tpu.memory_space<vmem>>, vector<1x256xf32>
    %56 = vector.broadcast %55 : vector<1x256xf32> to vector<24x256xf32>
    %57 = arith.addf %54, %56 : vector<24x256xf32>
    %c0_43 = arith.constant 0 : index
    %c0_44 = arith.constant 0 : index
    %58 = vector.load %arg10[%c0_43, %c0_44] : memref<24x256xf32, #tpu.memory_space<vmem>>, vector<24x256xf32>
    tpu.vector_store %arg10[%c0_43, %c0_44], %57 {strides = array<i32>} : memref<24x256xf32, #tpu.memory_space<vmem>>, vector<24x256xf32>,
    %c0_45 = arith.constant 0 : index
    %c0_46 = arith.constant 0 : index
    %59 = vector.load %arg10[%c0_45, %c0_46] : memref<24x256xf32, #tpu.memory_space<vmem>>, vector<4x256xf32>
    %c0_47 = arith.constant 0 : index
    %c0_48 = arith.constant 0 : index
    %c0_49 = arith.constant 0 : index
    %c0_50 = arith.constant 0 : index
    %60 = vector.load %arg6[%c0_47, %c0_48, %c0_49, %c0_50] : memref<1x8x4x256xf32, #tpu.memory_space<vmem>>, vector<1x1x4x256xf32>
    %61 = vector.shape_cast %60 : vector<1x1x4x256xf32> to vector<4x256xf32>
    %62 = vector.shape_cast %59 : vector<4x256xf32> to vector<1x1x4x256xf32>
    tpu.vector_store %arg6[%c0_47, %c0_48, %c0_49, %c0_50], %62 {strides = array<i32>} : memref<1x8x4x256xf32, #tpu.memory_space<vmem>>, vector<1x1x4x256xf32>,
    %c6_51 = arith.constant 6 : index
    %c0_52 = arith.constant 0 : index
    %63 = vector.load %arg10[%c6_51, %c0_52] : memref<24x256xf32, #tpu.memory_space<vmem>>, vector<4x256xf32>
    %c0_53 = arith.constant 0 : index
    %c2_54 = arith.constant 2 : index
    %c0_55 = arith.constant 0 : index
    %c0_56 = arith.constant 0 : index
    %64 = vector.load %arg6[%c0_53, %c2_54, %c0_55, %c0_56] : memref<1x8x4x256xf32, #tpu.memory_space<vmem>>, vector<1x1x4x256xf32>
    %65 = vector.shape_cast %64 : vector<1x1x4x256xf32> to vector<4x256xf32>
    %66 = vector.shape_cast %63 : vector<4x256xf32> to vector<1x1x4x256xf32>
    tpu.vector_store %arg6[%c0_53, %c2_54, %c0_55, %c0_56], %66 {strides = array<i32>} : memref<1x8x4x256xf32, #tpu.memory_space<vmem>>, vector<1x1x4x256xf32>,
    %c12_57 = arith.constant 12 : index
    %c0_58 = arith.constant 0 : index
    %67 = vector.load %arg10[%c12_57, %c0_58] : memref<24x256xf32, #tpu.memory_space<vmem>>, vector<4x256xf32>
    %c0_59 = arith.constant 0 : index
    %c4 = arith.constant 4 : index
    %c0_60 = arith.constant 0 : index
    %c0_61 = arith.constant 0 : index
    %68 = vector.load %arg6[%c0_59, %c4, %c0_60, %c0_61] : memref<1x8x4x256xf32, #tpu.memory_space<vmem>>, vector<1x1x4x256xf32>
    %69 = vector.shape_cast %68 : vector<1x1x4x256xf32> to vector<4x256xf32>
    %70 = vector.shape_cast %67 : vector<4x256xf32> to vector<1x1x4x256xf32>
    tpu.vector_store %arg6[%c0_59, %c4, %c0_60, %c0_61], %70 {strides = array<i32>} : memref<1x8x4x256xf32, #tpu.memory_space<vmem>>, vector<1x1x4x256xf32>,
    %c18 = arith.constant 18 : index
    %c0_62 = arith.constant 0 : index
    %71 = vector.load %arg10[%c18, %c0_62] : memref<24x256xf32, #tpu.memory_space<vmem>>, vector<4x256xf32>
    %c0_63 = arith.constant 0 : index
    %c6_64 = arith.constant 6 : index
    %c0_65 = arith.constant 0 : index
    %c0_66 = arith.constant 0 : index
    %72 = vector.load %arg6[%c0_63, %c6_64, %c0_65, %c0_66] : memref<1x8x4x256xf32, #tpu.memory_space<vmem>>, vector<1x1x4x256xf32>
    %73 = vector.shape_cast %72 : vector<1x1x4x256xf32> to vector<4x256xf32>
    %74 = vector.shape_cast %71 : vector<4x256xf32> to vector<1x1x4x256xf32>
    tpu.vector_store %arg6[%c0_63, %c6_64, %c0_65, %c0_66], %74 {strides = array<i32>} : memref<1x8x4x256xf32, #tpu.memory_space<vmem>>, vector<1x1x4x256xf32>,
    %c1_67 = arith.constant 1 : index
    %c0_68 = arith.constant 0 : index
    %c0_69 = arith.constant 0 : index
    %75 = vector.load %arg4[%c1_67, %c0_68, %c0_69] : memref<2x1152x256xbf16, #tpu.memory_space<vmem>>, vector<1x1152x256xbf16>
    %76 = vector.shape_cast %75 : vector<1x1152x256xbf16> to vector<1152x256xbf16>
    %cst_70 = arith.constant dense<0.000000e+00> : vector<24x256xf32>
    %77 = tpu.matmul %51, %76, %cst_70 {dimension_numbers = #tpu.dot_dimension_numbers<[1], [0], [0], [1], [0, 0, 1, 1], [], []>} : vector<24x1152xbf16>, vector<1152x256xbf16>, vector<24x256xf32> -> vector<24x256xf32>
    %c0_71 = arith.constant 0 : index
    %c0_72 = arith.constant 0 : index
    %78 = vector.load %arg5[%c0_71, %c0_72] : memref<1x256xf32, #tpu.memory_space<vmem>>, vector<1x256xf32>
    %79 = vector.broadcast %78 : vector<1x256xf32> to vector<24x256xf32>
    %80 = arith.addf %77, %79 : vector<24x256xf32>
    %c0_73 = arith.constant 0 : index
    %c0_74 = arith.constant 0 : index
    %81 = vector.load %arg10[%c0_73, %c0_74] : memref<24x256xf32, #tpu.memory_space<vmem>>, vector<24x256xf32>
    tpu.vector_store %arg10[%c0_73, %c0_74], %80 {strides = array<i32>} : memref<24x256xf32, #tpu.memory_space<vmem>>, vector<24x256xf32>,
    %c0_75 = arith.constant 0 : index
    %c0_76 = arith.constant 0 : index
    %82 = vector.load %arg10[%c0_75, %c0_76] : memref<24x256xf32, #tpu.memory_space<vmem>>, vector<4x256xf32>
    %c0_77 = arith.constant 0 : index
    %c1_78 = arith.constant 1 : index
    %c0_79 = arith.constant 0 : index
    %c0_80 = arith.constant 0 : index
    %83 = vector.load %arg6[%c0_77, %c1_78, %c0_79, %c0_80] : memref<1x8x4x256xf32, #tpu.memory_space<vmem>>, vector<1x1x4x256xf32>
    %84 = vector.shape_cast %83 : vector<1x1x4x256xf32> to vector<4x256xf32>
    %85 = vector.shape_cast %82 : vector<4x256xf32> to vector<1x1x4x256xf32>
    tpu.vector_store %arg6[%c0_77, %c1_78, %c0_79, %c0_80], %85 {strides = array<i32>} : memref<1x8x4x256xf32, #tpu.memory_space<vmem>>, vector<1x1x4x256xf32>,
    %c6_81 = arith.constant 6 : index
    %c0_82 = arith.constant 0 : index
    %86 = vector.load %arg10[%c6_81, %c0_82] : memref<24x256xf32, #tpu.memory_space<vmem>>, vector<4x256xf32>
    %c0_83 = arith.constant 0 : index
    %c3 = arith.constant 3 : index
    %c0_84 = arith.constant 0 : index
    %c0_85 = arith.constant 0 : index
    %87 = vector.load %arg6[%c0_83, %c3, %c0_84, %c0_85] : memref<1x8x4x256xf32, #tpu.memory_space<vmem>>, vector<1x1x4x256xf32>
    %88 = vector.shape_cast %87 : vector<1x1x4x256xf32> to vector<4x256xf32>
    %89 = vector.shape_cast %86 : vector<4x256xf32> to vector<1x1x4x256xf32>
    tpu.vector_store %arg6[%c0_83, %c3, %c0_84, %c0_85], %89 {strides = array<i32>} : memref<1x8x4x256xf32, #tpu.memory_space<vmem>>, vector<1x1x4x256xf32>,
    %c12_86 = arith.constant 12 : index
    %c0_87 = arith.constant 0 : index
    %90 = vector.load %arg10[%c12_86, %c0_87] : memref<24x256xf32, #tpu.memory_space<vmem>>, vector<4x256xf32>
    %c0_88 = arith.constant 0 : index
    %c5 = arith.constant 5 : index
    %c0_89 = arith.constant 0 : index
    %c0_90 = arith.constant 0 : index
    %91 = vector.load %arg6[%c0_88, %c5, %c0_89, %c0_90] : memref<1x8x4x256xf32, #tpu.memory_space<vmem>>, vector<1x1x4x256xf32>
    %92 = vector.shape_cast %91 : vector<1x1x4x256xf32> to vector<4x256xf32>
    %93 = vector.shape_cast %90 : vector<4x256xf32> to vector<1x1x4x256xf32>
    tpu.vector_store %arg6[%c0_88, %c5, %c0_89, %c0_90], %93 {strides = array<i32>} : memref<1x8x4x256xf32, #tpu.memory_space<vmem>>, vector<1x1x4x256xf32>,
    %c18_91 = arith.constant 18 : index
    %c0_92 = arith.constant 0 : index
    %94 = vector.load %arg10[%c18_91, %c0_92] : memref<24x256xf32, #tpu.memory_space<vmem>>, vector<4x256xf32>
    %c0_93 = arith.constant 0 : index
    %c7_94 = arith.constant 7 : index
    %c0_95 = arith.constant 0 : index
    %c0_96 = arith.constant 0 : index
    %95 = vector.load %arg6[%c0_93, %c7_94, %c0_95, %c0_96] : memref<1x8x4x256xf32, #tpu.memory_space<vmem>>, vector<1x1x4x256xf32>
    %96 = vector.shape_cast %95 : vector<1x1x4x256xf32> to vector<4x256xf32>
    %97 = vector.shape_cast %94 : vector<4x256xf32> to vector<1x1x4x256xf32>
    tpu.vector_store %arg6[%c0_93, %c7_94, %c0_95, %c0_96], %97 {strides = array<i32>} : memref<1x8x4x256xf32, #tpu.memory_space<vmem>>, vector<1x1x4x256xf32>,
    %c0_97 = arith.constant 0 : index
    %c0_98 = arith.constant 0 : index
    %c0_99 = arith.constant 0 : index
    %c0_100 = arith.constant 0 : index
    %98 = vector.load %arg6[%c0_97, %c0_98, %c0_99, %c0_100] : memref<1x8x4x256xf32, #tpu.memory_space<vmem>>, vector<1x8x4x256xf32>
    %99 = vector.shape_cast %98 : vector<1x8x4x256xf32> to vector<8x4x256xf32>
    %cst_101 = arith.constant dense<0.000000e+00> : vector<4x256xf32>
    %100 = vector.multi_reduction <add>, %99, %cst_101 [0] : vector<8x4x256xf32> to vector<4x256xf32>
    %cst_102 = arith.constant dense<0.000000e+00> : vector<256xf32>
    %101 = vector.multi_reduction <add>, %100, %cst_102 [0] : vector<4x256xf32> to vector<256xf32>
    %102 = vector.shape_cast %101 : vector<256xf32> to vector<1x256xf32>
    %103 = arith.mulf %99, %99 : vector<8x4x256xf32>
    %cst_103 = arith.constant dense<0.000000e+00> : vector<4x256xf32>
    %104 = vector.multi_reduction <add>, %103, %cst_103 [0] : vector<8x4x256xf32> to vector<4x256xf32>
    %cst_104 = arith.constant dense<0.000000e+00> : vector<256xf32>
    %105 = vector.multi_reduction <add>, %104, %cst_104 [0] : vector<4x256xf32> to vector<256xf32>
    %106 = vector.shape_cast %105 : vector<256xf32> to vector<1x256xf32>
    %107 = vector.extract_strided_slice %102 {offsets = [0, 0], sizes = [1, 128], strides = [1, 1]} : vector<1x256xf32> to vector<1x128xf32>
    %108 = vector.extract_strided_slice %102 {offsets = [0, 128], sizes = [1, 128], strides = [1, 1]} : vector<1x256xf32> to vector<1x128xf32>
    %109 = arith.addf %107, %108 : vector<1x128xf32>
    %110 = vector.extract_strided_slice %106 {offsets = [0, 0], sizes = [1, 128], strides = [1, 1]} : vector<1x256xf32> to vector<1x128xf32>
    %111 = vector.extract_strided_slice %106 {offsets = [0, 128], sizes = [1, 128], strides = [1, 1]} : vector<1x256xf32> to vector<1x128xf32>
    %112 = arith.addf %110, %111 : vector<1x128xf32>
    %c0_105 = arith.constant 0 : index
    %c0_106 = arith.constant 0 : index
    %c0_107 = arith.constant 0 : index
    %113 = vector.load %arg7[%c0_105, %c0_106, %c0_107] : memref<1x2x128xf32, #tpu.memory_space<vmem>>, vector<1x1x128xf32>
    %114 = vector.shape_cast %113 : vector<1x1x128xf32> to vector<1x128xf32>
    %115 = vector.shape_cast %109 : vector<1x128xf32> to vector<1x1x128xf32>
    tpu.vector_store %arg7[%c0_105, %c0_106, %c0_107], %115 {strides = array<i32>} : memref<1x2x128xf32, #tpu.memory_space<vmem>>, vector<1x1x128xf32>,
    %c0_108 = arith.constant 0 : index
    %c1_109 = arith.constant 1 : index
    %c0_110 = arith.constant 0 : index
    %116 = vector.load %arg7[%c0_108, %c1_109, %c0_110] : memref<1x2x128xf32, #tpu.memory_space<vmem>>, vector<1x1x128xf32>
    %117 = vector.shape_cast %116 : vector<1x1x128xf32> to vector<1x128xf32>
    %118 = vector.shape_cast %112 : vector<1x128xf32> to vector<1x1x128xf32>
    tpu.vector_store %arg7[%c0_108, %c1_109, %c0_110], %118 {strides = array<i32>} : memref<1x2x128xf32, #tpu.memory_space<vmem>>, vector<1x1x128xf32>,
    return
  }
  func.func @transform_0(%arg0: i32) -> (i32, i32, i32, i32) {
    %c0_i32 = arith.constant 0 : i32
    %c0_i32_0 = arith.constant 0 : i32
    %c0_i32_1 = arith.constant 0 : i32
    %c0_i32_2 = arith.constant 0 : i32
    return %arg0, %c0_i32, %c0_i32_0, %c0_i32_1 : i32, i32, i32, i32
  }
  func.func @transform_1(%arg0: i32) -> (i32, i32) {
    %c0_i32 = arith.constant 0 : i32
    %c0_i32_0 = arith.constant 0 : i32
    %c0_i32_1 = arith.constant 0 : i32
    return %c0_i32, %c0_i32_0 : i32, i32
  }
  func.func @transform_2(%arg0: i32) -> (i32, i32) {
    %c0_i32 = arith.constant 0 : i32
    %c0_i32_0 = arith.constant 0 : i32
    %c0_i32_1 = arith.constant 0 : i32
    return %c0_i32, %c0_i32_0 : i32, i32
  }
  func.func @transform_3(%arg0: i32) -> (i32, i32, i32) {
    %c0_i32 = arith.constant 0 : i32
    %c0_i32_0 = arith.constant 0 : i32
    %c0_i32_1 = arith.constant 0 : i32
    %c0_i32_2 = arith.constant 0 : i32
    return %c0_i32, %c0_i32_0, %c0_i32_1 : i32, i32, i32
  }
  func.func @transform_4(%arg0: i32) -> (i32, i32) {
    %c0_i32 = arith.constant 0 : i32
    %c0_i32_0 = arith.constant 0 : i32
    %c0_i32_1 = arith.constant 0 : i32
    return %c0_i32, %c0_i32_0 : i32, i32
  }
  func.func @transform_5(%arg0: i32) -> (i32, i32, i32, i32) {
    %c0_i32 = arith.constant 0 : i32
    %c0_i32_0 = arith.constant 0 : i32
    %c0_i32_1 = arith.constant 0 : i32
    %c0_i32_2 = arith.constant 0 : i32
    return %arg0, %c0_i32, %c0_i32_0, %c0_i32_1 : i32, i32, i32, i32
  }
  func.func @transform_6(%arg0: i32) -> (i32, i32, i32) {
    %c0_i32 = arith.constant 0 : i32
    %c0_i32_0 = arith.constant 0 : i32
    %c0_i32_1 = arith.constant 0 : i32
    return %arg0, %c0_i32, %c0_i32_0 : i32, i32, i32
  }
}

module attributes {stable_mosaic.version = 11 : i64} {
  func.func @_conv_kernel(%arg0: i32, %arg1: memref<1x16x16x64xf32, #tpu.memory_space<vmem>>, %arg2: memref<1x64xf32, #tpu.memory_space<vmem>>, %arg3: memref<1x64xf32, #tpu.memory_space<vmem>>, %arg4: memref<1x576x128xbf16, #tpu.memory_space<vmem>>, %arg5: memref<1x128xf32, #tpu.memory_space<vmem>>, %arg6: memref<1x16x16x128xf32, #tpu.memory_space<vmem>>, %arg7: memref<1x2x128xf32, #tpu.memory_space<vmem>>, %arg8: memref<342x64xf32, #tpu.memory_space<vmem>>, %arg9: memref<288x576xbf16, #tpu.memory_space<vmem>>, %arg10: memref<288x128xf32, #tpu.memory_space<vmem>>) attributes {dimension_semantics = [#tpu.dimension_semantics<parallel>], iteration_bounds = array<i64: 2>, scalar_prefetch = 0 : i64, scratch_operands = 3 : i64, tpu.core_type = #tpu.core_type<tc>, window_params = [{transform_indices = @transform_0, window_bounds = array<i64: 1, 16, 16, 64>}, {pipeline_mode = #tpu.pipeline_mode<synchronous>, transform_indices = @transform_1, window_bounds = array<i64: 1, 64>}, {pipeline_mode = #tpu.pipeline_mode<synchronous>, transform_indices = @transform_2, window_bounds = array<i64: 1, 64>}, {pipeline_mode = #tpu.pipeline_mode<synchronous>, transform_indices = @transform_3, window_bounds = array<i64: 1, 576, 128>}, {pipeline_mode = #tpu.pipeline_mode<synchronous>, transform_indices = @transform_4, window_bounds = array<i64: 1, 128>}, {transform_indices = @transform_5, window_bounds = array<i64: 1, 16, 16, 128>}, {transform_indices = @transform_6, window_bounds = array<i64: 1, 2, 128>}]} {
    %c0 = arith.constant 0 : index
    %c0_0 = arith.constant 0 : index
    %c0_1 = arith.constant 0 : index
    %c0_2 = arith.constant 0 : index
    %0 = vector.load %arg1[%c0, %c0_0, %c0_1, %c0_2] : memref<1x16x16x64xf32, #tpu.memory_space<vmem>>, vector<1x16x16x64xf32>
    %1 = vector.shape_cast %0 : vector<1x16x16x64xf32> to vector<16x16x64xf32>
    %c0_3 = arith.constant 0 : index
    %c0_4 = arith.constant 0 : index
    %2 = vector.load %arg2[%c0_3, %c0_4] : memref<1x64xf32, #tpu.memory_space<vmem>>, vector<1x64xf32>
    %3 = vector.shape_cast %2 : vector<1x64xf32> to vector<1x1x64xf32>
    %c0_5 = arith.constant 0 : index
    %c0_6 = arith.constant 0 : index
    %4 = vector.load %arg3[%c0_5, %c0_6] : memref<1x64xf32, #tpu.memory_space<vmem>>, vector<1x64xf32>
    %5 = vector.shape_cast %4 : vector<1x64xf32> to vector<1x1x64xf32>
    %6 = vector.broadcast %3 : vector<1x1x64xf32> to vector<16x16x64xf32>
    %7 = arith.mulf %1, %6 : vector<16x16x64xf32>
    %8 = vector.broadcast %5 : vector<1x1x64xf32> to vector<16x16x64xf32>
    %9 = arith.addf %7, %8 : vector<16x16x64xf32>
    %cst = arith.constant 0.000000e+00 : f32
    %10 = vector.broadcast %cst : f32 to vector<16x16x64xf32>
    %11 = arith.cmpf ogt, %9, %10 : vector<16x16x64xf32>
    %cst_7 = arith.constant 2.000000e-01 : f32
    %12 = vector.broadcast %cst_7 : f32 to vector<16x16x64xf32>
    %13 = arith.mulf %12, %9 : vector<16x16x64xf32>
    %14 = arith.select %11, %9, %13 : vector<16x16x64xi1>, vector<16x16x64xf32>
    %cst_8 = arith.constant 0.000000e+00 : f32
    %15 = vector.broadcast %cst_8 : f32 to vector<342x64xf32>
    %c0_9 = arith.constant 0 : index
    %c0_10 = arith.constant 0 : index
    %16 = vector.load %arg8[%c0_9, %c0_10] : memref<342x64xf32, #tpu.memory_space<vmem>>, vector<342x64xf32>
    tpu.vector_store %arg8[%c0_9, %c0_10], %15 {strides = array<i32>} : memref<342x64xf32, #tpu.memory_space<vmem>>, vector<342x64xf32>,
    %17 = vector.extract_strided_slice %14 {offsets = [0, 0, 0], sizes = [1, 16, 64], strides = [1, 1, 1]} : vector<16x16x64xf32> to vector<1x16x64xf32>
    %18 = vector.shape_cast %17 : vector<1x16x64xf32> to vector<16x64xf32>
    %c19 = arith.constant 19 : index
    %c0_11 = arith.constant 0 : index
    %19 = vector.load %arg8[%c19, %c0_11] : memref<342x64xf32, #tpu.memory_space<vmem>>, vector<16x64xf32>
    tpu.vector_store %arg8[%c19, %c0_11], %18 {strides = array<i32>} : memref<342x64xf32, #tpu.memory_space<vmem>>, vector<16x64xf32>,
    %20 = vector.extract_strided_slice %14 {offsets = [1, 0, 0], sizes = [1, 16, 64], strides = [1, 1, 1]} : vector<16x16x64xf32> to vector<1x16x64xf32>
    %21 = vector.shape_cast %20 : vector<1x16x64xf32> to vector<16x64xf32>
    %c37 = arith.constant 37 : index
    %c0_12 = arith.constant 0 : index
    %22 = vector.load %arg8[%c37, %c0_12] : memref<342x64xf32, #tpu.memory_space<vmem>>, vector<16x64xf32>
    tpu.vector_store %arg8[%c37, %c0_12], %21 {strides = array<i32>} : memref<342x64xf32, #tpu.memory_space<vmem>>, vector<16x64xf32>,
    %23 = vector.extract_strided_slice %14 {offsets = [2, 0, 0], sizes = [1, 16, 64], strides = [1, 1, 1]} : vector<16x16x64xf32> to vector<1x16x64xf32>
    %24 = vector.shape_cast %23 : vector<1x16x64xf32> to vector<16x64xf32>
    %c55 = arith.constant 55 : index
    %c0_13 = arith.constant 0 : index
    %25 = vector.load %arg8[%c55, %c0_13] : memref<342x64xf32, #tpu.memory_space<vmem>>, vector<16x64xf32>
    tpu.vector_store %arg8[%c55, %c0_13], %24 {strides = array<i32>} : memref<342x64xf32, #tpu.memory_space<vmem>>, vector<16x64xf32>,
    %26 = vector.extract_strided_slice %14 {offsets = [3, 0, 0], sizes = [1, 16, 64], strides = [1, 1, 1]} : vector<16x16x64xf32> to vector<1x16x64xf32>
    %27 = vector.shape_cast %26 : vector<1x16x64xf32> to vector<16x64xf32>
    %c73 = arith.constant 73 : index
    %c0_14 = arith.constant 0 : index
    %28 = vector.load %arg8[%c73, %c0_14] : memref<342x64xf32, #tpu.memory_space<vmem>>, vector<16x64xf32>
    tpu.vector_store %arg8[%c73, %c0_14], %27 {strides = array<i32>} : memref<342x64xf32, #tpu.memory_space<vmem>>, vector<16x64xf32>,
    %29 = vector.extract_strided_slice %14 {offsets = [4, 0, 0], sizes = [1, 16, 64], strides = [1, 1, 1]} : vector<16x16x64xf32> to vector<1x16x64xf32>
    %30 = vector.shape_cast %29 : vector<1x16x64xf32> to vector<16x64xf32>
    %c91 = arith.constant 91 : index
    %c0_15 = arith.constant 0 : index
    %31 = vector.load %arg8[%c91, %c0_15] : memref<342x64xf32, #tpu.memory_space<vmem>>, vector<16x64xf32>
    tpu.vector_store %arg8[%c91, %c0_15], %30 {strides = array<i32>} : memref<342x64xf32, #tpu.memory_space<vmem>>, vector<16x64xf32>,
    %32 = vector.extract_strided_slice %14 {offsets = [5, 0, 0], sizes = [1, 16, 64], strides = [1, 1, 1]} : vector<16x16x64xf32> to vector<1x16x64xf32>
    %33 = vector.shape_cast %32 : vector<1x16x64xf32> to vector<16x64xf32>
    %c109 = arith.constant 109 : index
    %c0_16 = arith.constant 0 : index
    %34 = vector.load %arg8[%c109, %c0_16] : memref<342x64xf32, #tpu.memory_space<vmem>>, vector<16x64xf32>
    tpu.vector_store %arg8[%c109, %c0_16], %33 {strides = array<i32>} : memref<342x64xf32, #tpu.memory_space<vmem>>, vector<16x64xf32>,
    %35 = vector.extract_strided_slice %14 {offsets = [6, 0, 0], sizes = [1, 16, 64], strides = [1, 1, 1]} : vector<16x16x64xf32> to vector<1x16x64xf32>
    %36 = vector.shape_cast %35 : vector<1x16x64xf32> to vector<16x64xf32>
    %c127 = arith.constant 127 : index
    %c0_17 = arith.constant 0 : index
    %37 = vector.load %arg8[%c127, %c0_17] : memref<342x64xf32, #tpu.memory_space<vmem>>, vector<16x64xf32>
    tpu.vector_store %arg8[%c127, %c0_17], %36 {strides = array<i32>} : memref<342x64xf32, #tpu.memory_space<vmem>>, vector<16x64xf32>,
    %38 = vector.extract_strided_slice %14 {offsets = [7, 0, 0], sizes = [1, 16, 64], strides = [1, 1, 1]} : vector<16x16x64xf32> to vector<1x16x64xf32>
    %39 = vector.shape_cast %38 : vector<1x16x64xf32> to vector<16x64xf32>
    %c145 = arith.constant 145 : index
    %c0_18 = arith.constant 0 : index
    %40 = vector.load %arg8[%c145, %c0_18] : memref<342x64xf32, #tpu.memory_space<vmem>>, vector<16x64xf32>
    tpu.vector_store %arg8[%c145, %c0_18], %39 {strides = array<i32>} : memref<342x64xf32, #tpu.memory_space<vmem>>, vector<16x64xf32>,
    %41 = vector.extract_strided_slice %14 {offsets = [8, 0, 0], sizes = [1, 16, 64], strides = [1, 1, 1]} : vector<16x16x64xf32> to vector<1x16x64xf32>
    %42 = vector.shape_cast %41 : vector<1x16x64xf32> to vector<16x64xf32>
    %c163 = arith.constant 163 : index
    %c0_19 = arith.constant 0 : index
    %43 = vector.load %arg8[%c163, %c0_19] : memref<342x64xf32, #tpu.memory_space<vmem>>, vector<16x64xf32>
    tpu.vector_store %arg8[%c163, %c0_19], %42 {strides = array<i32>} : memref<342x64xf32, #tpu.memory_space<vmem>>, vector<16x64xf32>,
    %44 = vector.extract_strided_slice %14 {offsets = [9, 0, 0], sizes = [1, 16, 64], strides = [1, 1, 1]} : vector<16x16x64xf32> to vector<1x16x64xf32>
    %45 = vector.shape_cast %44 : vector<1x16x64xf32> to vector<16x64xf32>
    %c181 = arith.constant 181 : index
    %c0_20 = arith.constant 0 : index
    %46 = vector.load %arg8[%c181, %c0_20] : memref<342x64xf32, #tpu.memory_space<vmem>>, vector<16x64xf32>
    tpu.vector_store %arg8[%c181, %c0_20], %45 {strides = array<i32>} : memref<342x64xf32, #tpu.memory_space<vmem>>, vector<16x64xf32>,
    %47 = vector.extract_strided_slice %14 {offsets = [10, 0, 0], sizes = [1, 16, 64], strides = [1, 1, 1]} : vector<16x16x64xf32> to vector<1x16x64xf32>
    %48 = vector.shape_cast %47 : vector<1x16x64xf32> to vector<16x64xf32>
    %c199 = arith.constant 199 : index
    %c0_21 = arith.constant 0 : index
    %49 = vector.load %arg8[%c199, %c0_21] : memref<342x64xf32, #tpu.memory_space<vmem>>, vector<16x64xf32>
    tpu.vector_store %arg8[%c199, %c0_21], %48 {strides = array<i32>} : memref<342x64xf32, #tpu.memory_space<vmem>>, vector<16x64xf32>,
    %50 = vector.extract_strided_slice %14 {offsets = [11, 0, 0], sizes = [1, 16, 64], strides = [1, 1, 1]} : vector<16x16x64xf32> to vector<1x16x64xf32>
    %51 = vector.shape_cast %50 : vector<1x16x64xf32> to vector<16x64xf32>
    %c217 = arith.constant 217 : index
    %c0_22 = arith.constant 0 : index
    %52 = vector.load %arg8[%c217, %c0_22] : memref<342x64xf32, #tpu.memory_space<vmem>>, vector<16x64xf32>
    tpu.vector_store %arg8[%c217, %c0_22], %51 {strides = array<i32>} : memref<342x64xf32, #tpu.memory_space<vmem>>, vector<16x64xf32>,
    %53 = vector.extract_strided_slice %14 {offsets = [12, 0, 0], sizes = [1, 16, 64], strides = [1, 1, 1]} : vector<16x16x64xf32> to vector<1x16x64xf32>
    %54 = vector.shape_cast %53 : vector<1x16x64xf32> to vector<16x64xf32>
    %c235 = arith.constant 235 : index
    %c0_23 = arith.constant 0 : index
    %55 = vector.load %arg8[%c235, %c0_23] : memref<342x64xf32, #tpu.memory_space<vmem>>, vector<16x64xf32>
    tpu.vector_store %arg8[%c235, %c0_23], %54 {strides = array<i32>} : memref<342x64xf32, #tpu.memory_space<vmem>>, vector<16x64xf32>,
    %56 = vector.extract_strided_slice %14 {offsets = [13, 0, 0], sizes = [1, 16, 64], strides = [1, 1, 1]} : vector<16x16x64xf32> to vector<1x16x64xf32>
    %57 = vector.shape_cast %56 : vector<1x16x64xf32> to vector<16x64xf32>
    %c253 = arith.constant 253 : index
    %c0_24 = arith.constant 0 : index
    %58 = vector.load %arg8[%c253, %c0_24] : memref<342x64xf32, #tpu.memory_space<vmem>>, vector<16x64xf32>
    tpu.vector_store %arg8[%c253, %c0_24], %57 {strides = array<i32>} : memref<342x64xf32, #tpu.memory_space<vmem>>, vector<16x64xf32>,
    %59 = vector.extract_strided_slice %14 {offsets = [14, 0, 0], sizes = [1, 16, 64], strides = [1, 1, 1]} : vector<16x16x64xf32> to vector<1x16x64xf32>
    %60 = vector.shape_cast %59 : vector<1x16x64xf32> to vector<16x64xf32>
    %c271 = arith.constant 271 : index
    %c0_25 = arith.constant 0 : index
    %61 = vector.load %arg8[%c271, %c0_25] : memref<342x64xf32, #tpu.memory_space<vmem>>, vector<16x64xf32>
    tpu.vector_store %arg8[%c271, %c0_25], %60 {strides = array<i32>} : memref<342x64xf32, #tpu.memory_space<vmem>>, vector<16x64xf32>,
    %62 = vector.extract_strided_slice %14 {offsets = [15, 0, 0], sizes = [1, 16, 64], strides = [1, 1, 1]} : vector<16x16x64xf32> to vector<1x16x64xf32>
    %63 = vector.shape_cast %62 : vector<1x16x64xf32> to vector<16x64xf32>
    %c289 = arith.constant 289 : index
    %c0_26 = arith.constant 0 : index
    %64 = vector.load %arg8[%c289, %c0_26] : memref<342x64xf32, #tpu.memory_space<vmem>>, vector<16x64xf32>
    tpu.vector_store %arg8[%c289, %c0_26], %63 {strides = array<i32>} : memref<342x64xf32, #tpu.memory_space<vmem>>, vector<16x64xf32>,
    %c0_27 = arith.constant 0 : index
    %c0_28 = arith.constant 0 : index
    %65 = vector.load %arg8[%c0_27, %c0_28] : memref<342x64xf32, #tpu.memory_space<vmem>>, vector<288x64xf32>
    %66 = arith.truncf %65 : vector<288x64xf32> to vector<288x64xbf16>
    %c0_29 = arith.constant 0 : index
    %c0_30 = arith.constant 0 : index
    %67 = vector.load %arg9[%c0_29, %c0_30] : memref<288x576xbf16, #tpu.memory_space<vmem>>, vector<288x64xbf16>
    tpu.vector_store %arg9[%c0_29, %c0_30], %66 {strides = array<i32>} : memref<288x576xbf16, #tpu.memory_space<vmem>>, vector<288x64xbf16>,
    %c1 = arith.constant 1 : index
    %c0_31 = arith.constant 0 : index
    %68 = vector.load %arg8[%c1, %c0_31] : memref<342x64xf32, #tpu.memory_space<vmem>>, vector<288x64xf32>
    %69 = arith.truncf %68 : vector<288x64xf32> to vector<288x64xbf16>
    %c0_32 = arith.constant 0 : index
    %c64 = arith.constant 64 : index
    %70 = vector.load %arg9[%c0_32, %c64] : memref<288x576xbf16, #tpu.memory_space<vmem>>, vector<288x64xbf16>
    tpu.vector_store %arg9[%c0_32, %c64], %69 {strides = array<i32>} : memref<288x576xbf16, #tpu.memory_space<vmem>>, vector<288x64xbf16>,
    %c2 = arith.constant 2 : index
    %c0_33 = arith.constant 0 : index
    %71 = vector.load %arg8[%c2, %c0_33] : memref<342x64xf32, #tpu.memory_space<vmem>>, vector<288x64xf32>
    %72 = arith.truncf %71 : vector<288x64xf32> to vector<288x64xbf16>
    %c0_34 = arith.constant 0 : index
    %c128 = arith.constant 128 : index
    %73 = vector.load %arg9[%c0_34, %c128] : memref<288x576xbf16, #tpu.memory_space<vmem>>, vector<288x64xbf16>
    tpu.vector_store %arg9[%c0_34, %c128], %72 {strides = array<i32>} : memref<288x576xbf16, #tpu.memory_space<vmem>>, vector<288x64xbf16>,
    %c18 = arith.constant 18 : index
    %c0_35 = arith.constant 0 : index
    %74 = vector.load %arg8[%c18, %c0_35] : memref<342x64xf32, #tpu.memory_space<vmem>>, vector<288x64xf32>
    %75 = arith.truncf %74 : vector<288x64xf32> to vector<288x64xbf16>
    %c0_36 = arith.constant 0 : index
    %c192 = arith.constant 192 : index
    %76 = vector.load %arg9[%c0_36, %c192] : memref<288x576xbf16, #tpu.memory_space<vmem>>, vector<288x64xbf16>
    tpu.vector_store %arg9[%c0_36, %c192], %75 {strides = array<i32>} : memref<288x576xbf16, #tpu.memory_space<vmem>>, vector<288x64xbf16>,
    %c19_37 = arith.constant 19 : index
    %c0_38 = arith.constant 0 : index
    %77 = vector.load %arg8[%c19_37, %c0_38] : memref<342x64xf32, #tpu.memory_space<vmem>>, vector<288x64xf32>
    %78 = arith.truncf %77 : vector<288x64xf32> to vector<288x64xbf16>
    %c0_39 = arith.constant 0 : index
    %c256 = arith.constant 256 : index
    %79 = vector.load %arg9[%c0_39, %c256] : memref<288x576xbf16, #tpu.memory_space<vmem>>, vector<288x64xbf16>
    tpu.vector_store %arg9[%c0_39, %c256], %78 {strides = array<i32>} : memref<288x576xbf16, #tpu.memory_space<vmem>>, vector<288x64xbf16>,
    %c20 = arith.constant 20 : index
    %c0_40 = arith.constant 0 : index
    %80 = vector.load %arg8[%c20, %c0_40] : memref<342x64xf32, #tpu.memory_space<vmem>>, vector<288x64xf32>
    %81 = arith.truncf %80 : vector<288x64xf32> to vector<288x64xbf16>
    %c0_41 = arith.constant 0 : index
    %c320 = arith.constant 320 : index
    %82 = vector.load %arg9[%c0_41, %c320] : memref<288x576xbf16, #tpu.memory_space<vmem>>, vector<288x64xbf16>
    tpu.vector_store %arg9[%c0_41, %c320], %81 {strides = array<i32>} : memref<288x576xbf16, #tpu.memory_space<vmem>>, vector<288x64xbf16>,
    %c36 = arith.constant 36 : index
    %c0_42 = arith.constant 0 : index
    %83 = vector.load %arg8[%c36, %c0_42] : memref<342x64xf32, #tpu.memory_space<vmem>>, vector<288x64xf32>
    %84 = arith.truncf %83 : vector<288x64xf32> to vector<288x64xbf16>
    %c0_43 = arith.constant 0 : index
    %c384 = arith.constant 384 : index
    %85 = vector.load %arg9[%c0_43, %c384] : memref<288x576xbf16, #tpu.memory_space<vmem>>, vector<288x64xbf16>
    tpu.vector_store %arg9[%c0_43, %c384], %84 {strides = array<i32>} : memref<288x576xbf16, #tpu.memory_space<vmem>>, vector<288x64xbf16>,
    %c37_44 = arith.constant 37 : index
    %c0_45 = arith.constant 0 : index
    %86 = vector.load %arg8[%c37_44, %c0_45] : memref<342x64xf32, #tpu.memory_space<vmem>>, vector<288x64xf32>
    %87 = arith.truncf %86 : vector<288x64xf32> to vector<288x64xbf16>
    %c0_46 = arith.constant 0 : index
    %c448 = arith.constant 448 : index
    %88 = vector.load %arg9[%c0_46, %c448] : memref<288x576xbf16, #tpu.memory_space<vmem>>, vector<288x64xbf16>
    tpu.vector_store %arg9[%c0_46, %c448], %87 {strides = array<i32>} : memref<288x576xbf16, #tpu.memory_space<vmem>>, vector<288x64xbf16>,
    %c38 = arith.constant 38 : index
    %c0_47 = arith.constant 0 : index
    %89 = vector.load %arg8[%c38, %c0_47] : memref<342x64xf32, #tpu.memory_space<vmem>>, vector<288x64xf32>
    %90 = arith.truncf %89 : vector<288x64xf32> to vector<288x64xbf16>
    %c0_48 = arith.constant 0 : index
    %c512 = arith.constant 512 : index
    %91 = vector.load %arg9[%c0_48, %c512] : memref<288x576xbf16, #tpu.memory_space<vmem>>, vector<288x64xbf16>
    tpu.vector_store %arg9[%c0_48, %c512], %90 {strides = array<i32>} : memref<288x576xbf16, #tpu.memory_space<vmem>>, vector<288x64xbf16>,
    %c0_49 = arith.constant 0 : index
    %c0_50 = arith.constant 0 : index
    %92 = vector.load %arg9[%c0_49, %c0_50] : memref<288x576xbf16, #tpu.memory_space<vmem>>, vector<288x576xbf16>
    %c0_51 = arith.constant 0 : index
    %c0_52 = arith.constant 0 : index
    %c0_53 = arith.constant 0 : index
    %93 = vector.load %arg4[%c0_51, %c0_52, %c0_53] : memref<1x576x128xbf16, #tpu.memory_space<vmem>>, vector<1x576x128xbf16>
    %94 = vector.shape_cast %93 : vector<1x576x128xbf16> to vector<576x128xbf16>
    %cst_54 = arith.constant dense<0.000000e+00> : vector<288x128xf32>
    %95 = tpu.matmul %92, %94, %cst_54 {dimension_numbers = #tpu.dot_dimension_numbers<[1], [0], [0], [1], [0, 0, 1, 1], [], []>} : vector<288x576xbf16>, vector<576x128xbf16>, vector<288x128xf32> -> vector<288x128xf32>
    %c0_55 = arith.constant 0 : index
    %c0_56 = arith.constant 0 : index
    %96 = vector.load %arg5[%c0_55, %c0_56] : memref<1x128xf32, #tpu.memory_space<vmem>>, vector<1x128xf32>
    %97 = vector.broadcast %96 : vector<1x128xf32> to vector<288x128xf32>
    %98 = arith.addf %95, %97 : vector<288x128xf32>
    %99 = math.tanh %98 : vector<288x128xf32>
    %c0_57 = arith.constant 0 : index
    %c0_58 = arith.constant 0 : index
    %100 = vector.load %arg10[%c0_57, %c0_58] : memref<288x128xf32, #tpu.memory_space<vmem>>, vector<288x128xf32>
    tpu.vector_store %arg10[%c0_57, %c0_58], %99 {strides = array<i32>} : memref<288x128xf32, #tpu.memory_space<vmem>>, vector<288x128xf32>,
    %c0_59 = arith.constant 0 : index
    %c0_60 = arith.constant 0 : index
    %101 = vector.load %arg10[%c0_59, %c0_60] : memref<288x128xf32, #tpu.memory_space<vmem>>, vector<16x128xf32>
    %c0_61 = arith.constant 0 : index
    %c0_62 = arith.constant 0 : index
    %c0_63 = arith.constant 0 : index
    %c0_64 = arith.constant 0 : index
    %102 = vector.load %arg6[%c0_61, %c0_62, %c0_63, %c0_64] : memref<1x16x16x128xf32, #tpu.memory_space<vmem>>, vector<1x1x16x128xf32>
    %103 = vector.shape_cast %102 : vector<1x1x16x128xf32> to vector<16x128xf32>
    %104 = vector.shape_cast %101 : vector<16x128xf32> to vector<1x1x16x128xf32>
    tpu.vector_store %arg6[%c0_61, %c0_62, %c0_63, %c0_64], %104 {strides = array<i32>} : memref<1x16x16x128xf32, #tpu.memory_space<vmem>>, vector<1x1x16x128xf32>,
    %c18_65 = arith.constant 18 : index
    %c0_66 = arith.constant 0 : index
    %105 = vector.load %arg10[%c18_65, %c0_66] : memref<288x128xf32, #tpu.memory_space<vmem>>, vector<16x128xf32>
    %c0_67 = arith.constant 0 : index
    %c1_68 = arith.constant 1 : index
    %c0_69 = arith.constant 0 : index
    %c0_70 = arith.constant 0 : index
    %106 = vector.load %arg6[%c0_67, %c1_68, %c0_69, %c0_70] : memref<1x16x16x128xf32, #tpu.memory_space<vmem>>, vector<1x1x16x128xf32>
    %107 = vector.shape_cast %106 : vector<1x1x16x128xf32> to vector<16x128xf32>
    %108 = vector.shape_cast %105 : vector<16x128xf32> to vector<1x1x16x128xf32>
    tpu.vector_store %arg6[%c0_67, %c1_68, %c0_69, %c0_70], %108 {strides = array<i32>} : memref<1x16x16x128xf32, #tpu.memory_space<vmem>>, vector<1x1x16x128xf32>,
    %c36_71 = arith.constant 36 : index
    %c0_72 = arith.constant 0 : index
    %109 = vector.load %arg10[%c36_71, %c0_72] : memref<288x128xf32, #tpu.memory_space<vmem>>, vector<16x128xf32>
    %c0_73 = arith.constant 0 : index
    %c2_74 = arith.constant 2 : index
    %c0_75 = arith.constant 0 : index
    %c0_76 = arith.constant 0 : index
    %110 = vector.load %arg6[%c0_73, %c2_74, %c0_75, %c0_76] : memref<1x16x16x128xf32, #tpu.memory_space<vmem>>, vector<1x1x16x128xf32>
    %111 = vector.shape_cast %110 : vector<1x1x16x128xf32> to vector<16x128xf32>
    %112 = vector.shape_cast %109 : vector<16x128xf32> to vector<1x1x16x128xf32>
    tpu.vector_store %arg6[%c0_73, %c2_74, %c0_75, %c0_76], %112 {strides = array<i32>} : memref<1x16x16x128xf32, #tpu.memory_space<vmem>>, vector<1x1x16x128xf32>,
    %c54 = arith.constant 54 : index
    %c0_77 = arith.constant 0 : index
    %113 = vector.load %arg10[%c54, %c0_77] : memref<288x128xf32, #tpu.memory_space<vmem>>, vector<16x128xf32>
    %c0_78 = arith.constant 0 : index
    %c3 = arith.constant 3 : index
    %c0_79 = arith.constant 0 : index
    %c0_80 = arith.constant 0 : index
    %114 = vector.load %arg6[%c0_78, %c3, %c0_79, %c0_80] : memref<1x16x16x128xf32, #tpu.memory_space<vmem>>, vector<1x1x16x128xf32>
    %115 = vector.shape_cast %114 : vector<1x1x16x128xf32> to vector<16x128xf32>
    %116 = vector.shape_cast %113 : vector<16x128xf32> to vector<1x1x16x128xf32>
    tpu.vector_store %arg6[%c0_78, %c3, %c0_79, %c0_80], %116 {strides = array<i32>} : memref<1x16x16x128xf32, #tpu.memory_space<vmem>>, vector<1x1x16x128xf32>,
    %c72 = arith.constant 72 : index
    %c0_81 = arith.constant 0 : index
    %117 = vector.load %arg10[%c72, %c0_81] : memref<288x128xf32, #tpu.memory_space<vmem>>, vector<16x128xf32>
    %c0_82 = arith.constant 0 : index
    %c4 = arith.constant 4 : index
    %c0_83 = arith.constant 0 : index
    %c0_84 = arith.constant 0 : index
    %118 = vector.load %arg6[%c0_82, %c4, %c0_83, %c0_84] : memref<1x16x16x128xf32, #tpu.memory_space<vmem>>, vector<1x1x16x128xf32>
    %119 = vector.shape_cast %118 : vector<1x1x16x128xf32> to vector<16x128xf32>
    %120 = vector.shape_cast %117 : vector<16x128xf32> to vector<1x1x16x128xf32>
    tpu.vector_store %arg6[%c0_82, %c4, %c0_83, %c0_84], %120 {strides = array<i32>} : memref<1x16x16x128xf32, #tpu.memory_space<vmem>>, vector<1x1x16x128xf32>,
    %c90 = arith.constant 90 : index
    %c0_85 = arith.constant 0 : index
    %121 = vector.load %arg10[%c90, %c0_85] : memref<288x128xf32, #tpu.memory_space<vmem>>, vector<16x128xf32>
    %c0_86 = arith.constant 0 : index
    %c5 = arith.constant 5 : index
    %c0_87 = arith.constant 0 : index
    %c0_88 = arith.constant 0 : index
    %122 = vector.load %arg6[%c0_86, %c5, %c0_87, %c0_88] : memref<1x16x16x128xf32, #tpu.memory_space<vmem>>, vector<1x1x16x128xf32>
    %123 = vector.shape_cast %122 : vector<1x1x16x128xf32> to vector<16x128xf32>
    %124 = vector.shape_cast %121 : vector<16x128xf32> to vector<1x1x16x128xf32>
    tpu.vector_store %arg6[%c0_86, %c5, %c0_87, %c0_88], %124 {strides = array<i32>} : memref<1x16x16x128xf32, #tpu.memory_space<vmem>>, vector<1x1x16x128xf32>,
    %c108 = arith.constant 108 : index
    %c0_89 = arith.constant 0 : index
    %125 = vector.load %arg10[%c108, %c0_89] : memref<288x128xf32, #tpu.memory_space<vmem>>, vector<16x128xf32>
    %c0_90 = arith.constant 0 : index
    %c6 = arith.constant 6 : index
    %c0_91 = arith.constant 0 : index
    %c0_92 = arith.constant 0 : index
    %126 = vector.load %arg6[%c0_90, %c6, %c0_91, %c0_92] : memref<1x16x16x128xf32, #tpu.memory_space<vmem>>, vector<1x1x16x128xf32>
    %127 = vector.shape_cast %126 : vector<1x1x16x128xf32> to vector<16x128xf32>
    %128 = vector.shape_cast %125 : vector<16x128xf32> to vector<1x1x16x128xf32>
    tpu.vector_store %arg6[%c0_90, %c6, %c0_91, %c0_92], %128 {strides = array<i32>} : memref<1x16x16x128xf32, #tpu.memory_space<vmem>>, vector<1x1x16x128xf32>,
    %c126 = arith.constant 126 : index
    %c0_93 = arith.constant 0 : index
    %129 = vector.load %arg10[%c126, %c0_93] : memref<288x128xf32, #tpu.memory_space<vmem>>, vector<16x128xf32>
    %c0_94 = arith.constant 0 : index
    %c7 = arith.constant 7 : index
    %c0_95 = arith.constant 0 : index
    %c0_96 = arith.constant 0 : index
    %130 = vector.load %arg6[%c0_94, %c7, %c0_95, %c0_96] : memref<1x16x16x128xf32, #tpu.memory_space<vmem>>, vector<1x1x16x128xf32>
    %131 = vector.shape_cast %130 : vector<1x1x16x128xf32> to vector<16x128xf32>
    %132 = vector.shape_cast %129 : vector<16x128xf32> to vector<1x1x16x128xf32>
    tpu.vector_store %arg6[%c0_94, %c7, %c0_95, %c0_96], %132 {strides = array<i32>} : memref<1x16x16x128xf32, #tpu.memory_space<vmem>>, vector<1x1x16x128xf32>,
    %c144 = arith.constant 144 : index
    %c0_97 = arith.constant 0 : index
    %133 = vector.load %arg10[%c144, %c0_97] : memref<288x128xf32, #tpu.memory_space<vmem>>, vector<16x128xf32>
    %c0_98 = arith.constant 0 : index
    %c8 = arith.constant 8 : index
    %c0_99 = arith.constant 0 : index
    %c0_100 = arith.constant 0 : index
    %134 = vector.load %arg6[%c0_98, %c8, %c0_99, %c0_100] : memref<1x16x16x128xf32, #tpu.memory_space<vmem>>, vector<1x1x16x128xf32>
    %135 = vector.shape_cast %134 : vector<1x1x16x128xf32> to vector<16x128xf32>
    %136 = vector.shape_cast %133 : vector<16x128xf32> to vector<1x1x16x128xf32>
    tpu.vector_store %arg6[%c0_98, %c8, %c0_99, %c0_100], %136 {strides = array<i32>} : memref<1x16x16x128xf32, #tpu.memory_space<vmem>>, vector<1x1x16x128xf32>,
    %c162 = arith.constant 162 : index
    %c0_101 = arith.constant 0 : index
    %137 = vector.load %arg10[%c162, %c0_101] : memref<288x128xf32, #tpu.memory_space<vmem>>, vector<16x128xf32>
    %c0_102 = arith.constant 0 : index
    %c9 = arith.constant 9 : index
    %c0_103 = arith.constant 0 : index
    %c0_104 = arith.constant 0 : index
    %138 = vector.load %arg6[%c0_102, %c9, %c0_103, %c0_104] : memref<1x16x16x128xf32, #tpu.memory_space<vmem>>, vector<1x1x16x128xf32>
    %139 = vector.shape_cast %138 : vector<1x1x16x128xf32> to vector<16x128xf32>
    %140 = vector.shape_cast %137 : vector<16x128xf32> to vector<1x1x16x128xf32>
    tpu.vector_store %arg6[%c0_102, %c9, %c0_103, %c0_104], %140 {strides = array<i32>} : memref<1x16x16x128xf32, #tpu.memory_space<vmem>>, vector<1x1x16x128xf32>,
    %c180 = arith.constant 180 : index
    %c0_105 = arith.constant 0 : index
    %141 = vector.load %arg10[%c180, %c0_105] : memref<288x128xf32, #tpu.memory_space<vmem>>, vector<16x128xf32>
    %c0_106 = arith.constant 0 : index
    %c10 = arith.constant 10 : index
    %c0_107 = arith.constant 0 : index
    %c0_108 = arith.constant 0 : index
    %142 = vector.load %arg6[%c0_106, %c10, %c0_107, %c0_108] : memref<1x16x16x128xf32, #tpu.memory_space<vmem>>, vector<1x1x16x128xf32>
    %143 = vector.shape_cast %142 : vector<1x1x16x128xf32> to vector<16x128xf32>
    %144 = vector.shape_cast %141 : vector<16x128xf32> to vector<1x1x16x128xf32>
    tpu.vector_store %arg6[%c0_106, %c10, %c0_107, %c0_108], %144 {strides = array<i32>} : memref<1x16x16x128xf32, #tpu.memory_space<vmem>>, vector<1x1x16x128xf32>,
    %c198 = arith.constant 198 : index
    %c0_109 = arith.constant 0 : index
    %145 = vector.load %arg10[%c198, %c0_109] : memref<288x128xf32, #tpu.memory_space<vmem>>, vector<16x128xf32>
    %c0_110 = arith.constant 0 : index
    %c11 = arith.constant 11 : index
    %c0_111 = arith.constant 0 : index
    %c0_112 = arith.constant 0 : index
    %146 = vector.load %arg6[%c0_110, %c11, %c0_111, %c0_112] : memref<1x16x16x128xf32, #tpu.memory_space<vmem>>, vector<1x1x16x128xf32>
    %147 = vector.shape_cast %146 : vector<1x1x16x128xf32> to vector<16x128xf32>
    %148 = vector.shape_cast %145 : vector<16x128xf32> to vector<1x1x16x128xf32>
    tpu.vector_store %arg6[%c0_110, %c11, %c0_111, %c0_112], %148 {strides = array<i32>} : memref<1x16x16x128xf32, #tpu.memory_space<vmem>>, vector<1x1x16x128xf32>,
    %c216 = arith.constant 216 : index
    %c0_113 = arith.constant 0 : index
    %149 = vector.load %arg10[%c216, %c0_113] : memref<288x128xf32, #tpu.memory_space<vmem>>, vector<16x128xf32>
    %c0_114 = arith.constant 0 : index
    %c12 = arith.constant 12 : index
    %c0_115 = arith.constant 0 : index
    %c0_116 = arith.constant 0 : index
    %150 = vector.load %arg6[%c0_114, %c12, %c0_115, %c0_116] : memref<1x16x16x128xf32, #tpu.memory_space<vmem>>, vector<1x1x16x128xf32>
    %151 = vector.shape_cast %150 : vector<1x1x16x128xf32> to vector<16x128xf32>
    %152 = vector.shape_cast %149 : vector<16x128xf32> to vector<1x1x16x128xf32>
    tpu.vector_store %arg6[%c0_114, %c12, %c0_115, %c0_116], %152 {strides = array<i32>} : memref<1x16x16x128xf32, #tpu.memory_space<vmem>>, vector<1x1x16x128xf32>,
    %c234 = arith.constant 234 : index
    %c0_117 = arith.constant 0 : index
    %153 = vector.load %arg10[%c234, %c0_117] : memref<288x128xf32, #tpu.memory_space<vmem>>, vector<16x128xf32>
    %c0_118 = arith.constant 0 : index
    %c13 = arith.constant 13 : index
    %c0_119 = arith.constant 0 : index
    %c0_120 = arith.constant 0 : index
    %154 = vector.load %arg6[%c0_118, %c13, %c0_119, %c0_120] : memref<1x16x16x128xf32, #tpu.memory_space<vmem>>, vector<1x1x16x128xf32>
    %155 = vector.shape_cast %154 : vector<1x1x16x128xf32> to vector<16x128xf32>
    %156 = vector.shape_cast %153 : vector<16x128xf32> to vector<1x1x16x128xf32>
    tpu.vector_store %arg6[%c0_118, %c13, %c0_119, %c0_120], %156 {strides = array<i32>} : memref<1x16x16x128xf32, #tpu.memory_space<vmem>>, vector<1x1x16x128xf32>,
    %c252 = arith.constant 252 : index
    %c0_121 = arith.constant 0 : index
    %157 = vector.load %arg10[%c252, %c0_121] : memref<288x128xf32, #tpu.memory_space<vmem>>, vector<16x128xf32>
    %c0_122 = arith.constant 0 : index
    %c14 = arith.constant 14 : index
    %c0_123 = arith.constant 0 : index
    %c0_124 = arith.constant 0 : index
    %158 = vector.load %arg6[%c0_122, %c14, %c0_123, %c0_124] : memref<1x16x16x128xf32, #tpu.memory_space<vmem>>, vector<1x1x16x128xf32>
    %159 = vector.shape_cast %158 : vector<1x1x16x128xf32> to vector<16x128xf32>
    %160 = vector.shape_cast %157 : vector<16x128xf32> to vector<1x1x16x128xf32>
    tpu.vector_store %arg6[%c0_122, %c14, %c0_123, %c0_124], %160 {strides = array<i32>} : memref<1x16x16x128xf32, #tpu.memory_space<vmem>>, vector<1x1x16x128xf32>,
    %c270 = arith.constant 270 : index
    %c0_125 = arith.constant 0 : index
    %161 = vector.load %arg10[%c270, %c0_125] : memref<288x128xf32, #tpu.memory_space<vmem>>, vector<16x128xf32>
    %c0_126 = arith.constant 0 : index
    %c15 = arith.constant 15 : index
    %c0_127 = arith.constant 0 : index
    %c0_128 = arith.constant 0 : index
    %162 = vector.load %arg6[%c0_126, %c15, %c0_127, %c0_128] : memref<1x16x16x128xf32, #tpu.memory_space<vmem>>, vector<1x1x16x128xf32>
    %163 = vector.shape_cast %162 : vector<1x1x16x128xf32> to vector<16x128xf32>
    %164 = vector.shape_cast %161 : vector<16x128xf32> to vector<1x1x16x128xf32>
    tpu.vector_store %arg6[%c0_126, %c15, %c0_127, %c0_128], %164 {strides = array<i32>} : memref<1x16x16x128xf32, #tpu.memory_space<vmem>>, vector<1x1x16x128xf32>,
    %c0_129 = arith.constant 0 : index
    %c0_130 = arith.constant 0 : index
    %c0_131 = arith.constant 0 : index
    %c0_132 = arith.constant 0 : index
    %165 = vector.load %arg6[%c0_129, %c0_130, %c0_131, %c0_132] : memref<1x16x16x128xf32, #tpu.memory_space<vmem>>, vector<1x16x16x128xf32>
    %166 = vector.shape_cast %165 : vector<1x16x16x128xf32> to vector<16x16x128xf32>
    %cst_133 = arith.constant dense<0.000000e+00> : vector<16x128xf32>
    %167 = vector.multi_reduction <add>, %166, %cst_133 [0] : vector<16x16x128xf32> to vector<16x128xf32>
    %cst_134 = arith.constant dense<0.000000e+00> : vector<128xf32>
    %168 = vector.multi_reduction <add>, %167, %cst_134 [0] : vector<16x128xf32> to vector<128xf32>
    %169 = vector.shape_cast %168 : vector<128xf32> to vector<1x128xf32>
    %170 = arith.mulf %166, %166 : vector<16x16x128xf32>
    %cst_135 = arith.constant dense<0.000000e+00> : vector<16x128xf32>
    %171 = vector.multi_reduction <add>, %170, %cst_135 [0] : vector<16x16x128xf32> to vector<16x128xf32>
    %cst_136 = arith.constant dense<0.000000e+00> : vector<128xf32>
    %172 = vector.multi_reduction <add>, %171, %cst_136 [0] : vector<16x128xf32> to vector<128xf32>
    %173 = vector.shape_cast %172 : vector<128xf32> to vector<1x128xf32>
    %c0_137 = arith.constant 0 : index
    %c0_138 = arith.constant 0 : index
    %c0_139 = arith.constant 0 : index
    %174 = vector.load %arg7[%c0_137, %c0_138, %c0_139] : memref<1x2x128xf32, #tpu.memory_space<vmem>>, vector<1x1x128xf32>
    %175 = vector.shape_cast %174 : vector<1x1x128xf32> to vector<1x128xf32>
    %176 = vector.shape_cast %169 : vector<1x128xf32> to vector<1x1x128xf32>
    tpu.vector_store %arg7[%c0_137, %c0_138, %c0_139], %176 {strides = array<i32>} : memref<1x2x128xf32, #tpu.memory_space<vmem>>, vector<1x1x128xf32>,
    %c0_140 = arith.constant 0 : index
    %c1_141 = arith.constant 1 : index
    %c0_142 = arith.constant 0 : index
    %177 = vector.load %arg7[%c0_140, %c1_141, %c0_142] : memref<1x2x128xf32, #tpu.memory_space<vmem>>, vector<1x1x128xf32>
    %178 = vector.shape_cast %177 : vector<1x1x128xf32> to vector<1x128xf32>
    %179 = vector.shape_cast %173 : vector<1x128xf32> to vector<1x1x128xf32>
    tpu.vector_store %arg7[%c0_140, %c1_141, %c0_142], %179 {strides = array<i32>} : memref<1x2x128xf32, #tpu.memory_space<vmem>>, vector<1x1x128xf32>,
    return
  }
  func.func @transform_0(%arg0: i32) -> (i32, i32, i32, i32) {
    %c0_i32 = arith.constant 0 : i32
    %c0_i32_0 = arith.constant 0 : i32
    %c0_i32_1 = arith.constant 0 : i32
    %c0_i32_2 = arith.constant 0 : i32
    return %arg0, %c0_i32, %c0_i32_0, %c0_i32_1 : i32, i32, i32, i32
  }
  func.func @transform_1(%arg0: i32) -> (i32, i32) {
    %c0_i32 = arith.constant 0 : i32
    %c0_i32_0 = arith.constant 0 : i32
    %c0_i32_1 = arith.constant 0 : i32
    return %c0_i32, %c0_i32_0 : i32, i32
  }
  func.func @transform_2(%arg0: i32) -> (i32, i32) {
    %c0_i32 = arith.constant 0 : i32
    %c0_i32_0 = arith.constant 0 : i32
    %c0_i32_1 = arith.constant 0 : i32
    return %c0_i32, %c0_i32_0 : i32, i32
  }
  func.func @transform_3(%arg0: i32) -> (i32, i32, i32) {
    %c0_i32 = arith.constant 0 : i32
    %c0_i32_0 = arith.constant 0 : i32
    %c0_i32_1 = arith.constant 0 : i32
    %c0_i32_2 = arith.constant 0 : i32
    return %c0_i32, %c0_i32_0, %c0_i32_1 : i32, i32, i32
  }
  func.func @transform_4(%arg0: i32) -> (i32, i32) {
    %c0_i32 = arith.constant 0 : i32
    %c0_i32_0 = arith.constant 0 : i32
    %c0_i32_1 = arith.constant 0 : i32
    return %c0_i32, %c0_i32_0 : i32, i32
  }
  func.func @transform_5(%arg0: i32) -> (i32, i32, i32, i32) {
    %c0_i32 = arith.constant 0 : i32
    %c0_i32_0 = arith.constant 0 : i32
    %c0_i32_1 = arith.constant 0 : i32
    %c0_i32_2 = arith.constant 0 : i32
    return %arg0, %c0_i32, %c0_i32_0, %c0_i32_1 : i32, i32, i32, i32
  }
  func.func @transform_6(%arg0: i32) -> (i32, i32, i32) {
    %c0_i32 = arith.constant 0 : i32
    %c0_i32_0 = arith.constant 0 : i32
    %c0_i32_1 = arith.constant 0 : i32
    return %arg0, %c0_i32, %c0_i32_0 : i32, i32, i32
  }
}

</mosaic_0001>

<bundles_post_ra>
// kernel: generator_forward.6
= control target key start
LH: loop header
LB: loop body
LE: loop exit
PB: predicated region body
PF: predicated region fallthrough
CT: control target
= control target key end

     0   :  { %6 = vsyncpa [#allocation3], 0  ;;  %s574_s0 = inlined_call_operand.hbm [shape: f32[2,16,128], index: 0, kind: input, shape index: {}]   ;;  %s575_s1 = inlined_call_operand.hbm [shape: f32[2,2,128], index: 1, kind: output, shape index: {}]  }
   0x1   :  { %8 = vsyncpa [#allocation3 + $0x1], 0 }
   0x2   :  { %9 = vsyncpa [#allocation4], 0 }
   0x3   :  { %11 = vsyncpa [#allocation4 + $0x1], 0  ;;  %s413_s6 = smov 0   ;;  %s415_s7 = smov 0  }
   0x4   :  { %s417_s8 = smov 0   ;;  %s419_s9 = smov 0  }
   0x5 LB: > { %s434_s10 = sadd.s32 4294967295, %s397_s9   ;;  %s239_s11 = sadd.s32 4294967294, %s397_s9   ;;  %s397_s9 = sphi %s419_s9, %s588_s9   ;;  %s393_s8 = sphi %s417_s8, %s587_s8   ;;  %s389_s7 = sphi %s415_s7, %s586_s7   ;;  %s385_s6 = sphi %s413_s6, %s585_s6  }
   0x6   : > { %s438_s12 = sadd.s32 1, %s397_s9   ;;  %s24_s13 = sadd.s32 1, %s393_s8 }
   0x7   : > { %s21_s14 = ssub.s32 %s397_s9, %s438_s12  ;;  %p31_p0 = scmp.ne.s32.totalorder %s393_s8, %s389_s7 }
   0x8   : > { %p22_p1 = scmp.eq.s32.totalorder %s21_s14, 0  ;;  %p32_p2 = scmp.eq.s32.totalorder %s397_s9, 0 }
   0x9   : > { %p37_p3 = scmp.ne.s32.totalorder %s389_s7, %s385_s6  ;;  %p38_p4 = scmp.eq.s32.totalorder %s434_s10, 0 }
   0xa   : > { %s450_s15 = scalar_select %p22_p1, %s393_s8, %s24_s13  }
   0xb   : > { %p452_p5 = por %p32_p2, %p31_p0  ;;  %p456_p6 = por %p38_p4, %p37_p3 }
   0xc   : > { %p61_p7 = scmp.eq.s32.totalorder %s434_s10, 1  ;;  %p67_p8 = scmp.eq.s32.totalorder %s239_s11, 1 }
   0xd   : > { %p265_p10 = scmp.lt.s32.totalorder %s397_s9, 2  ;;  %s87_s20 = sand.u32 1, %s393_s8  }
   0xe   : > { %p463_p11 = por %p61_p7, %p31_p0  ;;  %p467_p12 = por %p67_p8, %p37_p3 }
   0xf   : > { %s252_s21 = sshll.u32 %s397_s9, 8  ;;  %s242_s22 = sshll.u32 %s87_s20, 4 }
  0x10   : > { %s579_s18 = scalar_select %p463_p11, 1, 0 }
  0x11   : > { %s580_s19 = scalar_select %p467_p12, 1, 0 }
  0x12   : > { %s476_s25 = scalar_lea.hbm %s574_s0, %s252_s21  ;;  %s91_s26 = scalar_lea.vmem [#allocation2], %s242_s22 }
  0x13   : > { %s98_s27 = sshll.u32 %s91_s26, 4  ;;  %p480_p13 = pnand %p265_p10, %p452_p5  ;;  %s484_s27 = int_to_ptr.vmem [resolvable:$true] %s98_s27 }
  0x14   : > { %s486_s29 = scalar_lea.sflag [#allocation3], %s87_s20  ;;  %s301_s30 = scalar_lea.hbm %s476_s25, 256 }
  0x15   : > { %p302_p0 = scmp.ne.s32.totalorder %s476_s25, %s301_s30  ;;  %p303_p1 = pneg %p480_p13 }
  0x16   : > { %s306_s4 = scalar_lea.hbm %s574_s0, 512  ;;  %p307_p4 = scmp.lt.u32.totalorder %s476_s25, %s574_s0 }
  0x17   : > { %p304_p2 = pnand %p303_p1, %p302_p0  ;;  %p308_p5 = scmp.lt.u32.totalorder %s306_s4, %s301_s30 }
  0x18   : > { %p310_p8 = scmp.lt.u32.totalorder %s301_s30, %s476_s25 }
  0x19   : > { %p305_p3 = pneg %p304_p2  ;;  %p309_p7 = por %p308_p5, %p307_p4 }
  0x1b   : > { %p311_p10 = por %p310_p8, %p309_p7 }
  0x1d   : > { %p312_p9 = pnand %p311_p10, %p305_p3 }
  0x1f   : > { %315 = shalt.err (!%p312_p9)
}
  0x20   : > { %s316_s13 = scalar_lea.vmem %s484_s27, 256  ;;  %s399_s14 = smov [#allocation2]  }
  0x21   : > { %p317_p0 = scmp.ne.s32.totalorder %s484_s27, %s316_s13  ;;  %s321_s16 = sshll.u32 %s399_s14, 4  ;;  %s322_s16 = int_to_ptr.vmem [resolvable:$false] %s321_s16 }
  0x22   : > { %s323_s20 = scalar_lea.vmem %s322_s16, 512  ;;  %p324_p11 = scmp.lt.s32.totalorder %s484_s27, %s322_s16 }
  0x23   : > { %p319_p2 = pnand %p317_p0, %p303_p1  ;;  %p325_p4 = scmp.lt.s32.totalorder %s323_s20, %s316_s13 }
  0x25   : > { %p320_p12 = pneg %p319_p2  ;;  %p326_p5 = por %p325_p4, %p324_p11 }
  0x27   : > { %p327_p7 = pnand %p326_p5, %p320_p12 }
  0x29   : > { %330 = shalt.err (!%p327_p7)
}
  0x2a   : > { %s400_s21 = smov 128   ;;  %s401_s22 = smov 8  }
  0x2b   : > { %260 = dma.hbm_to_vmem [thread:$0]  (!%p480_p13), %s476_s25, 256, %s484_s27, %s486_s29, %s400_s21, %s400_s21, %s401_s22  }
  0x2c   : > { %p245_p9 = scmp.ge.s32.totalorder %s397_s9, 1  ;;  %p106_p1 = scmp.lt.s32.totalorder %s397_s9, 3 }
  0x2e   : > { %p107_p3 = pnand %p245_p9, %p106_p1 }
  0x2f   : > { %s517_s23 = sand.u32 (!%p107_p3), 1, %s389_s7  }
  0x30   : > { %110 = sbr.rel (%p107_p3) target bundleno = 87 (0x57), region = 24  ;;  %s246_s24 = sshll.u32 (!%p107_p3), %s517_s23, 4 }
  0x31   : > { %s113_s26 = scalar_lea.sflag (!%p107_p3), [#allocation3], %s517_s23  ;;  %s116_s30 = scalar_lea.vmem (!%p107_p3), [#allocation2], %s246_s24 }
  0x37   : > { %376 = dma.done.wait (%p456_p6), %s113_s26, 256  }
  0x38   : > { %378 = vsyncadd (%p456_p6), %s113_s26, 4294967040  ;;  %v135_v0 = vld [vmem:[%s116_s30] sm:$0xff]  ;;  %v136_v1 = vld [vmem:[%s116_s30 + $0x8] sm:$0xff]  ;;  %s247_s25 = sshll.u32 %s517_s23, 1  ;;  %s249_s28 = sshll.u32 %s434_s10, 5 }
  0x39   : > { %v137_v2 = vadd.f32 %v136_v1, %v135_v0  ;;  %v145_v3 = vmul.f32 %v135_v0, %v135_v0  ;;  %v146_v4 = vmul.f32 %v136_v1, %v136_v1  ;;  %s134_s17 = scalar_lea.vmem [#allocation5], %s247_s25  ;;  %s532_s3 = scalar_lea.hbm %s575_s1, %s249_s28 }
  0x3a   : > { %s169_s27 = sshll.u32 %s134_s17, 4  ;;  %s156_s4 = scalar_lea.sflag [#allocation4], %s517_s23  ;;  %s527_s27 = int_to_ptr.vmem [resolvable:$true] %s169_s27 }
  0x3b   : > { %v138_v5 = vrot.slane %v137_v2, 4  ;;  %v147_v6 = vadd.f32 %v146_v4, %v145_v3  ;;  %s331_s5 = scalar_lea.vmem %s527_s27, 32  ;;  %p582_p11 = scmp.ne.s32.totalorder %s579_s18, 0 }
  0x3c   : > { %p332_p6 = scmp.ne.s32.totalorder %s527_s27, %s331_s5  ;;  %s402_s10 = smov [#allocation5]  }
  0x3d   : > { %v139_v7 = vadd.f32 %v138_v5, %v137_v2  ;;  %v148_v8 = vrot.slane %v147_v6, 4  ;;  %s335_s11 = sshll.u32 %s402_s10, 4  ;;  %s336_s11 = int_to_ptr.vmem [resolvable:$false] %s335_s11 }
  0x3e   : > { %p333_p12 = pnand %p332_p6, %p582_p11  ;;  %s337_s13 = scalar_lea.vmem %s336_s11, 64 }
  0x3f   : > { %v140_v9 = vrot.slane %v139_v7, 2  ;;  %v149_v10 = vadd.f32 %v148_v8, %v147_v6  ;;  %p338_p8 = scmp.lt.s32.totalorder %s527_s27, %s336_s11  ;;  %p339_p10 = scmp.lt.s32.totalorder %s337_s13, %s331_s5 }
  0x40   : > { %p334_p13 = pneg %p333_p12 }
  0x41   : > { %v141_v11 = vadd.f32 %v140_v9, %v139_v7  ;;  %v150_v12 = vrot.slane %v149_v10, 2  ;;  %p340_p0 = por %p339_p10, %p338_p8 }
  0x43   : > { %v142_v13 = vrot.slane %v141_v11, 1  ;;  %v151_v14 = vadd.f32 %v150_v12, %v149_v10  ;;  %p341_p2 = pnand %p340_p0, %p334_p13 }
  0x45   : > { %v143_v15 = vadd.f32 %v142_v13, %v141_v11  ;;  %v152_v16 = vrot.slane %v151_v14, 1 }
  0x47   : > { %144 = vst [vmem:[%s134_s17] sm:$0x1] %v143_v15  ;;  %v153_v17 = vadd.f32 %v152_v16, %v151_v14 }
  0x49   : > { %154 = vst [vmem:[%s134_s17 + $0x1] sm:$0x1] %v153_v17 }
  0x4a   : > { %344 = shalt.err (!%p341_p2)
}
  0x4b   : > { %s345_s14 = scalar_lea.hbm %s532_s3, 32  ;;  %s349_s21 = scalar_lea.hbm %s575_s1, 64 }
  0x4c   : > { %p346_p4 = scmp.ne.s32.totalorder %s532_s3, %s345_s14  ;;  %p350_p9 = scmp.lt.u32.totalorder %s532_s3, %s575_s1 }
  0x4d   : > { %p351_p1 = scmp.lt.u32.totalorder %s349_s21, %s345_s14  ;;  %p353_p6 = scmp.lt.u32.totalorder %s345_s14, %s532_s3 }
  0x4e   : > { %p347_p5 = pnand %p346_p4, %p582_p11 }
  0x4f   : > { %p352_p3 = por %p351_p1, %p350_p9 }
  0x50   : > { %p348_p7 = pneg %p347_p5 }
  0x51   : > { %p354_p12 = por %p353_p6, %p352_p3 }
  0x53   : > { %p355_p13 = pnand %p354_p12, %p348_p7 }
  0x55   : > { %358 = shalt.err (!%p355_p13)
}
  0x56   : > { %255 = dma.vmem_to_hbm [thread:$0]  (%p582_p11), %s527_s27, 32, %s532_s3, %s156_s4  }
  0x57 PF: > { %s181_s24 = sand.u32 1, %s385_s6   ;;  %p583_p8 = scmp.ne.s32.totalorder %s580_s19, 0 }
  0x58   : > { %p584_p10 = scmp.ge.s32.totalorder %s397_s9, 2  ;;  %s182_s26 = scalar_lea.sflag [#allocation4], %s181_s24 }
  0x5a   : > { %p262_p0 = pnand %p584_p10, %p583_p8 }
  0x5c   : > { %380 = dma.done.wait (!%p262_p0), %s182_s26, 32  }
  0x5d   : > { %382 = vsyncadd (!%p262_p0), %s182_s26, 4294967264  ;;  %p14_p2 = scmp.ge.s32.totalorder %s438_s12, 4   ;;  %s585_s6 = smov %s389_s7 }
  0x5e   : > { %s586_s7 = smov %s393_s8  ;;  %s587_s8 = smov %s450_s15 }
  0x5f   : > { %s588_s9 = smov %s438_s12  ;;  %16 = sbr.rel (!%p14_p2) target bundleno = 5 (0x5), region = 69 }
  0x66   :  { %187 = vsyncpa [#allocation3], 1 }
  0x67   :  { %189 = vsyncpa [#allocation3 + $0x1], 1 }
  0x68   :  { %190 = vsyncpa [#allocation4], 1 }
  0x69   :  { %192 = vsyncpa [#allocation4 + $0x1], 1 }

// kernel: generator_forward.5
= control target key start
LH: loop header
LB: loop body
LE: loop exit
PB: predicated region body
PF: predicated region fallthrough
CT: control target
= control target key end

     0   :  { %8 = vsyncpa [#allocation3], 0  ;;  %s1035_s0 = inlined_call_operand.hbm [shape: bf16[2,32], index: 0, kind: input, shape index: {}]   ;;  %s1036_s1 = inlined_call_operand.hbm [shape: bf16[32,2048], index: 1, kind: input, shape index: {}]   ;;  %s1037_s2 = inlined_call_operand.hbm [shape: f32[1,2048], index: 2, kind: input, shape index: {}]   ;;  %s1038_s3 = inlined_call_operand.hbm [shape: f32[2,2048], index: 3, kind: output, shape index: {}]  }
   0x1   :  { %9 = vsyncpa [#allocation6], 0 }
   0x2   :  { %10 = vsyncpa [#allocation4], 0  ;;  %s912_s12 = smov [#allocation5]   ;;  %s818_s16 = scalar_lea.hbm %s1036_s1, 4096 }
   0x3   :  { %s26_s13 = sshll.u32 %s912_s12, 4  ;;  %p819_p0 = scmp.ne.s32.totalorder %s1036_s1, %s818_s16  ;;  %s27_s13 = int_to_ptr.vmem [resolvable:$true] %s26_s13 }
   0x4   :  { %p822_p1 = scmp.lt.u32.totalorder %s818_s16, %s1036_s1 }
   0x6   :  { %p824_p2 = pnand %p822_p1, %p819_p0 }
   0x8   :  { %827 = shalt.err (!%p824_p2)
}
   0x9   :  { %s828_s21 = scalar_lea.vmem %s27_s13, 4096  ;;  %p833_p4 = scmp.lt.s32.totalorder %s27_s13, %s27_s13 }
   0xa   :  { %p829_p3 = scmp.ne.s32.totalorder %s27_s13, %s828_s21  ;;  %p834_p5 = scmp.lt.s32.totalorder %s828_s21, %s828_s21 }
   0xc   :  { %p835_p6 = por %p834_p5, %p833_p4 }
   0xe   :  { %p836_p7 = pnand %p835_p6, %p829_p3 }
  0x10   :  { %839 = shalt.err (!%p836_p7)
}
  0x11   :  { %s913_s22 = smov 1024   ;;  %s914_s23 = smov 64  }
  0x12   :  { %32 = dma.hbm_to_vmem [thread:$0]  %s1036_s1, 4096, %s27_s13, [#allocation6], %s913_s22, %s913_s22, %s914_s23  }
  0x13   :  { %s915_s26 = smov [#allocation2]   ;;  %s916_s28 = smov [#allocation7]  }
  0x14   :  { %s17_s27 = sshll.u32 %s915_s26, 4  ;;  %s39_s29 = sshll.u32 %s916_s28, 4  ;;  %s18_s27 = int_to_ptr.vmem [resolvable:$true] %s17_s27  ;;  %s40_s29 = int_to_ptr.vmem [resolvable:$true] %s39_s29 }
  0x15   :  { %s840_s5 = scalar_lea.hbm %s1035_s0, 16 }
  0x16   :  { %p841_p8 = scmp.ne.s32.totalorder %s1035_s0, %s840_s5  ;;  %p844_p9 = scmp.lt.u32.totalorder %s840_s5, %s1035_s0 }
  0x18   :  { %p846_p10 = pnand %p844_p9, %p841_p8 }
  0x1a   :  { %849 = shalt.err (!%p846_p10)
}
  0x1b   :  { %s850_s1 = scalar_lea.vmem %s18_s27, 16  ;;  %s854_s10 = scalar_lea.vmem %s18_s27, 32 }
  0x1c   :  { %p851_p11 = scmp.ne.s32.totalorder %s18_s27, %s850_s1  ;;  %p855_p12 = scmp.lt.s32.totalorder %s18_s27, %s18_s27 }
  0x1d   :  { %p856_p13 = scmp.lt.s32.totalorder %s854_s10, %s850_s1 }
  0x1f   :  { %p857_p0 = por %p856_p13, %p855_p12 }
  0x21   :  { %p858_p1 = pnand %p857_p0, %p851_p11 }
  0x23   :  { %861 = shalt.err (!%p858_p1)
}
  0x24   :  { %20 = dma.hbm_to_vmem [thread:$0]  %s1035_s0, 16, %s18_s27, [#allocation3]  }
  0x25   :  { %s862_s15 = scalar_lea.hbm %s1037_s2, 256 }
  0x26   :  { %p863_p2 = scmp.ne.s32.totalorder %s1037_s2, %s862_s15  ;;  %p866_p3 = scmp.lt.u32.totalorder %s862_s15, %s1037_s2 }
  0x28   :  { %p868_p4 = pnand %p866_p3, %p863_p2 }
  0x2a   :  { %871 = shalt.err (!%p868_p4)
}
  0x2b   :  { %s872_s20 = scalar_lea.vmem %s40_s29, 256  ;;  %p877_p6 = scmp.lt.s32.totalorder %s40_s29, %s40_s29 }
  0x2c   :  { %p873_p5 = scmp.ne.s32.totalorder %s40_s29, %s872_s20  ;;  %p878_p7 = scmp.lt.s32.totalorder %s872_s20, %s872_s20 }
  0x2e   :  { %p879_p8 = por %p878_p7, %p877_p6 }
  0x30   :  { %p880_p9 = pnand %p879_p8, %p873_p5 }
  0x32   :  { %883 = shalt.err (!%p880_p9)
}
  0x33   :  { %42 = dma.hbm_to_vmem [thread:$0]  %s1037_s2, 256, %s40_s29, [#allocation6]  }
  0x34   :  { %906 = dma.done.wait [#allocation3], 16  }
  0x35   :  { %907 = vsyncadd [#allocation3], 4294967280 }
  0x36   :  { %908 = dma.done.wait [#allocation6], 4352  }
  0x37   :  { %909 = vsyncadd [#allocation6], 4294962944  ;;  %v917_v0 = vmov 0   ;;  %v54_v1 = vld [vmem:[#allocation5] sm:$0xff]  ;;  %v55_v3 = vld [vmem:[#allocation5 + $0x8] sm:$0xff]  ;;  %vm330_vm0 = vcmask 261120  }
  0x38   :  { %366 = vmatprep.mubr.bf16.mxu0 %v917_v0  ;;  %407 = vmatprep.mubr.bf16.mxu1 %v917_v0  ;;  %v62_v2 = vld [vmem:[#allocation5 + $0x40] sm:$0xff]  ;;  %v63_v5 = vld [vmem:[#allocation5 + $0x48] sm:$0xff]  ;;  %v56_v15 = vld [vmem:[#allocation5 + $0x10] sm:$0xff]  ;;  %s919_s2 = smov [#allocation8]  }
  0x39   :  { %v771_v4 = vcombine.high %v54_v1, %v62_v2  ;;  %v770_v6 = vcombine.low %v54_v1, %v62_v2  ;;  %v70_v7 = vld [vmem:[#allocation5 + $0x80] sm:$0xff]  ;;  %v773_v9 = vcombine.high %v55_v3, %v63_v5  ;;  %v772_v10 = vcombine.low %v55_v3, %v63_v5  ;;  %v71_v12 = vld [vmem:[#allocation5 + $0x88] sm:$0xff]  ;;  %v64_v16 = vld [vmem:[#allocation5 + $0x50] sm:$0xff]  ;;  %s760_s22 = sshll.u32 %s919_s2, 4  ;;  %s761_s22 = int_to_ptr.vmem [resolvable:$true] %s760_s22 }
  0x3a   :  { %v78_v8 = vld [vmem:[#allocation5 + $0xc0] sm:$0xff]  ;;  %v79_v13 = vld [vmem:[#allocation5 + $0xc8] sm:$0xff]  ;;  %v57_v17 = vld [vmem:[#allocation5 + $0x18] sm:$0xff]  ;;  %v775_v21 = vcombine.high %v56_v15, %v64_v16  ;;  %v774_v28 = vcombine.low %v56_v15, %v64_v16  ;;  %v90_v3 = vlaneseq  ;;  %s884_s23 = scalar_lea.vmem %s761_s22, 512  ;;  %p889_p11 = scmp.lt.s32.totalorder %s761_s22, %s761_s22 }
  0x3b   :  { %v787_v11 = vcombine.high %v70_v7, %v78_v8  ;;  %334 = vmatprep.subr.bf16.mxu0 %v771_v4  ;;  %v789_v14 = vcombine.high %v71_v12, %v79_v13  ;;  %375 = vmatprep.subr.bf16.mxu1 %v773_v9  ;;  %v786_v18 = vcombine.low %v70_v7, %v78_v8  ;;  %v65_v19 = vld [vmem:[#allocation5 + $0x58] sm:$0xff]  ;;  %v72_v23 = vld [vmem:[#allocation5 + $0x90] sm:$0xff]  ;;  %v58_v32 = vld [vmem:[#allocation5 + $0x20] sm:$0xff]  ;;  %p885_p10 = scmp.ne.s32.totalorder %s761_s22, %s884_s23  ;;  %p890_p12 = scmp.lt.s32.totalorder %s884_s23, %s884_s23 }
  0x3c   :  { %335 = vmatpush1.bf16.msra.mxu0 %v770_v6  ;;  %376 = vmatpush1.bf16.msra.mxu1 %v772_v10  ;;  %v788_v20 = vcombine.low %v71_v12, %v79_v13  ;;  %v777_v22 = vcombine.high %v57_v17, %v65_v19  ;;  %v80_v24 = vld [vmem:[#allocation5 + $0xd0] sm:$0xff]  ;;  %v73_v25 = vld [vmem:[#allocation5 + $0x98] sm:$0xff]  ;;  %v776_v29 = vcombine.low %v57_v17, %v65_v19  ;;  %v66_v33 = vld [vmem:[#allocation5 + $0x60] sm:$0xff]  ;;  %v1002_v4 = vshrl.u32 %v90_v3, 7 }
  0x3d   :  { %336 = vmatprep.subr.bf16.mxu0 %v787_v11  ;;  %377 = vmatprep.subr.bf16.mxu1 %v789_v14  ;;  %v81_v26 = vld [vmem:[#allocation5 + $0xd8] sm:$0xff]  ;;  %v791_v30 = vcombine.high %v72_v23, %v80_v24  ;;  %v59_v34 = vld [vmem:[#allocation5 + $0x28] sm:$0xff]  ;;  %v790_v36 = vcombine.low %v72_v23, %v80_v24  ;;  %v779_v38 = vcombine.high %v58_v32, %v66_v33  ;;  %v74_v40 = vld [vmem:[#allocation5 + $0xa0] sm:$0xff]  ;;  %v918_v6 = vmov 1983009808   ;;  %p891_p13 = por %p890_p12, %p889_p11 }
  0x3e   :  { %v978_v27 = vld [vmem:[#allocation2] sm:$0x1]  ;;  %v793_v31 = vcombine.high %v73_v25, %v81_v26  ;;  %v67_v35 = vld [vmem:[#allocation5 + $0x68] sm:$0xff]  ;;  %v792_v37 = vcombine.low %v73_v25, %v81_v26  ;;  %v82_v41 = vld [vmem:[#allocation5 + $0xe0] sm:$0xff]  ;;  %v778_v44 = vcombine.low %v58_v32, %v66_v33  ;;  %v92_v5 = vsub.s32 0, %v1002_v4 }
  0x3f   :  { %v781_v39 = vcombine.high %v59_v34, %v67_v35  ;;  %v75_v42 = vld [vmem:[#allocation5 + $0xa8] sm:$0xff]  ;;  %v780_v45 = vcombine.low %v59_v34, %v67_v35  ;;  %v795_v46 = vcombine.high %v74_v40, %v82_v41  ;;  %v60_v48 = vld [vmem:[#allocation5 + $0x30] sm:$0xff]  ;;  %v61_v50 = vld [vmem:[#allocation5 + $0x38] sm:$0xff]  ;;  %v794_v52 = vcombine.low %v74_v40, %v82_v41  ;;  %p892_p0 = pnand %p891_p13, %p885_p10 }
  0x40   :  { %337 = vmatpush1.bf16.msra.mxu0 %v786_v18  ;;  %378 = vmatpush1.bf16.msra.mxu1 %v788_v20  ;;  %v83_v43 = vld [vmem:[#allocation5 + $0xe8] sm:$0xff]  ;;  %v68_v49 = vld [vmem:[#allocation5 + $0x70] sm:$0xff]  ;;  %v69_v51 = vld [vmem:[#allocation5 + $0x78] sm:$0xff]  ;;  %v681_v7 = vunpack.c.l.s4 %v918_v6  ;;  %v100_v9 = vsub.s32 2, %v1002_v4  ;;  %v104_v10 = vsub.s32 3, %v1002_v4  ;;  %v116_v26 = vsub.s32 6, %v1002_v4 }
  0x41   :  { %416 = vmatprep.subr.bf16.mxu0 %v775_v21  ;;  %457 = vmatprep.subr.bf16.mxu1 %v777_v22  ;;  %v797_v47 = vcombine.high %v75_v42, %v83_v43  ;;  %v796_v53 = vcombine.low %v75_v42, %v83_v43  ;;  %v783_v54 = vcombine.high %v60_v48, %v68_v49  ;;  %v76_v56 = vld [vmem:[#allocation5 + $0xb0] sm:$0xff]  ;;  %v77_v58 = vld [vmem:[#allocation5 + $0xb8] sm:$0xff]  ;;  %v86_v8 = vld [vmem:[#allocation7] sm:$0xff]  ;;  %v108_v21 = vsub.s32 4, %v1002_v4 }
  0x42   :  { %v785_v55 = vcombine.high %v61_v50, %v69_v51  ;;  %v84_v57 = vld [vmem:[#allocation5 + $0xf0] sm:$0xff]  ;;  %v85_v59 = vld [vmem:[#allocation5 + $0xf8] sm:$0xff]  ;;  %v782_v60 = vcombine.low %v60_v48, %v68_v49  ;;  %v784_v61 = vcombine.low %v61_v50, %v69_v51  ;;  %v93_v11 = vrot.slane %v86_v8, %v92_v5  ;;  %v87_v50 = vld [vmem:[#allocation7 + $0x8] sm:$0xff] }
  0x43   :  { %802 = vmatmul.mubr.msk.bf16.vlgmr.msra.gmra.mrb[0].mxu0 %vm330_vm0, %v978_v27  ;;  %803 = vmatmul.mubr.msk.bf16.vlgmr.msra.gmra.mrb[0].mxu1 %vm330_vm0, %v978_v27  ;;  %v799_v62 = vcombine.high %v76_v56, %v84_v57  ;;  %v801_v63 = vcombine.high %v77_v58, %v85_v59  ;;  %v798_v1 = vcombine.low %v76_v56, %v84_v57  ;;  %v682_v12 = vunpack.c.0.s8 %v681_v7 }
  0x44   :  { %417 = vmatpush1.bf16.msra.mxu0 %v774_v28  ;;  %458 = vmatpush1.bf16.msra.mxu1 %v776_v29  ;;  %v800_v2 = vcombine.low %v77_v58, %v85_v59  ;;  %v101_v13 = vrot.slane %v86_v8, %v100_v9  ;;  %v105_v15 = vrot.slane %v86_v8, %v104_v10 }
  0x45   :  { %418 = vmatprep.subr.bf16.mxu0 %v791_v30  ;;  %459 = vmatprep.subr.bf16.mxu1 %v793_v31  ;;  %v1009_v20 = vsub.s32 %v682_v12, %v1002_v4  ;;  %v120_v31 = vsub.s32 7, %v1002_v4  ;;  %v109_v35 = vrot.slane %v86_v8, %v108_v21  ;;  %v125_v57 = vrot.slane %v87_v50, %v92_v5 }
  0x46   :  { %448 = vmatprep.mubr.bf16.mxu0 %v917_v0  ;;  %489 = vmatprep.mubr.bf16.mxu1 %v917_v0  ;;  %v133_v59 = vrot.slane %v87_v50, %v100_v9 }
  0x47   :  { %v121_v40 = vrot.slane %v86_v8, %v120_v31 }
  0x48   :  { %419 = vmatpush1.bf16.msra.mxu0 %v790_v36  ;;  %460 = vmatpush1.bf16.msra.mxu1 %v792_v37  ;;  %v117_v37 = vrot.slane %v86_v8, %v116_v26 }
  0x49   :  { %498 = vmatprep.subr.bf16.mxu0 %v779_v38  ;;  %539 = vmatprep.subr.bf16.mxu1 %v781_v39 }
  0x4b   :  { %804 = vmatmul.mubr.msk.bf16.vlgmr.msra.gmra.mrb[4].mxu0 %vm330_vm0, %v978_v27  ;;  %805 = vmatmul.mubr.msk.bf16.vlgmr.msra.gmra.mrb[4].mxu1 %vm330_vm0, %v978_v27 }
  0x4c   :  { %499 = vmatpush1.bf16.msra.mxu0 %v778_v44  ;;  %540 = vmatpush1.bf16.msra.mxu1 %v780_v45 }
  0x4d   :  { %500 = vmatprep.subr.bf16.mxu0 %v795_v46  ;;  %541 = vmatprep.subr.bf16.mxu1 %v797_v47 }
  0x4e   :  { %530 = vmatprep.mubr.bf16.mxu0 %v917_v0  ;;  %571 = vmatprep.mubr.bf16.mxu1 %v917_v0 }
  0x50   :  { %501 = vmatpush1.bf16.msra.mxu0 %v794_v52  ;;  %542 = vmatpush1.bf16.msra.mxu1 %v796_v53 }
  0x51   :  { %580 = vmatprep.subr.bf16.mxu0 %v783_v54  ;;  %621 = vmatprep.subr.bf16.mxu1 %v785_v55 }
  0x53   :  { %806 = vmatmul.mubr.msk.bf16.vlgmr.msra.gmra.mrb[8].mxu0 %vm330_vm0, %v978_v27  ;;  %807 = vmatmul.mubr.msk.bf16.vlgmr.msra.gmra.mrb[8].mxu1 %vm330_vm0, %v978_v27 }
  0x54   :  { %581 = vmatpush1.bf16.msra.mxu0 %v782_v60  ;;  %622 = vmatpush1.bf16.msra.mxu1 %v784_v61 }
  0x55   :  { %582 = vmatprep.subr.bf16.mxu0 %v799_v62  ;;  %623 = vmatprep.subr.bf16.mxu1 %v801_v63  ;;  %v137_v62 = vrot.slane %v87_v50, %v104_v10  ;;  %v149_v10 = vrot.slane %v87_v50, %v116_v26 }
  0x56   :  { %612 = vmatprep.mubr.bf16.mxu0 %v917_v0  ;;  %653 = vmatprep.mubr.bf16.mxu1 %v917_v0  ;;  %v96_v0 = vsub.s32 1, %v1002_v4 }
  0x58   :  { %583 = vmatpush1.bf16.msra.mxu0 %v798_v1  ;;  %624 = vmatpush1.bf16.msra.mxu1 %v800_v2  ;;  %v97_v14 = vrot.slane %v86_v8, %v96_v0  ;;  %v129_v60 = vrot.slane %v87_v50, %v96_v0  ;;  %v141_v0 = vrot.slane %v87_v50, %v108_v21 }
  0x5b   :  { %808 = vmatmul.mubr.msk.bf16.vlgmr.msra.gmra.mrb[12].mxu0 %vm330_vm0, %v978_v27  ;;  %809 = vmatmul.mubr.msk.bf16.vlgmr.msra.gmra.mrb[12].mxu1 %vm330_vm0, %v978_v27  ;;  %v112_v27 = vsub.s32 5, %v1002_v4 }
  0x5d   :  { %v113_v38 = vrot.slane %v86_v8, %v112_v27 }
 0x116   :  { %v368_v16 = vpop.f32.mrb[0].mxu0  ;;  %v409_v18 = vpop.f32.mrb[0].mxu1 }
 0x117   :  { %v369_v17 = vadd.f32 %v368_v16, %v93_v11  ;;  %v370_v19 = vpop.f32.mrb[1].mxu0  ;;  %v410_v22 = vadd.f32 %v409_v18, %v101_v13  ;;  %v411_v24 = vpop.f32.mrb[1].mxu1 }
 0x118   :  { %v371_v23 = vadd.f32 %v370_v19, %v97_v14  ;;  %v372_v25 = vpop.f32.mrb[2].mxu0  ;;  %v412_v28 = vadd.f32 %v411_v24, %v105_v15  ;;  %v413_v29 = vpop.f32.mrb[2].mxu1  ;;  %v153_v19 = vrot.slane %v87_v50, %v120_v31 }
 0x119   :  { %v373_v30 = vpop.f32.mrb[3].mxu0  ;;  %v414_v33 = vpop.f32.mrb[3].mxu1 }
 0x11a   :  { %v678_v32 = vcombine.low %v369_v17, %v371_v23  ;;  %v679_v34 = vcombine.low %v410_v22, %v412_v28  ;;  %v145_v17 = vrot.slane %v87_v50, %v112_v27 }
 0x11c   :  { %v686_v36 = vrot.slane %v678_v32, %v1009_v20  ;;  %v693_v39 = vrot.slane %v679_v34, %v1009_v20 }
 0x11e   :  { %v450_v41 = vpop.f32.mrb[4].mxu0  ;;  %v694_v42 = vcombine.low %v686_v36, %v693_v39  ;;  %v491_v44 = vpop.f32.mrb[4].mxu1 }
 0x11f   :  { %v451_v43 = vadd.f32 %v450_v41, %v109_v35  ;;  %v452_v45 = vpop.f32.mrb[5].mxu0  ;;  %v492_v46 = vadd.f32 %v491_v44, %v117_v37  ;;  %v493_v48 = vpop.f32.mrb[5].mxu1 }
 0x120   :  { %v453_v47 = vadd.f32 %v452_v45, %v113_v38  ;;  %v454_v49 = vpop.f32.mrb[6].mxu0  ;;  %750 = vst [vmem:[#allocation8] sm:$0xff] %v694_v42  ;;  %v494_v51 = vadd.f32 %v493_v48, %v121_v40  ;;  %v495_v52 = vpop.f32.mrb[6].mxu1 }
 0x121   :  { %v455_v53 = vpop.f32.mrb[7].mxu0  ;;  %v496_v55 = vpop.f32.mrb[7].mxu1 }
 0x122   :  { %v695_v54 = vcombine.low %v451_v43, %v453_v47  ;;  %v696_v56 = vcombine.low %v492_v46, %v494_v51 }
 0x124   :  { %v703_v58 = vrot.slane %v695_v54, %v1009_v20  ;;  %v710_v61 = vrot.slane %v696_v56, %v1009_v20 }
 0x126   :  { %v532_v63 = vpop.f32.mrb[8].mxu0  ;;  %v711_v1 = vcombine.low %v703_v58, %v710_v61  ;;  %v573_v3 = vpop.f32.mrb[8].mxu1 }
 0x127   :  { %v533_v2 = vadd.f32 %v532_v63, %v125_v57  ;;  %v534_v4 = vpop.f32.mrb[9].mxu0  ;;  %v574_v6 = vadd.f32 %v573_v3, %v133_v59  ;;  %v575_v8 = vpop.f32.mrb[9].mxu1 }
 0x128   :  { %v535_v7 = vadd.f32 %v534_v4, %v129_v60  ;;  %v536_v11 = vpop.f32.mrb[10].mxu0  ;;  %751 = vst [vmem:[#allocation8 + $0x8] sm:$0xff] %v711_v1  ;;  %v576_v12 = vadd.f32 %v575_v8, %v137_v62  ;;  %v577_v13 = vpop.f32.mrb[10].mxu1 }
 0x129   :  { %v537_v5 = vpop.f32.mrb[11].mxu0  ;;  %v578_v15 = vpop.f32.mrb[11].mxu1 }
 0x12a   :  { %v712_v14 = vcombine.low %v533_v2, %v535_v7  ;;  %v713_v9 = vcombine.low %v574_v6, %v576_v12 }
 0x12c   :  { %v720_v16 = vrot.slane %v712_v14, %v1009_v20  ;;  %v727_v18 = vrot.slane %v713_v9, %v1009_v20 }
 0x12e   :  { %v614_v22 = vpop.f32.mrb[12].mxu0  ;;  %v728_v23 = vcombine.low %v720_v16, %v727_v18  ;;  %v655_v25 = vpop.f32.mrb[12].mxu1 }
 0x12f   :  { %v615_v24 = vadd.f32 %v614_v22, %v141_v0  ;;  %v616_v28 = vpop.f32.mrb[13].mxu0  ;;  %v656_v29 = vadd.f32 %v655_v25, %v149_v10  ;;  %v657_v32 = vpop.f32.mrb[13].mxu1 }
 0x130   :  { %v617_v30 = vadd.f32 %v616_v28, %v145_v17  ;;  %v618_v33 = vpop.f32.mrb[14].mxu0  ;;  %752 = vst [vmem:[#allocation8 + $0x10] sm:$0xff] %v728_v23  ;;  %v658_v34 = vadd.f32 %v657_v32, %v153_v19  ;;  %v659_v35 = vpop.f32.mrb[14].mxu1 }
 0x131   :  { %v619_v21 = vpop.f32.mrb[15].mxu0  ;;  %v660_v37 = vpop.f32.mrb[15].mxu1 }
 0x132   :  { %v729_v36 = vcombine.low %v615_v24, %v617_v30  ;;  %v730_v26 = vcombine.low %v656_v29, %v658_v34 }
 0x134   :  { %v737_v27 = vrot.slane %v729_v36, %v1009_v20  ;;  %v744_v31 = vrot.slane %v730_v26, %v1009_v20 }
 0x136   :  { %v745_v38 = vcombine.low %v737_v27, %v744_v31 }
 0x138   :  { %753 = vst [vmem:[#allocation8 + $0x18] sm:$0xff] %v745_v38 }
 0x139   :  { %895 = shalt.err (!%p892_p0)
}
 0x13a   :  { %s896_s26 = scalar_lea.hbm %s1038_s3, 512 }
 0x13b   :  { %p897_p1 = scmp.ne.s32.totalorder %s1038_s3, %s896_s26  ;;  %p900_p2 = scmp.lt.u32.totalorder %s896_s26, %s1038_s3 }
 0x13d   :  { %p902_p3 = pnand %p900_p2, %p897_p1 }
 0x13f   :  { %905 = shalt.err (!%p902_p3)
}
 0x140   :  { %763 = dma.vmem_to_hbm [thread:$0]  %s761_s22, 512, %s1038_s3, [#allocation4]  }
 0x141   :  { %910 = dma.done.wait [#allocation4], 512  }
 0x142   :  { %911 = vsyncadd [#allocation4], 4294966784 }
 0x143   :  { %767 = vsyncpa [#allocation3], 1 }
 0x144   :  { %768 = vsyncpa [#allocation6], 1 }
 0x145   :  { %769 = vsyncpa [#allocation4], 1 }

// kernel: generator_forward.8
= control target key start
LH: loop header
LB: loop body
LE: loop exit
PB: predicated region body
PF: predicated region fallthrough
CT: control target
= control target key end

     0   :  { %12 = vsyncpa [#allocation6], 0  ;;  %s4861_s0 = inlined_call_operand.hbm [shape: f32[2,8,8,128], index: 0, kind: input, shape index: {}]   ;;  %s4862_s1 = inlined_call_operand.hbm [shape: f32[1,128], index: 1, kind: input, shape index: {}]   ;;  %s4863_s2 = inlined_call_operand.hbm [shape: f32[1,128], index: 2, kind: input, shape index: {}]   ;;  %s4864_s3 = inlined_call_operand.hbm [shape: bf16[2,1152,128], index: 3, kind: input, shape index: {}]   ;;  %s4865_s4 = inlined_call_operand.hbm [shape: f32[1,128], index: 4, kind: input, shape index: {}]   ;;  %s4866_s5 = inlined_call_operand.hbm [shape: f32[2,16,8,128], index: 5, kind: output, shape index: {0}]   ;;  %s4867_s6 = inlined_call_operand.hbm [shape: f32[2,2,64], index: 6, kind: output, shape index: {1}]  }
   0x1   :  { %14 = vsyncpa [#allocation6 + $0x1], 0 }
   0x2   :  { %15 = vsyncpa [#allocation9], 0 }
   0x3   :  { %16 = vsyncpa [#allocation12], 0 }
   0x4   :  { %17 = vsyncpa [#allocation7], 0 }
   0x5   :  { %19 = vsyncpa [#allocation7 + $0x1], 0 }
   0x6   :  { %20 = vsyncpa [#allocation16], 0 }
   0x7   :  { %22 = vsyncpa [#allocation16 + $0x1], 0  ;;  %s4072_s21 = smov 0   ;;  %s4074_s22 = smov 0  }
   0x8   :  { %s4076_s23 = smov 0   ;;  %s4078_s24 = smov 0  }
   0x9 LB: > { %s4093_s25 = sadd.s32 4294967295, %s4019_s24   ;;  %s2869_s26 = sadd.s32 4294967294, %s4019_s24   ;;  %s4019_s24 = sphi %s4078_s24, %s4890_s24   ;;  %s4015_s23 = sphi %s4076_s23, %s4889_s23   ;;  %s4011_s22 = sphi %s4074_s22, %s4888_s22   ;;  %s4007_s21 = sphi %s4072_s21, %s4887_s21  }
   0xa   : > { %p48_p0 = scmp.ne.s32.totalorder %s4011_s22, %s4007_s21  ;;  %p4868_p1 = scmp.eq.s32.totalorder %s4093_s25, 0 }
   0xb   : > { %p162_p3 = scmp.eq.s32.totalorder %s2869_s26, 1  ;;  %p2870_p5 = scmp.ge.s32.totalorder %s4019_s24, 1 }
   0xc   : > { %p4102_p4 = por %p4868_p1, %p48_p0  ;;  %p195_p7 = scmp.lt.s32.totalorder %s4019_s24, 3 }
   0xd   : > { %p4107_p6 = por %p162_p3, %p48_p0  ;;  %s4021_s30 = smov [#allocation8]  }
   0xe   : > { %s4871_s27 = scalar_select %p4102_p4, 1, 0 }
   0xf   : > { %s4872_s28 = scalar_select %p4107_p6, 1, 0 }
  0x10   : > { %p4112_p8 = pnand %p2870_p5, %p195_p7  ;;  %s208_s7 = sshll.u32 %s4021_s30, 4  ;;  %s209_s7 = int_to_ptr.vmem [resolvable:$true] %s208_s7 }
  0x11   : > { %s4022_s8 = smov [#allocation11]   ;;  %s4023_s11 = smov [#allocation10]  }
  0x12   : > { %s4873_s29 = scalar_select %p4112_p8, 1, 0 }
  0x13   : > { %p3547_p10 = pneg %p4112_p8  ;;  %s229_s9 = sshll.u32 %s4022_s8, 4  ;;  %s4125_s9 = int_to_ptr.vmem [resolvable:$true] %s229_s9 }
  0x14   : > { %s4127_s12 = sshll.u32 %s4023_s11, 4  ;;  %s3771_s15 = scalar_lea.hbm %s4862_s1, 16  ;;  %s220_s12 = int_to_ptr.vmem [resolvable:$true] %s4127_s12 }
  0x15   : > { %p4121_p11 = pnand %p3547_p10, %p4868_p1  ;;  %p3772_p12 = scmp.ne.s32.totalorder %s4862_s1, %s3771_s15 }
  0x16   : > { %p3778_p5 = scmp.lt.u32.totalorder %s3771_s15, %s4862_s1 }
  0x17   : > { %p4137_p13 = pneg %p4121_p11 }
  0x19   : > { %p3774_p0 = pnand %p4137_p13, %p3772_p12 }
  0x1b   : > { %p3775_p3 = pneg %p3774_p0 }
  0x1d   : > { %p3780_p7 = pnand %p3778_p5, %p3775_p3 }
  0x1f   : > { %3783 = shalt.err (!%p3780_p7)
}
  0x20   : > { %s3784_s26 = scalar_lea.vmem %s209_s7, 16  ;;  %s3791_s30 = scalar_lea.vmem %s209_s7, 32 }
  0x21   : > { %p3785_p10 = scmp.ne.s32.totalorder %s209_s7, %s3784_s26  ;;  %p3792_p2 = scmp.lt.s32.totalorder %s209_s7, %s209_s7 }
  0x22   : > { %p3793_p6 = scmp.lt.s32.totalorder %s3791_s30, %s3784_s26 }
  0x23   : > { %p3787_p9 = pnand %p3785_p10, %p4137_p13 }
  0x24   : > { %p3794_p4 = por %p3793_p6, %p3792_p2 }
  0x25   : > { %p3788_p1 = pneg %p3787_p9 }
  0x27   : > { %p3795_p8 = pnand %p3794_p4, %p3788_p1 }
  0x29   : > { %3798 = shalt.err (!%p3795_p8)
}
  0x2a   : > { %3550 = dma.hbm_to_vmem [thread:$0]  (!%p4121_p11), %s4862_s1, 16, %s209_s7, [#allocation9]  }
  0x2b   : > { %s3799_s15 = scalar_lea.hbm %s4864_s3, 18432 }
  0x2c   : > { %p3800_p9 = scmp.ne.s32.totalorder %s4864_s3, %s3799_s15  ;;  %p3806_p1 = scmp.lt.u32.totalorder %s3799_s15, %s4864_s3 }
  0x2e   : > { %p3802_p12 = pnand %p3800_p9, %p4137_p13 }
  0x30   : > { %p3803_p2 = pneg %p3802_p12 }
  0x32   : > { %p3808_p4 = pnand %p3806_p1, %p3803_p2 }
  0x34   : > { %3811 = shalt.err (!%p3808_p4)
}
  0x35   : > { %s3812_s7 = scalar_lea.vmem %s4125_s9, 18432  ;;  %p3820_p3 = scmp.lt.s32.totalorder %s4125_s9, %s4125_s9 }
  0x36   : > { %p3813_p6 = scmp.ne.s32.totalorder %s4125_s9, %s3812_s7  ;;  %p3821_p5 = scmp.lt.s32.totalorder %s3812_s7, %s3812_s7 }
  0x38   : > { %p3815_p8 = pnand %p3813_p6, %p4137_p13  ;;  %p3822_p7 = por %p3821_p5, %p3820_p3 }
  0x3a   : > { %p3816_p0 = pneg %p3815_p8 }
  0x3c   : > { %p3823_p10 = pnand %p3822_p7, %p3816_p0 }
  0x3e   : > { %3826 = shalt.err (!%p3823_p10)
}
  0x3f   : > { %s4024_s26 = smov 64   ;;  %s4025_s30 = smov 4  }
  0x40   : > { %3556 = dma.hbm_to_vmem [thread:$0]  (!%p4121_p11), %s4864_s3, 18432, %s4125_s9, [#allocation12], %s4024_s26, %s4024_s26, %s4025_s30  }
  0x41   : > { %s3827_s15 = scalar_lea.hbm %s4863_s2, 16 }
  0x42   : > { %p3828_p9 = scmp.ne.s32.totalorder %s4863_s2, %s3827_s15  ;;  %p3834_p1 = scmp.lt.u32.totalorder %s3827_s15, %s4863_s2 }
  0x44   : > { %p3830_p12 = pnand %p3828_p9, %p4137_p13 }
  0x46   : > { %p3831_p2 = pneg %p3830_p12 }
  0x48   : > { %p3836_p4 = pnand %p3834_p1, %p3831_p2 }
  0x4a   : > { %3839 = shalt.err (!%p3836_p4)
}
  0x4b   : > { %s3840_s7 = scalar_lea.vmem %s220_s12, 16  ;;  %s3847_s9 = scalar_lea.vmem %s220_s12, 32 }
  0x4c   : > { %p3841_p6 = scmp.ne.s32.totalorder %s220_s12, %s3840_s7  ;;  %p3848_p3 = scmp.lt.s32.totalorder %s220_s12, %s220_s12 }
  0x4d   : > { %p3849_p5 = scmp.lt.s32.totalorder %s3847_s9, %s3840_s7 }
  0x4e   : > { %p3843_p8 = pnand %p3841_p6, %p4137_p13 }
  0x4f   : > { %p3850_p7 = por %p3849_p5, %p3848_p3 }
  0x50   : > { %p3844_p0 = pneg %p3843_p8 }
  0x52   : > { %p3851_p10 = pnand %p3850_p7, %p3844_p0 }
  0x54   : > { %3854 = shalt.err (!%p3851_p10)
}
  0x55   : > { %3553 = dma.hbm_to_vmem [thread:$0]  (!%p4121_p11), %s4863_s2, 16, %s220_s12, [#allocation9]  }
  0x56   : > { %s4026_s8 = smov [#allocation13]   ;;  %s3855_s15 = scalar_lea.hbm %s4865_s4, 16 }
  0x57   : > { %s243_s11 = sshll.u32 %s4026_s8, 4  ;;  %p3856_p9 = scmp.ne.s32.totalorder %s4865_s4, %s3855_s15  ;;  %s244_s11 = int_to_ptr.vmem [resolvable:$true] %s243_s11 }
  0x58   : > { %p3862_p1 = scmp.lt.u32.totalorder %s3855_s15, %s4865_s4 }
  0x59   : > { %p3858_p12 = pnand %p3856_p9, %p4137_p13 }
  0x5b   : > { %p3859_p2 = pneg %p3858_p12 }
  0x5d   : > { %p3864_p4 = pnand %p3862_p1, %p3859_p2 }
  0x5f   : > { %3867 = shalt.err (!%p3864_p4)
}
  0x60   : > { %s3868_s12 = scalar_lea.vmem %s244_s11, 16  ;;  %s3875_s7 = scalar_lea.vmem %s244_s11, 32 }
  0x61   : > { %p3869_p6 = scmp.ne.s32.totalorder %s244_s11, %s3868_s12  ;;  %p3876_p3 = scmp.lt.s32.totalorder %s244_s11, %s244_s11 }
  0x62   : > { %p3877_p5 = scmp.lt.s32.totalorder %s3875_s7, %s3868_s12 }
  0x63   : > { %p3871_p8 = pnand %p3869_p6, %p4137_p13 }
  0x64   : > { %p3878_p7 = por %p3877_p5, %p3876_p3 }
  0x65   : > { %p3872_p0 = pneg %p3871_p8 }
  0x67   : > { %p3879_p10 = pnand %p3878_p7, %p3872_p0 }
  0x69   : > { %3882 = shalt.err (!%p3879_p10)
}
  0x6a   : > { %3559 = dma.hbm_to_vmem [thread:$0]  (!%p4121_p11), %s4865_s4, 16, %s244_s11, [#allocation12]  }
  0x6b   : > { %s4214_s18 = sadd.s32 1, %s4019_s24   ;;  %s35_s30 = sadd.s32 1, %s4015_s23 }
  0x6c   : > { %s32_s10 = ssub.s32 %s4019_s24, %s4214_s18  ;;  %p42_p13 = scmp.ne.s32.totalorder %s4015_s23, %s4011_s22 }
  0x6d   : > { %p33_p9 = scmp.eq.s32.totalorder %s32_s10, 0  ;;  %p43_p12 = scmp.eq.s32.totalorder %s4019_s24, 0 }
  0x6e   : > { %p4876_p2 = scmp.eq.s32.totalorder %s4093_s25, 1  ;;  %p3575_p4 = scmp.lt.s32.totalorder %s4019_s24, 2 }
  0x6f   : > { %s4230_s13 = scalar_select %p33_p9, %s4015_s23, %s35_s30  }
  0x70   : > { %p4224_p1 = por %p4876_p2, %p42_p13  ;;  %p44_p6 = por %p43_p12, %p42_p13 }
  0x71   : > { %s254_s14 = sand.u32 1, %s4015_s23   ;;  %s3057_s11 = sshll.u32 %s4019_s24, 10 }
  0x72   : > { %s2876_s15 = sshll.u32 %s254_s14, 6  ;;  %s4237_s19 = scalar_lea.hbm %s4861_s0, %s3057_s11 }
  0x73   : > { %s258_s20 = scalar_lea.vmem [#allocation5], %s2876_s15  ;;  %p4241_p11 = pnand %p3575_p4, %p44_p6 }
  0x74   : > { %s265_s12 = sshll.u32 %s258_s20, 4  ;;  %s4245_s9 = scalar_lea.sflag [#allocation6], %s254_s14  ;;  %s4239_s12 = int_to_ptr.vmem [resolvable:$true] %s265_s12 }
  0x75   : > { %s3883_s26 = scalar_lea.hbm %s4237_s19, 1024  ;;  %p3885_p0 = pneg %p4241_p11 }
  0x76   : > { %p3884_p8 = scmp.ne.s32.totalorder %s4237_s19, %s3883_s26  ;;  %s3888_s15 = scalar_lea.hbm %s4861_s0, 2048 }
  0x77   : > { %p3889_p7 = scmp.lt.u32.totalorder %s4237_s19, %s4861_s0  ;;  %p3890_p10 = scmp.lt.u32.totalorder %s3888_s15, %s3883_s26 }
  0x78   : > { %p3886_p3 = pnand %p3885_p0, %p3884_p8  ;;  %p3892_p9 = scmp.lt.u32.totalorder %s3883_s26, %s4237_s19 }
  0x79   : > { %p3891_p13 = por %p3890_p10, %p3889_p7 }
  0x7a   : > { %p3887_p5 = pneg %p3886_p3 }
  0x7b   : > { %p3893_p12 = por %p3892_p9, %p3891_p13 }
  0x7d   : > { %p3894_p2 = pnand %p3893_p12, %p3887_p5 }
  0x7f   : > { %3897 = shalt.err (!%p3894_p2)
}
  0x80   : > { %s3898_s14 = scalar_lea.vmem %s4239_s12, 1024  ;;  %s4027_s17 = smov [#allocation5]  }
  0x81   : > { %p3899_p4 = scmp.ne.s32.totalorder %s4239_s12, %s3898_s14  ;;  %s3903_s20 = sshll.u32 %s4027_s17, 4  ;;  %s3904_s20 = int_to_ptr.vmem [resolvable:$false] %s3903_s20 }
  0x82   : > { %s3905_s30 = scalar_lea.vmem %s3904_s20, 2048  ;;  %p3906_p3 = scmp.lt.s32.totalorder %s4239_s12, %s3904_s20 }
  0x83   : > { %p3901_p6 = pnand %p3899_p4, %p3885_p0  ;;  %p3907_p7 = scmp.lt.s32.totalorder %s3905_s30, %s3898_s14 }
  0x85   : > { %p3902_p8 = pneg %p3901_p6  ;;  %p3908_p10 = por %p3907_p7, %p3906_p3 }
  0x87   : > { %p3909_p13 = pnand %p3908_p10, %p3902_p8 }
  0x89   : > { %3912 = shalt.err (!%p3909_p13)
}
  0x8a   : > { %s4028_s26 = smov 128   ;;  %s4029_s10 = smov 8  }
  0x8b   : > { %3563 = dma.hbm_to_vmem [thread:$0]  (!%p4241_p11), %s4237_s19, 1024, %s4239_s12, %s4245_s9, %s4028_s26, %s4028_s26, %s4029_s10  }
  0x8c   : > { %p4879_p0 = scmp.ne.s32.totalorder %s4873_s29, 0 }
  0x8d   : > { %s4276_s15 = sand.u32 (!%p4879_p0), 1, %s4011_s22   ;;  %p4880_p5 = scmp.ne.s32.totalorder (!%p4879_p0), %s4871_s27, 0 }
  0x8e   : > { %277 = sbr.rel (%p4879_p0) target bundleno = 774 (0x306), region = 40  ;;  %s2880_s11 = sshll.u32 (!%p4879_p0), %s4276_s15, 6 }
  0x8f   : > { %s280_s16 = scalar_lea.sflag (!%p4879_p0), [#allocation6], %s4276_s15  ;;  %s4280_s14 = scalar_lea.vmem (!%p4879_p0), [#allocation5], %s2880_s11 }
  0x95   : > { %3986 = dma.done.wait (%p4880_p5), %s280_s16, 1024  }
  0x96   : > { %3988 = vsyncadd (%p4880_p5), %s280_s16, 4294966272  ;;  %p4881_p11 = scmp.eq.s32.totalorder %s4093_s25, 0 }
  0x98   : > { %3990 = dma.done.wait (%p4881_p11), [#allocation9], 32   ;;  %p4882_p9 = pmov %p4881_p11 }
  0x9a   : > { %3992 = vsyncadd (%p4882_p9), [#allocation9], 4294967264  ;;  %p4883_p12 = pmov %p4882_p9 }
  0x9b   : > { %p4884_p2 = pmov %p4882_p9 }
  0x9c   : > { %3994 = dma.done.wait (%p4883_p12), [#allocation12], 18448  }
  0x9d   : > { %3996 = vsyncadd (%p4884_p2), [#allocation12], 4294948848  ;;  %v4030_v0 = vmov 0.0   ;;  %v3626_v1 = vld [vmem:[#allocation11 + $0x40] sm:$0xff]   ;;  %v3630_v5 = vld [vmem:[#allocation11 + $0x48] sm:$0xff]   ;;  %vm4031_vm8 = vmmov 0  }
  0x9e   : > { %396 = vst [vmem:[#allocation2] sm:$0xff] %v4030_v0  ;;  %397 = vst [vmem:[#allocation2 + $0x8] sm:$0xff] %v4030_v0  ;;  %v3627_v2 = vld [vmem:[#allocation11] sm:$0xff]   ;;  %3059 = vmatprep.subr.bf16.mxu0 %v3626_v1  ;;  %v3631_v6 = vld [vmem:[#allocation11 + $0x8] sm:$0xff]   ;;  %s2885_s27 = sshll.u32 %s4276_s15, 7  ;;  %s3058_s19 = sshll.u32 %s4093_s25, 11 }
  0x9f   : > { %398 = vst [vmem:[#allocation2 + $0x10] sm:$0xff] %v4030_v0  ;;  %399 = vst [vmem:[#allocation2 + $0x18] sm:$0xff] %v4030_v0  ;;  %v3628_v3 = vld [vmem:[#allocation11 + $0xc0] sm:$0xff]   ;;  %3060 = vmatpush3.bf16.msra.mxu0 %v3627_v2  ;;  %v3632_v7 = vld [vmem:[#allocation11 + $0xc8] sm:$0xff]   ;;  %s4637_s29 = scalar_lea.vmem [#allocation14], %s2885_s27  ;;  %s4783_s9 = scalar_lea.hbm %s4866_s5, %s3058_s19 }
  0xa0   : > { %400 = vst [vmem:[#allocation2 + $0x20] sm:$0xff] %v4030_v0  ;;  %401 = vst [vmem:[#allocation2 + $0x28] sm:$0xff] %v4030_v0  ;;  %v3629_v4 = vld [vmem:[#allocation11 + $0x80] sm:$0xff]   ;;  %3105 = vmatprep.subr.bf16.mxu1 %v3628_v3  ;;  %3061 = vmatprep.subr.bf16.mxu0 %v3630_v5  ;;  %v3633_v8 = vld [vmem:[#allocation11 + $0x88] sm:$0xff]   ;;  %s2713_s17 = sshll.u32 %s4637_s29, 4  ;;  %s2695_s20 = scalar_lea.sflag [#allocation7], %s4276_s15  ;;  %s4786_s17 = int_to_ptr.vmem [resolvable:$true] %s2713_s17 }
  0xa1   : > { %402 = vst [vmem:[#allocation2 + $0x30] sm:$0xff] %v4030_v0  ;;  %403 = vst [vmem:[#allocation2 + $0x38] sm:$0xff] %v4030_v0  ;;  %3106 = vmatpush3.bf16.msra.mxu1 %v3629_v4  ;;  %v3634_v9 = vld [vmem:[#allocation11 + $0x50] sm:$0xff]   ;;  %v3638_v13 = vld [vmem:[#allocation11 + $0x58] sm:$0xff]   ;;  %s3913_s30 = scalar_lea.vmem %s4786_s17, 2048  ;;  %s4032_s26 = smov [#allocation14]  }
  0xa2   : > { %404 = vst [vmem:[#allocation2 + $0x40] sm:$0xff] %v4030_v0  ;;  %405 = vst [vmem:[#allocation2 + $0x48] sm:$0xff] %v4030_v0  ;;  %3107 = vmatprep.subr.bf16.mxu1 %v3632_v7  ;;  %v3635_v10 = vld [vmem:[#allocation11 + $0x10] sm:$0xff]   ;;  %v3639_v14 = vld [vmem:[#allocation11 + $0x18] sm:$0xff]   ;;  %p3914_p4 = scmp.ne.s32.totalorder %s4786_s17, %s3913_s30  ;;  %s3917_s10 = sshll.u32 %s4032_s26, 4  ;;  %s3918_s10 = int_to_ptr.vmem [resolvable:$false] %s3917_s10 }
  0xa3   : > { %406 = vst [vmem:[#allocation2 + $0x50] sm:$0xff] %v4030_v0  ;;  %407 = vst [vmem:[#allocation2 + $0x58] sm:$0xff] %v4030_v0  ;;  %3062 = vmatpush3.bf16.msra.mxu0 %v3631_v6  ;;  %v3636_v11 = vld [vmem:[#allocation11 + $0xd0] sm:$0xff]   ;;  %v3640_v15 = vld [vmem:[#allocation11 + $0xd8] sm:$0xff]   ;;  %s3919_s11 = scalar_lea.vmem %s3918_s10, 4096  ;;  %p3920_p3 = scmp.lt.s32.totalorder %s4786_s17, %s3918_s10 }
  0xa4   : > { %408 = vst [vmem:[#allocation2 + $0x60] sm:$0xff] %v4030_v0  ;;  %3063 = vmatprep.subr.bf16.mxu0 %v3634_v9  ;;  %v3637_v12 = vld [vmem:[#allocation11 + $0x90] sm:$0xff]   ;;  %v3641_v16 = vld [vmem:[#allocation11 + $0x98] sm:$0xff]   ;;  %v3642_v17 = vld [vmem:[#allocation11 + $0x60] sm:$0xff]   ;;  %p3915_p6 = pnand %p3914_p4, %p4224_p1  ;;  %p3921_p7 = scmp.lt.s32.totalorder %s3919_s11, %s3913_s30 }
  0xa5   : > { %3108 = vmatpush3.bf16.msra.mxu1 %v3633_v8  ;;  %v3643_v18 = vld [vmem:[#allocation11 + $0x20] sm:$0xff]   ;;  %v3646_v21 = vld [vmem:[#allocation11 + $0x68] sm:$0xff]   ;;  %v3650_v25 = vld [vmem:[#allocation11 + $0x70] sm:$0xff]  }
  0xa6   : > { %3109 = vmatprep.subr.bf16.mxu1 %v3636_v11  ;;  %v3644_v19 = vld [vmem:[#allocation11 + $0xe0] sm:$0xff]   ;;  %v3647_v22 = vld [vmem:[#allocation11 + $0x28] sm:$0xff]   ;;  %v3651_v26 = vld [vmem:[#allocation11 + $0x30] sm:$0xff]   ;;  %p3916_p8 = pneg %p3915_p6  ;;  %p3922_p10 = por %p3921_p7, %p3920_p3 }
  0xa7   : > { %3064 = vmatpush3.bf16.msra.mxu0 %v3635_v10  ;;  %v3645_v20 = vld [vmem:[#allocation11 + $0xa0] sm:$0xff]   ;;  %v3648_v23 = vld [vmem:[#allocation11 + $0xe8] sm:$0xff]   ;;  %v3652_v27 = vld [vmem:[#allocation11 + $0xf0] sm:$0xff]  }
  0xa8   : > { %3065 = vmatprep.subr.bf16.mxu0 %v3638_v13  ;;  %v3649_v24 = vld [vmem:[#allocation11 + $0xa8] sm:$0xff]   ;;  %v3653_v28 = vld [vmem:[#allocation11 + $0xb0] sm:$0xff]   ;;  %v3654_v29 = vld [vmem:[#allocation11 + $0x78] sm:$0xff]   ;;  %p3923_p13 = pnand %p3922_p10, %p3916_p8 }
  0xa9   : > { %3110 = vmatpush3.bf16.msra.mxu1 %v3637_v12  ;;  %v3655_v30 = vld [vmem:[#allocation11 + $0x38] sm:$0xff]   ;;  %v3658_v38 = vld [vmem:[#allocation11 + $0x140] sm:$0xff]   ;;  %v336_v46 = vld [vmem:[%s4280_s14 + $0x10] sm:$0xff] }
  0xaa   : > { %3111 = vmatprep.subr.bf16.mxu1 %v3640_v15  ;;  %v3656_v31 = vld [vmem:[#allocation11 + $0xf8] sm:$0xff]   ;;  %v335_v39 = vld [vmem:[%s4280_s14 + $0x8] sm:$0xff]  ;;  %v3664_v8 = vld [vmem:[#allocation11 + $0x150] sm:$0xff]  }
  0xab   : > { %3066 = vmatpush3.bf16.msra.mxu0 %v3639_v14  ;;  %v334_v32 = vld [vmem:[%s4280_s14] sm:$0xff]  ;;  %v337_v49 = vld [vmem:[%s4280_s14 + $0x18] sm:$0xff]  ;;  %v3660_v1 = vld [vmem:[#allocation11 + $0x148] sm:$0xff]  }
  0xac   : > { %3067 = vmatprep.subr.bf16.mxu0 %v3642_v17  ;;  %v4308_v33 = vld [vmem:[#allocation8] ss:$0 sm:$0xff]  ;;  %v4310_v34 = vld [vmem:[#allocation10] ss:$0 sm:$0xff]  ;;  %v3661_v44 = vld [vmem:[#allocation11 + $0x1c0] sm:$0xff]  }
  0xad   : > { %3112 = vmatpush3.bf16.msra.mxu1 %v3641_v16  ;;  %v350_v35 = vmul.f32 %v4308_v33, %v334_v32  ;;  %v3657_v36 = vld [vmem:[#allocation11 + $0xb8] sm:$0xff]   ;;  %v351_v40 = vmul.f32 %v4308_v33, %v335_v39  ;;  %v352_v48 = vmul.f32 %v4308_v33, %v336_v46  ;;  %v353_v50 = vmul.f32 %v4308_v33, %v337_v49  ;;  %v3659_v62 = vld [vmem:[#allocation11 + $0x100] sm:$0xff]   ;;  %v3662_v5 = vld [vmem:[#allocation11 + $0x108] sm:$0xff]  }
  0xae   : > { %3113 = vmatprep.subr.bf16.mxu1 %v3644_v19  ;;  %v438_v52 = vld [vmem:[#allocation2 + $0x1] sm:$0xff]  ;;  %v3665_v9 = vld [vmem:[#allocation11 + $0x1c8] sm:$0xff]   ;;  %v3666_v14 = vld [vmem:[#allocation11 + $0x110] sm:$0xff]  }
  0xaf   : > { %3068 = vmatpush3.bf16.msra.mxu0 %v3643_v18  ;;  %v364_v37 = vadd.f32 %v4310_v34, %v350_v35  ;;  %v365_v42 = vadd.f32 %v4310_v34, %v351_v40  ;;  %v366_v51 = vadd.f32 %v4310_v34, %v352_v48  ;;  %v367_v53 = vadd.f32 %v4310_v34, %v353_v50  ;;  %v458_v54 = vld [vmem:[#allocation2 + $0x2] sm:$0xff]  ;;  %v3667_v15 = vld [vmem:[#allocation11 + $0x188] sm:$0xff]  }
  0xb0   : > { %3069 = vmatprep.subr.bf16.mxu0 %v3646_v21  ;;  %v3663_v6 = vld [vmem:[#allocation11 + $0x180] sm:$0xff]   ;;  %v3670_v32 = vld [vmem:[#allocation11 + $0x118] sm:$0xff]   ;;  %v340_v39 = vld [vmem:[%s4280_s14 + $0x30] sm:$0xff] }
  0xb1   : > { %3114 = vmatpush3.bf16.msra.mxu1 %v3645_v20  ;;  %vm372_vm0 = vcmp.gt.f32.partialorder %v364_v37, 0.0  ;;  %v380_v41 = vmul.f32 0.2, %v364_v37  ;;  %vm373_vm1 = vcmp.gt.f32.partialorder %v365_v42, 0.0  ;;  %v381_v45 = vmul.f32 0.2, %v365_v42 }
  0xb2   : > { %3115 = vmatprep.subr.bf16.mxu1 %v3648_v23  ;;  %vm374_vm2 = vcmp.gt.f32.partialorder %v366_v51, 0.0  ;;  %v382_v55 = vmul.f32 0.2, %v366_v51  ;;  %vm375_vm3 = vcmp.gt.f32.partialorder %v367_v53, 0.0  ;;  %v383_v59 = vmul.f32 0.2, %v367_v53 }
  0xb3   : > { %3070 = vmatpush3.bf16.msra.mxu0 %v3647_v22  ;;  %v4317_v43 = vsel %vm372_vm0, %v364_v37, %v380_v41  ;;  %v4321_v47 = vsel %vm373_vm1, %v365_v42, %v381_v45  ;;  %v338_v10 = vld [vmem:[%s4280_s14 + $0x20] sm:$0xff]  ;;  %v356_v41 = vmul.f32 %v4308_v33, %v340_v39 }
  0xb4   : > { %3071 = vmatprep.subr.bf16.mxu0 %v3650_v25  ;;  %410 = vst [vmem:[#allocation2 + $0xb] sm:$0xff] %v4317_v43  ;;  %411 = vst [vmem:[#allocation2 + $0x15] sm:$0xff] %v4321_v47  ;;  %v390_v63 = vsel %vm374_vm2, %v366_v51, %v382_v55  ;;  %v391_v2 = vsel %vm375_vm3, %v367_v53, %v383_v59  ;;  %v354_v12 = vmul.f32 %v4308_v33, %v338_v10  ;;  %v3673_v35 = vld [vmem:[#allocation11 + $0x1d8] sm:$0xff]   ;;  %v3672_v42 = vld [vmem:[#allocation11 + $0x160] sm:$0xff]  }
  0xb5   : > { %3116 = vmatpush3.bf16.msra.mxu1 %v3649_v24  ;;  %412 = vst [vmem:[#allocation2 + $0x1f] sm:$0xff] %v390_v63  ;;  %413 = vst [vmem:[#allocation2 + $0x29] sm:$0xff] %v391_v2  ;;  %v3668_v24 = vld [vmem:[#allocation11 + $0x158] sm:$0xff]   ;;  %v3674_v46 = vld [vmem:[#allocation11 + $0x120] sm:$0xff]   ;;  %v370_v48 = vadd.f32 %v4310_v34, %v356_v41 }
  0xb6   : > { %3117 = vmatprep.subr.bf16.mxu1 %v3652_v27  ;;  %v368_v16 = vadd.f32 %v4310_v34, %v354_v12  ;;  %v3675_v50 = vld [vmem:[#allocation11 + $0x198] sm:$0xff]   ;;  %v3677_v53 = vld [vmem:[#allocation11 + $0x1e0] sm:$0xff]   ;;  %v3676_v55 = vld [vmem:[#allocation11 + $0x168] sm:$0xff]  }
  0xb7   : > { %3072 = vmatpush3.bf16.msra.mxu0 %v3651_v26  ;;  %vm378_vm6 = vcmp.gt.f32.partialorder %v370_v48, 0.0  ;;  %v3680_v63 = vld [vmem:[#allocation11 + $0x170] sm:$0xff]   ;;  %v3683_v10 = vld [vmem:[#allocation11 + $0x1a8] sm:$0xff]  }
  0xb8   : > { %3073 = vmatprep.subr.bf16.mxu0 %v3654_v29  ;;  %vm376_vm4 = vcmp.gt.f32.partialorder %v368_v16, 0.0  ;;  %v3671_v29 = vld [vmem:[#allocation11 + $0x190] sm:$0xff]  }
  0xb9   : > { %3118 = vmatpush3.bf16.msra.mxu1 %v3653_v28  ;;  %v3669_v28 = vld [vmem:[#allocation11 + $0x1d0] sm:$0xff]  }
  0xba   : > { %3119 = vmatprep.subr.bf16.mxu1 %v3656_v31 }
  0xbb   : > { %3074 = vmatpush3.bf16.msra.mxu0 %v3655_v30  ;;  %v439_v56 = vld [vmem:[#allocation2 + $0x9] sm:$0xff]  ;;  %v479_v3 = vld [vmem:[#allocation2 + $0x12] sm:$0xff]  ;;  %v384_v30 = vmul.f32 0.2, %v368_v16 }
  0xbc   : > { %3151 = vmatprep.subr.bf16.mxu0 %v3658_v38  ;;  %v419_v57 = vld [vmem:[#allocation2 + $0x8] sm:$0xff]  ;;  %v4329_v60 = vpack.c.bf16 %v439_v56, %v438_v52  ;;  %v440_v11 = vld [vmem:[#allocation2 + $0x11] sm:$0xff]  ;;  %v441_v17 = vld [vmem:[#allocation2 + $0x19] sm:$0xff]  ;;  %v386_v52 = vmul.f32 0.2, %v370_v48 }
  0xbd   : > { %3120 = vmatpush3.bf16.msra.mxu1 %v3657_v36  ;;  %v478_v58 = vld [vmem:[#allocation2 + $0xa] sm:$0xff]  ;;  %v4332_v61 = vpack.c.bf16 %v419_v57, %v4030_v0  ;;  %v421_v18 = vld [vmem:[#allocation2 + $0x18] sm:$0xff]  ;;  %v4345_v20 = vpack.c.bf16 %v441_v17, %v440_v11  ;;  %v481_v22 = vld [vmem:[#allocation2 + $0x22] sm:$0xff]  ;;  %v4359_v37 = vsel %vm376_vm4, %v368_v16, %v384_v30 }
  0xbe   : > { %3197 = vmatprep.subr.bf16.mxu1 %v3661_v44  ;;  %1258 = vmatprep.mubr.bf16.mxu0 %v4329_v60  ;;  %v4335_v4 = vpack.c.bf16 %v478_v58, %v458_v54  ;;  %v4338_v7 = vpack.c.bf16 %v479_v3, %v478_v58  ;;  %v420_v13 = vld [vmem:[#allocation2 + $0x10] sm:$0xff]  ;;  %v480_v19 = vld [vmem:[#allocation2 + $0x1a] sm:$0xff]  ;;  %v339_v36 = vld [vmem:[%s4280_s14 + $0x28] sm:$0xff]  ;;  %414 = vst [vmem:[#allocation2 + $0x33] sm:$0xff] %v4359_v37 }
  0xbf   : > { %1259 = vmatmul.mubr.bf16.vlgmr.msra.gmra.mrb[0].mxu0 %v4332_v61  ;;  %v4347_v21 = vpack.c.bf16 %v421_v18, %v420_v13  ;;  %v442_v23 = vld [vmem:[#allocation2 + $0x21] sm:$0xff]  ;;  %v4349_v25 = vpack.c.bf16 %v481_v22, %v480_v19  ;;  %v4351_v26 = vpack.c.bf16 %v480_v19, %v479_v3  ;;  %v355_v38 = vmul.f32 %v4308_v33, %v339_v36  ;;  %v482_v45 = vld [vmem:[#allocation2 + $0x2a] sm:$0xff]  ;;  %v341_v3 = vld [vmem:[%s4280_s14 + $0x38] sm:$0xff] }
  0xc0   : > { %3152 = vmatpush3.bf16.msra.mxu0 %v3659_v62  ;;  %1331 = vmatprep.mubr.bf16.mxu1 %v4338_v7  ;;  %v4353_v27 = vpack.c.bf16 %v391_v2, %v442_v23  ;;  %v422_v31 = vld [vmem:[#allocation2 + $0x20] sm:$0xff]  ;;  %v423_v40 = vld [vmem:[#allocation2 + $0x28] sm:$0xff]  ;;  %v394_v56 = vsel %vm378_vm6, %v370_v48, %v386_v52  ;;  %v4375_v59 = vpack.c.bf16 %v482_v45, %v481_v22  ;;  %v3686_v30 = vld [vmem:[#allocation11 + $0x1b0] sm:$0xff]  }
  0xc1   : > { %3153 = vmatprep.subr.bf16.mxu0 %v3660_v1  ;;  %1332 = vmatmul.mubr.bf16.vlgmr.msra.gmra.mrb[0].mxu1 %v4335_v4  ;;  %v369_v44 = vadd.f32 %v4310_v34, %v355_v38  ;;  %v4369_v49 = vpack.c.bf16 %v423_v40, %v422_v31  ;;  %v3678_v57 = vld [vmem:[#allocation11 + $0x128] sm:$0xff]   ;;  %416 = vst [vmem:[#allocation2 + $0x47] sm:$0xff] %v394_v56  ;;  %v3679_v62 = vld [vmem:[#allocation11 + $0x1a0] sm:$0xff]   ;;  %v3688_v36 = vld [vmem:[#allocation11 + $0x1f8] sm:$0xff]  }
  0xc2   : > { %3198 = vmatpush3.bf16.msra.mxu1 %v3663_v6  ;;  %1266 = vmatprep.mubr.bf16.mxu0 %v4345_v20  ;;  %v3681_v2 = vld [vmem:[#allocation11 + $0x1e8] sm:$0xff]   ;;  %v3682_v6 = vld [vmem:[#allocation11 + $0x130] sm:$0xff]  }
  0xc3   : > { %3199 = vmatprep.subr.bf16.mxu1 %v3665_v9  ;;  %1339 = vmatprep.mubr.bf16.mxu1 %v4349_v25  ;;  %vm377_vm5 = vcmp.gt.f32.partialorder %v369_v44, 0.0  ;;  %v385_v51 = vmul.f32 0.2, %v369_v44  ;;  %v518_v38 = vld [vmem:[#allocation2 + $0xc] sm:$0xff]  ;;  %v519_v39 = vld [vmem:[#allocation2 + $0x14] sm:$0xff] }
  0xc4   : > { %3154 = vmatpush3.bf16.msra.mxu0 %v3662_v5  ;;  %v4401_v41 = vpack.c.bf16 %v519_v39, %v518_v38  ;;  %v499_v52 = vld [vmem:[#allocation2 + $0x13] sm:$0xff]  ;;  %v3701_v38 = vld [vmem:[#allocation11 + $0x220] sm:$0xff]  }
  0xc5   : > { %3155 = vmatprep.subr.bf16.mxu0 %v3664_v8  ;;  %v4371_v54 = vsel %vm377_vm5, %v369_v44, %v385_v51  ;;  %v483_v58 = vld [vmem:[#allocation2 + $0x32] sm:$0xff]  ;;  %v357_v8 = vmul.f32 %v4308_v33, %v341_v3  ;;  %v559_v44 = vld [vmem:[#allocation2 + $0x1d] sm:$0xff]  ;;  %v4416_v56 = vpack.c.bf16 %v499_v52, %v4317_v43 }
  0xc6   : > { %3200 = vmatpush3.bf16.msra.mxu1 %v3667_v15  ;;  %415 = vst [vmem:[#allocation2 + $0x3d] sm:$0xff] %v4371_v54  ;;  %v4377_v1 = vpack.c.bf16 %v483_v58, %v482_v45  ;;  %v444_v5 = vld [vmem:[#allocation2 + $0x31] sm:$0xff]  ;;  %v3691_v45 = vld [vmem:[#allocation11 + $0x280] sm:$0xff]  }
  0xc7   : > { %1267 = vmatmul.mubr.bf16.gmra.mrb[4].mxu0 %v4347_v21  ;;  %3201 = vmatprep.subr.bf16.mxu1 %v3669_v28  ;;  %v424_v9 = vld [vmem:[#allocation2 + $0x30] sm:$0xff]  ;;  %v371_v11 = vadd.f32 %v4310_v34, %v357_v8  ;;  %v3685_v28 = vld [vmem:[#allocation11 + $0x178] sm:$0xff]  }
  0xc8   : > { %3156 = vmatpush3.bf16.msra.mxu0 %v3666_v14  ;;  %1274 = vmatprep.mubr.bf16.mxu0 %v4353_v27  ;;  %v447_v33 = vld [vmem:[#allocation2 + $0x49] sm:$0xff] }
  0xc9   : > { %1340 = vmatmul.mubr.bf16.gmra.mrb[4].mxu1 %v4351_v26  ;;  %3157 = vmatprep.subr.bf16.mxu0 %v3668_v24  ;;  %vm379_vm7 = vcmp.gt.f32.partialorder %v371_v11, 0.0  ;;  %v387_v34 = vmul.f32 0.2, %v371_v11  ;;  %v3684_v24 = vld [vmem:[#allocation11 + $0x1f0] sm:$0xff]   ;;  %v427_v31 = vld [vmem:[#allocation2 + $0x48] sm:$0xff] }
  0xca   : > { %3202 = vmatpush3.bf16.msra.mxu1 %v3671_v29  ;;  %1347 = vmatprep.mubr.bf16.mxu1 %v4377_v1  ;;  %v561_v3 = vld [vmem:[#allocation2 + $0x2d] sm:$0xff]  ;;  %v501_v43 = vld [vmem:[#allocation2 + $0x23] sm:$0xff] }
  0xcb   : > { %3203 = vmatprep.subr.bf16.mxu1 %v3673_v35  ;;  %v3687_v35 = vld [vmem:[#allocation11 + $0x138] sm:$0xff]   ;;  %v3704_v52 = vld [vmem:[#allocation11 + $0x228] sm:$0xff]  }
  0xcc   : > { %3158 = vmatpush3.bf16.msra.mxu0 %v3670_v32  ;;  %v395_v32 = vsel %vm379_vm7, %v371_v11, %v387_v34 }
  0xcd   : > { %3159 = vmatprep.subr.bf16.mxu0 %v3672_v42  ;;  %v445_v12 = vld [vmem:[#allocation2 + $0x39] sm:$0xff]  ;;  %v485_v17 = vld [vmem:[#allocation2 + $0x42] sm:$0xff]  ;;  %417 = vst [vmem:[#allocation2 + $0x51] sm:$0xff] %v395_v32 }
  0xce   : > { %3204 = vmatpush3.bf16.msra.mxu1 %v3675_v50  ;;  %v425_v13 = vld [vmem:[#allocation2 + $0x38] sm:$0xff]  ;;  %v4384_v15 = vpack.c.bf16 %v445_v12, %v444_v5  ;;  %v446_v18 = vld [vmem:[#allocation2 + $0x41] sm:$0xff]  ;;  %v541_v12 = vld [vmem:[#allocation2 + $0x2c] sm:$0xff] }
  0xcf   : > { %1275 = vmatmul.mubr.bf16.gmra.mrb[8].mxu0 %v4369_v49  ;;  %3205 = vmatprep.subr.bf16.mxu1 %v3677_v53  ;;  %v484_v14 = vld [vmem:[#allocation2 + $0x3a] sm:$0xff]  ;;  %v4386_v16 = vpack.c.bf16 %v425_v13, %v424_v9  ;;  %v4392_v23 = vpack.c.bf16 %v447_v33, %v446_v18  ;;  %v4411_v53 = vpack.c.bf16 %v559_v44, %v4321_v47  ;;  %v3693_v5 = vld [vmem:[#allocation11 + $0x240] sm:$0xff]   ;;  %v3694_v9 = vld [vmem:[#allocation11 + $0x288] sm:$0xff]  }
  0xd0   : > { %3160 = vmatpush3.bf16.msra.mxu0 %v3674_v46  ;;  %v4388_v19 = vpack.c.bf16 %v485_v17, %v484_v14  ;;  %v4390_v22 = vpack.c.bf16 %v484_v14, %v483_v58  ;;  %1282 = vmatprep.mubr.bf16.mxu0 %v4384_v15  ;;  %v426_v29 = vld [vmem:[#allocation2 + $0x40] sm:$0xff]  ;;  %v3695_v13 = vld [vmem:[#allocation11 + $0x210] sm:$0xff]   ;;  %v3696_v14 = vld [vmem:[#allocation11 + $0x248] sm:$0xff]  }
  0xd1   : > { %3161 = vmatprep.subr.bf16.mxu0 %v3676_v55  ;;  %1348 = vmatmul.mubr.bf16.gmra.mrb[8].mxu1 %v4375_v59  ;;  %v4399_v40 = vpack.c.bf16 %v427_v31, %v426_v29  ;;  %v3689_v42 = vld [vmem:[#allocation11 + $0x1b8] sm:$0xff]   ;;  %v521_v55 = vld [vmem:[#allocation2 + $0x24] sm:$0xff]  ;;  %v3697_v18 = vld [vmem:[#allocation11 + $0x290] sm:$0xff]  }
  0xd2   : > { %3206 = vmatpush3.bf16.msra.mxu1 %v3679_v62  ;;  %1355 = vmatprep.mubr.bf16.mxu1 %v4388_v19  ;;  %v3690_v58 = vld [vmem:[#allocation11 + $0x200] sm:$0xff]   ;;  %v562_v33 = vld [vmem:[#allocation2 + $0x35] sm:$0xff]  ;;  %v4436_v34 = vpack.c.bf16 %v541_v12, %v521_v55 }
  0xd3   : > { %3207 = vmatprep.subr.bf16.mxu1 %v3681_v2  ;;  %v3692_v2 = vld [vmem:[#allocation11 + $0x208] sm:$0xff]   ;;  %v3699_v29 = vld [vmem:[#allocation11 + $0x250] sm:$0xff]   ;;  %v3700_v31 = vld [vmem:[#allocation11 + $0x298] sm:$0xff]  }
  0xd4   : > { %3162 = vmatpush3.bf16.msra.mxu0 %v3678_v57  ;;  %v486_v46 = vld [vmem:[#allocation2 + $0x4a] sm:$0xff]  ;;  %v487_v48 = vld [vmem:[#allocation2 + $0x52] sm:$0xff]  ;;  %v539_v57 = vld [vmem:[#allocation2 + $0x1c] sm:$0xff] }
  0xd5   : > { %3163 = vmatprep.subr.bf16.mxu0 %v3680_v63  ;;  %v4405_v50 = vpack.c.bf16 %v487_v48, %v486_v46  ;;  %v4407_v51 = vpack.c.bf16 %v486_v46, %v485_v17  ;;  %v4419_v62 = vpack.c.bf16 %v521_v55, %v539_v57  ;;  %v560_v63 = vld [vmem:[#allocation2 + $0x25] sm:$0xff]  ;;  %v4422_v47 = vpack.c.bf16 %v539_v57, %v519_v39  ;;  %v3702_v39 = vld [vmem:[#allocation11 + $0x258] sm:$0xff]   ;;  %v565_v44 = vld [vmem:[#allocation2 + $0x4d] sm:$0xff] }
  0xd6   : > { %3208 = vmatpush3.bf16.msra.mxu1 %v3683_v10  ;;  %v4426_v8 = vpack.c.bf16 %v561_v3, %v560_v63  ;;  %v523_v10 = vld [vmem:[#allocation2 + $0x34] sm:$0xff]  ;;  %v525_v32 = vld [vmem:[#allocation2 + $0x44] sm:$0xff]  ;;  %v3706_v63 = vld [vmem:[#allocation11 + $0x2a8] sm:$0xff]  }
  0xd7   : > { %1283 = vmatmul.mubr.bf16.gmra.mrb[12].mxu0 %v4386_v16  ;;  %3209 = vmatprep.subr.bf16.mxu1 %v3684_v24  ;;  %v4433_v17 = vpack.c.bf16 %v523_v10, %v541_v12  ;;  %v502_v24 = vld [vmem:[#allocation2 + $0x2b] sm:$0xff]  ;;  %v505_v46 = vld [vmem:[#allocation2 + $0x43] sm:$0xff]  ;;  %v3707_v3 = vld [vmem:[#allocation11 + $0x230] sm:$0xff]  }
  0xd8   : > { %3164 = vmatpush3.bf16.msra.mxu0 %v3682_v6  ;;  %1290 = vmatprep.mubr.bf16.mxu0 %v4392_v23  ;;  %v500_v6 = vld [vmem:[#allocation2 + $0x1b] sm:$0xff]  ;;  %v3703_v48 = vld [vmem:[#allocation11 + $0x2a0] sm:$0xff]  }
  0xd9   : > { %1356 = vmatmul.mubr.bf16.gmra.mrb[12].mxu1 %v4390_v22  ;;  %3165 = vmatprep.subr.bf16.mxu0 %v3685_v28  ;;  %v4429_v11 = vpack.c.bf16 %v501_v43, %v500_v6  ;;  %v3698_v28 = vld [vmem:[#allocation11 + $0x218] sm:$0xff]   ;;  %v3705_v57 = vld [vmem:[#allocation11 + $0x260] sm:$0xff]   ;;  %v3708_v6 = vld [vmem:[#allocation11 + $0x268] sm:$0xff]  }
  0xda   : > { %3210 = vmatpush3.bf16.msra.mxu1 %v3686_v30  ;;  %1363 = vmatprep.mubr.bf16.mxu1 %v4405_v50  ;;  %v4441_v30 = vpack.c.bf16 %v4371_v54, %v562_v33  ;;  %v3709_v12 = vld [vmem:[#allocation11 + $0x2b0] sm:$0xff]  }
  0xdb   : > { %3211 = vmatprep.subr.bf16.mxu1 %v3688_v36  ;;  %v543_v36 = vld [vmem:[#allocation2 + $0x3c] sm:$0xff] }
  0xdc   : > { %3166 = vmatpush3.bf16.msra.mxu0 %v3687_v35  ;;  %v4445_v35 = vpack.c.bf16 %v4359_v37, %v502_v24  ;;  %v4449_v54 = vpack.c.bf16 %v525_v32, %v543_v36  ;;  %v4452_v37 = vpack.c.bf16 %v543_v36, %v523_v10  ;;  %v567_v10 = vld [vmem:[#allocation2 + $0x5d] sm:$0xff]  ;;  %v3710_v24 = vld [vmem:[#allocation11 + $0x270] sm:$0xff]  }
  0xdd   : > { %3453 = vmatprep.subr.bf16.mxu0 %v4030_v0 }
  0xde   : > { %3212 = vmatpush3.bf16.msra.mxu1 %v3689_v42  ;;  %v564_v42 = vld [vmem:[#allocation2 + $0x45] sm:$0xff] }
  0xdf   : > { %1291 = vmatmul.mubr.bf16.gmra.mrb[16].mxu0 %v4399_v40  ;;  %3256 = vmatprep.subr.bf16.mxu1 %v3691_v45  ;;  %v504_v45 = vld [vmem:[#allocation2 + $0x3b] sm:$0xff]  ;;  %v4454_v55 = vpack.c.bf16 %v565_v44, %v564_v42 }
  0xe0   : > { %1404 = vmatprep.mubr.bf16.mxu0 %v4401_v41  ;;  %v578_v44 = vld [vmem:[#allocation2 + $0x16] sm:$0xff] }
  0xe1   : > { %1364 = vmatmul.mubr.bf16.gmra.mrb[16].mxu1 %v4407_v51 }
  0xe2   : > { %1477 = vmatprep.mubr.bf16.mxu1 %v4411_v53 }
  0xe7   : > { %1405 = vmatmul.mubr.bf16.vlgmr.msra.gmra.mrb[20].mxu0 %v4416_v56 }
  0xe8   : > { %3454 = vmatpush3.bf16.msra.mxu0 %v3690_v58  ;;  %1412 = vmatprep.mubr.bf16.mxu0 %v4419_v62  ;;  %v545_v58 = vld [vmem:[#allocation2 + $0x4c] sm:$0xff] }
  0xe9   : > { %3455 = vmatprep.subr.bf16.mxu0 %v4030_v0  ;;  %1478 = vmatmul.mubr.bf16.vlgmr.msra.gmra.mrb[20].mxu1 %v4422_v47 }
  0xea   : > { %3257 = vmatpush3.bf16.msra.mxu1 %v3693_v5  ;;  %1485 = vmatprep.mubr.bf16.mxu1 %v4426_v8  ;;  %v4461_v5 = vpack.c.bf16 %v505_v46, %v504_v45  ;;  %v579_v45 = vld [vmem:[#allocation2 + $0x1e] sm:$0xff] }
  0xeb   : > { %3258 = vmatprep.subr.bf16.mxu1 %v3694_v9  ;;  %v566_v9 = vld [vmem:[#allocation2 + $0x55] sm:$0xff]  ;;  %v4484_v46 = vpack.c.bf16 %v579_v45, %v578_v44  ;;  %v584_v44 = vld [vmem:[#allocation2 + $0x46] sm:$0xff] }
  0xec   : > { %3456 = vmatpush3.bf16.msra.mxu0 %v3692_v2  ;;  %v527_v2 = vld [vmem:[#allocation2 + $0x54] sm:$0xff]  ;;  %v4471_v33 = vpack.c.bf16 %v567_v10, %v566_v9  ;;  %v3723_v10 = vld [vmem:[#allocation11 + $0x348] sm:$0xff]  }
  0xed   : > { %3457 = vmatprep.subr.bf16.mxu0 %v4030_v0  ;;  %v4464_v43 = vpack.c.bf16 %v527_v2, %v545_v58  ;;  %v585_v45 = vld [vmem:[#allocation2 + $0x4e] sm:$0xff] }
  0xee   : > { %3259 = vmatpush3.bf16.msra.mxu1 %v3696_v14  ;;  %v506_v14 = vld [vmem:[#allocation2 + $0x4b] sm:$0xff] }
  0xef   : > { %1413 = vmatmul.mubr.bf16.gmra.mrb[24].mxu0 %v4429_v11  ;;  %3260 = vmatprep.subr.bf16.mxu1 %v3697_v18  ;;  %v507_v18 = vld [vmem:[#allocation2 + $0x53] sm:$0xff] }
  0xf0   : > { %3458 = vmatpush3.bf16.msra.mxu0 %v3695_v13  ;;  %1420 = vmatprep.mubr.bf16.mxu0 %v4433_v17  ;;  %v4468_v13 = vpack.c.bf16 %v545_v58, %v525_v32  ;;  %v4475_v36 = vpack.c.bf16 %v507_v18, %v506_v14  ;;  %v547_v32 = vld [vmem:[#allocation2 + $0x5c] sm:$0xff]  ;;  %v3719_v58 = vld [vmem:[#allocation11 + $0x340] sm:$0xff]   ;;  %v3725_v14 = vld [vmem:[#allocation11 + $0x390] sm:$0xff]  }
  0xf1   : > { %3459 = vmatprep.subr.bf16.mxu0 %v4030_v0  ;;  %1486 = vmatmul.mubr.bf16.gmra.mrb[24].mxu1 %v4436_v34  ;;  %v4479_v42 = vpack.c.bf16 %v547_v32, %v527_v2  ;;  %v581_v2 = vld [vmem:[#allocation2 + $0x2e] sm:$0xff]  ;;  %v582_v18 = vld [vmem:[#allocation2 + $0x36] sm:$0xff]  ;;  %v3730_v32 = vld [vmem:[#allocation11 + $0x2e0] sm:$0xff]  }
  0xf2   : > { %3261 = vmatpush3.bf16.msra.mxu1 %v3699_v29  ;;  %1493 = vmatprep.mubr.bf16.mxu1 %v4441_v30  ;;  %v3714_v29 = vld [vmem:[#allocation11 + $0x300] sm:$0xff]  }
  0xf3   : > { %3262 = vmatprep.subr.bf16.mxu1 %v3700_v31  ;;  %v3712_v31 = vld [vmem:[#allocation11 + $0x2b8] sm:$0xff]  }
  0xf4   : > { %3460 = vmatpush3.bf16.msra.mxu0 %v3698_v28  ;;  %v3711_v28 = vld [vmem:[#allocation11 + $0x238] sm:$0xff]  }
  0xf5   : > { %3461 = vmatprep.subr.bf16.mxu0 %v4030_v0  ;;  %v4457_v0 = vld [vmem:[#allocation2] sm:$0xff] }
  0xf6   : > { %3263 = vmatpush3.bf16.msra.mxu1 %v3702_v39  ;;  %v3717_v39 = vld [vmem:[#allocation11 + $0x380] sm:$0xff]  }
  0xf7   : > { %1421 = vmatmul.mubr.bf16.gmra.mrb[28].mxu0 %v4445_v35  ;;  %3264 = vmatprep.subr.bf16.mxu1 %v3703_v48  ;;  %v3715_v48 = vld [vmem:[#allocation11 + $0x2c0] sm:$0xff]  }
  0xf8   : > { %3462 = vmatpush3.bf16.msra.mxu0 %v3701_v38  ;;  %1428 = vmatprep.mubr.bf16.mxu0 %v4449_v54  ;;  %v3713_v38 = vld [vmem:[#allocation11 + $0x278] sm:$0xff]  }
  0xf9   : > { %3463 = vmatprep.subr.bf16.mxu0 %v4457_v0  ;;  %1494 = vmatmul.mubr.bf16.gmra.mrb[28].mxu1 %v4452_v37 }
  0xfa   : > { %1501 = vmatprep.mubr.bf16.mxu1 %v4454_v55  ;;  %3265 = vmatpush3.bf16.msra.mxu1 %v3705_v57  ;;  %v3718_v57 = vld [vmem:[#allocation11 + $0x2c8] sm:$0xff]  }
  0xfb   : > { %3266 = vmatprep.subr.bf16.mxu1 %v3706_v63  ;;  %v580_v63 = vld [vmem:[#allocation2 + $0x26] sm:$0xff] }
  0xfc   : > { %3464 = vmatpush3.bf16.msra.mxu0 %v3704_v52  ;;  %v3716_v52 = vld [vmem:[#allocation11 + $0x308] sm:$0xff]   ;;  %v4491_v9 = vpack.c.bf16 %v581_v2, %v580_v63  ;;  %v3738_v63 = vld [vmem:[#allocation11 + $0x2f0] sm:$0xff]  }
  0xfd   : > { %3465 = vmatprep.subr.bf16.mxu0 %v4457_v0  ;;  %v3739_v2 = vld [vmem:[#allocation11 + $0x368] sm:$0xff]  }
  0xfe   : > { %3267 = vmatpush3.bf16.msra.mxu1 %v3708_v6  ;;  %v3721_v6 = vld [vmem:[#allocation11 + $0x388] sm:$0xff]  }
  0xff   : > { %1429 = vmatmul.mubr.bf16.gmra.mrb[32].mxu0 %v4461_v5  ;;  %3268 = vmatprep.subr.bf16.mxu1 %v3709_v12  ;;  %v3724_v12 = vld [vmem:[#allocation11 + $0x318] sm:$0xff]  }
 0x100   : > { %1436 = vmatprep.mubr.bf16.mxu0 %v4464_v43  ;;  %3466 = vmatpush3.bf16.msra.mxu0 %v3707_v3  ;;  %v3720_v3 = vld [vmem:[#allocation11 + $0x310] sm:$0xff]  }
 0x101   : > { %3467 = vmatprep.subr.bf16.mxu0 %v4457_v0  ;;  %1502 = vmatmul.mubr.bf16.gmra.mrb[32].mxu1 %v4468_v13 }
 0x102   : > { %1509 = vmatprep.mubr.bf16.mxu1 %v4471_v33  ;;  %3269 = vmatpush3.bf16.msra.mxu1 %v3710_v24  ;;  %v583_v24 = vld [vmem:[#allocation2 + $0x3e] sm:$0xff] }
 0x103   : > { %3270 = vmatprep.subr.bf16.mxu1 %v3712_v31  ;;  %v3729_v31 = vld [vmem:[#allocation11 + $0x398] sm:$0xff]  }
 0x104   : > { %3468 = vmatpush3.bf16.msra.mxu0 %v3711_v28  ;;  %v3726_v28 = vld [vmem:[#allocation11 + $0x2d8] sm:$0xff]  }
 0x105   : > { %3302 = vmatprep.subr.bf16.mxu0 %v3714_v29  ;;  %v3728_v29 = vld [vmem:[#allocation11 + $0x320] sm:$0xff]  }
 0x106   : > { %3271 = vmatpush3.bf16.msra.mxu1 %v3713_v38  ;;  %v3731_v38 = vld [vmem:[#allocation11 + $0x358] sm:$0xff]  }
 0x107   : > { %1437 = vmatmul.mubr.bf16.gmra.mrb[36].mxu0 %v4475_v36  ;;  %3348 = vmatprep.subr.bf16.mxu1 %v3717_v39  ;;  %v3732_v39 = vld [vmem:[#allocation11 + $0x328] sm:$0xff]  }
 0x108   : > { %3469 = vmatprep.mubr.msk.bf16.mxu0 %vm4031_vm8, %v4457_v0 }
 0x109   : > { %1510 = vmatmul.mubr.bf16.gmra.mrb[36].mxu1 %v4479_v42 }
 0x10a   : > { %2240 = vmatprep.mubr.bf16.mxu1 %v4329_v60  ;;  %v3722_v60 = vld [vmem:[#allocation11 + $0x2d0] sm:$0xff]  }
 0x10f   : > { %3470 = vmatmul.mubr.bf16.vlgmr.msra.gmra.mrb[40].mxu0 %v4484_v46 }
 0x110   : > { %3303 = vmatpush3.bf16.msra.mxu0 %v3715_v48  ;;  %3473 = vmatprep.mubr.msk.bf16.mxu0 %vm4031_vm8, %v4457_v0  ;;  %v3733_v48 = vld [vmem:[#allocation11 + $0x3a0] sm:$0xff]  }
 0x111   : > { %3304 = vmatprep.subr.bf16.mxu0 %v3716_v52  ;;  %2241 = vmatmul.mubr.bf16.vlgmr.msra.gmra.mrb[40].mxu1 %v4332_v61  ;;  %v3727_v61 = vld [vmem:[#allocation11 + $0x350] sm:$0xff]   ;;  %v3734_v52 = vld [vmem:[#allocation11 + $0x2e8] sm:$0xff]  }
 0x112   : > { %3349 = vmatpush3.bf16.msra.mxu1 %v3719_v58  ;;  %2248 = vmatprep.mubr.bf16.mxu1 %v4345_v20  ;;  %v4498_v20 = vpack.c.bf16 %v583_v24, %v582_v18  ;;  %v3737_v58 = vld [vmem:[#allocation11 + $0x3a8] sm:$0xff]   ;;  %v3745_v24 = vld [vmem:[#allocation11 + $0x378] sm:$0xff]  }
 0x113   : > { %3350 = vmatprep.subr.bf16.mxu1 %v3721_v6  ;;  %v586_v6 = vld [vmem:[#allocation2 + $0x56] sm:$0xff] }
 0x114   : > { %3305 = vmatpush3.bf16.msra.mxu0 %v3718_v57  ;;  %v3736_v57 = vld [vmem:[#allocation11 + $0x330] sm:$0xff]  }
 0x115   : > { %3306 = vmatprep.subr.bf16.mxu0 %v3720_v3  ;;  %v3741_v3 = vld [vmem:[#allocation11 + $0x338] sm:$0xff]  }
 0x116   : > { %3351 = vmatpush3.bf16.msra.mxu1 %v3723_v10  ;;  %v3740_v10 = vld [vmem:[#allocation11 + $0x3b0] sm:$0xff]  }
 0x117   : > { %3474 = vmatmul.mubr.bf16.gmra.mrb[44].mxu0 %v4491_v9  ;;  %3352 = vmatprep.subr.bf16.mxu1 %v3725_v14  ;;  %v3744_v14 = vld [vmem:[#allocation11 + $0x3b8] sm:$0xff]  }
 0x118   : > { %3307 = vmatpush3.bf16.msra.mxu0 %v3722_v60  ;;  %3477 = vmatprep.mubr.msk.bf16.mxu0 %vm4031_vm8, %v4457_v0  ;;  %v587_v60 = vld [vmem:[#allocation2 + $0x5e] sm:$0xff] }
 0x119   : > { %3308 = vmatprep.subr.bf16.mxu0 %v3724_v12  ;;  %2249 = vmatmul.mubr.bf16.gmra.mrb[44].mxu1 %v4347_v21  ;;  %v3735_v21 = vld [vmem:[#allocation11 + $0x360] sm:$0xff]   ;;  %v3742_v12 = vld [vmem:[#allocation11 + $0x370] sm:$0xff]   ;;  %v4512_v18 = vpack.c.bf16 %v587_v60, %v586_v6 }
 0x11a   : > { %3353 = vmatpush3.bf16.msra.mxu1 %v3727_v61  ;;  %2256 = vmatprep.mubr.bf16.mxu1 %v4353_v27  ;;  %v4505_v27 = vpack.c.bf16 %v585_v45, %v584_v44  ;;  %v3750_v61 = vld [vmem:[#allocation11 + $0x440] sm:$0xff]  }
 0x11b   : > { %3354 = vmatprep.subr.bf16.mxu1 %v3729_v31  ;;  %v3753_v31 = vld [vmem:[#allocation11 + $0x448] sm:$0xff]  }
 0x11c   : > { %3309 = vmatpush3.bf16.msra.mxu0 %v3726_v28  ;;  %v3748_v28 = vld [vmem:[#allocation11 + $0x408] sm:$0xff]  }
 0x11d   : > { %3310 = vmatprep.subr.bf16.mxu0 %v3728_v29  ;;  %v3751_v29 = vld [vmem:[#allocation11 + $0x410] sm:$0xff]  }
 0x11e   : > { %3355 = vmatpush3.bf16.msra.mxu1 %v3731_v38  ;;  %v3765_v38 = vld [vmem:[#allocation11 + $0x468] sm:$0xff]  }
 0x11f   : > { %3478 = vmatmul.mubr.bf16.gmra.mrb[48].mxu0 %v4498_v20  ;;  %3356 = vmatprep.subr.bf16.mxu1 %v3733_v48 }
 0x120   : > { %3311 = vmatpush3.bf16.msra.mxu0 %v3730_v32  ;;  %3481 = vmatprep.mubr.msk.bf16.mxu0 %vm4031_vm8, %v4457_v0  ;;  %v3762_v32 = vld [vmem:[#allocation11 + $0x460] sm:$0xff]  }
 0x121   : > { %3312 = vmatprep.subr.bf16.mxu0 %v3732_v39  ;;  %2257 = vmatmul.mubr.bf16.gmra.mrb[48].mxu1 %v4369_v49  ;;  %v3743_v49 = vld [vmem:[#allocation11 + $0x2f8] sm:$0xff]   ;;  %v3768_v39 = vld [vmem:[#allocation11 + $0x470] sm:$0xff]  }
 0x122   : > { %2264 = vmatprep.mubr.bf16.mxu1 %v4384_v15  ;;  %3357 = vmatpush3.bf16.msra.mxu1 %v3735_v21  ;;  %v3746_v15 = vld [vmem:[#allocation11 + $0x400] sm:$0xff]  }
 0x123   : > { %3358 = vmatprep.subr.bf16.mxu1 %v3737_v58 }
 0x124   : > { %3313 = vmatpush3.bf16.msra.mxu0 %v3734_v52 }
 0x125   : > { %3314 = vmatprep.subr.bf16.mxu0 %v3736_v57 }
 0x126   : > { %3359 = vmatpush3.bf16.msra.mxu1 %v3739_v2 }
 0x127   : > { %3482 = vmatmul.mubr.bf16.gmra.mrb[52].mxu0 %v4505_v27  ;;  %3360 = vmatprep.subr.bf16.mxu1 %v3740_v10 }
 0x128   : > { %3485 = vmatprep.mubr.msk.bf16.mxu0 %vm4031_vm8, %v4457_v0  ;;  %3315 = vmatpush3.bf16.msra.mxu0 %v3738_v63 }
 0x129   : > { %3316 = vmatprep.subr.bf16.mxu0 %v3741_v3  ;;  %2265 = vmatmul.mubr.bf16.gmra.mrb[52].mxu1 %v4386_v16  ;;  %v3747_v16 = vld [vmem:[#allocation11 + $0x3c0] sm:$0xff]  }
 0x12a   : > { %2272 = vmatprep.mubr.bf16.mxu1 %v4392_v23  ;;  %3361 = vmatpush3.bf16.msra.mxu1 %v3742_v12  ;;  %v3749_v23 = vld [vmem:[#allocation11 + $0x3c8] sm:$0xff]  }
 0x12b   : > { %3362 = vmatprep.subr.bf16.mxu1 %v3744_v14 }
 0x12c   : > { %3317 = vmatpush3.bf16.msra.mxu0 %v3743_v49 }
 0x12d   : > { %3394 = vmatprep.subr.bf16.mxu0 %v3746_v15 }
 0x12e   : > { %3363 = vmatpush3.bf16.msra.mxu1 %v3745_v24 }
 0x12f   : > { %3486 = vmatmul.mubr.bf16.gmra.mrb[56].mxu0 %v4512_v18  ;;  %3489 = vmatprep.subr.bf16.mxu1 %v4457_v0 }
 0x130   : > { %2313 = vmatprep.mubr.bf16.mxu0 %v4338_v7  ;;  %v3752_v7 = vld [vmem:[#allocation11 + $0x3d0] sm:$0xff]  }
 0x131   : > { %2273 = vmatmul.mubr.bf16.gmra.mrb[56].mxu1 %v4399_v40  ;;  %v3754_v40 = vld [vmem:[#allocation11 + $0x418] sm:$0xff]  }
 0x132   : > { %2386 = vmatprep.mubr.bf16.mxu1 %v4401_v41  ;;  %v3757_v41 = vld [vmem:[#allocation11 + $0x420] sm:$0xff]  }
 0x137   : > { %2314 = vmatmul.mubr.bf16.vlgmr.msra.gmra.mrb[60].mxu0 %v4335_v4  ;;  %v3755_v4 = vld [vmem:[#allocation11 + $0x3d8] sm:$0xff]  }
 0x138   : > { %3395 = vmatpush3.bf16.msra.mxu0 %v3747_v16  ;;  %2321 = vmatprep.mubr.bf16.mxu0 %v4349_v25  ;;  %v3756_v25 = vld [vmem:[#allocation11 + $0x450] sm:$0xff]  }
 0x139   : > { %3396 = vmatprep.subr.bf16.mxu0 %v3748_v28  ;;  %2387 = vmatmul.mubr.bf16.vlgmr.msra.gmra.mrb[60].mxu1 %v4416_v56  ;;  %v3758_v56 = vld [vmem:[#allocation11 + $0x3e0] sm:$0xff]  }
 0x13a   : > { %3490 = vmatpush3.bf16.msra.mxu1 %v3750_v61  ;;  %2394 = vmatprep.mubr.bf16.mxu1 %v4419_v62  ;;  %v3759_v62 = vld [vmem:[#allocation11 + $0x458] sm:$0xff]  }
 0x13b   : > { %3491 = vmatprep.subr.bf16.mxu1 %v4457_v0 }
 0x13c   : > { %3397 = vmatpush3.bf16.msra.mxu0 %v3749_v23 }
 0x13d   : > { %3398 = vmatprep.subr.bf16.mxu0 %v3751_v29 }
 0x13e   : > { %3492 = vmatpush3.bf16.msra.mxu1 %v3753_v31 }
 0x13f   : > { %2322 = vmatmul.mubr.bf16.gmra.mrb[64].mxu0 %v4351_v26  ;;  %3493 = vmatprep.subr.bf16.mxu1 %v4457_v0  ;;  %v3760_v26 = vld [vmem:[#allocation11 + $0x428] sm:$0xff]  }
 0x140   : > { %3399 = vmatpush3.bf16.msra.mxu0 %v3752_v7  ;;  %2329 = vmatprep.mubr.bf16.mxu0 %v4377_v1  ;;  %v3761_v1 = vld [vmem:[#allocation11 + $0x3e8] sm:$0xff]  }
 0x141   : > { %3400 = vmatprep.subr.bf16.mxu0 %v3754_v40  ;;  %2395 = vmatmul.mubr.bf16.gmra.mrb[64].mxu1 %v4429_v11  ;;  %v3763_v11 = vld [vmem:[#allocation11 + $0x430] sm:$0xff]  }
 0x142   : > { %3494 = vmatpush3.bf16.msra.mxu1 %v3756_v25  ;;  %2402 = vmatprep.mubr.bf16.mxu1 %v4433_v17  ;;  %v3764_v17 = vld [vmem:[#allocation11 + $0x3f0] sm:$0xff]  }
 0x143   : > { %3495 = vmatprep.subr.bf16.mxu1 %v4457_v0 }
 0x144   : > { %3401 = vmatpush3.bf16.msra.mxu0 %v3755_v4 }
 0x145   : > { %3402 = vmatprep.subr.bf16.mxu0 %v3757_v41 }
 0x146   : > { %3496 = vmatpush3.bf16.msra.mxu1 %v3759_v62 }
 0x147   : > { %2330 = vmatmul.mubr.bf16.gmra.mrb[68].mxu0 %v4375_v59  ;;  %3497 = vmatprep.subr.bf16.mxu1 %v4457_v0  ;;  %v3766_v59 = vld [vmem:[#allocation11 + $0x438] sm:$0xff]  }
 0x148   : > { %3403 = vmatpush3.bf16.msra.mxu0 %v3758_v56  ;;  %2337 = vmatprep.mubr.bf16.mxu0 %v4388_v19  ;;  %v3767_v19 = vld [vmem:[#allocation11 + $0x3f8] sm:$0xff]  }
 0x149   : > { %3404 = vmatprep.subr.bf16.mxu0 %v3760_v26  ;;  %2403 = vmatmul.mubr.bf16.gmra.mrb[68].mxu1 %v4445_v35  ;;  %v3769_v35 = vld [vmem:[#allocation11 + $0x478] sm:$0xff]  }
 0x14a   : > { %2410 = vmatprep.mubr.bf16.mxu1 %v4449_v54  ;;  %3498 = vmatpush3.bf16.msra.mxu1 %v3762_v32 }
 0x14b   : > { %3499 = vmatprep.subr.bf16.mxu1 %v4457_v0 }
 0x14c   : > { %3405 = vmatpush3.bf16.msra.mxu0 %v3761_v1 }
 0x14d   : > { %3406 = vmatprep.subr.bf16.mxu0 %v3763_v11 }
 0x14e   : > { %3500 = vmatpush3.bf16.msra.mxu1 %v3765_v38 }
 0x14f   : > { %2338 = vmatmul.mubr.bf16.gmra.mrb[72].mxu0 %v4390_v22  ;;  %3501 = vmatprep.subr.bf16.mxu1 %v4457_v0 }
 0x150   : > { %2345 = vmatprep.mubr.bf16.mxu0 %v4405_v50  ;;  %3407 = vmatpush3.bf16.msra.mxu0 %v3764_v17  ;;  %v4570_v50 = vld [vmem:[#allocation13] ss:$0 sm:$0xff] }
 0x151   : > { %3408 = vmatprep.subr.bf16.mxu0 %v3766_v59  ;;  %2411 = vmatmul.mubr.bf16.gmra.mrb[72].mxu1 %v4461_v5 }
 0x152   : > { %2418 = vmatprep.mubr.bf16.mxu1 %v4464_v43  ;;  %3502 = vmatpush3.bf16.msra.mxu1 %v3768_v39 }
 0x153   : > { %3503 = vmatprep.subr.bf16.mxu1 %v4457_v0 }
 0x154   : > { %3409 = vmatpush3.bf16.msra.mxu0 %v3767_v19 }
 0x156   : > { %3504 = vmatpush3.bf16.msra.mxu1 %v3769_v35 }
 0x157   : > { %2346 = vmatmul.mubr.bf16.gmra.mrb[76].mxu0 %v4407_v51 }
 0x158   : > { %2459 = vmatprep.mubr.bf16.mxu0 %v4411_v53 }
 0x159   : > { %2419 = vmatmul.mubr.bf16.gmra.mrb[76].mxu1 %v4475_v36 }
 0x15a   : > { %3505 = vmatprep.mubr.msk.bf16.mxu1 %vm4031_vm8, %v4457_v0 }
 0x15f   : > { %2460 = vmatmul.mubr.bf16.vlgmr.msra.gmra.mrb[80].mxu0 %v4422_v47 }
 0x160   : > { %2467 = vmatprep.mubr.bf16.mxu0 %v4426_v8 }
 0x161   : > { %3506 = vmatmul.mubr.bf16.vlgmr.msra.gmra.mrb[80].mxu1 %v4484_v46 }
 0x162   : > { %3509 = vmatprep.mubr.msk.bf16.mxu1 %vm4031_vm8, %v4457_v0 }
 0x167   : > { %2468 = vmatmul.mubr.bf16.gmra.mrb[84].mxu0 %v4436_v34 }
 0x168   : > { %2475 = vmatprep.mubr.bf16.mxu0 %v4441_v30 }
 0x169   : > { %3510 = vmatmul.mubr.bf16.gmra.mrb[84].mxu1 %v4491_v9 }
 0x16a   : > { %3513 = vmatprep.mubr.msk.bf16.mxu1 %vm4031_vm8, %v4457_v0 }
 0x16f   : > { %2476 = vmatmul.mubr.bf16.gmra.mrb[88].mxu0 %v4452_v37 }
 0x170   : > { %2483 = vmatprep.mubr.bf16.mxu0 %v4454_v55 }
 0x171   : > { %3514 = vmatmul.mubr.bf16.gmra.mrb[88].mxu1 %v4498_v20 }
 0x172   : > { %3517 = vmatprep.mubr.msk.bf16.mxu1 %vm4031_vm8, %v4457_v0 }
 0x177   : > { %2484 = vmatmul.mubr.bf16.gmra.mrb[92].mxu0 %v4468_v13 }
 0x178   : > { %2491 = vmatprep.mubr.bf16.mxu0 %v4471_v33 }
 0x179   : > { %3518 = vmatmul.mubr.bf16.gmra.mrb[92].mxu1 %v4505_v27 }
 0x17a   : > { %3521 = vmatprep.mubr.msk.bf16.mxu1 %vm4031_vm8, %v4457_v0 }
 0x17f   : > { %2492 = vmatmul.mubr.bf16.gmra.mrb[96].mxu0 %v4479_v42 }
 0x181   : > { %3522 = vmatmul.mubr.bf16.gmra.mrb[96].mxu1 %v4512_v18 }
 0x192   : > { %v3075_v22 = vpop.f32.mrb[0].mxu0 }
 0x193   : > { %v3076_v51 = vpop.f32.mrb[1].mxu0 }
 0x194   : > { %v3077_v53 = vadd.f32 %v3076_v51, %v3075_v22  ;;  %v3078_v47 = vpop.f32.mrb[2].mxu0  ;;  %v3121_v8 = vpop.f32.mrb[0].mxu1 }
 0x195   : > { %v3079_v34 = vpop.f32.mrb[3].mxu0  ;;  %v3122_v37 = vpop.f32.mrb[1].mxu1 }
 0x196   : > { %v1261_v30 = vadd.f32 %v3077_v53, %v4570_v50  ;;  %v3080_v54 = vadd.f32 %v3079_v34, %v3078_v47  ;;  %v3123_v55 = vadd.f32 %v3122_v37, %v3121_v8  ;;  %v3124_v5 = vpop.f32.mrb[2].mxu1 }
 0x197   : > { %v3125_v43 = vpop.f32.mrb[3].mxu1 }
 0x198   : > { %v1264_v0 = vadd.f32 %v3080_v54, %v4570_v50  ;;  %v4574_v13 = vadd.f32 %v3123_v55, %v1261_v30  ;;  %v3126_v33 = vadd.f32 %v3125_v43, %v3124_v5 }
 0x19a   : > { %v4576_v36 = vadd.f32 %v3126_v33, %v1264_v0  ;;  %v3081_v42 = vpop.f32.mrb[4].mxu0 }
 0x19b   : > { %v3082_v46 = vpop.f32.mrb[5].mxu0 }
 0x19c   : > { %v3083_v9 = vadd.f32 %v3082_v46, %v3081_v42  ;;  %v3084_v20 = vpop.f32.mrb[6].mxu0  ;;  %v3127_v44 = vpop.f32.mrb[4].mxu1 }
 0x19d   : > { %v3085_v45 = vpop.f32.mrb[7].mxu0  ;;  %v3128_v48 = vpop.f32.mrb[5].mxu1 }
 0x19e   : > { %v1269_v52 = vadd.f32 %v3083_v9, %v4570_v50  ;;  %v3086_v21 = vadd.f32 %v3085_v45, %v3084_v20  ;;  %v3129_v57 = vadd.f32 %v3128_v48, %v3127_v44  ;;  %v3130_v58 = vpop.f32.mrb[6].mxu1 }
 0x19f   : > { %v3131_v27 = vpop.f32.mrb[7].mxu1 }
 0x1a0   : > { %v1272_v63 = vadd.f32 %v3086_v21, %v4570_v50  ;;  %v4580_v2 = vadd.f32 %v3129_v57, %v1269_v52  ;;  %v3132_v3 = vadd.f32 %v3131_v27, %v3130_v58 }
 0x1a2   : > { %v4582_v6 = vadd.f32 %v3132_v3, %v1272_v63  ;;  %v3087_v60 = vpop.f32.mrb[8].mxu0 }
 0x1a3   : > { %v3088_v10 = vpop.f32.mrb[9].mxu0 }
 0x1a4   : > { %v3089_v12 = vadd.f32 %v3088_v10, %v3087_v60  ;;  %v3090_v49 = vpop.f32.mrb[10].mxu0  ;;  %v3133_v18 = vpop.f32.mrb[8].mxu1 }
 0x1a5   : > { %v3091_v15 = vpop.f32.mrb[11].mxu0  ;;  %v3134_v16 = vpop.f32.mrb[9].mxu1 }
 0x1a6   : > { %v1277_v14 = vadd.f32 %v3089_v12, %v4570_v50  ;;  %v3092_v24 = vadd.f32 %v3091_v15, %v3090_v49  ;;  %v3135_v23 = vadd.f32 %v3134_v16, %v3133_v18  ;;  %v3136_v61 = vpop.f32.mrb[10].mxu1 }
 0x1a7   : > { %v3137_v29 = vpop.f32.mrb[11].mxu1 }
 0x1a8   : > { %v1280_v28 = vadd.f32 %v3092_v24, %v4570_v50  ;;  %v4586_v7 = vadd.f32 %v3135_v23, %v1277_v14  ;;  %v3138_v31 = vadd.f32 %v3137_v29, %v3136_v61 }
 0x1aa   : > { %v4588_v40 = vadd.f32 %v3138_v31, %v1280_v28  ;;  %v3093_v4 = vpop.f32.mrb[12].mxu0 }
 0x1ab   : > { %v3094_v25 = vpop.f32.mrb[13].mxu0 }
 0x1ac   : > { %v3095_v41 = vadd.f32 %v3094_v25, %v3093_v4  ;;  %v3096_v56 = vpop.f32.mrb[14].mxu0  ;;  %v3139_v62 = vpop.f32.mrb[12].mxu1 }
 0x1ad   : > { %v3097_v26 = vpop.f32.mrb[15].mxu0  ;;  %v3140_v1 = vpop.f32.mrb[13].mxu1 }
 0x1ae   : > { %v1285_v32 = vadd.f32 %v3095_v41, %v4570_v50  ;;  %v3098_v11 = vadd.f32 %v3097_v26, %v3096_v56  ;;  %v3141_v17 = vadd.f32 %v3140_v1, %v3139_v62  ;;  %v3142_v38 = vpop.f32.mrb[14].mxu1 }
 0x1af   : > { %v3143_v59 = vpop.f32.mrb[15].mxu1 }
 0x1b0   : > { %v1288_v19 = vadd.f32 %v3098_v11, %v4570_v50  ;;  %v4592_v39 = vadd.f32 %v3141_v17, %v1285_v32  ;;  %v3144_v35 = vadd.f32 %v3143_v59, %v3142_v38 }
 0x1b2   : > { %v4594_v22 = vadd.f32 %v3144_v35, %v1288_v19  ;;  %v3099_v51 = vpop.f32.mrb[16].mxu0 }
 0x1b3   : > { %v3100_v53 = vpop.f32.mrb[17].mxu0 }
 0x1b4   : > { %v3101_v47 = vadd.f32 %v3100_v53, %v3099_v51  ;;  %v3102_v8 = vpop.f32.mrb[18].mxu0  ;;  %v3145_v54 = vpop.f32.mrb[16].mxu1 }
 0x1b5   : > { %v3103_v34 = vpop.f32.mrb[19].mxu0  ;;  %v3146_v55 = vpop.f32.mrb[17].mxu1 }
 0x1b6   : > { %v1293_v30 = vadd.f32 %v3101_v47, %v4570_v50  ;;  %v3104_v37 = vadd.f32 %v3103_v34, %v3102_v8  ;;  %v3147_v0 = vadd.f32 %v3146_v55, %v3145_v54  ;;  %v3148_v43 = vpop.f32.mrb[18].mxu1 }
 0x1b7   : > { %v3149_v33 = vpop.f32.mrb[19].mxu1 }
 0x1b8   : > { %v1296_v5 = vadd.f32 %v3104_v37, %v4570_v50  ;;  %v4598_v42 = vadd.f32 %v3147_v0, %v1293_v30  ;;  %v3150_v46 = vadd.f32 %v3149_v33, %v3148_v43 }
 0x1ba   : > { %v3167_v9 = vpop.f32.mrb[20].mxu0  ;;  %v4600_v44 = vadd.f32 %v3150_v46, %v1296_v5 }
 0x1bb   : > { %v3168_v20 = vpop.f32.mrb[21].mxu0 }
 0x1bc   : > { %v3169_v45 = vadd.f32 %v3168_v20, %v3167_v9  ;;  %v3170_v48 = vpop.f32.mrb[22].mxu0  ;;  %v3213_v57 = vpop.f32.mrb[20].mxu1 }
 0x1bd   : > { %v3171_v52 = vpop.f32.mrb[23].mxu0  ;;  %v3214_v27 = vpop.f32.mrb[21].mxu1 }
 0x1be   : > { %v1407_v21 = vadd.f32 %v3169_v45, %v4574_v13  ;;  %v3172_v58 = vadd.f32 %v3171_v52, %v3170_v48  ;;  %v3215_v3 = vadd.f32 %v3214_v27, %v3213_v57  ;;  %v3216_v60 = vpop.f32.mrb[22].mxu1 }
 0x1bf   : > { %v3217_v10 = vpop.f32.mrb[23].mxu1 }
 0x1c0   : > { %v1410_v63 = vadd.f32 %v3172_v58, %v4576_v36  ;;  %v3218_v12 = vadd.f32 %v3217_v10, %v3216_v60  ;;  %v4604_v15 = vadd.f32 %v3215_v3, %v1407_v21 }
 0x1c2   : > { %v3173_v49 = vpop.f32.mrb[24].mxu0  ;;  %v4606_v16 = vadd.f32 %v3218_v12, %v1410_v63 }
 0x1c3   : > { %v3174_v14 = vpop.f32.mrb[25].mxu0 }
 0x1c4   : > { %v3175_v18 = vadd.f32 %v3174_v14, %v3173_v49  ;;  %v3176_v24 = vpop.f32.mrb[26].mxu0  ;;  %v3219_v23 = vpop.f32.mrb[24].mxu1 }
 0x1c5   : > { %v3177_v28 = vpop.f32.mrb[27].mxu0  ;;  %v3220_v29 = vpop.f32.mrb[25].mxu1 }
 0x1c6   : > { %v1415_v13 = vadd.f32 %v3175_v18, %v4580_v2  ;;  %v3178_v61 = vadd.f32 %v3177_v28, %v3176_v24  ;;  %v3221_v31 = vadd.f32 %v3220_v29, %v3219_v23  ;;  %v3222_v4 = vpop.f32.mrb[26].mxu1 }
 0x1c7   : > { %v3223_v25 = vpop.f32.mrb[27].mxu1 }
 0x1c8   : > { %v1418_v36 = vadd.f32 %v3178_v61, %v4582_v6  ;;  %v3224_v41 = vadd.f32 %v3223_v25, %v3222_v4  ;;  %v4610_v62 = vadd.f32 %v3221_v31, %v1415_v13 }
 0x1ca   : > { %v3179_v56 = vpop.f32.mrb[28].mxu0  ;;  %v4612_v11 = vadd.f32 %v3224_v41, %v1418_v36 }
 0x1cb   : > { %v3180_v26 = vpop.f32.mrb[29].mxu0 }
 0x1cc   : > { %v3181_v1 = vadd.f32 %v3180_v26, %v3179_v56  ;;  %v3182_v32 = vpop.f32.mrb[30].mxu0  ;;  %v3225_v38 = vpop.f32.mrb[28].mxu1 }
 0x1cd   : > { %v3183_v17 = vpop.f32.mrb[31].mxu0  ;;  %v3226_v19 = vpop.f32.mrb[29].mxu1 }
 0x1ce   : > { %v1423_v2 = vadd.f32 %v3181_v1, %v4586_v7  ;;  %v3184_v59 = vadd.f32 %v3183_v17, %v3182_v32  ;;  %v3227_v35 = vadd.f32 %v3226_v19, %v3225_v38  ;;  %v3228_v51 = vpop.f32.mrb[30].mxu1 }
 0x1cf   : > { %v3229_v53 = vpop.f32.mrb[31].mxu1 }
 0x1d0   : > { %v1426_v6 = vadd.f32 %v3184_v59, %v4588_v40  ;;  %v3230_v47 = vadd.f32 %v3229_v53, %v3228_v51  ;;  %v4616_v34 = vadd.f32 %v3227_v35, %v1423_v2 }
 0x1d2   : > { %v3185_v8 = vpop.f32.mrb[32].mxu0  ;;  %v4618_v55 = vadd.f32 %v3230_v47, %v1426_v6 }
 0x1d3   : > { %v3186_v30 = vpop.f32.mrb[33].mxu0 }
 0x1d4   : > { %v3187_v54 = vadd.f32 %v3186_v30, %v3185_v8  ;;  %v3188_v37 = vpop.f32.mrb[34].mxu0  ;;  %v3231_v0 = vpop.f32.mrb[32].mxu1 }
 0x1d5   : > { %v3189_v5 = vpop.f32.mrb[35].mxu0  ;;  %v3232_v33 = vpop.f32.mrb[33].mxu1 }
 0x1d6   : > { %v1431_v7 = vadd.f32 %v3187_v54, %v4592_v39  ;;  %v3190_v43 = vadd.f32 %v3189_v5, %v3188_v37  ;;  %v3233_v46 = vadd.f32 %v3232_v33, %v3231_v0  ;;  %v3234_v9 = vpop.f32.mrb[34].mxu1 }
 0x1d7   : > { %v3235_v20 = vpop.f32.mrb[35].mxu1 }
 0x1d8   : > { %v1434_v40 = vadd.f32 %v3190_v43, %v4594_v22  ;;  %v3236_v45 = vadd.f32 %v3235_v20, %v3234_v9  ;;  %v4622_v52 = vadd.f32 %v3233_v46, %v1431_v7 }
 0x1da   : > { %v3191_v48 = vpop.f32.mrb[36].mxu0  ;;  %v4624_v27 = vadd.f32 %v3236_v45, %v1434_v40 }
 0x1db   : > { %v3192_v21 = vpop.f32.mrb[37].mxu0 }
 0x1dc   : > { %v3193_v57 = vadd.f32 %v3192_v21, %v3191_v48  ;;  %v3194_v58 = vpop.f32.mrb[38].mxu0  ;;  %v3237_v3 = vpop.f32.mrb[36].mxu1 }
 0x1dd   : > { %v3195_v63 = vpop.f32.mrb[39].mxu0  ;;  %v3238_v10 = vpop.f32.mrb[37].mxu1 }
 0x1de   : > { %v1439_v39 = vadd.f32 %v3193_v57, %v4598_v42  ;;  %v3196_v60 = vadd.f32 %v3195_v63, %v3194_v58  ;;  %v3239_v12 = vadd.f32 %v3238_v10, %v3237_v3  ;;  %v3240_v49 = vpop.f32.mrb[38].mxu1 }
 0x1df   : > { %v3241_v14 = vpop.f32.mrb[39].mxu1 }
 0x1e0   : > { %v1442_v22 = vadd.f32 %v3196_v60, %v4600_v44  ;;  %v3242_v18 = vadd.f32 %v3241_v14, %v3240_v49  ;;  %v4629_v28 = vadd.f32 %v3239_v12, %v1439_v39 }
 0x1e2   : > { %v1552_v24 = vpop.f32.mrb[40].mxu0  ;;  %v4634_v29 = vadd.f32 %v3242_v18, %v1442_v22 }
 0x1e3   : > { %v4632_v13 = vadd.f32 %v1552_v24, %v4604_v15  ;;  %v3471_v23 = vpop.f32.mrb[41].mxu0 }
 0x1e4   : > { %v1555_v61 = vpop.f32.mrb[42].mxu0  ;;  %v3272_v44 = vpop.f32.mrb[40].mxu1 }
 0x1e5   : > { %v1556_v42 = vadd.f32 %v1555_v61, %v4606_v16  ;;  %v3472_v36 = vpop.f32.mrb[43].mxu0  ;;  %1602 = vst [vmem:[%s4637_s29] sm:$0xff] %v4632_v13  ;;  %v3273_v31 = vpop.f32.mrb[41].mxu1 }
 0x1e6   : > { %v4641_v4 = vadd.f32 %v3273_v31, %v3272_v44  ;;  %v3275_v25 = vpop.f32.mrb[42].mxu1 }
 0x1e7   : > { %1592 = vst [vmem:[#allocation4 + $0x8] sm:$0xff] %v1556_v42  ;;  %v3276_v15 = vpop.f32.mrb[43].mxu1 }
 0x1e8   : > { %v4643_v41 = vadd.f32 %v3276_v15, %v3275_v25 }
 0x1ea   : > { %v1560_v56 = vpop.f32.mrb[44].mxu0  ;;  %v2246_v15 = vadd.f32 %v4643_v41, %v4570_v50 }
 0x1eb   : > { %v1561_v26 = vadd.f32 %v1560_v56, %v4610_v62  ;;  %v3475_v1 = vpop.f32.mrb[45].mxu0 }
 0x1ec   : > { %v1563_v16 = vpop.f32.mrb[46].mxu0  ;;  %v3278_v2 = vpop.f32.mrb[44].mxu1 }
 0x1ed   : > { %1593 = vst [vmem:[#allocation4 + $0x10] sm:$0xff] %v1561_v26  ;;  %v1564_v32 = vadd.f32 %v1563_v16, %v4612_v11  ;;  %v3476_v17 = vpop.f32.mrb[47].mxu0  ;;  %v3279_v38 = vpop.f32.mrb[45].mxu1 }
 0x1ee   : > { %v4647_v59 = vadd.f32 %v3279_v38, %v3278_v2  ;;  %v3281_v19 = vpop.f32.mrb[46].mxu1 }
 0x1ef   : > { %1594 = vst [vmem:[#allocation4 + $0x18] sm:$0xff] %v1564_v32  ;;  %v3282_v6 = vpop.f32.mrb[47].mxu1 }
 0x1f0   : > { %v4649_v35 = vadd.f32 %v3282_v6, %v3281_v19  ;;  %v2251_v41 = vadd.f32 %v4647_v59, %v4570_v50 }
 0x1f2   : > { %v1568_v51 = vpop.f32.mrb[48].mxu0 }
 0x1f3   : > { %v1569_v62 = vadd.f32 %v1568_v51, %v4616_v34  ;;  %v3479_v53 = vpop.f32.mrb[49].mxu0 }
 0x1f4   : > { %v1571_v47 = vpop.f32.mrb[50].mxu0  ;;  %v4652_v8 = vld [vmem:[#allocation4 + $0xa] sm:$0xff]  ;;  %v3284_v54 = vpop.f32.mrb[48].mxu1 }
 0x1f5   : > { %1595 = vst [vmem:[#allocation4 + $0x20] sm:$0xff] %v1569_v62  ;;  %v4655_v11 = vadd.f32 %v1571_v47, %v4618_v55  ;;  %v3480_v30 = vpop.f32.mrb[51].mxu0  ;;  %2962 = vst [vmem:[%s4637_s29 + $0x10] sm:$0xff] %v4652_v8  ;;  %v3285_v5 = vpop.f32.mrb[49].mxu1 }
 0x1f6   : > { %v4659_v37 = vld [vmem:[#allocation4 + $0x14] sm:$0xff]  ;;  %v4665_v34 = vadd.f32 %v3285_v5, %v3284_v54  ;;  %v3287_v7 = vpop.f32.mrb[50].mxu1  ;;  %v2254_v5 = vadd.f32 %v4649_v35, %v4570_v50 }
 0x1f7   : > { %2963 = vst [vmem:[%s4637_s29 + $0x20] sm:$0xff] %v4659_v37  ;;  %2965 = vst [vmem:[%s4637_s29 + $0x40] sm:$0xff] %v4655_v11  ;;  %v3288_v0 = vpop.f32.mrb[51].mxu1 }
 0x1f8   : > { %v4667_v43 = vadd.f32 %v3288_v0, %v3287_v7 }
 0x1fa   : > { %v1576_v55 = vpop.f32.mrb[52].mxu0 }
 0x1fb   : > { %v1577_v33 = vadd.f32 %v1576_v55, %v4622_v52  ;;  %v3483_v40 = vpop.f32.mrb[53].mxu0 }
 0x1fc   : > { %v1579_v46 = vpop.f32.mrb[54].mxu0  ;;  %v4670_v9 = vld [vmem:[#allocation4 + $0x1e] sm:$0xff]  ;;  %v3290_v48 = vpop.f32.mrb[52].mxu1 }
 0x1fd   : > { %1597 = vst [vmem:[#allocation4 + $0x30] sm:$0xff] %v1577_v33  ;;  %v1580_v20 = vadd.f32 %v1579_v46, %v4624_v27  ;;  %v3484_v45 = vpop.f32.mrb[55].mxu0  ;;  %2964 = vst [vmem:[%s4637_s29 + $0x30] sm:$0xff] %v4670_v9  ;;  %v3291_v21 = vpop.f32.mrb[53].mxu1 }
 0x1fe   : > { %v4675_v57 = vadd.f32 %v3291_v21, %v3290_v48  ;;  %v3293_v58 = vpop.f32.mrb[54].mxu1 }
 0x1ff   : > { %1598 = vst [vmem:[#allocation4 + $0x38] sm:$0xff] %v1580_v20  ;;  %v3294_v63 = vpop.f32.mrb[55].mxu1 }
 0x200   : > { %v4677_v39 = vadd.f32 %v3294_v63, %v3293_v58  ;;  %v2259_v63 = vadd.f32 %v4665_v34, %v4570_v50 }
 0x202   : > { %v1584_v52 = vpop.f32.mrb[56].mxu0 }
 0x203   : > { %v1585_v3 = vadd.f32 %v1584_v52, %v4629_v28  ;;  %v3487_v60 = vpop.f32.mrb[57].mxu0 }
 0x204   : > { %v1587_v10 = vpop.f32.mrb[58].mxu0  ;;  %v3296_v12 = vpop.f32.mrb[56].mxu1 }
 0x205   : > { %1599 = vst [vmem:[#allocation4 + $0x40] sm:$0xff] %v1585_v3  ;;  %v1588_v27 = vadd.f32 %v1587_v10, %v4634_v29  ;;  %v3488_v22 = vpop.f32.mrb[59].mxu0  ;;  %v3297_v14 = vpop.f32.mrb[57].mxu1  ;;  %v2243_v29 = vadd.f32 %v4641_v4, %v4570_v50  ;;  %v2262_v10 = vadd.f32 %v4667_v43, %v4570_v50 }
 0x206   : > { %v4681_v49 = vld [vmem:[#allocation4 + $0x32] sm:$0xff]  ;;  %v4685_v18 = vadd.f32 %v3297_v14, %v3296_v12  ;;  %v3299_v24 = vpop.f32.mrb[58].mxu1 }
 0x207   : > { %1600 = vst [vmem:[#allocation4 + $0x48] sm:$0xff] %v1588_v27  ;;  %2966 = vst [vmem:[%s4637_s29 + $0x50] sm:$0xff] %v4681_v49  ;;  %v3300_v23 = vpop.f32.mrb[59].mxu1 }
 0x208   : > { %v4687_v28 = vadd.f32 %v3300_v23, %v3299_v24 }
 0x20a   : > { %v3318_v61 = vpop.f32.mrb[60].mxu0 }
 0x20b   : > { %v3319_v42 = vpop.f32.mrb[61].mxu0 }
 0x20c   : > { %v3320_v36 = vadd.f32 %v3319_v42, %v3318_v61  ;;  %v3321_v44 = vpop.f32.mrb[62].mxu0  ;;  %v4691_v31 = vld [vmem:[#allocation4 + $0x3c] sm:$0xff]  ;;  %v3364_v26 = vpop.f32.mrb[60].mxu1 }
 0x20d   : > { %v3322_v25 = vpop.f32.mrb[63].mxu0  ;;  %2967 = vst [vmem:[%s4637_s29 + $0x60] sm:$0xff] %v4691_v31  ;;  %v3365_v32 = vpop.f32.mrb[61].mxu1 }
 0x20e   : > { %v2316_v56 = vadd.f32 %v3320_v36, %v2243_v29  ;;  %v3323_v1 = vadd.f32 %v3322_v25, %v3321_v44  ;;  %v4697_v16 = vld [vmem:[#allocation4 + $0x46] sm:$0xff]  ;;  %v3366_v4 = vadd.f32 %v3365_v32, %v3364_v26  ;;  %v3367_v2 = vpop.f32.mrb[62].mxu1  ;;  %v2267_v25 = vadd.f32 %v4675_v57, %v4570_v50 }
 0x20f   : > { %2968 = vst [vmem:[%s4637_s29 + $0x70] sm:$0xff] %v4697_v16  ;;  %v3368_v38 = vpop.f32.mrb[63].mxu1 }
 0x210   : > { %v2319_v17 = vadd.f32 %v3323_v1, %v2246_v15  ;;  %v4701_v19 = vadd.f32 %v3366_v4, %v2316_v56  ;;  %v3369_v6 = vadd.f32 %v3368_v38, %v3367_v2  ;;  %v2270_v1 = vadd.f32 %v4677_v39, %v4570_v50 }
 0x212   : > { %v3324_v51 = vpop.f32.mrb[64].mxu0  ;;  %v4705_v53 = vadd.f32 %v3369_v6, %v2319_v17 }
 0x213   : > { %v3325_v62 = vpop.f32.mrb[65].mxu0 }
 0x214   : > { %v3326_v47 = vadd.f32 %v3325_v62, %v3324_v51  ;;  %v3327_v30 = vpop.f32.mrb[66].mxu0  ;;  %v3370_v0 = vpop.f32.mrb[64].mxu1 }
 0x215   : > { %v3328_v54 = vpop.f32.mrb[67].mxu0  ;;  %v3371_v33 = vpop.f32.mrb[65].mxu1 }
 0x216   : > { %v2324_v7 = vadd.f32 %v3326_v47, %v2251_v41  ;;  %v3329_v55 = vadd.f32 %v3328_v54, %v3327_v30  ;;  %v3372_v46 = vadd.f32 %v3371_v33, %v3370_v0  ;;  %v3373_v20 = vpop.f32.mrb[66].mxu1  ;;  %v2275_v54 = vadd.f32 %v4685_v18, %v4570_v50 }
 0x217   : > { %v3374_v45 = vpop.f32.mrb[67].mxu1 }
 0x218   : > { %v2327_v40 = vadd.f32 %v3329_v55, %v2254_v5  ;;  %v4709_v48 = vadd.f32 %v3372_v46, %v2324_v7  ;;  %v3375_v21 = vadd.f32 %v3374_v45, %v3373_v20  ;;  %v2278_v55 = vadd.f32 %v4687_v28, %v4570_v50 }
 0x21a   : > { %v3330_v59 = vpop.f32.mrb[68].mxu0  ;;  %v4713_v52 = vadd.f32 %v3375_v21, %v2327_v40 }
 0x21b   : > { %v3331_v58 = vpop.f32.mrb[69].mxu0 }
 0x21c   : > { %v3332_v3 = vadd.f32 %v3331_v58, %v3330_v59  ;;  %v3333_v35 = vpop.f32.mrb[70].mxu0  ;;  %v3376_v22 = vpop.f32.mrb[68].mxu1 }
 0x21d   : > { %v3334_v60 = vpop.f32.mrb[71].mxu0  ;;  %v3377_v14 = vpop.f32.mrb[69].mxu1 }
 0x21e   : > { %v2332_v27 = vadd.f32 %v3332_v3, %v2259_v63  ;;  %v3335_v12 = vadd.f32 %v3334_v60, %v3333_v35  ;;  %v3378_v23 = vadd.f32 %v3377_v14, %v3376_v22  ;;  %v3379_v61 = vpop.f32.mrb[70].mxu1 }
 0x21f   : > { %v3380_v42 = vpop.f32.mrb[71].mxu1 }
 0x220   : > { %v2335_v24 = vadd.f32 %v3335_v12, %v2262_v10  ;;  %v4717_v29 = vadd.f32 %v3378_v23, %v2332_v27  ;;  %v3381_v36 = vadd.f32 %v3380_v42, %v3379_v61 }
 0x222   : > { %v3336_v34 = vpop.f32.mrb[72].mxu0  ;;  %v4721_v15 = vadd.f32 %v3381_v36, %v2335_v24 }
 0x223   : > { %v3337_v44 = vpop.f32.mrb[73].mxu0 }
 0x224   : > { %v3338_v56 = vadd.f32 %v3337_v44, %v3336_v34  ;;  %v3339_v43 = vpop.f32.mrb[74].mxu0  ;;  %v3382_v17 = vpop.f32.mrb[72].mxu1 }
 0x225   : > { %v3340_v26 = vpop.f32.mrb[75].mxu0  ;;  %v3383_v2 = vpop.f32.mrb[73].mxu1 }
 0x226   : > { %v2340_v32 = vadd.f32 %v3338_v56, %v2267_v25  ;;  %v3341_v4 = vadd.f32 %v3340_v26, %v3339_v43  ;;  %v3384_v6 = vadd.f32 %v3383_v2, %v3382_v17  ;;  %v3385_v51 = vpop.f32.mrb[74].mxu1 }
 0x227   : > { %v3386_v62 = vpop.f32.mrb[75].mxu1 }
 0x228   : > { %v2343_v38 = vadd.f32 %v3341_v4, %v2270_v1  ;;  %v4725_v41 = vadd.f32 %v3384_v6, %v2340_v32  ;;  %v3387_v47 = vadd.f32 %v3386_v62, %v3385_v51 }
 0x22a   : > { %v3342_v57 = vpop.f32.mrb[76].mxu0  ;;  %v4729_v5 = vadd.f32 %v3387_v47, %v2343_v38 }
 0x22b   : > { %v3343_v30 = vpop.f32.mrb[77].mxu0 }
 0x22c   : > { %v3344_v7 = vadd.f32 %v3343_v30, %v3342_v57  ;;  %v3345_v39 = vpop.f32.mrb[78].mxu0  ;;  %v3388_v40 = vpop.f32.mrb[76].mxu1 }
 0x22d   : > { %v3346_v0 = vpop.f32.mrb[79].mxu0  ;;  %v3389_v20 = vpop.f32.mrb[77].mxu1 }
 0x22e   : > { %v2348_v33 = vadd.f32 %v3344_v7, %v2275_v54  ;;  %v3347_v46 = vadd.f32 %v3346_v0, %v3345_v39  ;;  %v3390_v21 = vadd.f32 %v3389_v20, %v3388_v40  ;;  %v3391_v59 = vpop.f32.mrb[78].mxu1 }
 0x22f   : > { %v3392_v58 = vpop.f32.mrb[79].mxu1 }
 0x230   : > { %v2351_v45 = vadd.f32 %v3347_v46, %v2278_v55  ;;  %v4733_v63 = vadd.f32 %v3390_v21, %v2348_v33  ;;  %v3393_v18 = vadd.f32 %v3392_v58, %v3391_v59  ;;  %v2646_v59 = vmul.f32 %v4652_v8, %v4652_v8 }
 0x232   : > { %v3410_v3 = vpop.f32.mrb[80].mxu0  ;;  %v4735_v60 = vadd.f32 %v3393_v18, %v2351_v45 }
 0x233   : > { %v3411_v35 = vpop.f32.mrb[81].mxu0 }
 0x234   : > { %v3412_v10 = vadd.f32 %v3411_v35, %v3410_v3  ;;  %v3413_v27 = vpop.f32.mrb[82].mxu0  ;;  %v2534_v12 = vpop.f32.mrb[80].mxu1 }
 0x235   : > { %v3414_v22 = vpop.f32.mrb[83].mxu0  ;;  %v3507_v14 = vpop.f32.mrb[81].mxu1 }
 0x236   : > { %v3415_v50 = vadd.f32 %v3414_v22, %v3413_v27  ;;  %v2462_v28 = vadd.f32 %v3412_v10, %v4701_v19  ;;  %v2537_v61 = vpop.f32.mrb[82].mxu1 }
 0x237   : > { %v3508_v42 = vpop.f32.mrb[83].mxu1 }
 0x238   : > { %v2535_v24 = vadd.f32 %v2534_v12, %v2462_v28  ;;  %v2465_v23 = vadd.f32 %v3415_v50, %v4705_v53  ;;  %v2648_v28 = vmul.f32 %v4659_v37, %v4659_v37 }
 0x23a   : > { %3042 = vst [vmem:[%s4637_s29 + $0x8] sm:$0xff] %v2535_v24  ;;  %v2538_v36 = vadd.f32 %v2537_v61, %v2465_v23  ;;  %v3416_v34 = vpop.f32.mrb[84].mxu0  ;;  %v2645_v62 = vmul.f32 %v2535_v24, %v2535_v24  ;;  %v2623_v30 = vadd.f32 %v2535_v24, %v4632_v13 }
 0x23b   : > { %v3417_v44 = vpop.f32.mrb[85].mxu0 }
 0x23c   : > { %2574 = vst [vmem:[#allocation4 + $0x8] sm:$0xff] %v2538_v36  ;;  %v3418_v25 = vadd.f32 %v3417_v44, %v3416_v34  ;;  %v3419_v56 = vpop.f32.mrb[86].mxu0  ;;  %v2542_v32 = vpop.f32.mrb[84].mxu1  ;;  %v2624_v20 = vadd.f32 %v2623_v30, %v4652_v8 }
 0x23d   : > { %v3420_v43 = vpop.f32.mrb[87].mxu0  ;;  %v3511_v19 = vpop.f32.mrb[85].mxu1 }
 0x23e   : > { %v3421_v26 = vadd.f32 %v3420_v43, %v3419_v56  ;;  %v2470_v1 = vadd.f32 %v3418_v25, %v4709_v48  ;;  %v2545_v2 = vpop.f32.mrb[86].mxu1  ;;  %v2644_v48 = vmul.f32 %v4632_v13, %v4632_v13 }
 0x23f   : > { %v3512_v53 = vpop.f32.mrb[87].mxu1 }
 0x240   : > { %v2543_v17 = vadd.f32 %v2542_v32, %v2470_v1  ;;  %v2473_v4 = vadd.f32 %v3421_v26, %v4713_v52  ;;  %v2660_v55 = vadd.f32 %v2645_v62, %v2644_v48 }
 0x242   : > { %2575 = vst [vmem:[#allocation4 + $0x10] sm:$0xff] %v2543_v17  ;;  %v2546_v38 = vadd.f32 %v2545_v2, %v2473_v4  ;;  %v3422_v6 = vpop.f32.mrb[88].mxu0  ;;  %v2661_v10 = vadd.f32 %v2660_v55, %v2646_v59 }
 0x243   : > { %v3423_v51 = vpop.f32.mrb[89].mxu0 }
 0x244   : > { %v3424_v47 = vadd.f32 %v3423_v51, %v3422_v6  ;;  %v3425_v57 = vpop.f32.mrb[90].mxu0  ;;  %2576 = vst [vmem:[#allocation4 + $0x18] sm:$0xff] %v2546_v38  ;;  %v2550_v39 = vpop.f32.mrb[88].mxu1  ;;  %v2652_v51 = vmul.f32 %v4655_v11, %v4655_v11 }
 0x245   : > { %v3426_v54 = vpop.f32.mrb[91].mxu0  ;;  %v3515_v0 = vpop.f32.mrb[89].mxu1 }
 0x246   : > { %v3427_v7 = vadd.f32 %v3426_v54, %v3425_v57  ;;  %v2478_v52 = vadd.f32 %v3424_v47, %v4717_v29  ;;  %v2553_v46 = vpop.f32.mrb[90].mxu1 }
 0x247   : > { %v3516_v21 = vpop.f32.mrb[91].mxu1 }
 0x248   : > { %v2551_v33 = vadd.f32 %v2550_v39, %v2478_v52  ;;  %v2481_v40 = vadd.f32 %v3427_v7, %v4721_v15 }
 0x249   : > { %v2586_v45 = vld [vmem:[#allocation4 + $0xa] sm:$0xff] }
 0x24a   : > { %3043 = vst [vmem:[%s4637_s29 + $0x18] sm:$0xff] %v2586_v45  ;;  %2577 = vst [vmem:[#allocation4 + $0x20] sm:$0xff] %v2551_v33  ;;  %v2554_v13 = vadd.f32 %v2553_v46, %v2481_v40  ;;  %v3428_v29 = vpop.f32.mrb[92].mxu0  ;;  %v2625_v58 = vadd.f32 %v2624_v20, %v2586_v45  ;;  %v2647_v18 = vmul.f32 %v2586_v45, %v2586_v45 }
 0x24b   : > { %v2589_v3 = vld [vmem:[#allocation4 + $0x14] sm:$0xff]  ;;  %v3429_v35 = vpop.f32.mrb[93].mxu0 }
 0x24c   : > { %3044 = vst [vmem:[%s4637_s29 + $0x28] sm:$0xff] %v2589_v3  ;;  %3046 = vst [vmem:[%s4637_s29 + $0x48] sm:$0xff] %v2554_v13  ;;  %v3430_v15 = vadd.f32 %v3429_v35, %v3428_v29  ;;  %v3431_v27 = vpop.f32.mrb[94].mxu0  ;;  %v2626_v22 = vadd.f32 %v2625_v58, %v4659_v37  ;;  %v2662_v8 = vadd.f32 %v2661_v10, %v2647_v18  ;;  %v2558_v24 = vpop.f32.mrb[92].mxu1 }
 0x24d   : > { %v3432_v50 = vpop.f32.mrb[95].mxu0  ;;  %v3519_v61 = vpop.f32.mrb[93].mxu1  ;;  %v2649_v42 = vmul.f32 %v2589_v3, %v2589_v3  ;;  %v2650_v37 = vmul.f32 %v4670_v9, %v4670_v9  ;;  %v2653_v48 = vmul.f32 %v2554_v13, %v2554_v13  ;;  %v2658_v10 = vmul.f32 %v4697_v16, %v4697_v16 }
 0x24e   : > { %v3433_v12 = vadd.f32 %v3432_v50, %v3431_v27  ;;  %v2486_v14 = vadd.f32 %v3430_v15, %v4725_v41  ;;  %v2627_v23 = vadd.f32 %v2626_v22, %v2589_v3  ;;  %v2663_v36 = vadd.f32 %v2662_v8, %v2648_v28  ;;  %v2561_v25 = vpop.f32.mrb[94].mxu1 }
 0x24f   : > { %v3520_v26 = vpop.f32.mrb[95].mxu1 }
 0x250   : > { %v2559_v34 = vadd.f32 %v2558_v24, %v2486_v14  ;;  %v2489_v44 = vadd.f32 %v3433_v12, %v4729_v5  ;;  %v2628_v56 = vadd.f32 %v2627_v23, %v4670_v9  ;;  %v2664_v1 = vadd.f32 %v2663_v36, %v2649_v42 }
 0x251   : > { %v2592_v43 = vld [vmem:[#allocation4 + $0x1e] sm:$0xff] }
 0x252   : > { %3045 = vst [vmem:[%s4637_s29 + $0x38] sm:$0xff] %v2592_v43  ;;  %2579 = vst [vmem:[#allocation4 + $0x30] sm:$0xff] %v2559_v34  ;;  %v2562_v41 = vadd.f32 %v2561_v25, %v2489_v44  ;;  %v3434_v32 = vpop.f32.mrb[96].mxu0  ;;  %v2629_v19 = vadd.f32 %v2628_v56, %v2592_v43  ;;  %v2651_v17 = vmul.f32 %v2592_v43, %v2592_v43 }
 0x253   : > { %v3435_v4 = vpop.f32.mrb[97].mxu0  ;;  %v2665_v2 = vadd.f32 %v2664_v1, %v2650_v37 }
 0x254   : > { %2580 = vst [vmem:[#allocation4 + $0x38] sm:$0xff] %v2562_v41  ;;  %v3436_v53 = vadd.f32 %v3435_v4, %v3434_v32  ;;  %v3437_v5 = vpop.f32.mrb[98].mxu0  ;;  %v2630_v38 = vadd.f32 %v2629_v19, %v4655_v11  ;;  %v2566_v57 = vpop.f32.mrb[96].mxu1 }
 0x255   : > { %v3438_v6 = vpop.f32.mrb[99].mxu0  ;;  %v2666_v62 = vadd.f32 %v2665_v2, %v2651_v17  ;;  %v3523_v54 = vpop.f32.mrb[97].mxu1 }
 0x256   : > { %v3439_v9 = vadd.f32 %v3438_v6, %v3437_v5  ;;  %v2494_v47 = vadd.f32 %v3436_v53, %v4733_v63  ;;  %v2631_v30 = vadd.f32 %v2630_v38, %v2554_v13  ;;  %v2569_v0 = vpop.f32.mrb[98].mxu1  ;;  %v2654_v63 = vmul.f32 %v4681_v49, %v4681_v49 }
 0x257   : > { %v2667_v7 = vadd.f32 %v2666_v62, %v2652_v51  ;;  %v3524_v55 = vpop.f32.mrb[99].mxu1  ;;  %v2656_v13 = vmul.f32 %v4691_v31, %v4691_v31 }
 0x258   : > { %v2567_v52 = vadd.f32 %v2566_v57, %v2494_v47  ;;  %v2497_v39 = vadd.f32 %v3439_v9, %v4735_v60  ;;  %v2632_v11 = vadd.f32 %v2631_v30, %v4681_v49 }
 0x259   : > { %v2668_v33 = vadd.f32 %v2667_v7, %v2653_v48 }
 0x25a   : > { %v2570_v40 = vadd.f32 %v2569_v0, %v2497_v39  ;;  %2581 = vst [vmem:[#allocation4 + $0x40] sm:$0xff] %v2567_v52 }
 0x25b   : > { %v2598_v46 = vld [vmem:[#allocation4 + $0x32] sm:$0xff]  ;;  %v2669_v21 = vadd.f32 %v2668_v33, %v2654_v63 }
 0x25c   : > { %3047 = vst [vmem:[%s4637_s29 + $0x58] sm:$0xff] %v2598_v46  ;;  %2582 = vst [vmem:[#allocation4 + $0x48] sm:$0xff] %v2570_v40  ;;  %v2633_v20 = vadd.f32 %v2632_v11, %v2598_v46  ;;  %v2655_v45 = vmul.f32 %v2598_v46, %v2598_v46 }
 0x25e   : > { %v2670_v59 = vadd.f32 %v2669_v21, %v2655_v45  ;;  %v2634_v60 = vadd.f32 %v2633_v20, %v4691_v31 }
 0x260   : > { %v2671_v3 = vadd.f32 %v2670_v59, %v2656_v13 }
 0x261   : > { %v2601_v29 = vld [vmem:[#allocation4 + $0x3c] sm:$0xff] }
 0x262   : > { %3048 = vst [vmem:[%s4637_s29 + $0x68] sm:$0xff] %v2601_v29  ;;  %v2635_v58 = vadd.f32 %v2634_v60, %v2601_v29  ;;  %v2657_v18 = vmul.f32 %v2601_v29, %v2601_v29 }
 0x263   : > { %v2604_v49 = vld [vmem:[#allocation4 + $0x46] sm:$0xff] }
 0x264   : > { %3049 = vst [vmem:[%s4637_s29 + $0x78] sm:$0xff] %v2604_v49  ;;  %v2636_v35 = vadd.f32 %v2635_v58, %v4697_v16  ;;  %v2672_v15 = vadd.f32 %v2671_v3, %v2657_v18  ;;  %v2659_v22 = vmul.f32 %v2604_v49, %v2604_v49 }
 0x266   : > { %v2637_v27 = vadd.f32 %v2636_v35, %v2604_v49  ;;  %v2673_v50 = vadd.f32 %v2672_v15, %v2658_v10 }
 0x268   : > { %v2638_v31 = vrot.slane %v2637_v27, 4  ;;  %v2674_v28 = vadd.f32 %v2673_v50, %v2659_v22 }
 0x26a   : > { %v2639_v8 = vadd.f32 %v2638_v31, %v2637_v27  ;;  %v2675_v12 = vrot.slane %v2674_v28, 4 }
 0x26c   : > { %v2640_v14 = vrot.slane %v2639_v8, 2  ;;  %v2676_v24 = vadd.f32 %v2675_v12, %v2674_v28 }
 0x26e   : > { %v2641_v16 = vadd.f32 %v2640_v14, %v2639_v8  ;;  %v2677_v23 = vrot.slane %v2676_v24, 2 }
 0x26f   : > { %3926 = shalt.err (!%p3923_p13)
}
 0x270   : > { %s3927_s16 = scalar_lea.hbm %s4783_s9, 2048  ;;  %s3931_s29 = scalar_lea.hbm %s4866_s5, 4096 }
 0x271   : > { %p3928_p0 = scmp.ne.s32.totalorder %s4783_s9, %s3927_s16  ;;  %p3932_p9 = scmp.lt.u32.totalorder %s4783_s9, %s4866_s5 }
 0x272   : > { %p3933_p12 = scmp.lt.u32.totalorder %s3931_s29, %s3927_s16  ;;  %p3935_p4 = scmp.lt.u32.totalorder %s3927_s16, %s4783_s9 }
 0x273   : > { %p3929_p5 = pnand %p3928_p0, %p4224_p1 }
 0x274   : > { %p3934_p2 = por %p3933_p12, %p3932_p9 }
 0x275   : > { %p3930_p11 = pneg %p3929_p5 }
 0x276   : > { %p3936_p6 = por %p3935_p4, %p3934_p2 }
 0x278   : > { %p3937_p8 = pnand %p3936_p6, %p3930_p11 }
 0x27a   : > { %3940 = shalt.err (!%p3937_p8)
}
 0x27b   : > { %s4033_s7 = smov 128   ;;  %s4034_s30 = smov 8   ;;  %v2642_v61 = vrot.slane %v2641_v16, 1  ;;  %v2678_v42 = vadd.f32 %v2677_v23, %v2676_v24  ;;  %vm2691_vm9 = vcmask 516096  }
 0x27c   : > { %3543 = dma.vmem_to_hbm [thread:$0]  (%p4224_p1), %s4786_s17, 2048, %s4783_s9, %s2695_s20, %s4033_s7, %s4033_s7, %s4034_s30  }
 0x27d   : > { %v2643_v36 = vadd.f32 %v2642_v61, %v2641_v16  ;;  %v2679_v34 = vrot.slane %v2678_v42, 1  ;;  %s4035_s26 = smov 64   ;;  %s2886_s10 = sshll.u32 %s4276_s15, 1 }
 0x27e   : > { %s3054_s11 = sshll.u32 %s4093_s25, 5  ;;  %s332_s16 = scalar_lea.vmem [#allocation15], %s2886_s10 }
 0x27f   : > { %2682 = vrot.lane.b32.xlu0 %v2643_v36, %s4035_s26  ;;  %v2680_v44 = vadd.f32 %v2679_v34, %v2678_v42  ;;  %s2729_s14 = sshll.u32 %s332_s16, 4  ;;  %s4817_s20 = scalar_lea.hbm %s4867_s6, %s3054_s11  ;;  %s4819_s14 = int_to_ptr.vmem [resolvable:$true] %s2729_s14 }
 0x280   : > { %s2700_s27 = scalar_lea.sflag [#allocation16], %s4276_s15  ;;  %s3941_s29 = scalar_lea.vmem %s4819_s14, 32 }
 0x281   : > { %p3942_p3 = scmp.ne.s32.totalorder %s4819_s14, %s3941_s29  ;;  %s4036_s25 = smov [#allocation15]  }
 0x282   : > { %s3945_s19 = sshll.u32 %s4036_s25, 4  ;;  %s3946_s19 = int_to_ptr.vmem [resolvable:$false] %s3945_s19 }
 0x283   : > { %2687 = vrot.lane.b32.xlu0 %v2680_v44, %s4035_s26  ;;  %p3943_p7 = pnand %p3942_p3, %p4224_p1  ;;  %s3947_s12 = scalar_lea.vmem %s3946_s19, 64 }
 0x284   : > { %p3948_p13 = scmp.lt.s32.totalorder %s4819_s14, %s3946_s19  ;;  %p3949_p0 = scmp.lt.s32.totalorder %s3947_s12, %s3941_s29 }
 0x285   : > { %p3944_p10 = pneg %p3943_p7 }
 0x286   : > { %p3950_p5 = por %p3949_p0, %p3948_p13 }
 0x288   : > { %p3951_p11 = pnand %p3950_p5, %p3944_p10 }
 0x2f1   : > { %v2683_v25 = vpop.permute.xlu0 %2682 }
 0x2f2   : > { %v2685_v56 = vadd.f32 %v2683_v25, %v2643_v36 }
 0x2f4   : > { %2692 = vst.msk [vmem:[%s332_s16] sm:$0x1] %vm2691_vm9, %v2685_v56 }
 0x2f5   : > { %v2688_v43 = vpop.permute.xlu0 %2687 }
 0x2f6   : > { %v2690_v26 = vadd.f32 %v2688_v43, %v2680_v44 }
 0x2f8   : > { %2693 = vst.msk [vmem:[%s332_s16 + $0x1] sm:$0x1] %vm2691_vm9, %v2690_v26 }
 0x2f9   : > { %3954 = shalt.err (!%p3951_p11)
}
 0x2fa   : > { %s3955_s15 = scalar_lea.hbm %s4817_s20, 32  ;;  %s3959_s26 = scalar_lea.hbm %s4867_s6, 64 }
 0x2fb   : > { %p3956_p9 = scmp.ne.s32.totalorder %s4817_s20, %s3955_s15  ;;  %p3960_p4 = scmp.lt.u32.totalorder %s4817_s20, %s4867_s6 }
 0x2fc   : > { %p3961_p6 = scmp.lt.u32.totalorder %s3959_s26, %s3955_s15  ;;  %p3963_p3 = scmp.lt.u32.totalorder %s3955_s15, %s4817_s20 }
 0x2fd   : > { %p3957_p12 = pnand %p3956_p9, %p4224_p1 }
 0x2fe   : > { %p3962_p8 = por %p3961_p6, %p3960_p4 }
 0x2ff   : > { %p3958_p2 = pneg %p3957_p12 }
 0x300   : > { %p3964_p7 = por %p3963_p3, %p3962_p8 }
 0x302   : > { %p3965_p10 = pnand %p3964_p7, %p3958_p2 }
 0x304   : > { %3968 = shalt.err (!%p3965_p10)
}
 0x305   : > { %3544 = dma.vmem_to_hbm [thread:$0]  (%p4224_p1), %s4819_s14, 32, %s4817_s20, %s2700_s27  }
 0x306 PF: > { %s2741_s16 = sand.u32 1, %s4007_s21   ;;  %p4885_p13 = scmp.ne.s32.totalorder %s4872_s28, 0 }
 0x307   : > { %p4886_p0 = scmp.ge.s32.totalorder %s4019_s24, 2  ;;  %s2742_s9 = scalar_lea.sflag [#allocation7], %s2741_s16 }
 0x309   : > { %p3565_p5 = pnand %p4886_p0, %p4885_p13 }
 0x30b   : > { %3998 = dma.done.wait (!%p3565_p5), %s2742_s9, 2048  }
 0x30c   : > { %4000 = vsyncadd (!%p3565_p5), %s2742_s9, 4294965248  ;;  %s2751_s17 = scalar_lea.sflag [#allocation16], %s2741_s16 }
 0x30d   : > { %4002 = dma.done.wait (!%p3565_p5), %s2751_s17, 32  }
 0x30e   : > { %4004 = vsyncadd (!%p3565_p5), %s2751_s17, 4294967264  ;;  %p25_p1 = scmp.ge.s32.totalorder %s4214_s18, 4   ;;  %s4887_s21 = smov %s4011_s22 }
 0x30f   : > { %s4888_s22 = smov %s4015_s23  ;;  %s4889_s23 = smov %s4230_s13 }
 0x310   : > { %s4890_s24 = smov %s4214_s18  ;;  %27 = sbr.rel (!%p25_p1) target bundleno = 9 (0x9), region = 134 }
 0x317   :  { %2756 = vsyncpa [#allocation6], 1 }
 0x318   :  { %2758 = vsyncpa [#allocation6 + $0x1], 1 }
 0x319   :  { %2759 = vsyncpa [#allocation9], 1 }
 0x31a   :  { %2760 = vsyncpa [#allocation12], 1 }
 0x31b   :  { %2761 = vsyncpa [#allocation7], 1 }
 0x31c   :  { %2763 = vsyncpa [#allocation7 + $0x1], 1 }
 0x31d   :  { %2764 = vsyncpa [#allocation16], 1 }
 0x31e   :  { %2766 = vsyncpa [#allocation16 + $0x1], 1 }

// kernel: generator_forward.7
= control target key start
LH: loop header
LB: loop body
LE: loop exit
PB: predicated region body
PF: predicated region fallthrough
CT: control target
= control target key end

     0   :  { %12 = vsyncpa [#allocation6], 0  ;;  %s5108_s0 = inlined_call_operand.hbm [shape: f32[2,4,4,128], index: 0, kind: input, shape index: {}]   ;;  %s5109_s1 = inlined_call_operand.hbm [shape: f32[1,128], index: 1, kind: input, shape index: {}]   ;;  %s5110_s2 = inlined_call_operand.hbm [shape: f32[1,128], index: 2, kind: input, shape index: {}]   ;;  %s5111_s3 = inlined_call_operand.hbm [shape: bf16[2,1152,256], index: 3, kind: input, shape index: {}]   ;;  %s5112_s4 = inlined_call_operand.hbm [shape: f32[1,256], index: 4, kind: input, shape index: {}]   ;;  %s5113_s5 = inlined_call_operand.hbm [shape: f32[2,8,4,256], index: 5, kind: output, shape index: {0}]   ;;  %s5114_s6 = inlined_call_operand.hbm [shape: f32[2,2,128], index: 6, kind: output, shape index: {1}]  }
   0x1   :  { %14 = vsyncpa [#allocation6 + $0x1], 0 }
   0x2   :  { %15 = vsyncpa [#allocation9], 0 }
   0x3   :  { %16 = vsyncpa [#allocation12], 0 }
   0x4   :  { %17 = vsyncpa [#allocation7], 0 }
   0x5   :  { %19 = vsyncpa [#allocation7 + $0x1], 0 }
   0x6   :  { %20 = vsyncpa [#allocation16], 0 }
   0x7   :  { %22 = vsyncpa [#allocation16 + $0x1], 0  ;;  %s4678_s21 = smov 0   ;;  %s4680_s22 = smov 0  }
   0x8   :  { %s4682_s23 = smov 0   ;;  %s4684_s24 = smov 0  }
   0x9 LB: > { %s4699_s25 = sadd.s32 4294967295, %s4626_s24   ;;  %s3335_s26 = sadd.s32 4294967294, %s4626_s24   ;;  %s4626_s24 = sphi %s4684_s24, %s5139_s24   ;;  %s4622_s23 = sphi %s4682_s23, %s5138_s23   ;;  %s4618_s22 = sphi %s4680_s22, %s5137_s22   ;;  %s4614_s21 = sphi %s4678_s21, %s5136_s21  }
   0xa   : > { %p48_p0 = scmp.ne.s32.totalorder %s4618_s22, %s4614_s21  ;;  %p5115_p1 = scmp.eq.s32.totalorder %s4699_s25, 0 }
   0xb   : > { %p162_p3 = scmp.eq.s32.totalorder %s3335_s26, 1  ;;  %p3336_p5 = scmp.ge.s32.totalorder %s4626_s24, 1 }
   0xc   : > { %p4708_p4 = por %p5115_p1, %p48_p0  ;;  %p195_p7 = scmp.lt.s32.totalorder %s4626_s24, 3 }
   0xd   : > { %p4713_p6 = por %p162_p3, %p48_p0  ;;  %s4628_s30 = smov [#allocation8]  }
   0xe   : > { %s5118_s27 = scalar_select %p4708_p4, 1, 0 }
   0xf   : > { %s5119_s28 = scalar_select %p4713_p6, 1, 0 }
  0x10   : > { %p4718_p8 = pnand %p3336_p5, %p195_p7  ;;  %s208_s7 = sshll.u32 %s4628_s30, 4  ;;  %s209_s7 = int_to_ptr.vmem [resolvable:$true] %s208_s7 }
  0x11   : > { %s4629_s8 = smov [#allocation11]   ;;  %s4630_s11 = smov [#allocation10]  }
  0x12   : > { %s5120_s29 = scalar_select %p4718_p8, 1, 0 }
  0x13   : > { %p3833_p10 = pneg %p4718_p8  ;;  %s229_s9 = sshll.u32 %s4629_s8, 4  ;;  %s4731_s9 = int_to_ptr.vmem [resolvable:$true] %s229_s9 }
  0x14   : > { %s4733_s12 = sshll.u32 %s4630_s11, 4  ;;  %s4378_s15 = scalar_lea.hbm %s5109_s1, 16  ;;  %s220_s12 = int_to_ptr.vmem [resolvable:$true] %s4733_s12 }
  0x15   : > { %p4727_p11 = pnand %p3833_p10, %p5115_p1  ;;  %p4379_p12 = scmp.ne.s32.totalorder %s5109_s1, %s4378_s15 }
  0x16   : > { %p4385_p5 = scmp.lt.u32.totalorder %s4378_s15, %s5109_s1 }
  0x17   : > { %p4743_p13 = pneg %p4727_p11 }
  0x19   : > { %p4381_p0 = pnand %p4743_p13, %p4379_p12 }
  0x1b   : > { %p4382_p3 = pneg %p4381_p0 }
  0x1d   : > { %p4387_p7 = pnand %p4385_p5, %p4382_p3 }
  0x1f   : > { %4390 = shalt.err (!%p4387_p7)
}
  0x20   : > { %s4391_s26 = scalar_lea.vmem %s209_s7, 16  ;;  %s4398_s30 = scalar_lea.vmem %s209_s7, 32 }
  0x21   : > { %p4392_p10 = scmp.ne.s32.totalorder %s209_s7, %s4391_s26  ;;  %p4399_p2 = scmp.lt.s32.totalorder %s209_s7, %s209_s7 }
  0x22   : > { %p4400_p6 = scmp.lt.s32.totalorder %s4398_s30, %s4391_s26 }
  0x23   : > { %p4394_p9 = pnand %p4392_p10, %p4743_p13 }
  0x24   : > { %p4401_p4 = por %p4400_p6, %p4399_p2 }
  0x25   : > { %p4395_p1 = pneg %p4394_p9 }
  0x27   : > { %p4402_p8 = pnand %p4401_p4, %p4395_p1 }
  0x29   : > { %4405 = shalt.err (!%p4402_p8)
}
  0x2a   : > { %3836 = dma.hbm_to_vmem [thread:$0]  (!%p4727_p11), %s5109_s1, 16, %s209_s7, [#allocation9]  }
  0x2b   : > { %s4406_s15 = scalar_lea.hbm %s5111_s3, 36864 }
  0x2c   : > { %p4407_p9 = scmp.ne.s32.totalorder %s5111_s3, %s4406_s15  ;;  %p4413_p1 = scmp.lt.u32.totalorder %s4406_s15, %s5111_s3 }
  0x2e   : > { %p4409_p12 = pnand %p4407_p9, %p4743_p13 }
  0x30   : > { %p4410_p2 = pneg %p4409_p12 }
  0x32   : > { %p4415_p4 = pnand %p4413_p1, %p4410_p2 }
  0x34   : > { %4418 = shalt.err (!%p4415_p4)
}
  0x35   : > { %s4419_s7 = scalar_lea.vmem %s4731_s9, 36864  ;;  %p4427_p3 = scmp.lt.s32.totalorder %s4731_s9, %s4731_s9 }
  0x36   : > { %p4420_p6 = scmp.ne.s32.totalorder %s4731_s9, %s4419_s7  ;;  %p4428_p5 = scmp.lt.s32.totalorder %s4419_s7, %s4419_s7 }
  0x38   : > { %p4422_p8 = pnand %p4420_p6, %p4743_p13  ;;  %p4429_p7 = por %p4428_p5, %p4427_p3 }
  0x3a   : > { %p4423_p0 = pneg %p4422_p8 }
  0x3c   : > { %p4430_p10 = pnand %p4429_p7, %p4423_p0 }
  0x3e   : > { %4433 = shalt.err (!%p4430_p10)
}
  0x3f   : > { %s4631_s26 = smov 128   ;;  %s4632_s30 = smov 8  }
  0x40   : > { %3842 = dma.hbm_to_vmem [thread:$0]  (!%p4727_p11), %s5111_s3, 36864, %s4731_s9, [#allocation12], %s4631_s26, %s4631_s26, %s4632_s30  }
  0x41   : > { %s4434_s15 = scalar_lea.hbm %s5110_s2, 16 }
  0x42   : > { %p4435_p9 = scmp.ne.s32.totalorder %s5110_s2, %s4434_s15  ;;  %p4441_p1 = scmp.lt.u32.totalorder %s4434_s15, %s5110_s2 }
  0x44   : > { %p4437_p12 = pnand %p4435_p9, %p4743_p13 }
  0x46   : > { %p4438_p2 = pneg %p4437_p12 }
  0x48   : > { %p4443_p4 = pnand %p4441_p1, %p4438_p2 }
  0x4a   : > { %4446 = shalt.err (!%p4443_p4)
}
  0x4b   : > { %s4447_s7 = scalar_lea.vmem %s220_s12, 16  ;;  %s4454_s9 = scalar_lea.vmem %s220_s12, 32 }
  0x4c   : > { %p4448_p6 = scmp.ne.s32.totalorder %s220_s12, %s4447_s7  ;;  %p4455_p3 = scmp.lt.s32.totalorder %s220_s12, %s220_s12 }
  0x4d   : > { %p4456_p5 = scmp.lt.s32.totalorder %s4454_s9, %s4447_s7 }
  0x4e   : > { %p4450_p8 = pnand %p4448_p6, %p4743_p13 }
  0x4f   : > { %p4457_p7 = por %p4456_p5, %p4455_p3 }
  0x50   : > { %p4451_p0 = pneg %p4450_p8 }
  0x52   : > { %p4458_p10 = pnand %p4457_p7, %p4451_p0 }
  0x54   : > { %4461 = shalt.err (!%p4458_p10)
}
  0x55   : > { %3839 = dma.hbm_to_vmem [thread:$0]  (!%p4727_p11), %s5110_s2, 16, %s220_s12, [#allocation9]  }
  0x56   : > { %s4633_s8 = smov [#allocation13]   ;;  %s4462_s15 = scalar_lea.hbm %s5112_s4, 32 }
  0x57   : > { %s243_s11 = sshll.u32 %s4633_s8, 4  ;;  %p4463_p9 = scmp.ne.s32.totalorder %s5112_s4, %s4462_s15  ;;  %s244_s11 = int_to_ptr.vmem [resolvable:$true] %s243_s11 }
  0x58   : > { %p4469_p1 = scmp.lt.u32.totalorder %s4462_s15, %s5112_s4 }
  0x59   : > { %p4465_p12 = pnand %p4463_p9, %p4743_p13 }
  0x5b   : > { %p4466_p2 = pneg %p4465_p12 }
  0x5d   : > { %p4471_p4 = pnand %p4469_p1, %p4466_p2 }
  0x5f   : > { %4474 = shalt.err (!%p4471_p4)
}
  0x60   : > { %s4475_s12 = scalar_lea.vmem %s244_s11, 32  ;;  %p4483_p3 = scmp.lt.s32.totalorder %s244_s11, %s244_s11 }
  0x61   : > { %p4476_p6 = scmp.ne.s32.totalorder %s244_s11, %s4475_s12  ;;  %p4484_p5 = scmp.lt.s32.totalorder %s4475_s12, %s4475_s12 }
  0x63   : > { %p4478_p8 = pnand %p4476_p6, %p4743_p13  ;;  %p4485_p7 = por %p4484_p5, %p4483_p3 }
  0x65   : > { %p4479_p0 = pneg %p4478_p8 }
  0x67   : > { %p4486_p10 = pnand %p4485_p7, %p4479_p0 }
  0x69   : > { %4489 = shalt.err (!%p4486_p10)
}
  0x6a   : > { %3845 = dma.hbm_to_vmem [thread:$0]  (!%p4727_p11), %s5112_s4, 32, %s244_s11, [#allocation12]  }
  0x6b   : > { %s4820_s18 = sadd.s32 1, %s4626_s24   ;;  %s35_s26 = sadd.s32 1, %s4622_s23 }
  0x6c   : > { %s32_s10 = ssub.s32 %s4626_s24, %s4820_s18  ;;  %p42_p13 = scmp.ne.s32.totalorder %s4622_s23, %s4618_s22 }
  0x6d   : > { %p33_p9 = scmp.eq.s32.totalorder %s32_s10, 0  ;;  %p43_p12 = scmp.eq.s32.totalorder %s4626_s24, 0 }
  0x6e   : > { %p5123_p2 = scmp.eq.s32.totalorder %s4699_s25, 1  ;;  %p3861_p4 = scmp.lt.s32.totalorder %s4626_s24, 2 }
  0x6f   : > { %s4836_s8 = scalar_select %p33_p9, %s4622_s23, %s35_s26  }
  0x70   : > { %p4830_p1 = por %p5123_p2, %p42_p13  ;;  %p44_p6 = por %p43_p12, %p42_p13 }
  0x71   : > { %s254_s13 = sand.u32 1, %s4622_s23   ;;  %s3706_s11 = sshll.u32 %s4626_s24, 8 }
  0x72   : > { %s3342_s14 = sshll.u32 %s254_s13, 4  ;;  %s4843_s17 = scalar_lea.hbm %s5108_s0, %s3706_s11 }
  0x73   : > { %s258_s19 = scalar_lea.vmem [#allocation5], %s3342_s14  ;;  %p4847_p11 = pnand %p3861_p4, %p44_p6 }
  0x74   : > { %s265_s20 = sshll.u32 %s258_s19, 4  ;;  %s4851_s7 = scalar_lea.sflag [#allocation6], %s254_s13  ;;  %s4845_s20 = int_to_ptr.vmem [resolvable:$true] %s265_s20 }
  0x75   : > { %s4490_s9 = scalar_lea.hbm %s4843_s17, 256  ;;  %p4492_p0 = pneg %p4847_p11 }
  0x76   : > { %p4491_p8 = scmp.ne.s32.totalorder %s4843_s17, %s4490_s9  ;;  %s4495_s14 = scalar_lea.hbm %s5108_s0, 512 }
  0x77   : > { %p4496_p7 = scmp.lt.u32.totalorder %s4843_s17, %s5108_s0  ;;  %p4497_p10 = scmp.lt.u32.totalorder %s4495_s14, %s4490_s9 }
  0x78   : > { %p4493_p3 = pnand %p4492_p0, %p4491_p8  ;;  %p4499_p9 = scmp.lt.u32.totalorder %s4490_s9, %s4843_s17 }
  0x79   : > { %p4498_p13 = por %p4497_p10, %p4496_p7 }
  0x7a   : > { %p4494_p5 = pneg %p4493_p3 }
  0x7b   : > { %p4500_p12 = por %p4499_p9, %p4498_p13 }
  0x7d   : > { %p4501_p2 = pnand %p4500_p12, %p4494_p5 }
  0x7f   : > { %4504 = shalt.err (!%p4501_p2)
}
  0x80   : > { %s4505_s13 = scalar_lea.vmem %s4845_s20, 256  ;;  %s4634_s16 = smov [#allocation5]  }
  0x81   : > { %p4506_p4 = scmp.ne.s32.totalorder %s4845_s20, %s4505_s13  ;;  %s4510_s19 = sshll.u32 %s4634_s16, 4  ;;  %s4511_s19 = int_to_ptr.vmem [resolvable:$false] %s4510_s19 }
  0x82   : > { %s4512_s26 = scalar_lea.vmem %s4511_s19, 512  ;;  %p4513_p3 = scmp.lt.s32.totalorder %s4845_s20, %s4511_s19 }
  0x83   : > { %p4508_p6 = pnand %p4506_p4, %p4492_p0  ;;  %p4514_p7 = scmp.lt.s32.totalorder %s4512_s26, %s4505_s13 }
  0x85   : > { %p4509_p8 = pneg %p4508_p6  ;;  %p4515_p10 = por %p4514_p7, %p4513_p3 }
  0x87   : > { %p4516_p13 = pnand %p4515_p10, %p4509_p8 }
  0x89   : > { %4519 = shalt.err (!%p4516_p13)
}
  0x8a   : > { %s4635_s9 = smov 64   ;;  %s4636_s10 = smov 4  }
  0x8b   : > { %3849 = dma.hbm_to_vmem [thread:$0]  (!%p4847_p11), %s4843_s17, 256, %s4845_s20, %s4851_s7, %s4635_s9, %s4635_s9, %s4636_s10  }
  0x8c   : > { %p5126_p0 = scmp.ne.s32.totalorder %s5120_s29, 0 }
  0x8d   : > { %s4882_s14 = sand.u32 (!%p5126_p0), 1, %s4618_s22   ;;  %p5127_p5 = scmp.ne.s32.totalorder (!%p5126_p0), %s5118_s27, 0 }
  0x8e   : > { %277 = sbr.rel (%p5126_p0) target bundleno = 752 (0x2f0), region = 40  ;;  %s3346_s11 = sshll.u32 (!%p5126_p0), %s4882_s14, 4 }
  0x8f   : > { %s280_s15 = scalar_lea.sflag (!%p5126_p0), [#allocation6], %s4882_s14  ;;  %s4886_s13 = scalar_lea.vmem (!%p5126_p0), [#allocation5], %s3346_s11 }
  0x95   : > { %4593 = dma.done.wait (%p5127_p5), %s280_s15, 256  }
  0x96   : > { %4595 = vsyncadd (%p5127_p5), %s280_s15, 4294967040  ;;  %p5128_p11 = scmp.eq.s32.totalorder %s4699_s25, 0 }
  0x98   : > { %4597 = dma.done.wait (%p5128_p11), [#allocation9], 32   ;;  %p5129_p9 = pmov %p5128_p11 }
  0x9a   : > { %4599 = vsyncadd (%p5129_p9), [#allocation9], 4294967264  ;;  %p5130_p12 = pmov %p5129_p9 }
  0x9b   : > { %p5131_p2 = pmov %p5129_p9 }
  0x9c   : > { %4601 = dma.done.wait (%p5130_p12), [#allocation12], 36896  }
  0x9d   : > { %4603 = vsyncadd (%p5131_p2), [#allocation12], 4294930400  ;;  %v4637_v0 = vmov 0.0   ;;  %v3911_v1 = vld [vmem:[#allocation11 + $0x4] ss:$8 sps:$4 sm:$0xff]   ;;  %s3351_s27 = sshll.u32 %s4882_s14, 6 }
  0x9e   : > { %360 = vst [vmem:[#allocation2] sm:$0xff] %v4637_v0  ;;  %361 = vst [vmem:[#allocation2 + $0x8] sm:$0xff] %v4637_v0  ;;  %v3913_v2 = vld [vmem:[#allocation11 + $0x484] ss:$8 sps:$4 sm:$0xff]   ;;  %1510 = vmatprep.subr.bf16.mxu0 %v3911_v1  ;;  %v3915_v3 = vld [vmem:[#allocation11] ss:$8 sps:$4 sm:$0xff]  }
  0x9f   : > { %362 = vst [vmem:[#allocation2 + $0x10] sm:$0xff] %v4637_v0  ;;  %363 = vst [vmem:[#allocation2 + $0x18] sm:$0xff] %v4637_v0  ;;  %v3916_v4 = vld [vmem:[#allocation11 + $0x480] ss:$8 sps:$4 sm:$0xff]   ;;  %2696 = vmatprep.subr.bf16.mxu1 %v3913_v2  ;;  %v3917_v5 = vld [vmem:[#allocation11 + $0x14] ss:$8 sps:$4 sm:$0xff]   ;;  %1511 = vmatpush1.bf16.msra.mxu0 %v3915_v3 }
  0xa0   : > { %364 = vst [vmem:[#allocation2 + $0x20] sm:$0xff] %v4637_v0  ;;  %2697 = vmatpush1.bf16.msra.mxu1 %v3916_v4  ;;  %v3919_v6 = vld [vmem:[#allocation11 + $0x494] ss:$8 sps:$4 sm:$0xff]   ;;  %v3921_v7 = vld [vmem:[#allocation11 + $0x10] ss:$8 sps:$4 sm:$0xff]   ;;  %1512 = vmatprep.subr.bf16.mxu0 %v3917_v5  ;;  %vm1788_vm0 = vcmask 1041408  }
  0xa1   : > { %v3922_v8 = vld [vmem:[#allocation11 + $0x490] ss:$8 sps:$4 sm:$0xff]   ;;  %2698 = vmatprep.subr.bf16.mxu1 %v3919_v6  ;;  %v3923_v9 = vld [vmem:[#allocation11 + $0x24] ss:$8 sps:$4 sm:$0xff]   ;;  %v3927_v11 = vld [vmem:[#allocation11 + $0x20] ss:$8 sps:$4 sm:$0xff]  }
  0xa2   : > { %v3925_v10 = vld [vmem:[#allocation11 + $0x4a4] ss:$8 sps:$4 sm:$0xff]   ;;  %v3928_v12 = vld [vmem:[#allocation11 + $0x4a0] ss:$8 sps:$4 sm:$0xff]   ;;  %v3929_v13 = vld [vmem:[#allocation11 + $0x34] ss:$8 sps:$4 sm:$0xff]  }
  0xa3   : > { %1513 = vmatpush1.bf16.msra.mxu0 %v3921_v7  ;;  %v3931_v14 = vld [vmem:[#allocation11 + $0x4b4] ss:$8 sps:$4 sm:$0xff]   ;;  %v3933_v15 = vld [vmem:[#allocation11 + $0x30] ss:$8 sps:$4 sm:$0xff]   ;;  %v3935_v17 = vld [vmem:[#allocation11 + $0x44] ss:$8 sps:$4 sm:$0xff]  }
  0xa4   : > { %2699 = vmatpush1.bf16.msra.mxu1 %v3922_v8  ;;  %1514 = vmatprep.subr.bf16.mxu0 %v3923_v9  ;;  %v3934_v16 = vld [vmem:[#allocation11 + $0x4b0] ss:$8 sps:$4 sm:$0xff]   ;;  %v3937_v18 = vld [vmem:[#allocation11 + $0x4c4] ss:$8 sps:$4 sm:$0xff]   ;;  %v3939_v19 = vld [vmem:[#allocation11 + $0x40] ss:$8 sps:$4 sm:$0xff]  }
  0xa5   : > { %2700 = vmatprep.subr.bf16.mxu1 %v3925_v10  ;;  %v3940_v20 = vld [vmem:[#allocation11 + $0x4c0] ss:$8 sps:$4 sm:$0xff]   ;;  %v3941_v21 = vld [vmem:[#allocation11 + $0x54] ss:$8 sps:$4 sm:$0xff]   ;;  %v3945_v23 = vld [vmem:[#allocation11 + $0x50] ss:$8 sps:$4 sm:$0xff]  }
  0xa6   : > { %v3943_v22 = vld [vmem:[#allocation11 + $0x4d4] ss:$8 sps:$4 sm:$0xff]   ;;  %v3946_v24 = vld [vmem:[#allocation11 + $0x4d0] ss:$8 sps:$4 sm:$0xff]   ;;  %v3947_v25 = vld [vmem:[#allocation11 + $0x64] ss:$8 sps:$4 sm:$0xff]  }
  0xa7   : > { %1515 = vmatpush1.bf16.msra.mxu0 %v3927_v11  ;;  %v3949_v26 = vld [vmem:[#allocation11 + $0x4e4] ss:$8 sps:$4 sm:$0xff]   ;;  %v3951_v27 = vld [vmem:[#allocation11 + $0x60] ss:$8 sps:$4 sm:$0xff]   ;;  %v3953_v29 = vld [vmem:[#allocation11 + $0x74] ss:$8 sps:$4 sm:$0xff]  }
  0xa8   : > { %2701 = vmatpush1.bf16.msra.mxu1 %v3928_v12  ;;  %1516 = vmatprep.subr.bf16.mxu0 %v3929_v13  ;;  %v3952_v28 = vld [vmem:[#allocation11 + $0x4e0] ss:$8 sps:$4 sm:$0xff]   ;;  %v3955_v30 = vld [vmem:[#allocation11 + $0x4f4] ss:$8 sps:$4 sm:$0xff]   ;;  %v3957_v31 = vld [vmem:[#allocation11 + $0x70] ss:$8 sps:$4 sm:$0xff]  }
  0xa9   : > { %2702 = vmatprep.subr.bf16.mxu1 %v3931_v14  ;;  %v3958_v32 = vld [vmem:[#allocation11 + $0x4f0] ss:$8 sps:$4 sm:$0xff]   ;;  %v3959_v33 = vld [vmem:[#allocation11 + $0x84] ss:$8 sps:$4 sm:$0xff]   ;;  %v3963_v35 = vld [vmem:[#allocation11 + $0x80] ss:$8 sps:$4 sm:$0xff]  }
  0xaa   : > { %v3961_v34 = vld [vmem:[#allocation11 + $0x504] ss:$8 sps:$4 sm:$0xff]   ;;  %v3964_v36 = vld [vmem:[#allocation11 + $0x500] ss:$8 sps:$4 sm:$0xff]   ;;  %v3965_v37 = vld [vmem:[#allocation11 + $0x94] ss:$8 sps:$4 sm:$0xff]  }
  0xab   : > { %1517 = vmatpush1.bf16.msra.mxu0 %v3933_v15  ;;  %v3967_v38 = vld [vmem:[#allocation11 + $0x514] ss:$8 sps:$4 sm:$0xff]   ;;  %v3969_v39 = vld [vmem:[#allocation11 + $0x90] ss:$8 sps:$4 sm:$0xff]   ;;  %v3971_v41 = vld [vmem:[#allocation11 + $0xa4] ss:$8 sps:$4 sm:$0xff]  }
  0xac   : > { %2703 = vmatpush1.bf16.msra.mxu1 %v3934_v16  ;;  %1518 = vmatprep.subr.bf16.mxu0 %v3935_v17  ;;  %v3970_v40 = vld [vmem:[#allocation11 + $0x510] ss:$8 sps:$4 sm:$0xff]   ;;  %v3973_v42 = vld [vmem:[#allocation11 + $0x524] ss:$8 sps:$4 sm:$0xff]   ;;  %v3975_v43 = vld [vmem:[#allocation11 + $0xa0] ss:$8 sps:$4 sm:$0xff]  }
  0xad   : > { %2704 = vmatprep.subr.bf16.mxu1 %v3937_v18  ;;  %v3976_v44 = vld [vmem:[#allocation11 + $0x520] ss:$8 sps:$4 sm:$0xff]   ;;  %v3977_v45 = vld [vmem:[#allocation11 + $0xb4] ss:$8 sps:$4 sm:$0xff]   ;;  %v3981_v47 = vld [vmem:[#allocation11 + $0xb0] ss:$8 sps:$4 sm:$0xff]  }
  0xae   : > { %v3979_v46 = vld [vmem:[#allocation11 + $0x534] ss:$8 sps:$4 sm:$0xff]   ;;  %v3982_v48 = vld [vmem:[#allocation11 + $0x530] ss:$8 sps:$4 sm:$0xff]   ;;  %v3983_v53 = vld [vmem:[#allocation11 + $0xc4] ss:$8 sps:$4 sm:$0xff]  }
  0xaf   : > { %1519 = vmatpush1.bf16.msra.mxu0 %v3939_v19  ;;  %v334_v49 = vld [vmem:[%s4886_s13] sm:$0xf]  ;;  %v335_v50 = vld [vmem:[%s4886_s13 + $0x4] sm:$0xf]  ;;  %vm1789_vm1 = vcmask 1045508   ;;  %s4919_s29 = scalar_lea.vmem [#allocation14], %s3351_s27 }
  0xb0   : > { %2705 = vmatpush1.bf16.msra.mxu1 %v3940_v20  ;;  %1520 = vmatprep.subr.bf16.mxu0 %v3941_v21  ;;  %v4902_v51 = vld [vmem:[#allocation8] ss:$0 sm:$0xff]  ;;  %v4904_v52 = vld [vmem:[#allocation10] ss:$0 sm:$0xff]  ;;  %v3985_v56 = vld [vmem:[#allocation11 + $0x544] ss:$8 sps:$4 sm:$0xff]  }
  0xb1   : > { %2706 = vmatprep.subr.bf16.mxu1 %v3943_v22  ;;  %v346_v54 = vmul.f32 %v4902_v51, %v334_v49  ;;  %v347_v55 = vmul.f32 %v4902_v51, %v335_v50  ;;  %v3987_v59 = vld [vmem:[#allocation11 + $0xc0] ss:$8 sps:$4 sm:$0xff]   ;;  %v3989_v61 = vld [vmem:[#allocation11 + $0xd4] ss:$8 sps:$4 sm:$0xff]   ;;  %v3993_v63 = vld [vmem:[#allocation11 + $0xd0] ss:$8 sps:$4 sm:$0xff]  }
  0xb2   : > { %v3988_v60 = vld [vmem:[#allocation11 + $0x540] ss:$8 sps:$4 sm:$0xff]   ;;  %v3991_v62 = vld [vmem:[#allocation11 + $0x554] ss:$8 sps:$4 sm:$0xff]   ;;  %v3994_v0 = vld [vmem:[#allocation11 + $0x550] ss:$8 sps:$4 sm:$0xff]  }
  0xb3   : > { %1521 = vmatpush1.bf16.msra.mxu0 %v3945_v23  ;;  %v356_v57 = vadd.f32 %v4904_v52, %v346_v54  ;;  %v357_v58 = vadd.f32 %v4904_v52, %v347_v55  ;;  %v3995_v1 = vld [vmem:[#allocation11 + $0xe4] ss:$8 sps:$4 sm:$0xff]   ;;  %v3999_v3 = vld [vmem:[#allocation11 + $0xe0] ss:$8 sps:$4 sm:$0xff]   ;;  %v4001_v8 = vld [vmem:[#allocation11 + $0xf4] ss:$8 sps:$4 sm:$0xff]  }
  0xb4   : > { %2707 = vmatpush1.bf16.msra.mxu1 %v3946_v24  ;;  %1522 = vmatprep.subr.bf16.mxu0 %v3947_v25  ;;  %v3997_v2 = vld [vmem:[#allocation11 + $0x564] ss:$8 sps:$4 sm:$0xff]   ;;  %v4000_v4 = vld [vmem:[#allocation11 + $0x560] ss:$8 sps:$4 sm:$0xff]   ;;  %v4003_v13 = vld [vmem:[#allocation11 + $0x574] ss:$8 sps:$4 sm:$0xff]  }
  0xb5   : > { %2708 = vmatprep.subr.bf16.mxu1 %v3949_v26  ;;  %366 = vst [vmem:[#allocation2 + $0x7] sm:$0xf] %v356_v57  ;;  %367 = vst [vmem:[#allocation2 + $0xd] sm:$0xf] %v357_v58  ;;  %v4005_v15 = vld [vmem:[#allocation11 + $0xf0] ss:$8 sps:$4 sm:$0xff]  }
  0xb6   : > { %v4006_v16 = vld [vmem:[#allocation11 + $0x570] ss:$8 sps:$4 sm:$0xff]   ;;  %v4012_v17 = vld [vmem:[#allocation11 + $0x104] ss:$8 sps:$4 sm:$0xff]   ;;  %v4010_v19 = vld [vmem:[#allocation11 + $0x100] ss:$8 sps:$4 sm:$0xff]  }
  0xb7   : > { %1523 = vmatpush1.bf16.msra.mxu0 %v3951_v27  ;;  %v4015_v18 = vld [vmem:[#allocation11 + $0x584] ss:$8 sps:$4 sm:$0xff]   ;;  %v4013_v20 = vld [vmem:[#allocation11 + $0x580] ss:$8 sps:$4 sm:$0xff]   ;;  %v4018_v23 = vld [vmem:[#allocation11 + $0x114] ss:$8 sps:$4 sm:$0xff]  }
  0xb8   : > { %2709 = vmatpush1.bf16.msra.mxu1 %v3952_v28  ;;  %1524 = vmatprep.subr.bf16.mxu0 %v3953_v29  ;;  %v4021_v24 = vld [vmem:[#allocation11 + $0x594] ss:$8 sps:$4 sm:$0xff]   ;;  %v4016_v25 = vld [vmem:[#allocation11 + $0x110] ss:$8 sps:$4 sm:$0xff]   ;;  %v4024_v27 = vld [vmem:[#allocation11 + $0x124] ss:$8 sps:$4 sm:$0xff]  }
  0xb9   : > { %2710 = vmatprep.subr.bf16.mxu1 %v3955_v30  ;;  %v4019_v26 = vld [vmem:[#allocation11 + $0x590] ss:$8 sps:$4 sm:$0xff]   ;;  %v4027_v28 = vld [vmem:[#allocation11 + $0x5a4] ss:$8 sps:$4 sm:$0xff]   ;;  %v4022_v29 = vld [vmem:[#allocation11 + $0x120] ss:$8 sps:$4 sm:$0xff]  }
  0xba   : > { %v4025_v30 = vld [vmem:[#allocation11 + $0x5a0] ss:$8 sps:$4 sm:$0xff]   ;;  %v4057_v57 = vld [vmem:[#allocation11 + $0x5f4] ss:$8 sps:$4 sm:$0xff]   ;;  %vm4923_vm2 = vmor %vm1788_vm0, %vm1789_vm1  ;;  %vm3035_vm3 = vcmask 1043456   ;;  %s3734_s17 = sshll.u32 %s4699_s25, 10 }
  0xbb   : > { %1525 = vmatpush1.bf16.msra.mxu0 %v3957_v31  ;;  %v4030_v31 = vld [vmem:[#allocation11 + $0x134] ss:$8 sps:$4 sm:$0xff]   ;;  %v4049_v49 = vld [vmem:[#allocation11 + $0x5e0] ss:$8 sps:$4 sm:$0xff]   ;;  %s3179_s20 = sshll.u32 %s4919_s29, 4  ;;  %s4961_s16 = scalar_lea.hbm %s5113_s5, %s3734_s17  ;;  %s4963_s20 = int_to_ptr.vmem [resolvable:$true] %s3179_s20 }
  0xbc   : > { %2711 = vmatpush1.bf16.msra.mxu1 %v3958_v32  ;;  %1526 = vmatprep.subr.bf16.mxu0 %v3959_v33  ;;  %v370_v5 = vld [vmem:[#allocation2] sm:$0xff]  ;;  %v371_v6 = vld [vmem:[#allocation2 + $0x8] sm:$0xff]  ;;  %s3161_s19 = scalar_lea.sflag [#allocation7], %s4882_s14  ;;  %s4520_s26 = scalar_lea.vmem %s4963_s20, 1024 }
  0xbd   : > { %2712 = vmatprep.subr.bf16.mxu1 %v3961_v34  ;;  %v389_v7 = vld [vmem:[#allocation2 + $0x1] sm:$0xff]  ;;  %v3707_v9 = vpack.c.bf16 %v370_v5, %v370_v5  ;;  %v3708_v10 = vpack.c.bf16 %v371_v6, %v371_v6  ;;  %v390_v11 = vld [vmem:[#allocation2 + $0x9] sm:$0xff]  ;;  %p4521_p4 = scmp.ne.s32.totalorder %s4963_s20, %s4520_s26  ;;  %s4639_s9 = smov [#allocation14]  }
  0xbe   : > { %v3710_v12 = vpack.c.bf16 %v389_v7, %v389_v7  ;;  %v3711_v14 = vpack.c.bf16 %v390_v11, %v390_v11  ;;  %v4033_v32 = vld [vmem:[#allocation11 + $0x5b4] ss:$8 sps:$4 sm:$0xff]   ;;  %v4028_v33 = vld [vmem:[#allocation11 + $0x130] ss:$8 sps:$4 sm:$0xff]   ;;  %v4061_v7 = vld [vmem:[#allocation11 + $0x600] ss:$8 sps:$4 sm:$0xff]  }
  0xbf   : > { %1527 = vmatpush1.bf16.msra.mxu0 %v3963_v35  ;;  %386 = vst [vmem:[#allocation3] sm:$0xf] %v3707_v9  ;;  %387 = vst [vmem:[#allocation3 + $0x24] sm:$0xf] %v3708_v10  ;;  %v4031_v34 = vld [vmem:[#allocation11 + $0x5b0] ss:$8 sps:$4 sm:$0xff]   ;;  %p4522_p6 = pnand %p4521_p4, %p4830_p1 }
  0xc0   : > { %2713 = vmatpush1.bf16.msra.mxu1 %v3964_v36  ;;  %1528 = vmatprep.subr.bf16.mxu0 %v3965_v37  ;;  %405 = vst [vmem:[#allocation3 + $0x4] sm:$0xf] %v3710_v12  ;;  %481 = vst [vmem:[#allocation3 + $0x14] sm:$0xf] %v3708_v10  ;;  %v4036_v35 = vld [vmem:[#allocation11 + $0x144] ss:$8 sps:$4 sm:$0xff]  }
  0xc1   : > { %2714 = vmatprep.subr.bf16.mxu1 %v3967_v38  ;;  %406 = vst [vmem:[#allocation3 + $0x28] sm:$0xf] %v3711_v14  ;;  %v4039_v36 = vld [vmem:[#allocation11 + $0x5c4] ss:$8 sps:$4 sm:$0xff]   ;;  %v4034_v37 = vld [vmem:[#allocation11 + $0x140] ss:$8 sps:$4 sm:$0xff]   ;;  %p4523_p8 = pneg %p4522_p6 }
  0xc2   : > { %v4037_v38 = vld [vmem:[#allocation11 + $0x5c0] ss:$8 sps:$4 sm:$0xff]   ;;  %v408_v50 = vld [vmem:[#allocation2 + $0x2] sm:$0xff]  ;;  %v4072_v12 = vld [vmem:[#allocation11 + $0x1a4] ss:$8 sps:$4 sm:$0xff]   ;;  %s4524_s10 = sshll.u32 %s4639_s9, 4  ;;  %s4525_s10 = int_to_ptr.vmem [resolvable:$false] %s4524_s10 }
  0xc3   : > { %1529 = vmatpush1.bf16.msra.mxu0 %v3969_v39  ;;  %v4042_v39 = vld [vmem:[#allocation11 + $0x154] ss:$8 sps:$4 sm:$0xff]   ;;  %v3713_v54 = vpack.c.bf16 %v408_v50, %v408_v50  ;;  %v4064_v10 = vld [vmem:[#allocation11 + $0x190] ss:$8 sps:$4 sm:$0xff]   ;;  %v4070_v14 = vld [vmem:[#allocation11 + $0x1a0] ss:$8 sps:$4 sm:$0xff]   ;;  %p4527_p3 = scmp.lt.s32.totalorder %s4963_s20, %s4525_s10 }
  0xc4   : > { %2715 = vmatpush1.bf16.msra.mxu1 %v3970_v40  ;;  %1530 = vmatprep.subr.bf16.mxu0 %v3971_v41  ;;  %v4045_v40 = vld [vmem:[#allocation11 + $0x5d4] ss:$8 sps:$4 sm:$0xff]   ;;  %v4067_v11 = vld [vmem:[#allocation11 + $0x610] ss:$8 sps:$4 sm:$0xff]   ;;  %s4526_s11 = scalar_lea.vmem %s4525_s10, 2048 }
  0xc5   : > { %2716 = vmatprep.subr.bf16.mxu1 %v3973_v42  ;;  %v336_v41 = vld [vmem:[%s4886_s13 + $0x8] sm:$0xf]  ;;  %v4040_v42 = vld [vmem:[#allocation11 + $0x150] ss:$8 sps:$4 sm:$0xff]   ;;  %424 = vst [vmem:[#allocation3 + $0x8] sm:$0xf] %v3713_v54  ;;  %p4528_p7 = scmp.lt.s32.totalorder %s4526_s11, %s4520_s26 }
  0xc6   : > { %v4007_v21 = vld [vmem:[#allocation3] ss:$36 sps:$4 sm:$0xff]   ;;  %v427_v55 = vld [vmem:[#allocation2 + $0x6] sm:$0xff] }
  0xc7   : > { %1531 = vmatpush1.bf16.msra.mxu0 %v3975_v43  ;;  %v348_v43 = vmul.f32 %v4902_v51, %v336_v41  ;;  %v4069_v9 = vld [vmem:[#allocation11 + $0x614] ss:$8 sps:$4 sm:$0xff]   ;;  %v4116_v41 = vld [vmem:[#allocation11 + $0x684] ss:$8 sps:$4 sm:$0xff]   ;;  %p4529_p10 = por %p4528_p7, %p4527_p3 }
  0xc8   : > { %2717 = vmatpush1.bf16.msra.mxu1 %v3976_v44  ;;  %1532 = vmatprep.subr.bf16.mxu0 %v3977_v45  ;;  %v4009_v22 = vld [vmem:[#allocation3 + $0x4] ss:$36 sps:$4 sm:$0xff]   ;;  %v4043_v44 = vld [vmem:[#allocation11 + $0x5d0] ss:$8 sps:$4 sm:$0xff]  }
  0xc9   : > { %2718 = vmatprep.subr.bf16.mxu1 %v3979_v46  ;;  %1542 = vmatprep.mubr.bf16.mxu0 %v4009_v22  ;;  %v4048_v45 = vld [vmem:[#allocation11 + $0x164] ss:$8 sps:$4 sm:$0xff]   ;;  %p4530_p13 = pnand %p4529_p10, %p4523_p8 }
  0xca   : > { %2728 = vmatprep.mubr.bf16.mxu1 %v4009_v22  ;;  %v4051_v46 = vld [vmem:[#allocation11 + $0x5e4] ss:$8 sps:$4 sm:$0xff]   ;;  %v4076_v22 = vld [vmem:[#allocation11 + $0x1b0] ss:$8 sps:$4 sm:$0xff]  }
  0xcb   : > { %1533 = vmatpush1.bf16.msra.mxu0 %v3981_v47  ;;  %v358_v47 = vadd.f32 %v4904_v52, %v348_v43  ;;  %v4125_v54 = vld [vmem:[#allocation11 + $0x224] ss:$8 sps:$4 sm:$0xff]  }
  0xcc   : > { %2719 = vmatpush1.bf16.msra.mxu1 %v3982_v48  ;;  %1534 = vmatprep.subr.bf16.mxu0 %v3983_v53  ;;  %v4046_v48 = vld [vmem:[#allocation11 + $0x160] ss:$8 sps:$4 sm:$0xff]  }
  0xcd   : > { %2720 = vmatprep.subr.bf16.mxu1 %v3985_v56  ;;  %368 = vst [vmem:[#allocation2 + $0x13] sm:$0xf] %v358_v47  ;;  %v409_v53 = vld [vmem:[#allocation2 + $0xa] sm:$0xff] }
  0xce   : > { %v4054_v56 = vld [vmem:[#allocation11 + $0x174] ss:$8 sps:$4 sm:$0xff]   ;;  %v3714_v58 = vpack.c.bf16 %v409_v53, %v409_v53  ;;  %v4120_v53 = vld [vmem:[#allocation11 + $0x690] ss:$8 sps:$4 sm:$0xff]  }
  0xcf   : > { %1535 = vmatpush1.bf16.msra.mxu0 %v3987_v59  ;;  %v3716_v59 = vpack.c.bf16 %v427_v55, %v427_v55  ;;  %v4122_v47 = vld [vmem:[#allocation11 + $0x694] ss:$8 sps:$4 sm:$0xff]   ;;  %v4128_v55 = vld [vmem:[#allocation11 + $0x6a4] ss:$8 sps:$4 sm:$0xff]  }
  0xd0   : > { %2721 = vmatpush1.bf16.msra.mxu1 %v3988_v60  ;;  %1536 = vmatprep.subr.bf16.mxu0 %v3989_v61  ;;  %425 = vst [vmem:[#allocation3 + $0x2c] sm:$0xf] %v3714_v58  ;;  %v4052_v60 = vld [vmem:[#allocation11 + $0x170] ss:$8 sps:$4 sm:$0xff]   ;;  %v4123_v58 = vld [vmem:[#allocation11 + $0x220] ss:$8 sps:$4 sm:$0xff]  }
  0xd1   : > { %2722 = vmatprep.subr.bf16.mxu1 %v3991_v62  ;;  %443 = vst [vmem:[#allocation3 + $0xc] sm:$0xf] %v3716_v59  ;;  %v4055_v61 = vld [vmem:[#allocation11 + $0x5f0] ss:$8 sps:$4 sm:$0xff]   ;;  %v4060_v62 = vld [vmem:[#allocation11 + $0x184] ss:$8 sps:$4 sm:$0xff]  }
  0xd3   : > { %1537 = vmatpush1.bf16.msra.mxu0 %v3993_v63  ;;  %v4063_v63 = vld [vmem:[#allocation11 + $0x604] ss:$8 sps:$4 sm:$0xff]  }
  0xd4   : > { %2723 = vmatpush1.bf16.msra.mxu1 %v3994_v0  ;;  %1538 = vmatprep.subr.bf16.mxu0 %v3995_v1  ;;  %v372_v0 = vld [vmem:[#allocation2 + $0x10] sm:$0xff] }
  0xd5   : > { %2724 = vmatprep.subr.bf16.mxu1 %v3997_v2  ;;  %v391_v1 = vld [vmem:[#allocation2 + $0x11] sm:$0xff] }
  0xd6   : > { %v428_v2 = vld [vmem:[#allocation2 + $0xe] sm:$0xff]  ;;  %v3712_v5 = vpack.c.bf16 %v391_v1, %v391_v1 }
  0xd7   : > { %1539 = vmatpush1.bf16.msra.mxu0 %v3999_v3  ;;  %v4058_v3 = vld [vmem:[#allocation11 + $0x180] ss:$8 sps:$4 sm:$0xff]   ;;  %v3717_v6 = vpack.c.bf16 %v428_v2, %v428_v2 }
  0xd8   : > { %2725 = vmatpush1.bf16.msra.mxu1 %v4000_v4  ;;  %1540 = vmatprep.subr.bf16.mxu0 %v4001_v8  ;;  %v3709_v4 = vpack.c.bf16 %v372_v0, %v372_v0  ;;  %v4066_v8 = vld [vmem:[#allocation11 + $0x194] ss:$8 sps:$4 sm:$0xff]   ;;  %407 = vst [vmem:[#allocation3 + $0x4c] sm:$0xf] %v3712_v5  ;;  %v4108_v43 = vld [vmem:[#allocation3 + $0x8] ss:$36 sps:$4 sm:$0xff]  }
  0xd9   : > { %2726 = vmatprep.subr.bf16.mxu1 %v4003_v13  ;;  %444 = vst [vmem:[#allocation3 + $0x30] sm:$0xf] %v3717_v6  ;;  %v4075_v13 = vld [vmem:[#allocation11 + $0x624] ss:$8 sps:$4 sm:$0xff]   ;;  %v4135_v6 = vld [vmem:[#allocation11 + $0x240] ss:$8 sps:$4 sm:$0xff]  }
  0xda   : > { %388 = vst [vmem:[#allocation3 + $0x48] sm:$0xf] %v3709_v4  ;;  %482 = vst [vmem:[#allocation3 + $0x38] sm:$0xf] %v3709_v4  ;;  %v4137_v0 = vld [vmem:[#allocation11 + $0x244] ss:$8 sps:$4 sm:$0xff]  }
  0xdb   : > { %1541 = vmatpush1.bf16.msra.mxu0 %v4005_v15  ;;  %v4073_v15 = vld [vmem:[#allocation11 + $0x620] ss:$8 sps:$4 sm:$0xff]  }
  0xdc   : > { %2727 = vmatpush1.bf16.msra.mxu1 %v4006_v16  ;;  %1561 = vmatprep.subr.bf16.mxu0 %v4012_v17  ;;  %v4078_v17 = vld [vmem:[#allocation11 + $0x1b4] ss:$8 sps:$4 sm:$0xff]  }
  0xdd   : > { %2747 = vmatprep.subr.bf16.mxu1 %v4015_v18  ;;  %v4081_v18 = vld [vmem:[#allocation11 + $0x634] ss:$8 sps:$4 sm:$0xff]  }
  0xde   : > { %1543 = vmatmul.mubr.bf16.vlgmr.msra.gmra.mrb[0].mxu0 %v4007_v21 }
  0xdf   : > { %2729 = vmatmul.mubr.bf16.vlgmr.msra.gmra.mrb[0].mxu1 %v4007_v21  ;;  %1562 = vmatpush1.bf16.msra.mxu0 %v4010_v19 }
  0xe0   : > { %2748 = vmatpush1.bf16.msra.mxu1 %v4013_v20  ;;  %1563 = vmatprep.subr.bf16.mxu0 %v4018_v23  ;;  %v4110_v21 = vld [vmem:[#allocation3 + $0xc] ss:$36 sps:$4 sm:$0xff]  }
  0xe1   : > { %2749 = vmatprep.subr.bf16.mxu1 %v4021_v24  ;;  %v551_v16 = vld [vmem:[#allocation3 + $0x48] sm:$0xff]  ;;  %v4079_v23 = vld [vmem:[#allocation11 + $0x630] ss:$8 sps:$4 sm:$0xff]  }
  0xe2   : > { %v3392_v19 = vcombine.high %v551_v16, %v551_v16  ;;  %v3391_v20 = vcombine.low %v551_v16, %v551_v16  ;;  %v4084_v24 = vld [vmem:[#allocation11 + $0x1c4] ss:$8 sps:$4 sm:$0xff]   ;;  %v4150_v16 = vld [vmem:[#allocation11 + $0x6e0] ss:$8 sps:$4 sm:$0xff]  }
  0xe3   : > { %1564 = vmatpush1.bf16.msra.mxu0 %v4016_v25  ;;  %v4087_v25 = vld [vmem:[#allocation11 + $0x644] ss:$8 sps:$4 sm:$0xff]  }
  0xe4   : > { %2750 = vmatpush1.bf16.msra.mxu1 %v4019_v26  ;;  %1565 = vmatprep.subr.bf16.mxu0 %v4024_v27  ;;  %v4082_v26 = vld [vmem:[#allocation11 + $0x1c0] ss:$8 sps:$4 sm:$0xff]  }
  0xe5   : > { %2751 = vmatprep.subr.bf16.mxu1 %v4027_v28  ;;  %1552 = vmatprep.mubr.bf16.mxu0 %v3392_v19  ;;  %v4085_v27 = vld [vmem:[#allocation11 + $0x640] ss:$8 sps:$4 sm:$0xff]   ;;  %v4090_v28 = vld [vmem:[#allocation11 + $0x1d4] ss:$8 sps:$4 sm:$0xff]  }
  0xe6   : > { %2738 = vmatprep.mubr.bf16.mxu1 %v3392_v19  ;;  %1553 = vmatmul.mubr.bf16.gmra.mrb[4].mxu0 %v3391_v20  ;;  %v4155_v19 = vld [vmem:[#allocation11 + $0x274] ss:$8 sps:$4 sm:$0xff]  }
  0xe7   : > { %1566 = vmatpush1.bf16.msra.mxu0 %v4022_v29  ;;  %2739 = vmatmul.mubr.bf16.gmra.mrb[4].mxu1 %v3391_v20  ;;  %v4093_v29 = vld [vmem:[#allocation11 + $0x654] ss:$8 sps:$4 sm:$0xff]  }
  0xe8   : > { %2752 = vmatpush1.bf16.msra.mxu1 %v4025_v30  ;;  %1567 = vmatprep.subr.bf16.mxu0 %v4030_v31  ;;  %v4088_v30 = vld [vmem:[#allocation11 + $0x1d0] ss:$8 sps:$4 sm:$0xff]   ;;  %v4158_v20 = vld [vmem:[#allocation11 + $0x6f4] ss:$8 sps:$4 sm:$0xff]  }
  0xe9   : > { %2753 = vmatprep.subr.bf16.mxu1 %v4033_v32  ;;  %1593 = vmatprep.mubr.bf16.mxu0 %v4110_v21  ;;  %v4091_v31 = vld [vmem:[#allocation11 + $0x650] ss:$8 sps:$4 sm:$0xff]   ;;  %v4097_v32 = vld [vmem:[#allocation11 + $0x1e4] ss:$8 sps:$4 sm:$0xff]  }
  0xea   : > { %2779 = vmatprep.mubr.bf16.mxu1 %v4110_v21  ;;  %v4211_v21 = vld [vmem:[#allocation3 + $0x14] ss:$36 sps:$4 sm:$0xff]  }
  0xeb   : > { %1568 = vmatpush1.bf16.msra.mxu0 %v4028_v33  ;;  %v4100_v33 = vld [vmem:[#allocation11 + $0x664] ss:$8 sps:$4 sm:$0xff]  }
  0xec   : > { %2754 = vmatpush1.bf16.msra.mxu1 %v4031_v34  ;;  %1569 = vmatprep.subr.bf16.mxu0 %v4036_v35  ;;  %v4095_v34 = vld [vmem:[#allocation11 + $0x1e0] ss:$8 sps:$4 sm:$0xff]  }
  0xed   : > { %2755 = vmatprep.subr.bf16.mxu1 %v4039_v36  ;;  %v4098_v35 = vld [vmem:[#allocation11 + $0x660] ss:$8 sps:$4 sm:$0xff]   ;;  %v4104_v36 = vld [vmem:[#allocation11 + $0x1f4] ss:$8 sps:$4 sm:$0xff]  }
  0xef   : > { %1570 = vmatpush1.bf16.msra.mxu0 %v4034_v37  ;;  %v4107_v37 = vld [vmem:[#allocation11 + $0x674] ss:$8 sps:$4 sm:$0xff]  }
  0xf0   : > { %2756 = vmatpush1.bf16.msra.mxu1 %v4037_v38  ;;  %1571 = vmatprep.subr.bf16.mxu0 %v4042_v39  ;;  %v4102_v38 = vld [vmem:[#allocation11 + $0x1f0] ss:$8 sps:$4 sm:$0xff]  }
  0xf1   : > { %2757 = vmatprep.subr.bf16.mxu1 %v4045_v40  ;;  %v4105_v39 = vld [vmem:[#allocation11 + $0x670] ss:$8 sps:$4 sm:$0xff]   ;;  %v4113_v40 = vld [vmem:[#allocation11 + $0x204] ss:$8 sps:$4 sm:$0xff]  }
  0xf3   : > { %1572 = vmatpush1.bf16.msra.mxu0 %v4040_v42  ;;  %v4111_v42 = vld [vmem:[#allocation11 + $0x200] ss:$8 sps:$4 sm:$0xff]  }
  0xf4   : > { %2758 = vmatpush1.bf16.msra.mxu1 %v4043_v44  ;;  %1573 = vmatprep.subr.bf16.mxu0 %v4048_v45  ;;  %v4114_v44 = vld [vmem:[#allocation11 + $0x680] ss:$8 sps:$4 sm:$0xff]   ;;  %v4119_v45 = vld [vmem:[#allocation11 + $0x214] ss:$8 sps:$4 sm:$0xff]  }
  0xf5   : > { %2759 = vmatprep.subr.bf16.mxu1 %v4051_v46  ;;  %v337_v46 = vld [vmem:[%s4886_s13 + $0xc] sm:$0xf] }
  0xf7   : > { %1574 = vmatpush1.bf16.msra.mxu0 %v4046_v48  ;;  %v349_v48 = vmul.f32 %v4902_v51, %v337_v46  ;;  %v4126_v51 = vld [vmem:[#allocation11 + $0x6a0] ss:$8 sps:$4 sm:$0xff]  }
  0xf8   : > { %2760 = vmatpush1.bf16.msra.mxu1 %v4049_v49  ;;  %1575 = vmatprep.subr.bf16.mxu0 %v4054_v56  ;;  %v4117_v49 = vld [vmem:[#allocation11 + $0x210] ss:$8 sps:$4 sm:$0xff]   ;;  %v4186_v46 = vld [vmem:[#allocation11 + $0x740] ss:$8 sps:$4 sm:$0xff]  }
  0xf9   : > { %2761 = vmatprep.subr.bf16.mxu1 %v4057_v57  ;;  %v359_v50 = vadd.f32 %v4904_v52, %v349_v48  ;;  %v446_v56 = vld [vmem:[#allocation2 + $0x7] sm:$0xff]  ;;  %v447_v57 = vld [vmem:[#allocation2 + $0xf] sm:$0xff] }
  0xfa   : > { %v3719_v59 = vpack.c.bf16 %v446_v56, %v446_v56  ;;  %v4134_v52 = vld [vmem:[#allocation11 + $0x6b4] ss:$8 sps:$4 sm:$0xff]  }
  0xfb   : > { %1576 = vmatpush1.bf16.msra.mxu0 %v4052_v60  ;;  %369 = vst [vmem:[#allocation2 + $0x19] sm:$0xf] %v359_v50  ;;  %v3720_v60 = vpack.c.bf16 %v447_v57, %v447_v57  ;;  %v4191_v48 = vld [vmem:[#allocation11 + $0x2d4] ss:$8 sps:$4 sm:$0xff]   ;;  %v4189_v50 = vld [vmem:[#allocation11 + $0x2d0] ss:$8 sps:$4 sm:$0xff]  }
  0xfc   : > { %2762 = vmatpush1.bf16.msra.mxu1 %v4055_v61  ;;  %1577 = vmatprep.subr.bf16.mxu0 %v4060_v62  ;;  %v4131_v61 = vld [vmem:[#allocation11 + $0x234] ss:$8 sps:$4 sm:$0xff]   ;;  %462 = vst [vmem:[#allocation3 + $0x10] sm:$0xf] %v3719_v59  ;;  %v4129_v62 = vld [vmem:[#allocation11 + $0x230] ss:$8 sps:$4 sm:$0xff]  }
  0xfd   : > { %2763 = vmatprep.subr.bf16.mxu1 %v4063_v63  ;;  %463 = vst [vmem:[#allocation3 + $0x34] sm:$0xf] %v3720_v60  ;;  %v4132_v63 = vld [vmem:[#allocation11 + $0x6b0] ss:$8 sps:$4 sm:$0xff]   ;;  %v484_v56 = vld [vmem:[#allocation2 + $0xc] sm:$0xff] }
  0xfe   : > { %v503_v59 = vld [vmem:[#allocation2 + $0xd] sm:$0xff] }
  0xff   : > { %1578 = vmatpush1.bf16.msra.mxu0 %v4058_v3  ;;  %v4140_v3 = vld [vmem:[#allocation11 + $0x6c4] ss:$8 sps:$4 sm:$0xff]  }
 0x100   : > { %2764 = vmatpush1.bf16.msra.mxu1 %v4061_v7  ;;  %1579 = vmatprep.subr.bf16.mxu0 %v4066_v8  ;;  %v4138_v7 = vld [vmem:[#allocation11 + $0x6c0] ss:$8 sps:$4 sm:$0xff]   ;;  %v4143_v8 = vld [vmem:[#allocation11 + $0x254] ss:$8 sps:$4 sm:$0xff]  }
 0x101   : > { %2765 = vmatprep.subr.bf16.mxu1 %v4069_v9  ;;  %v4146_v9 = vld [vmem:[#allocation11 + $0x6d4] ss:$8 sps:$4 sm:$0xff]  }
 0x102   : > { %v410_v1 = vld [vmem:[#allocation2 + $0x12] sm:$0xff] }
 0x103   : > { %1580 = vmatpush1.bf16.msra.mxu0 %v4064_v10  ;;  %v429_v2 = vld [vmem:[#allocation2 + $0x16] sm:$0xff]  ;;  %v3715_v4 = vpack.c.bf16 %v410_v1, %v410_v1  ;;  %v4141_v10 = vld [vmem:[#allocation11 + $0x250] ss:$8 sps:$4 sm:$0xff]   ;;  %v4208_v1 = vld [vmem:[#allocation11 + $0x774] ss:$8 sps:$4 sm:$0xff]  }
 0x104   : > { %2766 = vmatpush1.bf16.msra.mxu1 %v4067_v11  ;;  %1581 = vmatprep.subr.bf16.mxu0 %v4072_v12  ;;  %v3718_v5 = vpack.c.bf16 %v429_v2, %v429_v2  ;;  %v4144_v11 = vld [vmem:[#allocation11 + $0x6d0] ss:$8 sps:$4 sm:$0xff]   ;;  %v4149_v12 = vld [vmem:[#allocation11 + $0x264] ss:$8 sps:$4 sm:$0xff]  }
 0x105   : > { %2767 = vmatprep.subr.bf16.mxu1 %v4075_v13  ;;  %426 = vst [vmem:[#allocation3 + $0x50] sm:$0xf] %v3715_v4  ;;  %v4152_v13 = vld [vmem:[#allocation11 + $0x6e4] ss:$8 sps:$4 sm:$0xff]   ;;  %v4203_v2 = vld [vmem:[#allocation11 + $0x2f0] ss:$8 sps:$4 sm:$0xff]  }
 0x106   : > { %445 = vst [vmem:[#allocation3 + $0x54] sm:$0xf] %v3718_v5  ;;  %539 = vst [vmem:[#allocation3 + $0x44] sm:$0xf] %v3718_v5  ;;  %v485_v57 = vld [vmem:[#allocation2 + $0x14] sm:$0xff] }
 0x107   : > { %1582 = vmatpush1.bf16.msra.mxu0 %v4070_v14  ;;  %v504_v60 = vld [vmem:[#allocation2 + $0x15] sm:$0xff] }
 0x108   : > { %2768 = vmatpush1.bf16.msra.mxu1 %v4073_v15  ;;  %1583 = vmatprep.subr.bf16.mxu0 %v4078_v17  ;;  %v4147_v15 = vld [vmem:[#allocation11 + $0x260] ss:$8 sps:$4 sm:$0xff]   ;;  %v4214_v4 = vld [vmem:[#allocation11 + $0x304] ss:$8 sps:$4 sm:$0xff]  }
 0x109   : > { %2769 = vmatprep.subr.bf16.mxu1 %v4081_v18  ;;  %v4217_v5 = vld [vmem:[#allocation11 + $0x784] ss:$8 sps:$4 sm:$0xff]  }
 0x10b   : > { %1584 = vmatpush1.bf16.msra.mxu0 %v4076_v22  ;;  %v4153_v22 = vld [vmem:[#allocation11 + $0x270] ss:$8 sps:$4 sm:$0xff]  }
 0x10c   : > { %2770 = vmatpush1.bf16.msra.mxu1 %v4079_v23  ;;  %1585 = vmatprep.subr.bf16.mxu0 %v4084_v24  ;;  %v4156_v23 = vld [vmem:[#allocation11 + $0x6f0] ss:$8 sps:$4 sm:$0xff]   ;;  %v4161_v24 = vld [vmem:[#allocation11 + $0x284] ss:$8 sps:$4 sm:$0xff]  }
 0x10d   : > { %2771 = vmatprep.subr.bf16.mxu1 %v4087_v25  ;;  %v552_v14 = vld [vmem:[#allocation3 + $0x50] sm:$0xff]  ;;  %v4164_v25 = vld [vmem:[#allocation11 + $0x704] ss:$8 sps:$4 sm:$0xff]  }
 0x10e   : > { %v3394_v17 = vcombine.high %v552_v14, %v552_v14  ;;  %v3393_v18 = vcombine.low %v552_v14, %v552_v14  ;;  %v4221_v14 = vld [vmem:[#allocation11 + $0x790] ss:$8 sps:$4 sm:$0xff]  }
 0x10f   : > { %1586 = vmatpush1.bf16.msra.mxu0 %v4082_v26  ;;  %v4159_v26 = vld [vmem:[#allocation11 + $0x280] ss:$8 sps:$4 sm:$0xff]  }
 0x110   : > { %2772 = vmatpush1.bf16.msra.mxu1 %v4085_v27  ;;  %1587 = vmatprep.subr.bf16.mxu0 %v4090_v28  ;;  %v4162_v27 = vld [vmem:[#allocation11 + $0x700] ss:$8 sps:$4 sm:$0xff]   ;;  %v4167_v28 = vld [vmem:[#allocation11 + $0x294] ss:$8 sps:$4 sm:$0xff]  }
 0x111   : > { %2773 = vmatprep.subr.bf16.mxu1 %v4093_v29  ;;  %v4170_v29 = vld [vmem:[#allocation11 + $0x714] ss:$8 sps:$4 sm:$0xff]  }
 0x113   : > { %1588 = vmatpush1.bf16.msra.mxu0 %v4088_v30  ;;  %v4165_v30 = vld [vmem:[#allocation11 + $0x290] ss:$8 sps:$4 sm:$0xff]  }
 0x114   : > { %2774 = vmatpush1.bf16.msra.mxu1 %v4091_v31  ;;  %1589 = vmatprep.subr.bf16.mxu0 %v4097_v32  ;;  %v4168_v31 = vld [vmem:[#allocation11 + $0x710] ss:$8 sps:$4 sm:$0xff]   ;;  %v4173_v32 = vld [vmem:[#allocation11 + $0x2a4] ss:$8 sps:$4 sm:$0xff]  }
 0x115   : > { %2775 = vmatprep.subr.bf16.mxu1 %v4100_v33  ;;  %v4176_v33 = vld [vmem:[#allocation11 + $0x724] ss:$8 sps:$4 sm:$0xff]  }
 0x117   : > { %1590 = vmatpush1.bf16.msra.mxu0 %v4095_v34  ;;  %v4171_v34 = vld [vmem:[#allocation11 + $0x2a0] ss:$8 sps:$4 sm:$0xff]  }
 0x118   : > { %2776 = vmatpush1.bf16.msra.mxu1 %v4098_v35  ;;  %1591 = vmatprep.subr.bf16.mxu0 %v4104_v36  ;;  %v4174_v35 = vld [vmem:[#allocation11 + $0x720] ss:$8 sps:$4 sm:$0xff]   ;;  %v4179_v36 = vld [vmem:[#allocation11 + $0x2b4] ss:$8 sps:$4 sm:$0xff]  }
 0x119   : > { %2777 = vmatprep.subr.bf16.mxu1 %v4107_v37  ;;  %v4182_v37 = vld [vmem:[#allocation11 + $0x734] ss:$8 sps:$4 sm:$0xff]  }
 0x11b   : > { %1592 = vmatpush1.bf16.msra.mxu0 %v4102_v38  ;;  %v4177_v38 = vld [vmem:[#allocation11 + $0x2b0] ss:$8 sps:$4 sm:$0xff]  }
 0x11c   : > { %2778 = vmatpush1.bf16.msra.mxu1 %v4105_v39  ;;  %1612 = vmatprep.subr.bf16.mxu0 %v4113_v40  ;;  %v4180_v39 = vld [vmem:[#allocation11 + $0x730] ss:$8 sps:$4 sm:$0xff]   ;;  %v4185_v40 = vld [vmem:[#allocation11 + $0x2c4] ss:$8 sps:$4 sm:$0xff]  }
 0x11d   : > { %2798 = vmatprep.subr.bf16.mxu1 %v4116_v41  ;;  %v4188_v41 = vld [vmem:[#allocation11 + $0x744] ss:$8 sps:$4 sm:$0xff]  }
 0x11e   : > { %1594 = vmatmul.mubr.bf16.vlgmr.msra.gmra.mrb[0].mxu0 %v4108_v43 }
 0x11f   : > { %2780 = vmatmul.mubr.bf16.vlgmr.msra.gmra.mrb[0].mxu1 %v4108_v43  ;;  %1613 = vmatpush1.bf16.msra.mxu0 %v4111_v42  ;;  %v448_v42 = vld [vmem:[#allocation2 + $0x17] sm:$0xff] }
 0x120   : > { %2799 = vmatpush1.bf16.msra.mxu1 %v4114_v44  ;;  %1614 = vmatprep.subr.bf16.mxu0 %v4119_v45  ;;  %v3721_v43 = vpack.c.bf16 %v448_v42, %v448_v42  ;;  %v467_v44 = vld [vmem:[#allocation2 + $0x18] sm:$0xff] }
 0x121   : > { %2800 = vmatprep.subr.bf16.mxu1 %v4122_v47  ;;  %1603 = vmatprep.mubr.bf16.mxu0 %v3394_v17  ;;  %v4183_v45 = vld [vmem:[#allocation11 + $0x2c0] ss:$8 sps:$4 sm:$0xff]   ;;  %v3724_v47 = vpack.c.bf16 %v467_v44, %v467_v44  ;;  %v4253_v42 = vld [vmem:[#allocation11 + $0x7e4] ss:$8 sps:$4 sm:$0xff]  }
 0x122   : > { %2789 = vmatprep.mubr.bf16.mxu1 %v3394_v17  ;;  %464 = vst [vmem:[#allocation3 + $0x58] sm:$0xf] %v3721_v43  ;;  %v4224_v17 = vld [vmem:[#allocation11 + $0x320] ss:$8 sps:$4 sm:$0xff]  }
 0x123   : > { %1615 = vmatpush1.bf16.msra.mxu0 %v4117_v49  ;;  %v4194_v49 = vld [vmem:[#allocation11 + $0x754] ss:$8 sps:$4 sm:$0xff]   ;;  %483 = vst [vmem:[#allocation3 + $0x5c] sm:$0xf] %v3724_v47  ;;  %v4248_v43 = vld [vmem:[#allocation11 + $0x360] ss:$8 sps:$4 sm:$0xff]  }
 0x124   : > { %2801 = vmatpush1.bf16.msra.mxu1 %v4120_v53  ;;  %1616 = vmatprep.subr.bf16.mxu0 %v4125_v54  ;;  %v4192_v53 = vld [vmem:[#allocation11 + $0x750] ss:$8 sps:$4 sm:$0xff]   ;;  %v4198_v54 = vld [vmem:[#allocation11 + $0x2e4] ss:$8 sps:$4 sm:$0xff]   ;;  %v4251_v44 = vld [vmem:[#allocation11 + $0x7e0] ss:$8 sps:$4 sm:$0xff]  }
 0x125   : > { %2802 = vmatprep.subr.bf16.mxu1 %v4128_v55  ;;  %v4201_v55 = vld [vmem:[#allocation11 + $0x764] ss:$8 sps:$4 sm:$0xff]   ;;  %v4254_v47 = vld [vmem:[#allocation11 + $0x370] ss:$8 sps:$4 sm:$0xff]  }
 0x126   : > { %1604 = vmatmul.mubr.bf16.gmra.mrb[4].mxu0 %v3393_v18 }
 0x127   : > { %1617 = vmatpush1.bf16.msra.mxu0 %v4123_v58  ;;  %2790 = vmatmul.mubr.bf16.gmra.mrb[4].mxu1 %v3393_v18  ;;  %v3725_v58 = vpack.c.bf16 %v484_v56, %v484_v56  ;;  %v4227_v18 = vld [vmem:[#allocation11 + $0x7a0] ss:$8 sps:$4 sm:$0xff]   ;;  %v4271_v56 = vld [vmem:[#allocation11 + $0x814] ss:$8 sps:$4 sm:$0xff]  }
 0x128   : > { %2803 = vmatpush1.bf16.msra.mxu1 %v4126_v51  ;;  %1618 = vmatprep.subr.bf16.mxu0 %v4131_v61  ;;  %v3726_v51 = vpack.c.bf16 %v485_v57, %v485_v57  ;;  %v3728_v61 = vpack.c.bf16 %v503_v59, %v503_v59  ;;  %v4266_v57 = vld [vmem:[#allocation11 + $0x390] ss:$8 sps:$4 sm:$0xff]   ;;  %v4274_v59 = vld [vmem:[#allocation11 + $0x3a4] ss:$8 sps:$4 sm:$0xff]  }
 0x129   : > { %2804 = vmatprep.subr.bf16.mxu1 %v4134_v52  ;;  %1644 = vmatprep.mubr.bf16.mxu0 %v4211_v21  ;;  %v3729_v52 = vpack.c.bf16 %v504_v60, %v504_v60  ;;  %500 = vst [vmem:[#allocation3 + $0x18] sm:$0xf] %v3725_v58  ;;  %v4269_v58 = vld [vmem:[#allocation11 + $0x810] ss:$8 sps:$4 sm:$0xff]   ;;  %v4277_v60 = vld [vmem:[#allocation11 + $0x824] ss:$8 sps:$4 sm:$0xff]  }
 0x12a   : > { %2830 = vmatprep.mubr.bf16.mxu1 %v4211_v21  ;;  %501 = vst [vmem:[#allocation3 + $0x3c] sm:$0xf] %v3726_v51  ;;  %519 = vst [vmem:[#allocation3 + $0x1c] sm:$0xf] %v3728_v61  ;;  %v4272_v51 = vld [vmem:[#allocation11 + $0x3a0] ss:$8 sps:$4 sm:$0xff]  }
 0x12b   : > { %1619 = vmatpush1.bf16.msra.mxu0 %v4129_v62  ;;  %v4196_v62 = vld [vmem:[#allocation11 + $0x2e0] ss:$8 sps:$4 sm:$0xff]   ;;  %520 = vst [vmem:[#allocation3 + $0x40] sm:$0xf] %v3729_v52  ;;  %v4280_v52 = vld [vmem:[#allocation11 + $0x3b4] ss:$8 sps:$4 sm:$0xff]  }
 0x12c   : > { %2805 = vmatpush1.bf16.msra.mxu1 %v4132_v63  ;;  %1620 = vmatprep.subr.bf16.mxu0 %v4137_v0  ;;  %v4199_v63 = vld [vmem:[#allocation11 + $0x760] ss:$8 sps:$4 sm:$0xff]   ;;  %v4205_v0 = vld [vmem:[#allocation11 + $0x2f4] ss:$8 sps:$4 sm:$0xff]  }
 0x12d   : > { %2806 = vmatprep.subr.bf16.mxu1 %v4140_v3  ;;  %v4206_v3 = vld [vmem:[#allocation11 + $0x770] ss:$8 sps:$4 sm:$0xff]   ;;  %v4275_v61 = vld [vmem:[#allocation11 + $0x820] ss:$8 sps:$4 sm:$0xff]  }
 0x12f   : > { %1621 = vmatpush1.bf16.msra.mxu0 %v4135_v6  ;;  %v4209_v6 = vld [vmem:[#allocation3 + $0x10] ss:$36 sps:$4 sm:$0xff]  }
 0x130   : > { %2807 = vmatpush1.bf16.msra.mxu1 %v4138_v7  ;;  %1622 = vmatprep.subr.bf16.mxu0 %v4143_v8  ;;  %v553_v7 = vld [vmem:[#allocation3 + $0x58] sm:$0xff]  ;;  %v4212_v8 = vld [vmem:[#allocation11 + $0x300] ss:$8 sps:$4 sm:$0xff]  }
 0x131   : > { %2808 = vmatprep.subr.bf16.mxu1 %v4146_v9  ;;  %v4215_v9 = vld [vmem:[#allocation11 + $0x780] ss:$8 sps:$4 sm:$0xff]  }
 0x133   : > { %1623 = vmatpush1.bf16.msra.mxu0 %v4141_v10  ;;  %v4220_v10 = vld [vmem:[#allocation11 + $0x314] ss:$8 sps:$4 sm:$0xff]  }
 0x134   : > { %2809 = vmatpush1.bf16.msra.mxu1 %v4144_v11  ;;  %1624 = vmatprep.subr.bf16.mxu0 %v4149_v12  ;;  %v4223_v11 = vld [vmem:[#allocation11 + $0x794] ss:$8 sps:$4 sm:$0xff]   ;;  %v3396_v12 = vcombine.high %v553_v7, %v553_v7 }
 0x135   : > { %2810 = vmatprep.subr.bf16.mxu1 %v4152_v13  ;;  %v4218_v13 = vld [vmem:[#allocation11 + $0x310] ss:$8 sps:$4 sm:$0xff]  }
 0x137   : > { %1625 = vmatpush1.bf16.msra.mxu0 %v4147_v15  ;;  %v4226_v15 = vld [vmem:[#allocation11 + $0x324] ss:$8 sps:$4 sm:$0xff]  }
 0x138   : > { %2811 = vmatpush1.bf16.msra.mxu1 %v4150_v16  ;;  %1626 = vmatprep.subr.bf16.mxu0 %v4155_v19  ;;  %v4229_v16 = vld [vmem:[#allocation11 + $0x7a4] ss:$8 sps:$4 sm:$0xff]   ;;  %v3395_v19 = vcombine.low %v553_v7, %v553_v7  ;;  %v4290_v7 = vld [vmem:[#allocation11 + $0x3d0] ss:$8 sps:$4 sm:$0xff]  }
 0x139   : > { %2812 = vmatprep.subr.bf16.mxu1 %v4158_v20  ;;  %v486_v20 = vld [vmem:[#allocation2 + $0x1c] sm:$0xff] }
 0x13a   : > { %v3727_v21 = vpack.c.bf16 %v486_v20, %v486_v20 }
 0x13b   : > { %1627 = vmatpush1.bf16.msra.mxu0 %v4153_v22  ;;  %v505_v22 = vld [vmem:[#allocation2 + $0x1d] sm:$0xff] }
 0x13c   : > { %2813 = vmatpush1.bf16.msra.mxu1 %v4156_v23  ;;  %1628 = vmatprep.subr.bf16.mxu0 %v4161_v24  ;;  %v4232_v23 = vld [vmem:[#allocation11 + $0x334] ss:$8 sps:$4 sm:$0xff]   ;;  %502 = vst [vmem:[#allocation3 + $0x60] sm:$0xf] %v3727_v21  ;;  %v4313_v21 = vld [vmem:[#allocation11 + $0x400] ss:$8 sps:$4 sm:$0xff]  }
 0x13d   : > { %2814 = vmatprep.subr.bf16.mxu1 %v4164_v25  ;;  %v4235_v24 = vld [vmem:[#allocation11 + $0x7b4] ss:$8 sps:$4 sm:$0xff]   ;;  %v3730_v25 = vpack.c.bf16 %v505_v22, %v505_v22  ;;  %v4316_v22 = vld [vmem:[#allocation11 + $0x880] ss:$8 sps:$4 sm:$0xff]  }
 0x13f   : > { %1629 = vmatpush1.bf16.msra.mxu0 %v4159_v26  ;;  %v4312_v26 = vld [vmem:[#allocation3 + $0x1c] ss:$36 sps:$4 sm:$0xff]   ;;  %521 = vst [vmem:[#allocation3 + $0x64] sm:$0xf] %v3730_v25 }
 0x140   : > { %2815 = vmatpush1.bf16.msra.mxu1 %v4162_v27  ;;  %1630 = vmatprep.subr.bf16.mxu0 %v4167_v28  ;;  %v4230_v27 = vld [vmem:[#allocation11 + $0x330] ss:$8 sps:$4 sm:$0xff]  }
 0x141   : > { %2816 = vmatprep.subr.bf16.mxu1 %v4170_v29  ;;  %v4233_v28 = vld [vmem:[#allocation11 + $0x7b0] ss:$8 sps:$4 sm:$0xff]   ;;  %v4238_v29 = vld [vmem:[#allocation11 + $0x344] ss:$8 sps:$4 sm:$0xff]  }
 0x143   : > { %1631 = vmatpush1.bf16.msra.mxu0 %v4165_v30  ;;  %v4241_v30 = vld [vmem:[#allocation11 + $0x7c4] ss:$8 sps:$4 sm:$0xff]  }
 0x144   : > { %2817 = vmatpush1.bf16.msra.mxu1 %v4168_v31  ;;  %1632 = vmatprep.subr.bf16.mxu0 %v4173_v32  ;;  %v522_v31 = vld [vmem:[#allocation2 + $0xe] sm:$0xff] }
 0x145   : > { %2818 = vmatprep.subr.bf16.mxu1 %v4176_v33  ;;  %v3731_v32 = vpack.c.bf16 %v522_v31, %v522_v31  ;;  %v524_v33 = vld [vmem:[#allocation2 + $0x1e] sm:$0xff]  ;;  %v4325_v31 = vld [vmem:[#allocation11 + $0x420] ss:$8 sps:$4 sm:$0xff]  }
 0x146   : > { %v554_v20 = vld [vmem:[#allocation3 + $0x60] sm:$0xff] }
 0x147   : > { %1633 = vmatpush1.bf16.msra.mxu0 %v4171_v34  ;;  %v3733_v34 = vpack.c.bf16 %v524_v33, %v524_v33  ;;  %538 = vst [vmem:[#allocation3 + $0x20] sm:$0xf] %v3731_v32  ;;  %v3398_v25 = vcombine.high %v554_v20, %v554_v20  ;;  %v4328_v32 = vld [vmem:[#allocation11 + $0x8a0] ss:$8 sps:$4 sm:$0xff]   ;;  %v4333_v33 = vld [vmem:[#allocation11 + $0x434] ss:$8 sps:$4 sm:$0xff]  }
 0x148   : > { %2819 = vmatpush1.bf16.msra.mxu1 %v4174_v35  ;;  %1634 = vmatprep.subr.bf16.mxu0 %v4179_v36  ;;  %v4236_v35 = vld [vmem:[#allocation11 + $0x340] ss:$8 sps:$4 sm:$0xff]  }
 0x149   : > { %2820 = vmatprep.subr.bf16.mxu1 %v4182_v37  ;;  %v4239_v36 = vld [vmem:[#allocation11 + $0x7c0] ss:$8 sps:$4 sm:$0xff]   ;;  %v4244_v37 = vld [vmem:[#allocation11 + $0x354] ss:$8 sps:$4 sm:$0xff]   ;;  %540 = vst [vmem:[#allocation3 + $0x68] sm:$0xf] %v3733_v34 }
 0x14a   : > { %v4336_v34 = vld [vmem:[#allocation11 + $0x8b4] ss:$8 sps:$4 sm:$0xff]  }
 0x14b   : > { %1635 = vmatpush1.bf16.msra.mxu0 %v4177_v38  ;;  %v4247_v38 = vld [vmem:[#allocation11 + $0x7d4] ss:$8 sps:$4 sm:$0xff]  }
 0x14c   : > { %2821 = vmatpush1.bf16.msra.mxu1 %v4180_v39  ;;  %1636 = vmatprep.subr.bf16.mxu0 %v4185_v40  ;;  %v4242_v39 = vld [vmem:[#allocation11 + $0x350] ss:$8 sps:$4 sm:$0xff]  }
 0x14d   : > { %2822 = vmatprep.subr.bf16.mxu1 %v4188_v41  ;;  %v4245_v40 = vld [vmem:[#allocation11 + $0x7d0] ss:$8 sps:$4 sm:$0xff]   ;;  %v4250_v41 = vld [vmem:[#allocation11 + $0x364] ss:$8 sps:$4 sm:$0xff]  }
 0x14f   : > { %1637 = vmatpush1.bf16.msra.mxu0 %v4183_v45  ;;  %v4256_v45 = vld [vmem:[#allocation11 + $0x374] ss:$8 sps:$4 sm:$0xff]  }
 0x150   : > { %2823 = vmatpush1.bf16.msra.mxu1 %v4186_v46  ;;  %1638 = vmatprep.subr.bf16.mxu0 %v4191_v48  ;;  %v4259_v46 = vld [vmem:[#allocation11 + $0x7f4] ss:$8 sps:$4 sm:$0xff]   ;;  %v4257_v48 = vld [vmem:[#allocation11 + $0x7f0] ss:$8 sps:$4 sm:$0xff]  }
 0x151   : > { %2824 = vmatprep.subr.bf16.mxu1 %v4194_v49  ;;  %v4262_v49 = vld [vmem:[#allocation11 + $0x384] ss:$8 sps:$4 sm:$0xff]  }
 0x153   : > { %1639 = vmatpush1.bf16.msra.mxu0 %v4189_v50  ;;  %v4265_v50 = vld [vmem:[#allocation11 + $0x804] ss:$8 sps:$4 sm:$0xff]  }
 0x154   : > { %2825 = vmatpush1.bf16.msra.mxu1 %v4192_v53  ;;  %1640 = vmatprep.subr.bf16.mxu0 %v4198_v54  ;;  %v4260_v53 = vld [vmem:[#allocation11 + $0x380] ss:$8 sps:$4 sm:$0xff]  }
 0x155   : > { %2826 = vmatprep.subr.bf16.mxu1 %v4201_v55  ;;  %v4263_v54 = vld [vmem:[#allocation11 + $0x800] ss:$8 sps:$4 sm:$0xff]   ;;  %v4268_v55 = vld [vmem:[#allocation11 + $0x394] ss:$8 sps:$4 sm:$0xff]  }
 0x157   : > { %1641 = vmatpush1.bf16.msra.mxu0 %v4196_v62  ;;  %v4283_v62 = vld [vmem:[#allocation11 + $0x834] ss:$8 sps:$4 sm:$0xff]  }
 0x158   : > { %2827 = vmatpush1.bf16.msra.mxu1 %v4199_v63  ;;  %1642 = vmatprep.subr.bf16.mxu0 %v4205_v0  ;;  %v4278_v63 = vld [vmem:[#allocation11 + $0x3b0] ss:$8 sps:$4 sm:$0xff]  }
 0x159   : > { %2828 = vmatprep.subr.bf16.mxu1 %v4208_v1  ;;  %v4281_v0 = vld [vmem:[#allocation11 + $0x830] ss:$8 sps:$4 sm:$0xff]   ;;  %v4286_v1 = vld [vmem:[#allocation11 + $0x3c4] ss:$8 sps:$4 sm:$0xff]  }
 0x15b   : > { %1643 = vmatpush1.bf16.msra.mxu0 %v4203_v2  ;;  %v4289_v2 = vld [vmem:[#allocation11 + $0x844] ss:$8 sps:$4 sm:$0xff]  }
 0x15c   : > { %2829 = vmatpush1.bf16.msra.mxu1 %v4206_v3  ;;  %1663 = vmatprep.subr.bf16.mxu0 %v4214_v4  ;;  %v4284_v3 = vld [vmem:[#allocation11 + $0x3c0] ss:$8 sps:$4 sm:$0xff]  }
 0x15d   : > { %2849 = vmatprep.subr.bf16.mxu1 %v4217_v5  ;;  %v4287_v4 = vld [vmem:[#allocation11 + $0x840] ss:$8 sps:$4 sm:$0xff]   ;;  %v4292_v5 = vld [vmem:[#allocation11 + $0x3d4] ss:$8 sps:$4 sm:$0xff]  }
 0x15e   : > { %1645 = vmatmul.mubr.bf16.vlgmr.msra.gmra.mrb[0].mxu0 %v4209_v6 }
 0x15f   : > { %2831 = vmatmul.mubr.bf16.vlgmr.msra.gmra.mrb[0].mxu1 %v4209_v6  ;;  %1664 = vmatpush1.bf16.msra.mxu0 %v4212_v8  ;;  %v4295_v6 = vld [vmem:[#allocation11 + $0x854] ss:$8 sps:$4 sm:$0xff]   ;;  %v4293_v8 = vld [vmem:[#allocation11 + $0x850] ss:$8 sps:$4 sm:$0xff]  }
 0x160   : > { %2850 = vmatpush1.bf16.msra.mxu1 %v4215_v9  ;;  %1665 = vmatprep.subr.bf16.mxu0 %v4220_v10  ;;  %v4299_v9 = vld [vmem:[#allocation11 + $0x3e4] ss:$8 sps:$4 sm:$0xff]  }
 0x161   : > { %2851 = vmatprep.subr.bf16.mxu1 %v4223_v11  ;;  %1654 = vmatprep.mubr.bf16.mxu0 %v3396_v12  ;;  %v4302_v10 = vld [vmem:[#allocation11 + $0x864] ss:$8 sps:$4 sm:$0xff]   ;;  %v4297_v11 = vld [vmem:[#allocation11 + $0x3e0] ss:$8 sps:$4 sm:$0xff]  }
 0x162   : > { %2840 = vmatprep.mubr.bf16.mxu1 %v3396_v12  ;;  %v4300_v12 = vld [vmem:[#allocation11 + $0x860] ss:$8 sps:$4 sm:$0xff]  }
 0x163   : > { %1666 = vmatpush1.bf16.msra.mxu0 %v4218_v13  ;;  %v4306_v13 = vld [vmem:[#allocation11 + $0x3f4] ss:$8 sps:$4 sm:$0xff]  }
 0x164   : > { %2852 = vmatpush1.bf16.msra.mxu1 %v4221_v14  ;;  %1667 = vmatprep.subr.bf16.mxu0 %v4226_v15  ;;  %v4309_v14 = vld [vmem:[#allocation11 + $0x874] ss:$8 sps:$4 sm:$0xff]   ;;  %v4304_v15 = vld [vmem:[#allocation11 + $0x3f0] ss:$8 sps:$4 sm:$0xff]  }
 0x165   : > { %2853 = vmatprep.subr.bf16.mxu1 %v4229_v16  ;;  %v4307_v16 = vld [vmem:[#allocation11 + $0x870] ss:$8 sps:$4 sm:$0xff]  }
 0x166   : > { %1655 = vmatmul.mubr.bf16.gmra.mrb[4].mxu0 %v3395_v19 }
 0x167   : > { %2841 = vmatmul.mubr.bf16.gmra.mrb[4].mxu1 %v3395_v19  ;;  %1668 = vmatpush1.bf16.msra.mxu0 %v4224_v17  ;;  %v4315_v17 = vld [vmem:[#allocation11 + $0x404] ss:$8 sps:$4 sm:$0xff]   ;;  %v4310_v19 = vld [vmem:[#allocation3 + $0x18] ss:$36 sps:$4 sm:$0xff]  }
 0x168   : > { %2854 = vmatpush1.bf16.msra.mxu1 %v4227_v18  ;;  %1669 = vmatprep.subr.bf16.mxu0 %v4232_v23  ;;  %v4318_v18 = vld [vmem:[#allocation11 + $0x884] ss:$8 sps:$4 sm:$0xff]   ;;  %v4321_v23 = vld [vmem:[#allocation11 + $0x414] ss:$8 sps:$4 sm:$0xff]  }
 0x169   : > { %2855 = vmatprep.subr.bf16.mxu1 %v4235_v24  ;;  %1695 = vmatprep.mubr.bf16.mxu0 %v4312_v26  ;;  %v4324_v24 = vld [vmem:[#allocation11 + $0x894] ss:$8 sps:$4 sm:$0xff]  }
 0x16a   : > { %2881 = vmatprep.mubr.bf16.mxu1 %v4312_v26  ;;  %v4319_v26 = vld [vmem:[#allocation11 + $0x410] ss:$8 sps:$4 sm:$0xff]  }
 0x16b   : > { %1670 = vmatpush1.bf16.msra.mxu0 %v4230_v27  ;;  %v4322_v27 = vld [vmem:[#allocation11 + $0x890] ss:$8 sps:$4 sm:$0xff]  }
 0x16c   : > { %2856 = vmatpush1.bf16.msra.mxu1 %v4233_v28  ;;  %1671 = vmatprep.subr.bf16.mxu0 %v4238_v29  ;;  %v4327_v28 = vld [vmem:[#allocation11 + $0x424] ss:$8 sps:$4 sm:$0xff]  }
 0x16d   : > { %2857 = vmatprep.subr.bf16.mxu1 %v4241_v30  ;;  %v4330_v29 = vld [vmem:[#allocation11 + $0x8a4] ss:$8 sps:$4 sm:$0xff]   ;;  %v3397_v30 = vcombine.low %v554_v20, %v554_v20 }
 0x16f   : > { %1672 = vmatpush1.bf16.msra.mxu0 %v4236_v35  ;;  %v4331_v35 = vld [vmem:[#allocation11 + $0x430] ss:$8 sps:$4 sm:$0xff]  }
 0x170   : > { %2858 = vmatpush1.bf16.msra.mxu1 %v4239_v36  ;;  %1673 = vmatprep.subr.bf16.mxu0 %v4244_v37  ;;  %v4334_v36 = vld [vmem:[#allocation11 + $0x8b0] ss:$8 sps:$4 sm:$0xff]   ;;  %v4339_v37 = vld [vmem:[#allocation11 + $0x444] ss:$8 sps:$4 sm:$0xff]  }
 0x171   : > { %2859 = vmatprep.subr.bf16.mxu1 %v4247_v38  ;;  %v4342_v38 = vld [vmem:[#allocation11 + $0x8c4] ss:$8 sps:$4 sm:$0xff]  }
 0x173   : > { %1674 = vmatpush1.bf16.msra.mxu0 %v4242_v39  ;;  %v4638_v39 = vmov 0  }
 0x174   : > { %2860 = vmatpush1.bf16.msra.mxu1 %v4245_v40  ;;  %1675 = vmatprep.subr.bf16.mxu0 %v4250_v41  ;;  %v4337_v40 = vld [vmem:[#allocation11 + $0x440] ss:$8 sps:$4 sm:$0xff]  }
 0x175   : > { %2861 = vmatprep.subr.bf16.mxu1 %v4253_v42  ;;  %v4340_v41 = vld [vmem:[#allocation11 + $0x8c0] ss:$8 sps:$4 sm:$0xff]   ;;  %v4345_v42 = vld [vmem:[#allocation11 + $0x454] ss:$8 sps:$4 sm:$0xff]  }
 0x177   : > { %1676 = vmatpush1.bf16.msra.mxu0 %v4248_v43  ;;  %v4348_v43 = vld [vmem:[#allocation11 + $0x8d4] ss:$8 sps:$4 sm:$0xff]  }
 0x178   : > { %2862 = vmatpush1.bf16.msra.mxu1 %v4251_v44  ;;  %1677 = vmatprep.subr.bf16.mxu0 %v4256_v45  ;;  %v4343_v44 = vld [vmem:[#allocation11 + $0x450] ss:$8 sps:$4 sm:$0xff]  }
 0x179   : > { %2863 = vmatprep.subr.bf16.mxu1 %v4259_v46  ;;  %v4346_v45 = vld [vmem:[#allocation11 + $0x8d0] ss:$8 sps:$4 sm:$0xff]   ;;  %v4353_v46 = vld [vmem:[#allocation11 + $0x464] ss:$8 sps:$4 sm:$0xff]  }
 0x17b   : > { %1678 = vmatpush1.bf16.msra.mxu0 %v4254_v47  ;;  %v4356_v47 = vld [vmem:[#allocation11 + $0x8e4] ss:$8 sps:$4 sm:$0xff]  }
 0x17c   : > { %2864 = vmatpush1.bf16.msra.mxu1 %v4257_v48  ;;  %1679 = vmatprep.subr.bf16.mxu0 %v4262_v49  ;;  %v4351_v48 = vld [vmem:[#allocation11 + $0x460] ss:$8 sps:$4 sm:$0xff]  }
 0x17d   : > { %2865 = vmatprep.subr.bf16.mxu1 %v4265_v50  ;;  %v4354_v49 = vld [vmem:[#allocation11 + $0x8e0] ss:$8 sps:$4 sm:$0xff]   ;;  %v4359_v50 = vld [vmem:[#allocation11 + $0x474] ss:$8 sps:$4 sm:$0xff]  }
 0x17f   : > { %1680 = vmatpush1.bf16.msra.mxu0 %v4260_v53  ;;  %v4362_v53 = vld [vmem:[#allocation11 + $0x8f4] ss:$8 sps:$4 sm:$0xff]  }
 0x180   : > { %2866 = vmatpush1.bf16.msra.mxu1 %v4263_v54  ;;  %1681 = vmatprep.subr.bf16.mxu0 %v4268_v55  ;;  %v4357_v54 = vld [vmem:[#allocation11 + $0x470] ss:$8 sps:$4 sm:$0xff]  }
 0x181   : > { %2867 = vmatprep.subr.bf16.mxu1 %v4271_v56  ;;  %v4360_v55 = vld [vmem:[#allocation11 + $0x8f0] ss:$8 sps:$4 sm:$0xff]   ;;  %v4363_v56 = vld [vmem:[#allocation3 + $0x20] ss:$36 sps:$4 sm:$0xff]  }
 0x183   : > { %1682 = vmatpush1.bf16.msra.mxu0 %v4266_v57  ;;  %v4364_v57 = vld [vmem:[#allocation3 + $0x68] ss:$0 sps:$4 sm:$0xff]  }
 0x184   : > { %2868 = vmatpush1.bf16.msra.mxu1 %v4269_v58  ;;  %1683 = vmatprep.subr.bf16.mxu0 %v4274_v59  ;;  %v702_v58 = vlaneseq }
 0x185   : > { %2869 = vmatprep.subr.bf16.mxu1 %v4277_v60 }
 0x186   : > { %v703_v59 = vshrl.u32 %v702_v58, 7 }
 0x187   : > { %1684 = vmatpush1.bf16.msra.mxu0 %v4272_v51  ;;  %v700_v51 = vld [vmem:[#allocation13] sm:$0x3] }
 0x188   : > { %2870 = vmatpush1.bf16.msra.mxu1 %v4275_v61  ;;  %1685 = vmatprep.subr.bf16.mxu0 %v4280_v52  ;;  %v704_v60 = vsub.s32 0, %v703_v59  ;;  %v708_v61 = vsub.s32 1, %v703_v59 }
 0x189   : > { %2871 = vmatprep.subr.bf16.mxu1 %v4283_v62 }
 0x18a   : > { %v705_v52 = vrot.slane %v700_v51, %v704_v60  ;;  %v709_v62 = vrot.slane %v700_v51, %v708_v61 }
 0x18b   : > { %1686 = vmatpush1.bf16.msra.mxu0 %v4278_v63 }
 0x18c   : > { %2872 = vmatpush1.bf16.msra.mxu1 %v4281_v0  ;;  %1687 = vmatprep.subr.bf16.mxu0 %v4286_v1 }
 0x18d   : > { %2873 = vmatprep.subr.bf16.mxu1 %v4289_v2 }
 0x18f   : > { %1688 = vmatpush1.bf16.msra.mxu0 %v4284_v3 }
 0x190   : > { %2874 = vmatpush1.bf16.msra.mxu1 %v4287_v4  ;;  %1689 = vmatprep.subr.bf16.mxu0 %v4292_v5  ;;  %v1964_v4 = vld [vmem:[#allocation13] sm:$0x3] }
 0x191   : > { %2875 = vmatprep.subr.bf16.mxu1 %v4295_v6 }
 0x193   : > { %1690 = vmatpush1.bf16.msra.mxu0 %v4290_v7 }
 0x194   : > { %2876 = vmatpush1.bf16.msra.mxu1 %v4293_v8  ;;  %1691 = vmatprep.subr.bf16.mxu0 %v4299_v9 }
 0x195   : > { %2877 = vmatprep.subr.bf16.mxu1 %v4302_v10 }
 0x197   : > { %1692 = vmatpush1.bf16.msra.mxu0 %v4297_v11 }
 0x198   : > { %2878 = vmatpush1.bf16.msra.mxu1 %v4300_v12  ;;  %1693 = vmatprep.subr.bf16.mxu0 %v4306_v13  ;;  %v1969_v12 = vrot.slane %v1964_v4, %v704_v60  ;;  %v1973_v13 = vrot.slane %v1964_v4, %v708_v61 }
 0x199   : > { %2879 = vmatprep.subr.bf16.mxu1 %v4309_v14 }
 0x19b   : > { %1694 = vmatpush1.bf16.msra.mxu0 %v4304_v15 }
 0x19c   : > { %2880 = vmatpush1.bf16.msra.mxu1 %v4307_v16  ;;  %1714 = vmatprep.subr.bf16.mxu0 %v4315_v17 }
 0x19d   : > { %2900 = vmatprep.subr.bf16.mxu1 %v4318_v18 }
 0x19e   : > { %1696 = vmatmul.mubr.bf16.vlgmr.msra.gmra.mrb[0].mxu0 %v4310_v19 }
 0x19f   : > { %2882 = vmatmul.mubr.bf16.vlgmr.msra.gmra.mrb[0].mxu1 %v4310_v19  ;;  %1715 = vmatpush1.bf16.msra.mxu0 %v4313_v21 }
 0x1a0   : > { %2901 = vmatpush1.bf16.msra.mxu1 %v4316_v22  ;;  %1716 = vmatprep.subr.bf16.mxu0 %v4321_v23 }
 0x1a1   : > { %2902 = vmatprep.subr.bf16.mxu1 %v4324_v24  ;;  %1705 = vmatprep.mubr.bf16.mxu0 %v3398_v25 }
 0x1a2   : > { %2891 = vmatprep.mubr.bf16.mxu1 %v3398_v25 }
 0x1a3   : > { %1717 = vmatpush1.bf16.msra.mxu0 %v4319_v26 }
 0x1a4   : > { %2903 = vmatpush1.bf16.msra.mxu1 %v4322_v27  ;;  %1718 = vmatprep.subr.bf16.mxu0 %v4327_v28 }
 0x1a5   : > { %2904 = vmatprep.subr.bf16.mxu1 %v4330_v29 }
 0x1a6   : > { %1706 = vmatmul.mubr.bf16.gmra.mrb[4].mxu0 %v3397_v30 }
 0x1a7   : > { %2892 = vmatmul.mubr.bf16.gmra.mrb[4].mxu1 %v3397_v30  ;;  %1719 = vmatpush1.bf16.msra.mxu0 %v4325_v31 }
 0x1a8   : > { %2905 = vmatpush1.bf16.msra.mxu1 %v4328_v32  ;;  %1720 = vmatprep.subr.bf16.mxu0 %v4333_v33 }
 0x1a9   : > { %2906 = vmatprep.subr.bf16.mxu1 %v4336_v34  ;;  %1746 = vmatprep.mubr.bf16.mxu0 %v4638_v39 }
 0x1aa   : > { %2932 = vmatprep.mubr.bf16.mxu1 %v4638_v39 }
 0x1ab   : > { %1721 = vmatpush1.bf16.msra.mxu0 %v4331_v35 }
 0x1ac   : > { %2907 = vmatpush1.bf16.msra.mxu1 %v4334_v36  ;;  %1722 = vmatprep.subr.bf16.mxu0 %v4339_v37 }
 0x1ad   : > { %2908 = vmatprep.subr.bf16.mxu1 %v4342_v38 }
 0x1af   : > { %1723 = vmatpush1.bf16.msra.mxu0 %v4337_v40 }
 0x1b0   : > { %2909 = vmatpush1.bf16.msra.mxu1 %v4340_v41  ;;  %1724 = vmatprep.subr.bf16.mxu0 %v4345_v42 }
 0x1b1   : > { %2910 = vmatprep.subr.bf16.mxu1 %v4348_v43 }
 0x1b3   : > { %1725 = vmatpush1.bf16.msra.mxu0 %v4343_v44 }
 0x1b4   : > { %2911 = vmatpush1.bf16.msra.mxu1 %v4346_v45  ;;  %1726 = vmatprep.subr.bf16.mxu0 %v4353_v46 }
 0x1b5   : > { %2912 = vmatprep.subr.bf16.mxu1 %v4356_v47 }
 0x1b7   : > { %1727 = vmatpush1.bf16.msra.mxu0 %v4351_v48 }
 0x1b8   : > { %2913 = vmatpush1.bf16.msra.mxu1 %v4354_v49  ;;  %1728 = vmatprep.subr.bf16.mxu0 %v4359_v50 }
 0x1b9   : > { %2914 = vmatprep.subr.bf16.mxu1 %v4362_v53 }
 0x1bb   : > { %1729 = vmatpush1.bf16.msra.mxu0 %v4357_v54 }
 0x1bc   : > { %2915 = vmatpush1.bf16.msra.mxu1 %v4360_v55 }
 0x1be   : > { %1747 = vmatmul.mubr.bf16.vlgmr.msra.gmra.mrb[0].mxu0 %v4363_v56 }
 0x1bf   : > { %2933 = vmatmul.mubr.bf16.vlgmr.msra.gmra.mrb[0].mxu1 %v4363_v56  ;;  %1756 = vmatprep.mubr.bf16.mxu0 %v4638_v39 }
 0x1c0   : > { %2942 = vmatprep.mubr.bf16.mxu1 %v4638_v39 }
 0x1c6   : > { %1757 = vmatmul.mubr.bf16.gmra.mrb[4].mxu0 %v4364_v57 }
 0x1c7   : > { %2943 = vmatmul.mubr.bf16.gmra.mrb[4].mxu1 %v4364_v57 }
 0x291   : > { %v1748_v63 = vpop.f32.mrb[0].mxu0 }
 0x292   : > { %v2934_v0 = vpop.f32.mrb[0].mxu1  ;;  %v3735_v1 = vadd.f32 %v1748_v63, %v705_v52  ;;  %v1750_v2 = vpop.f32.mrb[1].mxu0 }
 0x293   : > { %v2936_v3 = vpop.f32.mrb[1].mxu1  ;;  %v3736_v5 = vadd.f32 %v1750_v2, %v709_v62  ;;  %v1752_v6 = vpop.f32.mrb[2].mxu0  ;;  %v3741_v16 = vadd.f32 %v2934_v0, %v1969_v12 }
 0x294   : > { %v2938_v7 = vpop.f32.mrb[2].mxu1  ;;  %1765 = vst [vmem:[#allocation4] sm:$0xff] %v3735_v1  ;;  %v3737_v8 = vadd.f32 %v1752_v6, %v705_v52  ;;  %v1754_v9 = vpop.f32.mrb[3].mxu0  ;;  %v3742_v22 = vadd.f32 %v2936_v3, %v1973_v13 }
 0x295   : > { %v2940_v10 = vpop.f32.mrb[3].mxu1  ;;  %1766 = vst [vmem:[#allocation4 + $0x8] sm:$0xff] %v3736_v5  ;;  %v3738_v11 = vadd.f32 %v1754_v9, %v709_v62  ;;  %v3743_v28 = vadd.f32 %v2938_v7, %v1969_v12 }
 0x296   : > { %1767 = vst [vmem:[#allocation4 + $0x10] sm:$0xff] %v3737_v8  ;;  %v3744_v35 = vadd.f32 %v2940_v10, %v1973_v13 }
 0x297   : > { %1768 = vst [vmem:[#allocation4 + $0x18] sm:$0xff] %v3738_v11 }
 0x299   : > { %v1758_v14 = vpop.f32.mrb[4].mxu0 }
 0x29a   : > { %v2944_v15 = vpop.f32.mrb[4].mxu1  ;;  %v3739_v17 = vadd.f32 %v1758_v14, %v705_v52  ;;  %v1760_v18 = vpop.f32.mrb[5].mxu0 }
 0x29b   : > { %v2946_v19 = vpop.f32.mrb[5].mxu1  ;;  %v1771_v20 = vld [vmem:[#allocation4] sm:$0xf]  ;;  %v1778_v21 = vld [vmem:[#allocation4] sm:$0xc0]  ;;  %v3740_v23 = vadd.f32 %v1760_v18, %v709_v62  ;;  %v1762_v24 = vpop.f32.mrb[6].mxu0  ;;  %v3745_v43 = vadd.f32 %v2944_v15, %v1969_v12 }
 0x29c   : > { %v2948_v25 = vpop.f32.mrb[6].mxu1  ;;  %2951 = vst [vmem:[#allocation4] sm:$0xff] %v3741_v16  ;;  %v1772_v26 = vld [vmem:[#allocation4 + $0x8] sm:$0xf]  ;;  %v1779_v27 = vld [vmem:[#allocation4 + $0x8] sm:$0xc0]  ;;  %v3746_v47 = vadd.f32 %v2946_v19, %v1973_v13 }
 0x29d   : > { %1769 = vst [vmem:[#allocation4 + $0x20] sm:$0xff] %v3739_v17  ;;  %v1763_v29 = vpop.f32.mrb[7].mxu0  ;;  %v2949_v30 = vpop.f32.mrb[7].mxu1  ;;  %v1775_v31 = vcombine.low %v1771_v20, %v1772_v26  ;;  %v1786_v32 = vcombine.high %v1778_v21, %v1779_v27  ;;  %2952 = vst [vmem:[#allocation4 + $0x8] sm:$0xff] %v3742_v22  ;;  %v1780_v33 = vld [vmem:[#allocation4 + $0x10] sm:$0x3] }
 0x29e   : > { %v1798_v34 = vld [vmem:[#allocation4 + $0x10] sm:$0xf0]  ;;  %1770 = vst [vmem:[#allocation4 + $0x28] sm:$0xff] %v3740_v23  ;;  %v1781_v36 = vld [vmem:[#allocation4 + $0x18] sm:$0x3] }
 0x29f   : > { %2953 = vst [vmem:[#allocation4 + $0x10] sm:$0xff] %v3743_v28  ;;  %v1799_v37 = vld [vmem:[#allocation4 + $0x18] sm:$0xf0]  ;;  %1777 = vst [vmem:[%s4919_s29] sm:$0xff] %v1775_v31  ;;  %v1787_v38 = vcombine.low %v1780_v33, %v1781_v36  ;;  %v3544_v41 = vrot.slane %v1786_v32, 10 }
 0x2a0   : > { %v1802_v39 = vcombine.high %v1798_v34, %v1799_v37  ;;  %2954 = vst [vmem:[#allocation4 + $0x18] sm:$0xff] %v3744_v35 }
 0x2a1   : > { %v1793_v42 = vrot.slane %v1787_v38, 6 }
 0x2a2   : > { %3546 = vst [vmem:[%s4919_s29 + $0x20] sm:$0xff] %v1802_v39 }
 0x2a3   : > { %v2957_v44 = vld [vmem:[#allocation4] sm:$0xf]  ;;  %v1794_v46 = vsel %vm4923_vm2, %v3544_v41, %v1793_v42 }
 0x2a4   : > { %v1806_v45 = vld [vmem:[#allocation4 + $0x20] sm:$0x3c]  ;;  %v2958_v48 = vld [vmem:[#allocation4 + $0x8] sm:$0xf]  ;;  %3545 = vst [vmem:[%s4919_s29 + $0x10] sm:$0xff] %v1794_v46 }
 0x2a5   : > { %2955 = vst [vmem:[#allocation4 + $0x20] sm:$0xff] %v3745_v43  ;;  %v1807_v49 = vld [vmem:[#allocation4 + $0x28] sm:$0x3c]  ;;  %v2961_v50 = vcombine.low %v2957_v44, %v2958_v48  ;;  %v4365_v60 = vld [vmem:[#allocation4 + $0x4] ss:$8 sps:$4 sm:$0xcc]  }
 0x2a6   : > { %v2982_v53 = vld [vmem:[#allocation4 + $0x10] sm:$0xf0]  ;;  %v1810_v54 = vcombine.low %v1806_v45, %v1807_v49  ;;  %v1811_v55 = vcombine.high %v1806_v45, %v1807_v49  ;;  %2956 = vst [vmem:[#allocation4 + $0x28] sm:$0xff] %v3746_v47  ;;  %v3694_v62 = vrot.slane %v4365_v60, 10 }
 0x2a7   : > { %v2983_v56 = vld [vmem:[#allocation4 + $0x18] sm:$0xf0]  ;;  %3693 = vst [vmem:[%s4919_s29 + $0x8] sm:$0xff] %v2961_v50  ;;  %v4366_v61 = vld [vmem:[#allocation4 + $0x10] ss:$8 sps:$4 sm:$0x33]  }
 0x2a8   : > { %v2986_v57 = vcombine.high %v2982_v53, %v2983_v56  ;;  %v3547_v58 = vrot.slane %v1810_v54, 10  ;;  %v1814_v59 = vrot.slane %v1811_v55, 6  ;;  %v3003_v51 = vld [vmem:[%s4919_s29] sm:$0xff]  ;;  %v2977_v63 = vrot.slane %v4366_v61, 6 }
 0x2a9   : > { %v4937_v0 = vmul.f32 %v3003_v51, %v3003_v51  ;;  %v3007_v2 = vld [vmem:[%s4919_s29 + $0x20] sm:$0xff]  ;;  %v3019_v5 = vcombine.high %v3003_v51, %v3003_v51  ;;  %v3036_v7 = vsel %vm3035_vm3, %v3003_v51, 0.0 }
 0x2aa   : > { %3696 = vst [vmem:[%s4919_s29 + $0x28] sm:$0xff] %v2986_v57  ;;  %v1815_v52 = vsel %vm4923_vm2, %v3547_v58, %v1814_v59  ;;  %v2978_v3 = vsel %vm4923_vm2, %v3694_v62, %v2977_v63  ;;  %v3023_v11 = vcombine.high %v3007_v2, %v3007_v2  ;;  %v4954_v12 = vmul.f32 %v3007_v2, %v3007_v2 }
 0x2ab   : > { %3548 = vst [vmem:[%s4919_s29 + $0x30] sm:$0xff] %v1815_v52  ;;  %v4941_v1 = vld [vmem:[%s4919_s29 + $0x10] sm:$0xff]  ;;  %3695 = vst [vmem:[%s4919_s29 + $0x18] sm:$0xff] %v2978_v3  ;;  %v3096_v13 = vcombine.high %v4937_v0, %v4937_v0  ;;  %v4969_v19 = vsel %vm3035_vm3, %v3007_v2, 0.0  ;;  %v3051_v20 = vsel %vm3035_vm3, %v3019_v5, 0.0 }
 0x2ac   : > { %v4951_v8 = vmul.f32 %v4941_v1, %v4941_v1  ;;  %v3021_v16 = vcombine.high %v4941_v1, %v4941_v1  ;;  %v3039_v23 = vsel %vm3035_vm3, %v4941_v1, 0.0  ;;  %v4986_v29 = vsel %vm3035_vm3, %v3023_v11, 0.0 }
 0x2ad   : > { %v4367_v4 = vld [vmem:[#allocation4 + $0x20] ss:$8 sps:$4 sm:$0xcc]   ;;  %v4369_v6 = vld [vmem:[#allocation4 + $0x24] ss:$8 sps:$4 sm:$0x33]   ;;  %v3100_v30 = vcombine.high %v4954_v12, %v4954_v12 }
 0x2ae   : > { %v3697_v9 = vrot.slane %v4367_v4, 10  ;;  %v3004_v10 = vld [vmem:[%s4919_s29 + $0x8] sm:$0xff]  ;;  %v2998_v14 = vrot.slane %v4369_v6, 6  ;;  %v3098_v25 = vcombine.high %v4951_v8, %v4951_v8 }
 0x2af   : > { %v3020_v15 = vcombine.high %v3004_v10, %v3004_v10  ;;  %v3037_v17 = vsel %vm3035_vm3, %v3004_v10, 0.0  ;;  %v4972_v21 = vmul.f32 %v3004_v10, %v3004_v10 }
 0x2b0   : > { %v3038_v18 = vadd.f32 %v3037_v17, %v3036_v7  ;;  %v2999_v22 = vsel %vm4923_vm2, %v3697_v9, %v2998_v14 }
 0x2b1   : > { %v3052_v24 = vsel %vm3035_vm3, %v3020_v15, 0.0  ;;  %3698 = vst [vmem:[%s4919_s29 + $0x38] sm:$0xff] %v2999_v22  ;;  %v4983_v26 = vld [vmem:[%s4919_s29 + $0x28] sm:$0xff] }
 0x2b2   : > { %v3040_v27 = vadd.f32 %v3039_v23, %v3038_v18  ;;  %v3053_v28 = vadd.f32 %v3052_v24, %v3051_v20 }
 0x2b3   : > { %4533 = shalt.err (!%p4530_p13)
}
 0x2b4   : > { %s4534_s15 = scalar_lea.hbm %s4961_s16, 1024  ;;  %s4538_s17 = scalar_lea.hbm %s5113_s5, 2048 }
 0x2b5   : > { %p4535_p0 = scmp.ne.s32.totalorder %s4961_s16, %s4534_s15  ;;  %p4539_p9 = scmp.lt.u32.totalorder %s4961_s16, %s5113_s5 }
 0x2b6   : > { %p4540_p12 = scmp.lt.u32.totalorder %s4538_s17, %s4534_s15  ;;  %p4542_p4 = scmp.lt.u32.totalorder %s4534_s15, %s4961_s16 }
 0x2b7   : > { %p4536_p5 = pnand %p4535_p0, %p4830_p1 }
 0x2b8   : > { %p4541_p2 = por %p4540_p12, %p4539_p9 }
 0x2b9   : > { %p4537_p11 = pneg %p4536_p5 }
 0x2ba   : > { %p4543_p6 = por %p4542_p4, %p4541_p2 }
 0x2bc   : > { %p4544_p8 = pnand %p4543_p6, %p4537_p11 }
 0x2be   : > { %4547 = shalt.err (!%p4544_p8)
}
 0x2bf   : > { %s4640_s26 = smov 128   ;;  %s4641_s9 = smov 8   ;;  %v3054_v31 = vsel %vm3035_vm3, %v3021_v16, 0.0  ;;  %v3112_v32 = vsel %vm3035_vm3, %v4937_v0, 0.0  ;;  %v3119_v33 = vsel %vm3035_vm3, %v4954_v12, 0.0  ;;  %v3127_v34 = vsel %vm3035_vm3, %v3096_v13, 0.0 }
 0x2c0   : > { %3829 = dma.vmem_to_hbm [thread:$0]  (%p4830_p1), %s4963_s20, 1024, %s4961_s16, %s3161_s19, %s4640_s26, %s4640_s26, %s4641_s9   ;;  %v3055_v36 = vadd.f32 %v3054_v31, %v3053_v28  ;;  %v3097_v37 = vcombine.high %v4972_v21, %v4972_v21  ;;  %v3113_v38 = vsel %vm3035_vm3, %v4972_v21, 0.0  ;;  %v3115_v39 = vsel %vm3035_vm3, %v4951_v8, 0.0 }
 0x2c1   : > { %v3006_v35 = vld [vmem:[%s4919_s29 + $0x18] sm:$0xff]  ;;  %v3130_v43 = vsel %vm3035_vm3, %v3098_v25, 0.0  ;;  %v3009_v44 = vld [vmem:[%s4919_s29 + $0x30] sm:$0xff]  ;;  %v3024_v45 = vcombine.high %v4983_v26, %v4983_v26  ;;  %v3114_v47 = vadd.f32 %v3113_v38, %v3112_v32  ;;  %v3134_v48 = vsel %vm3035_vm3, %v3100_v30, 0.0  ;;  %s3703_s16 = sshll.u32 %s4699_s25, 5  ;;  %s3166_s13 = scalar_lea.sflag [#allocation16], %s4882_s14 }
 0x2c2   : > { %v3022_v40 = vcombine.high %v3006_v35, %v3006_v35  ;;  %v3041_v41 = vsel %vm3035_vm3, %v3006_v35, 0.0  ;;  %v3083_v42 = vmul.f32 %v3006_v35, %v3006_v35  ;;  %v3085_v50 = vmul.f32 %v4983_v26, %v4983_v26  ;;  %v3010_v59 = vld [vmem:[%s4919_s29 + $0x38] sm:$0xff]  ;;  %s3352_s29 = sshll.u32 %s4882_s14, 1  ;;  %s5064_s15 = scalar_lea.hbm %s5114_s6, %s3703_s16 }
 0x2c3   : > { %v3042_v46 = vadd.f32 %v3041_v41, %v3040_v27  ;;  %v3116_v57 = vadd.f32 %v3115_v39, %v3114_v47  ;;  %v3128_v58 = vsel %vm3035_vm3, %v3097_v37, 0.0  ;;  %v3025_v60 = vcombine.high %v3009_v44, %v3009_v44  ;;  %s332_s20 = scalar_lea.vmem [#allocation15], %s3352_s29  ;;  %s4642_s25 = smov [#allocation15]  }
 0x2c4   : > { %v3056_v49 = vsel %vm3035_vm3, %v3022_v40, 0.0  ;;  %v3099_v53 = vcombine.high %v3083_v42, %v3083_v42  ;;  %v3117_v54 = vsel %vm3035_vm3, %v3083_v42, 0.0  ;;  %v3045_v51 = vsel %vm3035_vm3, %v4983_v26, 0.0  ;;  %s3195_s19 = sshll.u32 %s332_s20, 4  ;;  %s4552_s17 = sshll.u32 %s4642_s25, 4  ;;  %s5066_s19 = int_to_ptr.vmem [resolvable:$true] %s3195_s19  ;;  %s4553_s17 = int_to_ptr.vmem [resolvable:$false] %s4552_s17 }
 0x2c5   : > { %v3044_v55 = vadd.f32 %v4969_v19, %v3042_v46  ;;  %v3057_v56 = vadd.f32 %v3056_v49, %v3055_v36  ;;  %v3047_v61 = vsel %vm3035_vm3, %v3009_v44, 0.0  ;;  %v3129_v52 = vadd.f32 %v3128_v58, %v3127_v34  ;;  %s4548_s27 = scalar_lea.vmem %s5066_s19, 32  ;;  %s4554_s12 = scalar_lea.vmem %s4553_s17, 64 }
 0x2c6   : > { %v3086_v0 = vmul.f32 %v3009_v44, %v3009_v44  ;;  %v3132_v1 = vsel %vm3035_vm3, %v3099_v53, 0.0  ;;  %v3026_v2 = vcombine.high %v3010_v59, %v3010_v59  ;;  %v3060_v3 = vsel %vm3035_vm3, %v3024_v45, 0.0  ;;  %p4549_p3 = scmp.ne.s32.totalorder %s5066_s19, %s4548_s27  ;;  %p4555_p13 = scmp.lt.s32.totalorder %s5066_s19, %s4553_s17 }
 0x2c7   : > { %v3046_v62 = vadd.f32 %v3045_v51, %v3044_v55  ;;  %v3059_v63 = vadd.f32 %v4986_v29, %v3057_v56  ;;  %v3118_v4 = vadd.f32 %v3117_v54, %v3116_v57  ;;  %v3131_v5 = vadd.f32 %v3130_v43, %v3129_v52  ;;  %p4556_p0 = scmp.lt.s32.totalorder %s4554_s12, %s4548_s27 }
 0x2c8   : > { %v3087_v8 = vmul.f32 %v3010_v59, %v3010_v59  ;;  %v3101_v9 = vcombine.high %v3085_v50, %v3085_v50  ;;  %v3049_v10 = vsel %vm3035_vm3, %v3010_v59, 0.0  ;;  %v3062_v11 = vsel %vm3035_vm3, %v3025_v60, 0.0  ;;  %p4550_p7 = pnand %p4549_p3, %p4830_p1 }
 0x2c9   : > { %v3048_v6 = vadd.f32 %v3047_v61, %v3046_v62  ;;  %v3061_v7 = vadd.f32 %v3060_v3, %v3059_v63  ;;  %v3120_v12 = vadd.f32 %v3119_v33, %v3118_v4  ;;  %v3133_v13 = vadd.f32 %v3132_v1, %v3131_v5  ;;  %p4557_p5 = por %p4556_p0, %p4555_p13 }
 0x2ca   : > { %v3102_v16 = vcombine.high %v3086_v0, %v3086_v0  ;;  %v3121_v17 = vsel %vm3035_vm3, %v3085_v50, 0.0  ;;  %v3064_v18 = vsel %vm3035_vm3, %v3026_v2, 0.0  ;;  %v3123_v20 = vsel %vm3035_vm3, %v3086_v0, 0.0  ;;  %p4551_p10 = pneg %p4550_p7 }
 0x2cb   : > { %v3050_v14 = vadd.f32 %v3049_v10, %v3048_v6  ;;  %v3063_v15 = vadd.f32 %v3062_v11, %v3061_v7  ;;  %v3122_v19 = vadd.f32 %v3121_v17, %v3120_v12  ;;  %v3135_v21 = vadd.f32 %v3134_v48, %v3133_v13 }
 0x2cc   : > { %v3103_v24 = vcombine.high %v3087_v8, %v3087_v8  ;;  %v3136_v25 = vsel %vm3035_vm3, %v3101_v9, 0.0  ;;  %v3125_v30 = vsel %vm3035_vm3, %v3087_v8, 0.0  ;;  %v3138_v31 = vsel %vm3035_vm3, %v3102_v16, 0.0  ;;  %p4558_p11 = pnand %p4557_p5, %p4551_p10 }
 0x2cd   : > { %v3065_v22 = vadd.f32 %v3064_v18, %v3063_v15  ;;  %v3066_v23 = vsel %vm3035_vm3, %v3050_v14, 0.0  ;;  %v3124_v27 = vadd.f32 %v3123_v20, %v3122_v19  ;;  %v3137_v28 = vadd.f32 %v3136_v25, %v3135_v21 }
 0x2ce   : > { %v3067_v26 = vrot.slane %v3066_v23, 4  ;;  %v3140_v36 = vsel %vm3035_vm3, %v3103_v24, 0.0 }
 0x2cf   : > { %v3073_v29 = vsel %vm3035_vm3, %v3065_v22, 0.0  ;;  %v3126_v34 = vadd.f32 %v3125_v30, %v3124_v27  ;;  %v3139_v35 = vadd.f32 %v3138_v31, %v3137_v28 }
 0x2d0   : > { %v3068_v32 = vadd.f32 %v3067_v26, %v3066_v23  ;;  %v3074_v33 = vrot.slane %v3073_v29, 4 }
 0x2d1   : > { %v3141_v39 = vadd.f32 %v3140_v36, %v3139_v35  ;;  %v3142_v40 = vsel %vm3035_vm3, %v3126_v34, 0.0 }
 0x2d2   : > { %v3069_v37 = vrot.slane %v3068_v32, 2  ;;  %v3075_v38 = vadd.f32 %v3074_v33, %v3073_v29  ;;  %v3143_v41 = vrot.slane %v3142_v40, 4 }
 0x2d3   : > { %v3149_v44 = vsel %vm3035_vm3, %v3141_v39, 0.0 }
 0x2d4   : > { %v3070_v42 = vadd.f32 %v3069_v37, %v3068_v32  ;;  %v3076_v43 = vrot.slane %v3075_v38, 2  ;;  %v3144_v45 = vadd.f32 %v3143_v41, %v3142_v40  ;;  %v3150_v46 = vrot.slane %v3149_v44, 4 }
 0x2d6   : > { %v3071_v47 = vrot.slane %v3070_v42, 1  ;;  %v3077_v48 = vadd.f32 %v3076_v43, %v3075_v38  ;;  %v3145_v49 = vrot.slane %v3144_v45, 2  ;;  %v3151_v50 = vadd.f32 %v3150_v46, %v3149_v44 }
 0x2d8   : > { %v3078_v53 = vrot.slane %v3077_v48, 1  ;;  %v3146_v54 = vadd.f32 %v3145_v49, %v3144_v45  ;;  %v3152_v55 = vrot.slane %v3151_v50, 2  ;;  %v3072_v56 = vadd.f32 %v3071_v47, %v3070_v42 }
 0x2da   : > { %v3079_v57 = vadd.f32 %v3078_v53, %v3077_v48  ;;  %v3147_v58 = vrot.slane %v3146_v54, 1  ;;  %v3153_v59 = vadd.f32 %v3152_v55, %v3151_v50 }
 0x2dc   : > { %v3156_v60 = vadd.f32 %v3079_v57, %v3072_v56  ;;  %v3154_v51 = vrot.slane %v3153_v59, 1  ;;  %v3148_v61 = vadd.f32 %v3147_v58, %v3146_v54 }
 0x2de   : > { %3158 = vst [vmem:[%s332_s20] sm:$0x1] %v3156_v60  ;;  %v3155_v52 = vadd.f32 %v3154_v51, %v3153_v59 }
 0x2e0   : > { %v3157_v62 = vadd.f32 %v3155_v52, %v3148_v61 }
 0x2e2   : > { %3159 = vst [vmem:[%s332_s20 + $0x1] sm:$0x1] %v3157_v62 }
 0x2e3   : > { %4561 = shalt.err (!%p4558_p11)
}
 0x2e4   : > { %s4562_s14 = scalar_lea.hbm %s5064_s15, 32  ;;  %s4566_s9 = scalar_lea.hbm %s5114_s6, 64 }
 0x2e5   : > { %p4563_p9 = scmp.ne.s32.totalorder %s5064_s15, %s4562_s14  ;;  %p4567_p4 = scmp.lt.u32.totalorder %s5064_s15, %s5114_s6 }
 0x2e6   : > { %p4568_p6 = scmp.lt.u32.totalorder %s4566_s9, %s4562_s14  ;;  %p4570_p3 = scmp.lt.u32.totalorder %s4562_s14, %s5064_s15 }
 0x2e7   : > { %p4564_p12 = pnand %p4563_p9, %p4830_p1 }
 0x2e8   : > { %p4569_p8 = por %p4568_p6, %p4567_p4 }
 0x2e9   : > { %p4565_p2 = pneg %p4564_p12 }
 0x2ea   : > { %p4571_p7 = por %p4570_p3, %p4569_p8 }
 0x2ec   : > { %p4572_p10 = pnand %p4571_p7, %p4565_p2 }
 0x2ee   : > { %4575 = shalt.err (!%p4572_p10)
}
 0x2ef   : > { %3830 = dma.vmem_to_hbm [thread:$0]  (%p4830_p1), %s5066_s19, 32, %s5064_s15, %s3166_s13  }
 0x2f0 PF: > { %s3207_s16 = sand.u32 1, %s4614_s21   ;;  %p5134_p13 = scmp.ne.s32.totalorder %s5119_s28, 0 }
 0x2f1   : > { %p5135_p0 = scmp.ge.s32.totalorder %s4626_s24, 2  ;;  %s3208_s10 = scalar_lea.sflag [#allocation7], %s3207_s16 }
 0x2f3   : > { %p3851_p5 = pnand %p5135_p0, %p5134_p13 }
 0x2f5   : > { %4605 = dma.done.wait (!%p3851_p5), %s3208_s10, 1024  }
 0x2f6   : > { %4607 = vsyncadd (!%p3851_p5), %s3208_s10, 4294966272  ;;  %s3217_s11 = scalar_lea.sflag [#allocation16], %s3207_s16 }
 0x2f7   : > { %4609 = dma.done.wait (!%p3851_p5), %s3217_s11, 32  }
 0x2f8   : > { %4611 = vsyncadd (!%p3851_p5), %s3217_s11, 4294967264  ;;  %p25_p1 = scmp.ge.s32.totalorder %s4820_s18, 4   ;;  %s5136_s21 = smov %s4618_s22 }
 0x2f9   : > { %s5137_s22 = smov %s4622_s23  ;;  %s5138_s23 = smov %s4836_s8 }
 0x2fa   : > { %s5139_s24 = smov %s4820_s18  ;;  %27 = sbr.rel (!%p25_p1) target bundleno = 9 (0x9), region = 126 }
 0x301   :  { %3222 = vsyncpa [#allocation6], 1 }
 0x302   :  { %3224 = vsyncpa [#allocation6 + $0x1], 1 }
 0x303   :  { %3225 = vsyncpa [#allocation9], 1 }
 0x304   :  { %3226 = vsyncpa [#allocation12], 1 }
 0x305   :  { %3227 = vsyncpa [#allocation7], 1 }
 0x306   :  { %3229 = vsyncpa [#allocation7 + $0x1], 1 }
 0x307   :  { %3230 = vsyncpa [#allocation16], 1 }
 0x308   :  { %3232 = vsyncpa [#allocation16 + $0x1], 1 }

// kernel: generator_forward.9
= control target key start
LH: loop header
LB: loop body
LE: loop exit
PB: predicated region body
PF: predicated region fallthrough
CT: control target
= control target key end

     0   :  { %12 = vsyncpa [#allocation6], 0  ;;  %s4901_s0 = inlined_call_operand.hbm [shape: f32[2,16,16,64], index: 0, kind: input, shape index: {}]   ;;  %s4902_s1 = inlined_call_operand.hbm [shape: f32[1,64], index: 1, kind: input, shape index: {}]   ;;  %s4903_s2 = inlined_call_operand.hbm [shape: f32[1,64], index: 2, kind: input, shape index: {}]   ;;  %s4904_s3 = inlined_call_operand.hbm [shape: bf16[1,576,128], index: 3, kind: input, shape index: {}]   ;;  %s4905_s4 = inlined_call_operand.hbm [shape: f32[1,128], index: 4, kind: input, shape index: {}]   ;;  %s4906_s5 = inlined_call_operand.hbm [shape: f32[2,16,16,128], index: 5, kind: output, shape index: {0}]   ;;  %s4907_s6 = inlined_call_operand.hbm [shape: f32[2,2,128], index: 6, kind: output, shape index: {1}]  }
   0x1   :  { %14 = vsyncpa [#allocation6 + $0x1], 0 }
   0x2   :  { %15 = vsyncpa [#allocation9], 0 }
   0x3   :  { %16 = vsyncpa [#allocation12], 0 }
   0x4   :  { %17 = vsyncpa [#allocation7], 0 }
   0x5   :  { %19 = vsyncpa [#allocation7 + $0x1], 0 }
   0x6   :  { %20 = vsyncpa [#allocation16], 0 }
   0x7   :  { %22 = vsyncpa [#allocation16 + $0x1], 0  ;;  %s3810_s21 = smov 0   ;;  %s3812_s22 = smov 0  }
   0x8   :  { %s3814_s23 = smov 0   ;;  %s3816_s24 = smov 0  }
   0x9 LB: > { %s3831_s25 = sadd.s32 4294967295, %s3757_s24   ;;  %s2990_s26 = sadd.s32 4294967294, %s3757_s24   ;;  %s3757_s24 = sphi %s3816_s24, %s4930_s24   ;;  %s3753_s23 = sphi %s3814_s23, %s4929_s23   ;;  %s3749_s22 = sphi %s3812_s22, %s4928_s22   ;;  %s3745_s21 = sphi %s3810_s21, %s4927_s21  }
   0xa   : > { %p48_p0 = scmp.ne.s32.totalorder %s3749_s22, %s3745_s21  ;;  %p4908_p1 = scmp.eq.s32.totalorder %s3831_s25, 0 }
   0xb   : > { %p162_p3 = scmp.eq.s32.totalorder %s2990_s26, 1  ;;  %p2991_p5 = scmp.ge.s32.totalorder %s3757_s24, 1 }
   0xc   : > { %p3840_p4 = por %p4908_p1, %p48_p0  ;;  %p195_p7 = scmp.lt.s32.totalorder %s3757_s24, 3 }
   0xd   : > { %p3845_p6 = por %p162_p3, %p48_p0  ;;  %s3759_s30 = smov [#allocation8]  }
   0xe   : > { %s4911_s27 = scalar_select %p3840_p4, 1, 0 }
   0xf   : > { %s4912_s28 = scalar_select %p3845_p6, 1, 0 }
  0x10   : > { %p3850_p8 = pnand %p2991_p5, %p195_p7  ;;  %s208_s7 = sshll.u32 %s3759_s30, 4  ;;  %s209_s7 = int_to_ptr.vmem [resolvable:$true] %s208_s7 }
  0x11   : > { %s3760_s8 = smov [#allocation11]   ;;  %s3761_s11 = smov [#allocation10]  }
  0x12   : > { %s4913_s29 = scalar_select %p3850_p8, 1, 0 }
  0x13   : > { %p3306_p10 = pneg %p3850_p8  ;;  %s229_s9 = sshll.u32 %s3760_s8, 4  ;;  %s3863_s9 = int_to_ptr.vmem [resolvable:$true] %s229_s9 }
  0x14   : > { %s3865_s12 = sshll.u32 %s3761_s11, 4  ;;  %s3509_s15 = scalar_lea.hbm %s4902_s1, 16  ;;  %s220_s12 = int_to_ptr.vmem [resolvable:$true] %s3865_s12 }
  0x15   : > { %p3859_p11 = pnand %p3306_p10, %p4908_p1  ;;  %p3510_p12 = scmp.ne.s32.totalorder %s4902_s1, %s3509_s15 }
  0x16   : > { %p3516_p5 = scmp.lt.u32.totalorder %s3509_s15, %s4902_s1 }
  0x17   : > { %p3875_p13 = pneg %p3859_p11 }
  0x19   : > { %p3512_p0 = pnand %p3875_p13, %p3510_p12 }
  0x1b   : > { %p3513_p3 = pneg %p3512_p0 }
  0x1d   : > { %p3518_p7 = pnand %p3516_p5, %p3513_p3 }
  0x1f   : > { %3521 = shalt.err (!%p3518_p7)
}
  0x20   : > { %s3522_s26 = scalar_lea.vmem %s209_s7, 16  ;;  %s3529_s30 = scalar_lea.vmem %s209_s7, 32 }
  0x21   : > { %p3523_p10 = scmp.ne.s32.totalorder %s209_s7, %s3522_s26  ;;  %p3530_p2 = scmp.lt.s32.totalorder %s209_s7, %s209_s7 }
  0x22   : > { %p3531_p6 = scmp.lt.s32.totalorder %s3529_s30, %s3522_s26 }
  0x23   : > { %p3525_p9 = pnand %p3523_p10, %p3875_p13 }
  0x24   : > { %p3532_p4 = por %p3531_p6, %p3530_p2 }
  0x25   : > { %p3526_p1 = pneg %p3525_p9 }
  0x27   : > { %p3533_p8 = pnand %p3532_p4, %p3526_p1 }
  0x29   : > { %3536 = shalt.err (!%p3533_p8)
}
  0x2a   : > { %3309 = dma.hbm_to_vmem [thread:$0]  (!%p3859_p11), %s4902_s1, 16, %s209_s7, [#allocation9]  }
  0x2b   : > { %s3537_s15 = scalar_lea.hbm %s4904_s3, 4608 }
  0x2c   : > { %p3538_p9 = scmp.ne.s32.totalorder %s4904_s3, %s3537_s15  ;;  %p3544_p1 = scmp.lt.u32.totalorder %s3537_s15, %s4904_s3 }
  0x2e   : > { %p3540_p12 = pnand %p3538_p9, %p3875_p13 }
  0x30   : > { %p3541_p2 = pneg %p3540_p12 }
  0x32   : > { %p3546_p4 = pnand %p3544_p1, %p3541_p2 }
  0x34   : > { %3549 = shalt.err (!%p3546_p4)
}
  0x35   : > { %s3550_s7 = scalar_lea.vmem %s3863_s9, 4608  ;;  %p3558_p3 = scmp.lt.s32.totalorder %s3863_s9, %s3863_s9 }
  0x36   : > { %p3551_p6 = scmp.ne.s32.totalorder %s3863_s9, %s3550_s7  ;;  %p3559_p5 = scmp.lt.s32.totalorder %s3550_s7, %s3550_s7 }
  0x38   : > { %p3553_p8 = pnand %p3551_p6, %p3875_p13  ;;  %p3560_p7 = por %p3559_p5, %p3558_p3 }
  0x3a   : > { %p3554_p0 = pneg %p3553_p8 }
  0x3c   : > { %p3561_p10 = pnand %p3560_p7, %p3554_p0 }
  0x3e   : > { %3564 = shalt.err (!%p3561_p10)
}
  0x3f   : > { %s3762_s26 = smov 64   ;;  %s3763_s30 = smov 4  }
  0x40   : > { %3315 = dma.hbm_to_vmem [thread:$0]  (!%p3859_p11), %s4904_s3, 4608, %s3863_s9, [#allocation12], %s3762_s26, %s3762_s26, %s3763_s30  }
  0x41   : > { %s3565_s15 = scalar_lea.hbm %s4903_s2, 16 }
  0x42   : > { %p3566_p9 = scmp.ne.s32.totalorder %s4903_s2, %s3565_s15  ;;  %p3572_p1 = scmp.lt.u32.totalorder %s3565_s15, %s4903_s2 }
  0x44   : > { %p3568_p12 = pnand %p3566_p9, %p3875_p13 }
  0x46   : > { %p3569_p2 = pneg %p3568_p12 }
  0x48   : > { %p3574_p4 = pnand %p3572_p1, %p3569_p2 }
  0x4a   : > { %3577 = shalt.err (!%p3574_p4)
}
  0x4b   : > { %s3578_s7 = scalar_lea.vmem %s220_s12, 16  ;;  %s3585_s9 = scalar_lea.vmem %s220_s12, 32 }
  0x4c   : > { %p3579_p6 = scmp.ne.s32.totalorder %s220_s12, %s3578_s7  ;;  %p3586_p3 = scmp.lt.s32.totalorder %s220_s12, %s220_s12 }
  0x4d   : > { %p3587_p5 = scmp.lt.s32.totalorder %s3585_s9, %s3578_s7 }
  0x4e   : > { %p3581_p8 = pnand %p3579_p6, %p3875_p13 }
  0x4f   : > { %p3588_p7 = por %p3587_p5, %p3586_p3 }
  0x50   : > { %p3582_p0 = pneg %p3581_p8 }
  0x52   : > { %p3589_p10 = pnand %p3588_p7, %p3582_p0 }
  0x54   : > { %3592 = shalt.err (!%p3589_p10)
}
  0x55   : > { %3312 = dma.hbm_to_vmem [thread:$0]  (!%p3859_p11), %s4903_s2, 16, %s220_s12, [#allocation9]  }
  0x56   : > { %s3764_s8 = smov [#allocation13]   ;;  %s3593_s15 = scalar_lea.hbm %s4905_s4, 16 }
  0x57   : > { %s243_s11 = sshll.u32 %s3764_s8, 4  ;;  %p3594_p9 = scmp.ne.s32.totalorder %s4905_s4, %s3593_s15  ;;  %s244_s11 = int_to_ptr.vmem [resolvable:$true] %s243_s11 }
  0x58   : > { %p3600_p1 = scmp.lt.u32.totalorder %s3593_s15, %s4905_s4 }
  0x59   : > { %p3596_p12 = pnand %p3594_p9, %p3875_p13 }
  0x5b   : > { %p3597_p2 = pneg %p3596_p12 }
  0x5d   : > { %p3602_p4 = pnand %p3600_p1, %p3597_p2 }
  0x5f   : > { %3605 = shalt.err (!%p3602_p4)
}
  0x60   : > { %s3606_s12 = scalar_lea.vmem %s244_s11, 16  ;;  %s3613_s7 = scalar_lea.vmem %s244_s11, 32 }
  0x61   : > { %p3607_p6 = scmp.ne.s32.totalorder %s244_s11, %s3606_s12  ;;  %p3614_p3 = scmp.lt.s32.totalorder %s244_s11, %s244_s11 }
  0x62   : > { %p3615_p5 = scmp.lt.s32.totalorder %s3613_s7, %s3606_s12 }
  0x63   : > { %p3609_p8 = pnand %p3607_p6, %p3875_p13 }
  0x64   : > { %p3616_p7 = por %p3615_p5, %p3614_p3 }
  0x65   : > { %p3610_p0 = pneg %p3609_p8 }
  0x67   : > { %p3617_p10 = pnand %p3616_p7, %p3610_p0 }
  0x69   : > { %3620 = shalt.err (!%p3617_p10)
}
  0x6a   : > { %3318 = dma.hbm_to_vmem [thread:$0]  (!%p3859_p11), %s4905_s4, 16, %s244_s11, [#allocation12]  }
  0x6b   : > { %s3952_s18 = sadd.s32 1, %s3757_s24   ;;  %s35_s30 = sadd.s32 1, %s3753_s23 }
  0x6c   : > { %s32_s10 = ssub.s32 %s3757_s24, %s3952_s18  ;;  %p42_p13 = scmp.ne.s32.totalorder %s3753_s23, %s3749_s22 }
  0x6d   : > { %p33_p9 = scmp.eq.s32.totalorder %s32_s10, 0  ;;  %p43_p12 = scmp.eq.s32.totalorder %s3757_s24, 0 }
  0x6e   : > { %p4916_p2 = scmp.eq.s32.totalorder %s3831_s25, 1  ;;  %p3334_p4 = scmp.lt.s32.totalorder %s3757_s24, 2 }
  0x6f   : > { %s3968_s13 = scalar_select %p33_p9, %s3753_s23, %s35_s30  }
  0x70   : > { %p3962_p1 = por %p4916_p2, %p42_p13  ;;  %p44_p6 = por %p43_p12, %p42_p13 }
  0x71   : > { %s254_s14 = sand.u32 1, %s3753_s23   ;;  %s3102_s11 = sshll.u32 %s3757_s24, 12 }
  0x72   : > { %s2997_s15 = sshll.u32 %s254_s14, 8  ;;  %s3975_s19 = scalar_lea.hbm %s4901_s0, %s3102_s11 }
  0x73   : > { %s258_s20 = scalar_lea.vmem [#allocation5], %s2997_s15  ;;  %p3979_p11 = pnand %p3334_p4, %p44_p6 }
  0x74   : > { %s265_s12 = sshll.u32 %s258_s20, 4  ;;  %s3983_s9 = scalar_lea.sflag [#allocation6], %s254_s14  ;;  %s3977_s12 = int_to_ptr.vmem [resolvable:$true] %s265_s12 }
  0x75   : > { %s3621_s26 = scalar_lea.hbm %s3975_s19, 4096  ;;  %p3623_p0 = pneg %p3979_p11 }
  0x76   : > { %p3622_p8 = scmp.ne.s32.totalorder %s3975_s19, %s3621_s26  ;;  %s3626_s15 = scalar_lea.hbm %s4901_s0, 8192 }
  0x77   : > { %p3627_p7 = scmp.lt.u32.totalorder %s3975_s19, %s4901_s0  ;;  %p3628_p10 = scmp.lt.u32.totalorder %s3626_s15, %s3621_s26 }
  0x78   : > { %p3624_p3 = pnand %p3623_p0, %p3622_p8  ;;  %p3630_p9 = scmp.lt.u32.totalorder %s3621_s26, %s3975_s19 }
  0x79   : > { %p3629_p13 = por %p3628_p10, %p3627_p7 }
  0x7a   : > { %p3625_p5 = pneg %p3624_p3 }
  0x7b   : > { %p3631_p12 = por %p3630_p9, %p3629_p13 }
  0x7d   : > { %p3632_p2 = pnand %p3631_p12, %p3625_p5 }
  0x7f   : > { %3635 = shalt.err (!%p3632_p2)
}
  0x80   : > { %s3636_s14 = scalar_lea.vmem %s3977_s12, 4096  ;;  %s3765_s17 = smov [#allocation5]  }
  0x81   : > { %p3637_p4 = scmp.ne.s32.totalorder %s3977_s12, %s3636_s14  ;;  %s3641_s20 = sshll.u32 %s3765_s17, 4  ;;  %s3642_s20 = int_to_ptr.vmem [resolvable:$false] %s3641_s20 }
  0x82   : > { %s3643_s30 = scalar_lea.vmem %s3642_s20, 8192  ;;  %p3644_p3 = scmp.lt.s32.totalorder %s3977_s12, %s3642_s20 }
  0x83   : > { %p3639_p6 = pnand %p3637_p4, %p3623_p0  ;;  %p3645_p7 = scmp.lt.s32.totalorder %s3643_s30, %s3636_s14 }
  0x85   : > { %p3640_p8 = pneg %p3639_p6  ;;  %p3646_p10 = por %p3645_p7, %p3644_p3 }
  0x87   : > { %p3647_p13 = pnand %p3646_p10, %p3640_p8 }
  0x89   : > { %3650 = shalt.err (!%p3647_p13)
}
  0x8a   : > { %s3766_s26 = smov 128   ;;  %s3767_s10 = smov 8  }
  0x8b   : > { %3322 = dma.hbm_to_vmem [thread:$0]  (!%p3979_p11), %s3975_s19, 4096, %s3977_s12, %s3983_s9, %s3766_s26, %s3766_s26, %s3767_s10  }
  0x8c   : > { %p4919_p0 = scmp.ne.s32.totalorder %s4913_s29, 0 }
  0x8d   : > { %s4014_s15 = sand.u32 (!%p4919_p0), 1, %s3749_s22   ;;  %p4920_p5 = scmp.ne.s32.totalorder (!%p4919_p0), %s4911_s27, 0 }
  0x8e   : > { %277 = sbr.rel (%p4919_p0) target bundleno = 804 (0x324), region = 40  ;;  %s3001_s11 = sshll.u32 (!%p4919_p0), %s4014_s15, 8 }
  0x8f   : > { %s280_s16 = scalar_lea.sflag (!%p4919_p0), [#allocation6], %s4014_s15  ;;  %s4020_s14 = scalar_lea.vmem (!%p4919_p0), [#allocation5], %s3001_s11 }
  0x95   : > { %3724 = dma.done.wait (%p4920_p5), %s280_s16, 4096  }
  0x96   : > { %3726 = vsyncadd (%p4920_p5), %s280_s16, 4294963200  ;;  %p4921_p11 = scmp.eq.s32.totalorder %s3831_s25, 0 }
  0x98   : > { %3728 = dma.done.wait (%p4921_p11), [#allocation9], 32   ;;  %p4922_p9 = pmov %p4921_p11 }
  0x9a   : > { %3730 = vsyncadd (%p4922_p9), [#allocation9], 4294967264  ;;  %p4923_p12 = pmov %p4922_p9 }
  0x9b   : > { %p4924_p2 = pmov %p4922_p9 }
  0x9c   : > { %3732 = dma.done.wait (%p4923_p12), [#allocation12], 4624  }
  0x9d   : > { %3734 = vsyncadd (%p4924_p2), [#allocation12], 4294962672  ;;  %vm540_vm0 = vcmask 523264   ;;  %v3768_v0 = vmov 0.0   ;;  %v3769_v1 = vmov 0   ;;  %v334_v2 = vld [vmem:[%s4020_s14] sm:$0xff] }
  0x9e   : > { %541 = vst.msk [vmem:[#allocation2] sm:$0xff] %vm540_vm0, %v3768_v0  ;;  %542 = vst.msk [vmem:[#allocation2 + $0x8] sm:$0xff] %vm540_vm0, %v3768_v0  ;;  %1993 = vmatprep.subr.bf16.mxu0 %v3769_v1  ;;  %3170 = vmatprep.subr.bf16.mxu1 %v3769_v1  ;;  %v335_v3 = vld [vmem:[%s4020_s14 + $0x8] sm:$0xff]  ;;  %v4079_v4 = vld [vmem:[#allocation8] ss:$0 sm:$0xff]  ;;  %s3770_s27 = smov 64  }
  0x9f   : > { %543 = vst.msk [vmem:[#allocation2 + $0x10] sm:$0xff] %vm540_vm0, %v3768_v0  ;;  %544 = vst.msk [vmem:[#allocation2 + $0x18] sm:$0xff] %vm540_vm0, %v3768_v0  ;;  %v4081_v5 = vld [vmem:[#allocation10] ss:$0 sm:$0xff]  ;;  %v374_v6 = vmul.f32 %v4079_v4, %v334_v2  ;;  %v375_v7 = vmul.f32 %v4079_v4, %v335_v3  ;;  %v336_v8 = vld [vmem:[%s4020_s14 + $0x10] sm:$0xff]  ;;  %s4716_s29 = scalar_lea.vmem [#allocation14], %s3001_s11 }
  0xa0   : > { %545 = vst.msk [vmem:[#allocation2 + $0x20] sm:$0xff] %vm540_vm0, %v3768_v0  ;;  %546 = vst.msk [vmem:[#allocation2 + $0x28] sm:$0xff] %vm540_vm0, %v3768_v0  ;;  %v337_v9 = vld [vmem:[%s4020_s14 + $0x18] sm:$0xff]  ;;  %v376_v10 = vmul.f32 %v4079_v4, %v336_v8  ;;  %v338_v12 = vld [vmem:[%s4020_s14 + $0x20] sm:$0xff]  ;;  %s3103_s19 = sshll.u32 %s3831_s25, 12  ;;  %s2834_s12 = sshll.u32 %s4716_s29, 4  ;;  %s4798_s12 = int_to_ptr.vmem [resolvable:$true] %s2834_s12 }
  0xa1   : > { %547 = vst.msk [vmem:[#allocation2 + $0x30] sm:$0xff] %vm540_vm0, %v3768_v0  ;;  %548 = vst.msk [vmem:[#allocation2 + $0x38] sm:$0xff] %vm540_vm0, %v3768_v0  ;;  %v377_v11 = vmul.f32 %v4079_v4, %v337_v9  ;;  %v412_v13 = vadd.f32 %v4081_v5, %v374_v6  ;;  %v413_v14 = vadd.f32 %v4081_v5, %v375_v7  ;;  %v339_v15 = vld [vmem:[%s4020_s14 + $0x28] sm:$0xff]  ;;  %v340_v17 = vld [vmem:[%s4020_s14 + $0x30] sm:$0xff]  ;;  %s4796_s17 = scalar_lea.hbm %s4906_s5, %s3103_s19  ;;  %s2816_s20 = scalar_lea.sflag [#allocation7], %s4014_s15 }
  0xa2   : > { %549 = vst.msk [vmem:[#allocation2 + $0x40] sm:$0xff] %vm540_vm0, %v3768_v0  ;;  %550 = vst.msk [vmem:[#allocation2 + $0x48] sm:$0xff] %vm540_vm0, %v3768_v0  ;;  %v378_v16 = vmul.f32 %v4079_v4, %v338_v12  ;;  %v414_v18 = vadd.f32 %v4081_v5, %v376_v10  ;;  %v379_v20 = vmul.f32 %v4079_v4, %v339_v15  ;;  %v341_v21 = vld [vmem:[%s4020_s14 + $0x38] sm:$0xff]  ;;  %v346_v36 = vld [vmem:[%s4020_s14 + $0x60] sm:$0xff]  ;;  %s3651_s30 = scalar_lea.vmem %s4798_s12, 4096  ;;  %s3771_s26 = smov [#allocation14]  }
  0xa3   : > { %551 = vst.msk [vmem:[#allocation2 + $0x50] sm:$0xff] %vm540_vm0, %v3768_v0  ;;  %552 = vst.msk [vmem:[#allocation2 + $0x58] sm:$0xff] %vm540_vm0, %v3768_v0  ;;  %v415_v19 = vadd.f32 %v4081_v5, %v377_v11  ;;  %v380_v22 = vmul.f32 %v4079_v4, %v340_v17  ;;  %vm444_vm1 = vcmp.gt.f32.partialorder %v412_v13, 0.0  ;;  %vm445_vm2 = vcmp.gt.f32.partialorder %v413_v14, 0.0  ;;  %v345_v31 = vld [vmem:[%s4020_s14 + $0x58] sm:$0xff]  ;;  %v343_v37 = vld [vmem:[%s4020_s14 + $0x48] sm:$0xff]  ;;  %p3652_p4 = scmp.ne.s32.totalorder %s4798_s12, %s3651_s30 }
  0xa4   : > { %553 = vst.msk [vmem:[#allocation2 + $0x60] sm:$0xff] %vm540_vm0, %v3768_v0  ;;  %554 = vst.msk [vmem:[#allocation2 + $0x68] sm:$0xff] %vm540_vm0, %v3768_v0  ;;  %v476_v23 = vmul.f32 0.2, %v412_v13  ;;  %v477_v24 = vmul.f32 0.2, %v413_v14  ;;  %v416_v29 = vadd.f32 %v4081_v5, %v378_v16  ;;  %v417_v30 = vadd.f32 %v4081_v5, %v379_v20 }
  0xa5   : > { %555 = vst.msk [vmem:[#allocation2 + $0x70] sm:$0xff] %vm540_vm0, %v3768_v0  ;;  %556 = vst.msk [vmem:[#allocation2 + $0x78] sm:$0xff] %vm540_vm0, %v3768_v0  ;;  %vm446_vm3 = vcmp.gt.f32.partialorder %v414_v18, 0.0  ;;  %vm447_vm4 = vcmp.gt.f32.partialorder %v415_v19, 0.0  ;;  %v478_v25 = vmul.f32 0.2, %v414_v18  ;;  %v381_v34 = vmul.f32 %v4079_v4, %v341_v21  ;;  %p3653_p6 = pnand %p3652_p4, %p3962_p1 }
  0xa6   : > { %557 = vst.msk [vmem:[#allocation2 + $0x80] sm:$0xff] %vm540_vm0, %v3768_v0  ;;  %558 = vst.msk [vmem:[#allocation2 + $0x88] sm:$0xff] %vm540_vm0, %v3768_v0  ;;  %v479_v26 = vmul.f32 0.2, %v415_v19  ;;  %v508_v27 = vsel %vm444_vm1, %v412_v13, %v476_v23  ;;  %v509_v28 = vsel %vm445_vm2, %v413_v14, %v477_v24  ;;  %v418_v35 = vadd.f32 %v4081_v5, %v380_v22  ;;  %v344_v43 = vld [vmem:[%s4020_s14 + $0x50] sm:$0xff]  ;;  %v342_v44 = vld [vmem:[%s4020_s14 + $0x40] sm:$0xff] }
  0xa7   : > { %559 = vst.msk [vmem:[#allocation2 + $0x90] sm:$0xff] %vm540_vm0, %v3768_v0  ;;  %560 = vst.msk [vmem:[#allocation2 + $0x98] sm:$0xff] %vm540_vm0, %v3768_v0  ;;  %v510_v32 = vsel %vm446_vm3, %v414_v18, %v478_v25  ;;  %vm448_vm5 = vcmp.gt.f32.partialorder %v416_v29, 0.0  ;;  %vm449_vm6 = vcmp.gt.f32.partialorder %v417_v30, 0.0  ;;  %v480_v38 = vmul.f32 0.2, %v416_v29  ;;  %p3654_p8 = pneg %p3653_p6 }
  0xa8   : > { %561 = vst.msk [vmem:[#allocation2 + $0xa0] sm:$0xff] %vm540_vm0, %v3768_v0  ;;  %562 = vst.msk [vmem:[#allocation2 + $0xa8] sm:$0xff] %vm540_vm0, %v3768_v0  ;;  %v511_v33 = vsel %vm447_vm4, %v415_v19, %v479_v26  ;;  %v481_v39 = vmul.f32 0.2, %v417_v30  ;;  %v419_v40 = vadd.f32 %v4081_v5, %v381_v34  ;;  %vm450_vm7 = vcmp.gt.f32.partialorder %v418_v35, 0.0  ;;  %v347_v49 = vld [vmem:[%s4020_s14 + $0x68] sm:$0xff] }
  0xa9   : > { %563 = vst.msk [vmem:[#allocation2 + $0xb0] sm:$0xff] %vm540_vm0, %v3768_v0  ;;  %564 = vst.msk [vmem:[#allocation2 + $0xb8] sm:$0xff] %vm540_vm0, %v3768_v0  ;;  %v482_v41 = vmul.f32 0.2, %v418_v35  ;;  %v385_v42 = vmul.f32 %v4079_v4, %v345_v31  ;;  %v512_v45 = vsel %vm448_vm5, %v416_v29, %v480_v38  ;;  %v386_v47 = vmul.f32 %v4079_v4, %v346_v36  ;;  %v3385_v53 = vld [vmem:[#allocation11] sm:$0xff]   ;;  %v4121_v54 = vld [vmem:[#allocation2 + $0x1] sm:$0xff] }
  0xaa   : > { %565 = vst.msk [vmem:[#allocation2 + $0xc0] sm:$0xff] %vm540_vm0, %v3768_v0  ;;  %566 = vst.msk [vmem:[#allocation2 + $0xc8] sm:$0xff] %vm540_vm0, %v3768_v0  ;;  %v513_v46 = vsel %vm449_vm6, %v417_v30, %v481_v39  ;;  %v383_v48 = vmul.f32 %v4079_v4, %v343_v37  ;;  %vm451_vm8 = vcmp.gt.f32.partialorder %v419_v40, 0.0  ;;  %v483_v50 = vmul.f32 0.2, %v419_v40  ;;  %v4123_v55 = vld [vmem:[#allocation2 + $0x9] sm:$0xff]  ;;  %1994 = vmatpush1.bf16.msra.mxu0 %v3385_v53 }
  0xab   : > { %567 = vst.msk [vmem:[#allocation2 + $0xd0] sm:$0xff] %vm540_vm0, %v3768_v0  ;;  %568 = vst.msk [vmem:[#allocation2 + $0xd8] sm:$0xff] %vm540_vm0, %v3768_v0  ;;  %v514_v51 = vsel %vm450_vm7, %v418_v35, %v482_v41  ;;  %v423_v52 = vadd.f32 %v4081_v5, %v385_v42  ;;  %v424_v56 = vadd.f32 %v4081_v5, %v386_v47  ;;  %v348_v62 = vld [vmem:[%s4020_s14 + $0x70] sm:$0xff]  ;;  %1995 = vmatprep.subr.bf16.mxu0 %v3769_v1  ;;  %v350_v20 = vld [vmem:[%s4020_s14 + $0x80] sm:$0xff]  ;;  %s3655_s10 = sshll.u32 %s3771_s26, 4  ;;  %s3656_s10 = int_to_ptr.vmem [resolvable:$false] %s3655_s10 }
  0xac   : > { %569 = vst.msk [vmem:[#allocation2 + $0xe0] sm:$0xff] %vm540_vm0, %v3768_v0  ;;  %570 = vst.msk [vmem:[#allocation2 + $0xe8] sm:$0xff] %vm540_vm0, %v3768_v0  ;;  %v384_v57 = vmul.f32 %v4079_v4, %v344_v43  ;;  %v421_v58 = vadd.f32 %v4081_v5, %v383_v48  ;;  %v382_v59 = vmul.f32 %v4079_v4, %v342_v44  ;;  %v3386_v2 = vld [vmem:[#allocation11 + $0x8] sm:$0xff]   ;;  %v3387_v25 = vld [vmem:[#allocation11 + $0x10] sm:$0xff]   ;;  %s3657_s11 = scalar_lea.vmem %s3656_s10, 8192  ;;  %p3658_p3 = scmp.lt.s32.totalorder %s4798_s12, %s3656_s10 }
  0xad   : > { %571 = vst.msk [vmem:[#allocation2 + $0xf0] sm:$0xff] %vm540_vm0, %v3768_v0  ;;  %572 = vst.msk [vmem:[#allocation2 + $0xf8] sm:$0xff] %vm540_vm0, %v3768_v0  ;;  %v515_v60 = vsel %vm451_vm8, %v419_v40, %v483_v50  ;;  %vm455_vm9 = vcmp.gt.f32.partialorder %v423_v52, 0.0  ;;  %v487_v61 = vmul.f32 0.2, %v423_v52  ;;  %v387_v63 = vmul.f32 %v4079_v4, %v347_v49  ;;  %v351_v21 = vld [vmem:[%s4020_s14 + $0x88] sm:$0xff]  ;;  %p3659_p7 = scmp.lt.s32.totalorder %s3657_s11, %s3651_s30 }
  0xae   : > { %573 = vst.msk [vmem:[#allocation2 + $0x100] sm:$0xff] %vm540_vm0, %v3768_v0  ;;  %574 = vst.msk [vmem:[#allocation2 + $0x108] sm:$0xff] %vm540_vm0, %v3768_v0  ;;  %vm456_vm10 = vcmp.gt.f32.partialorder %v424_v56, 0.0  ;;  %v488_v8 = vmul.f32 0.2, %v424_v56  ;;  %v422_v9 = vadd.f32 %v4081_v5, %v384_v57  ;;  %v420_v10 = vadd.f32 %v4081_v5, %v382_v59  ;;  %1996 = vmatpush1.bf16.msra.mxu0 %v3386_v2  ;;  %v352_v39 = vld [vmem:[%s4020_s14 + $0x90] sm:$0xff] }
  0xaf   : > { %575 = vst.msk [vmem:[#allocation2 + $0x110] sm:$0xff] %vm540_vm0, %v3768_v0  ;;  %576 = vst.msk [vmem:[#allocation2 + $0x118] sm:$0xff] %vm540_vm0, %v3768_v0  ;;  %v519_v15 = vsel %vm455_vm9, %v423_v52, %v487_v61  ;;  %vm453_vm11 = vcmp.gt.f32.partialorder %v421_v58, 0.0  ;;  %v485_v16 = vmul.f32 0.2, %v421_v58  ;;  %v725_v18 = vpack.c.bf16 %v4123_v55, %v4121_v54  ;;  %1997 = vmatprep.subr.bf16.mxu0 %v3769_v1  ;;  %v353_v40 = vld [vmem:[%s4020_s14 + $0x98] sm:$0xff]  ;;  %p3660_p10 = por %p3659_p7, %p3658_p3 }
  0xb0   : > { %577 = vst.msk [vmem:[#allocation2 + $0x120] sm:$0xff] %vm540_vm0, %v3768_v0  ;;  %578 = vst.msk [vmem:[#allocation2 + $0x128] sm:$0xff] %vm540_vm0, %v3768_v0  ;;  %v520_v19 = vsel %vm456_vm10, %v424_v56, %v488_v8  ;;  %vm454_vm12 = vcmp.gt.f32.partialorder %v422_v9, 0.0  ;;  %v486_v23 = vmul.f32 0.2, %v422_v9  ;;  %vm452_vm13 = vcmp.gt.f32.partialorder %v420_v10, 0.0 }
  0xb1   : > { %579 = vst.msk [vmem:[#allocation2 + $0x130] sm:$0xff] %vm540_vm0, %v3768_v0  ;;  %580 = vst.msk [vmem:[#allocation2 + $0x138] sm:$0xff] %vm540_vm0, %v3768_v0  ;;  %v517_v24 = vsel %vm453_vm11, %v421_v58, %v485_v16  ;;  %v388_v29 = vmul.f32 %v4079_v4, %v348_v62  ;;  %v425_v30 = vadd.f32 %v4081_v5, %v387_v63  ;;  %v355_v52 = vld [vmem:[%s4020_s14 + $0xa8] sm:$0xff]  ;;  %v3388_v53 = vld [vmem:[#allocation11 + $0x18] sm:$0xff]   ;;  %p3661_p13 = pnand %p3660_p10, %p3654_p8 }
  0xb2   : > { %581 = vst.msk [vmem:[#allocation2 + $0x140] sm:$0xff] %vm540_vm0, %v3768_v0  ;;  %585 = vst.msk [vmem:[#allocation2 + $0x13] sm:$0xff] %vm540_vm0, %v508_v27  ;;  %v349_v0 = vld [vmem:[%s4020_s14 + $0x78] sm:$0xff]  ;;  %v518_v34 = vsel %vm454_vm12, %v422_v9, %v486_v23  ;;  %v390_v35 = vmul.f32 %v4079_v4, %v350_v20  ;;  %v391_v36 = vmul.f32 %v4079_v4, %v351_v21  ;;  %1998 = vmatpush1.bf16.msra.mxu0 %v3387_v25  ;;  %v3389_v57 = vld [vmem:[#allocation11 + $0x80] sm:$0xff]  }
  0xb3   : > { %586 = vst.msk [vmem:[#allocation2 + $0x1b] sm:$0xff] %vm540_vm0, %v509_v28  ;;  %587 = vst.msk [vmem:[#allocation2 + $0x25] sm:$0xff] %vm540_vm0, %v510_v32  ;;  %v484_v28 = vmul.f32 0.2, %v420_v10  ;;  %v389_v31 = vmul.f32 %v4079_v4, %v349_v0  ;;  %v426_v38 = vadd.f32 %v4081_v5, %v388_v29  ;;  %vm457_vm14 = vcmp.gt.f32.partialorder %v425_v30, 0.0  ;;  %1999 = vmatprep.subr.bf16.mxu0 %v3769_v1  ;;  %v356_v62 = vld [vmem:[%s4020_s14 + $0xb0] sm:$0xff] }
  0xb4   : > { %588 = vst.msk [vmem:[#allocation2 + $0x2d] sm:$0xff] %vm540_vm0, %v511_v33  ;;  %589 = vst.msk [vmem:[#allocation2 + $0x37] sm:$0xff] %vm540_vm0, %v512_v45  ;;  %v489_v45 = vmul.f32 0.2, %v425_v30  ;;  %v428_v47 = vadd.f32 %v4081_v5, %v390_v35  ;;  %v429_v50 = vadd.f32 %v4081_v5, %v391_v36  ;;  %v392_v61 = vmul.f32 %v4079_v4, %v352_v39  ;;  %v357_v63 = vld [vmem:[%s4020_s14 + $0xb8] sm:$0xff]  ;;  %v358_v25 = vld [vmem:[%s4020_s14 + $0xc0] sm:$0xff] }
  0xb5   : > { %590 = vst.msk [vmem:[#allocation2 + $0x3f] sm:$0xff] %vm540_vm0, %v513_v46  ;;  %591 = vst.msk [vmem:[#allocation2 + $0x49] sm:$0xff] %vm540_vm0, %v514_v51  ;;  %v516_v37 = vsel %vm452_vm13, %v420_v10, %v484_v28  ;;  %v427_v46 = vadd.f32 %v4081_v5, %v389_v31  ;;  %vm458_vm15 = vcmp.gt.f32.partialorder %v426_v38, 0.0  ;;  %v490_v49 = vmul.f32 0.2, %v426_v38  ;;  %v354_v51 = vld [vmem:[%s4020_s14 + $0xa0] sm:$0xff]  ;;  %3186 = vmatpush1.bf16.msra.mxu1 %v3389_v57 }
  0xb6   : > { %592 = vst.msk [vmem:[#allocation2 + $0x51] sm:$0xff] %vm540_vm0, %v515_v60  ;;  %596 = vst.msk [vmem:[#allocation2 + $0x75] sm:$0xff] %vm540_vm0, %v519_v15  ;;  %v521_v55 = vsel %vm457_vm14, %v425_v30, %v489_v45  ;;  %vm460_vm2 = vcmp.gt.f32.partialorder %v428_v47, 0.0  ;;  %v492_v60 = vmul.f32 0.2, %v428_v47  ;;  %vm461_vm3 = vcmp.gt.f32.partialorder %v429_v50, 0.0  ;;  %2000 = vmatpush1.bf16.msra.mxu0 %v3388_v53  ;;  %3171 = vmatprep.subr.bf16.mxu1 %v3769_v1 }
  0xb7   : > { %597 = vst.msk [vmem:[#allocation2 + $0x7f] sm:$0xff] %vm540_vm0, %v520_v19  ;;  %594 = vst.msk [vmem:[#allocation2 + $0x63] sm:$0xff] %vm540_vm0, %v517_v24  ;;  %vm459_vm1 = vcmp.gt.f32.partialorder %v427_v46, 0.0  ;;  %v491_v56 = vmul.f32 0.2, %v427_v46  ;;  %v522_v59 = vsel %vm458_vm15, %v426_v38, %v490_v49  ;;  %v393_v8 = vmul.f32 %v4079_v4, %v353_v40  ;;  %2001 = vmatprep.subr.bf16.mxu0 %v3769_v1  ;;  %v3390_v31 = vld [vmem:[#allocation11 + $0x20] sm:$0xff]  }
  0xb8   : > { %595 = vst.msk [vmem:[#allocation2 + $0x6d] sm:$0xff] %vm540_vm0, %v518_v34  ;;  %593 = vst.msk [vmem:[#allocation2 + $0x5b] sm:$0xff] %vm540_vm0, %v516_v37  ;;  %v524_v10 = vsel %vm460_vm2, %v428_v47, %v492_v60  ;;  %v396_v21 = vmul.f32 %v4079_v4, %v356_v62  ;;  %v397_v24 = vmul.f32 %v4079_v4, %v357_v63 }
  0xb9   : > { %v906_v3 = vld [vmem:[#allocation2 + $0x12] sm:$0xff]  ;;  %598 = vst.msk [vmem:[#allocation2 + $0x87] sm:$0xff] %vm540_vm0, %v521_v55  ;;  %599 = vst.msk [vmem:[#allocation2 + $0x91] sm:$0xff] %vm540_vm0, %v522_v59  ;;  %v431_v16 = vadd.f32 %v4081_v5, %v393_v8  ;;  %v398_v38 = vmul.f32 %v4079_v4, %v358_v25 }
  0xba   : > { %v907_v6 = vld [vmem:[#allocation2 + $0x1a] sm:$0xff]  ;;  %v691_v7 = vld [vmem:[#allocation2 + $0x11] sm:$0xff]  ;;  %v908_v12 = vld [vmem:[#allocation2 + $0x22] sm:$0xff]  ;;  %601 = vst.msk [vmem:[#allocation2 + $0xa3] sm:$0xff] %vm540_vm0, %v524_v10  ;;  %v434_v37 = vadd.f32 %v4081_v5, %v396_v21  ;;  %2002 = vmatpush1.bf16.msra.mxu0 %v3390_v31 }
  0xbb   : > { %v942_v11 = vpack.c.bf16 %v907_v6, %v906_v3  ;;  %v909_v13 = vld [vmem:[#allocation2 + $0x2a] sm:$0xff]  ;;  %v692_v14 = vld [vmem:[#allocation2 + $0x19] sm:$0xff]  ;;  %v693_v32 = vld [vmem:[#allocation2 + $0x21] sm:$0xff]  ;;  %v523_v6 = vsel %vm459_vm1, %v427_v46, %v491_v56  ;;  %vm463_vm5 = vcmp.gt.f32.partialorder %v431_v16, 0.0  ;;  %v495_v29 = vmul.f32 0.2, %v431_v16  ;;  %2003 = vmatprep.subr.bf16.mxu0 %v3769_v1 }
  0xbc   : > { %v943_v17 = vpack.c.bf16 %v909_v13, %v908_v12  ;;  %v726_v22 = vpack.c.bf16 %v692_v14, %v691_v7  ;;  %v910_v26 = vld [vmem:[#allocation2 + $0x32] sm:$0xff]  ;;  %v911_v27 = vld [vmem:[#allocation2 + $0x3a] sm:$0xff]  ;;  %v694_v33 = vld [vmem:[#allocation2 + $0x29] sm:$0xff]  ;;  %v493_v7 = vmul.f32 0.2, %v429_v50  ;;  %600 = vst.msk [vmem:[#allocation2 + $0x99] sm:$0xff] %vm540_vm0, %v523_v6  ;;  %v436_v46 = vadd.f32 %v4081_v5, %v398_v38 }
  0xbd   : > { %978 = vrot.lane.b32.xlu0 %v942_v11, %s3770_s27  ;;  %v944_v41 = vpack.c.bf16 %v911_v27, %v910_v26  ;;  %v912_v42 = vld [vmem:[#allocation2 + $0x42] sm:$0xff]  ;;  %v913_v43 = vld [vmem:[#allocation2 + $0x4a] sm:$0xff]  ;;  %v727_v48 = vpack.c.bf16 %v694_v33, %v693_v32  ;;  %v696_v54 = vld [vmem:[#allocation2 + $0x39] sm:$0xff]  ;;  %v430_v11 = vadd.f32 %v4081_v5, %v392_v61  ;;  %v527_v36 = vsel %vm463_vm5, %v431_v16, %v495_v29 }
  0xbe   : > { %980 = vrot.lane.b32.xlu1 %v943_v17, %s3770_s27  ;;  %v4160_v44 = vld [vmem:[#allocation2 + $0x31] sm:$0xff]  ;;  %v945_v0 = vpack.c.bf16 %v913_v43, %v912_v42  ;;  %v1349_v2 = vld [vmem:[#allocation2 + $0x7d] sm:$0xff]  ;;  %v525_v15 = vsel %vm461_vm3, %v429_v50, %v493_v7  ;;  %v394_v17 = vmul.f32 %v4079_v4, %v354_v51  ;;  %v698_v33 = vld [vmem:[#allocation2 + $0x49] sm:$0xff]  ;;  %604 = vst.msk [vmem:[#allocation2 + $0xbd] sm:$0xff] %vm540_vm0, %v527_v36  ;;  %vm466_vm8 = vcmp.gt.f32.partialorder %v434_v37, 0.0 }
  0xbf   : > { %v1348_v58 = vld [vmem:[#allocation2 + $0x75] sm:$0xff]  ;;  %v728_v9 = vpack.c.bf16 %v696_v54, %v4160_v44  ;;  %v1132_v12 = vld [vmem:[#allocation2 + $0x64] sm:$0xff]  ;;  %v1133_v13 = vld [vmem:[#allocation2 + $0x6c] sm:$0xff]  ;;  %602 = vst.msk [vmem:[#allocation2 + $0xab] sm:$0xff] %vm540_vm0, %v525_v15  ;;  %vm462_vm4 = vcmp.gt.f32.partialorder %v430_v11, 0.0  ;;  %vm468_vm10 = vcmp.gt.f32.partialorder %v436_v46, 0.0 }
  0xc0   : > { %v1135_v3 = vld [vmem:[#allocation2 + $0x7c] sm:$0xff]  ;;  %v1134_v14 = vld [vmem:[#allocation2 + $0x74] sm:$0xff]  ;;  %v494_v20 = vmul.f32 0.2, %v430_v11  ;;  %v1163_v27 = vpack.c.bf16 %v1133_v13, %v1132_v12  ;;  %v432_v34 = vadd.f32 %v4081_v5, %v394_v17  ;;  %v1350_v43 = vld [vmem:[#allocation2 + $0x85] sm:$0xff]  ;;  %vm815_vm3 = vcmask 1048064  }
  0xc1   : > { %761 = vrot.lane.b32.xlu0 %v725_v18, %s3770_s27  ;;  %v395_v18 = vmul.f32 %v4079_v4, %v355_v52  ;;  %v4189_v19 = vpack.c.bf16 %v1135_v3, %v1134_v14  ;;  %v914_v23 = vld [vmem:[#allocation2 + $0x52] sm:$0xff]  ;;  %v915_v28 = vld [vmem:[#allocation2 + $0x5a] sm:$0xff]  ;;  %v498_v52 = vmul.f32 0.2, %v434_v37  ;;  %v916_v53 = vld [vmem:[#allocation2 + $0x62] sm:$0xff] }
  0xc2   : > { %763 = vrot.lane.b32.xlu1 %v726_v22, %s3770_s27  ;;  %v1379_v22 = vpack.c.bf16 %v1349_v2, %v1348_v58  ;;  %v359_v26 = vld [vmem:[%s4020_s14 + $0xc8] sm:$0xff]  ;;  %v526_v30 = vsel %vm462_vm4, %v430_v11, %v494_v20  ;;  %v697_v32 = vld [vmem:[#allocation2 + $0x41] sm:$0xff]  ;;  %v946_v40 = vpack.c.bf16 %v915_v28, %v914_v23  ;;  %vm464_vm6 = vcmp.gt.f32.partialorder %v432_v34, 0.0  ;;  %v700_v57 = vld [vmem:[#allocation2 + $0x59] sm:$0xff] }
  0xc3   : > { %1325 = vst.msk [vmem:[#allocation3 + $0xe0] sm:$0xff] %vm540_vm0, %v4189_v19  ;;  %603 = vst.msk [vmem:[#allocation2 + $0xb5] sm:$0xff] %vm540_vm0, %v526_v30  ;;  %v433_v35 = vadd.f32 %v4081_v5, %v395_v18  ;;  %v399_v39 = vmul.f32 %v4079_v4, %v359_v26  ;;  %v729_v42 = vpack.c.bf16 %v698_v33, %v697_v32  ;;  %v1351_v44 = vld [vmem:[#allocation2 + $0x8d] sm:$0xff]  ;;  %v496_v45 = vmul.f32 0.2, %v432_v34  ;;  %v1352_v63 = vld [vmem:[#allocation2 + $0x95] sm:$0xff] }
  0xc4   : > { %v1380_v50 = vpack.c.bf16 %v1351_v44, %v1350_v43  ;;  %v917_v54 = vld [vmem:[#allocation2 + $0x6a] sm:$0xff]  ;;  %v530_v58 = vsel %vm466_vm8, %v434_v37, %v498_v52  ;;  %v500_v59 = vmul.f32 0.2, %v436_v46  ;;  %v360_v7 = vld [vmem:[%s4020_s14 + $0xd0] sm:$0xff]  ;;  %v920_v29 = vld [vmem:[#allocation2 + $0x82] sm:$0xff] }
  0xc5   : > { %982 = vrot.lane.b32.xlu0 %v944_v41, %s3770_s27  ;;  %v435_v41 = vadd.f32 %v4081_v5, %v397_v24  ;;  %vm465_vm7 = vcmp.gt.f32.partialorder %v433_v35, 0.0  ;;  %v497_v47 = vmul.f32 0.2, %v433_v35  ;;  %v528_v49 = vsel %vm464_vm6, %v432_v34, %v496_v45  ;;  %v699_v56 = vld [vmem:[#allocation2 + $0x51] sm:$0xff]  ;;  %607 = vst.msk [vmem:[#allocation2 + $0xd9] sm:$0xff] %vm540_vm0, %v530_v58  ;;  %v1136_v2 = vld [vmem:[#allocation2 + $0x84] sm:$0xff] }
  0xc6   : > { %765 = vrot.lane.b32.xlu1 %v727_v48, %s3770_s27  ;;  %v437_v48 = vadd.f32 %v4081_v5, %v399_v39  ;;  %605 = vst.msk [vmem:[#allocation2 + $0xc7] sm:$0xff] %vm540_vm0, %v528_v49  ;;  %v947_v62 = vpack.c.bf16 %v917_v54, %v916_v53  ;;  %v1137_v3 = vld [vmem:[#allocation2 + $0x8c] sm:$0xff]  ;;  %v532_v6 = vsel %vm468_vm10, %v436_v46, %v500_v59  ;;  %v3391_v11 = vld [vmem:[#allocation11 + $0x88] sm:$0xff]   ;;  %v3393_v18 = vld [vmem:[#allocation11 + $0x90] sm:$0xff]  }
  0xc7   : > { %v529_v51 = vsel %vm465_vm7, %v433_v35, %v497_v47  ;;  %vm467_vm9 = vcmp.gt.f32.partialorder %v435_v41, 0.0  ;;  %v499_v55 = vmul.f32 0.2, %v435_v41  ;;  %v730_v8 = vpack.c.bf16 %v700_v57, %v699_v56  ;;  %609 = vst.msk [vmem:[#allocation2 + $0xeb] sm:$0xff] %vm540_vm0, %v532_v6  ;;  %v3392_v12 = vld [vmem:[#allocation11 + $0x28] sm:$0xff]   ;;  %3187 = vmatpush1.bf16.msra.mxu1 %v3391_v11  ;;  %v702_v20 = vld [vmem:[#allocation2 + $0x69] sm:$0xff] }
  0xc8   : > { %606 = vst.msk [vmem:[#allocation2 + $0xcf] sm:$0xff] %vm540_vm0, %v529_v51  ;;  %vm469_vm11 = vcmp.gt.f32.partialorder %v437_v48, 0.0  ;;  %v501_v61 = vmul.f32 0.2, %v437_v48  ;;  %v400_v10 = vmul.f32 %v4079_v4, %v360_v7  ;;  %v918_v15 = vld [vmem:[#allocation2 + $0x72] sm:$0xff]  ;;  %v919_v16 = vld [vmem:[#allocation2 + $0x7a] sm:$0xff]  ;;  %2004 = vmatpush1.bf16.msra.mxu0 %v3392_v12  ;;  %v1165_v17 = vpack.c.bf16 %v1137_v3, %v1136_v2  ;;  %3172 = vmatprep.subr.bf16.mxu1 %v3769_v1 }
  0xc9   : > { %984 = vrot.lane.b32.xlu0 %v945_v0, %s3770_s27  ;;  %v531_v60 = vsel %vm467_vm9, %v435_v41, %v499_v55  ;;  %v1353_v0 = vld [vmem:[#allocation2 + $0x9d] sm:$0xff]  ;;  %2005 = vmatprep.subr.bf16.mxu0 %v3769_v1  ;;  %v1354_v25 = vld [vmem:[#allocation2 + $0xa5] sm:$0xff]  ;;  %v1355_v26 = vld [vmem:[#allocation2 + $0xad] sm:$0xff] }
  0xca   : > { %767 = vrot.lane.b32.xlu1 %v728_v9, %s3770_s27  ;;  %608 = vst.msk [vmem:[#allocation2 + $0xe1] sm:$0xff] %vm540_vm0, %v531_v60  ;;  %v533_v9 = vsel %vm469_vm11, %v437_v48, %v501_v61  ;;  %v438_v13 = vadd.f32 %v4081_v5, %v400_v10  ;;  %v1381_v14 = vpack.c.bf16 %v1353_v0, %v1352_v63  ;;  %v1139_v28 = vld [vmem:[#allocation2 + $0x9c] sm:$0xff]  ;;  %v362_v32 = vld [vmem:[%s4020_s14 + $0xe0] sm:$0xff]  ;;  %v703_v39 = vld [vmem:[#allocation2 + $0x71] sm:$0xff] }
  0xcb   : > { %610 = vst.msk [vmem:[#allocation2 + $0xf3] sm:$0xff] %vm540_vm0, %v533_v9  ;;  %3188 = vmatpush1.bf16.msra.mxu1 %v3393_v18  ;;  %v3394_v30 = vld [vmem:[#allocation11 + $0x30] sm:$0xff]   ;;  %v1382_v33 = vpack.c.bf16 %v1355_v26, %v1354_v25  ;;  %v402_v35 = vmul.f32 %v4079_v4, %v362_v32  ;;  %v3395_v36 = vld [vmem:[#allocation11 + $0x98] sm:$0xff]   ;;  %v3397_v44 = vld [vmem:[#allocation11 + $0xa0] sm:$0xff]  }
  0xcc   : > { %vm470_vm12 = vcmp.gt.f32.partialorder %v438_v13, 0.0  ;;  %v502_v21 = vmul.f32 0.2, %v438_v13  ;;  %3173 = vmatprep.subr.bf16.mxu1 %v3769_v1  ;;  %v361_v31 = vld [vmem:[%s4020_s14 + $0xd8] sm:$0xff]  ;;  %v921_v38 = vld [vmem:[#allocation2 + $0x8a] sm:$0xff]  ;;  %2006 = vmatpush1.bf16.msra.mxu0 %v3394_v30  ;;  %v922_v56 = vld [vmem:[#allocation2 + $0x92] sm:$0xff] }
  0xcd   : > { %1420 = vrot.lane.b32.xlu0 %v1379_v22, %s3770_s27  ;;  %v948_v22 = vpack.c.bf16 %v919_v16, %v918_v15  ;;  %v401_v34 = vmul.f32 %v4079_v4, %v361_v31  ;;  %2007 = vmatprep.subr.bf16.mxu0 %v3769_v1  ;;  %v3396_v43 = vld [vmem:[#allocation11 + $0x38] sm:$0xff]   ;;  %v949_v45 = vpack.c.bf16 %v921_v38, %v920_v29  ;;  %v1141_v47 = vld [vmem:[#allocation2 + $0xac] sm:$0xff]  ;;  %v923_v57 = vld [vmem:[#allocation2 + $0x9a] sm:$0xff] }
  0xce   : > { %1204 = vrot.lane.b32.xlu1 %v1163_v27, %s3770_s27  ;;  %v534_v23 = vsel %vm470_vm12, %v438_v13, %v502_v21  ;;  %v1138_v27 = vld [vmem:[#allocation2 + $0x94] sm:$0xff]  ;;  %v1140_v46 = vld [vmem:[#allocation2 + $0xa4] sm:$0xff]  ;;  %v3398_v54 = vld [vmem:[#allocation11 + $0x40] sm:$0xff]  }
  0xcf   : > { %611 = vst.msk [vmem:[#allocation2 + $0xfd] sm:$0xff] %vm540_vm0, %v534_v23  ;;  %v1166_v37 = vpack.c.bf16 %v1139_v28, %v1138_v27  ;;  %v439_v41 = vadd.f32 %v4081_v5, %v401_v34  ;;  %3189 = vmatpush1.bf16.msra.mxu1 %v3395_v36  ;;  %v1357_v51 = vld [vmem:[#allocation2 + $0xbd] sm:$0xff]  ;;  %v363_v55 = vld [vmem:[%s4020_s14 + $0xe8] sm:$0xff]  ;;  %v1167_v0 = vpack.c.bf16 %v1141_v47, %v1140_v46  ;;  %v1358_v10 = vld [vmem:[#allocation2 + $0xc5] sm:$0xff] }
  0xd0   : > { %3174 = vmatprep.subr.bf16.mxu1 %v3769_v1  ;;  %2008 = vmatpush1.bf16.msra.mxu0 %v3396_v43  ;;  %v364_v59 = vld [vmem:[%s4020_s14 + $0xf0] sm:$0xff]  ;;  %v403_v60 = vmul.f32 %v4079_v4, %v363_v55  ;;  %v705_v2 = vld [vmem:[#allocation2 + $0x81] sm:$0xff]  ;;  %v706_v3 = vld [vmem:[#allocation2 + $0x89] sm:$0xff] }
  0xd1   : > { %986 = vrot.lane.b32.xlu0 %v946_v40, %s3770_s27  ;;  %v704_v40 = vld [vmem:[#allocation2 + $0x79] sm:$0xff]  ;;  %vm471_vm13 = vcmp.gt.f32.partialorder %v439_v41, 0.0  ;;  %v503_v48 = vmul.f32 0.2, %v439_v41  ;;  %2009 = vmatprep.subr.bf16.mxu0 %v3769_v1  ;;  %v1359_v11 = vld [vmem:[#allocation2 + $0xcd] sm:$0xff]  ;;  %v3403_v23 = vld [vmem:[#allocation11 + $0xb8] sm:$0xff]  }
  0xd2   : > { %769 = vrot.lane.b32.xlu1 %v729_v42, %s3770_s27  ;;  %v440_v42 = vadd.f32 %v4081_v5, %v402_v35  ;;  %v732_v49 = vpack.c.bf16 %v704_v40, %v703_v39  ;;  %v3399_v63 = vld [vmem:[#allocation11 + $0xa8] sm:$0xff]   ;;  %v441_v6 = vadd.f32 %v4081_v5, %v403_v60  ;;  %v3401_v9 = vld [vmem:[#allocation11 + $0xb0] sm:$0xff]   ;;  %v1384_v26 = vpack.c.bf16 %v1359_v11, %v1358_v10  ;;  %v3404_v30 = vld [vmem:[#allocation11 + $0x58] sm:$0xff]  }
  0xd3   : > { %v535_v53 = vsel %vm471_vm13, %v439_v41, %v503_v48  ;;  %3190 = vmatpush1.bf16.msra.mxu1 %v3397_v44  ;;  %v3400_v7 = vld [vmem:[#allocation11 + $0x48] sm:$0xff]   ;;  %v3402_v13 = vld [vmem:[#allocation11 + $0x50] sm:$0xff]   ;;  %v3405_v32 = vld [vmem:[#allocation11 + $0xc0] sm:$0xff]  }
  0xd4   : > { %vm472_vm14 = vcmp.gt.f32.partialorder %v440_v42, 0.0  ;;  %v504_v52 = vmul.f32 0.2, %v440_v42  ;;  %612 = vst.msk [vmem:[#allocation2 + $0x105] sm:$0xff] %vm540_vm0, %v535_v53  ;;  %3175 = vmatprep.subr.bf16.mxu1 %v3769_v1  ;;  %2010 = vmatpush1.bf16.msra.mxu0 %v3398_v54  ;;  %vm473_vm15 = vcmp.gt.f32.partialorder %v441_v6, 0.0  ;;  %v365_v16 = vld [vmem:[%s4020_s14 + $0xf8] sm:$0xff] }
  0xd5   : > { %1422 = vrot.lane.b32.xlu0 %v1380_v50, %s3770_s27  ;;  %v1356_v50 = vld [vmem:[#allocation2 + $0xb5] sm:$0xff]  ;;  %2011 = vmatprep.subr.bf16.mxu0 %v3769_v1  ;;  %v505_v12 = vmul.f32 0.2, %v441_v6  ;;  %v1361_v36 = vld [vmem:[#allocation2 + $0xdd] sm:$0xff]  ;;  %v1145_v39 = vld [vmem:[#allocation2 + $0xcc] sm:$0xff] }
  0xd6   : > { %1206 = vrot.lane.b32.xlu1 %v4189_v19, %s3770_s27  ;;  %v701_v19 = vld [vmem:[#allocation2 + $0x61] sm:$0xff]  ;;  %v536_v58 = vsel %vm472_vm14, %v440_v42, %v504_v52  ;;  %v1383_v61 = vpack.c.bf16 %v1357_v51, %v1356_v50  ;;  %v707_v27 = vld [vmem:[#allocation2 + $0x91] sm:$0xff]  ;;  %v708_v31 = vld [vmem:[#allocation2 + $0x99] sm:$0xff] }
  0xd7   : > { %v731_v24 = vpack.c.bf16 %v702_v20, %v701_v19  ;;  %613 = vst.msk [vmem:[#allocation2 + $0x10f] sm:$0xff] %vm540_vm0, %v536_v58  ;;  %3191 = vmatpush1.bf16.msra.mxu1 %v3399_v63  ;;  %v537_v18 = vsel %vm473_vm15, %v441_v6, %v505_v12  ;;  %v405_v19 = vmul.f32 %v4079_v4, %v365_v16  ;;  %v1142_v20 = vld [vmem:[#allocation2 + $0xb4] sm:$0xff]  ;;  %v1143_v21 = vld [vmem:[#allocation2 + $0xbc] sm:$0xff]  ;;  %v1144_v38 = vld [vmem:[#allocation2 + $0xc4] sm:$0xff] }
  0xd8   : > { %3176 = vmatprep.subr.bf16.mxu1 %v3769_v1  ;;  %2012 = vmatpush1.bf16.msra.mxu0 %v3400_v7  ;;  %614 = vst.msk [vmem:[#allocation2 + $0x117] sm:$0xff] %vm540_vm0, %v537_v18  ;;  %v1168_v28 = vpack.c.bf16 %v1143_v21, %v1142_v20  ;;  %v1360_v34 = vld [vmem:[#allocation2 + $0xd5] sm:$0xff]  ;;  %v734_v35 = vpack.c.bf16 %v708_v31, %v707_v27  ;;  %v834_v43 = vld [vmem:[#allocation2 + $0x2] sm:$0xff]  ;;  %v835_v44 = vld [vmem:[#allocation2 + $0xa] sm:$0xff] }
  0xd9   : > { %988 = vrot.lane.b32.xlu0 %v947_v62, %s3770_s27  ;;  %v404_v62 = vmul.f32 %v4079_v4, %v364_v59  ;;  %2013 = vmatprep.subr.bf16.mxu0 %v3769_v1  ;;  %v443_v25 = vadd.f32 %v4081_v5, %v405_v19  ;;  %v925_v4 = vld [vmem:[#allocation2 + $0xaa] sm:$0xff]  ;;  %v926_v40 = vld [vmem:[#allocation2 + $0xb2] sm:$0xff]  ;;  %v927_v41 = vld [vmem:[#allocation2 + $0xba] sm:$0xff]  ;;  %v870_v48 = vpack.c.bf16 %v835_v44, %v834_v43 }
  0xda   : > { %771 = vrot.lane.b32.xlu1 %v730_v8, %s3770_s27  ;;  %v3407_v42 = vld [vmem:[#allocation11 + $0xc8] sm:$0xff]   ;;  %v709_v46 = vld [vmem:[#allocation2 + $0xa1] sm:$0xff]  ;;  %v710_v47 = vld [vmem:[#allocation2 + $0xa9] sm:$0xff]  ;;  %v1169_v50 = vpack.c.bf16 %v1145_v39, %v1144_v38 }
  0xdb   : > { %v442_v8 = vadd.f32 %v4081_v5, %v404_v62  ;;  %3192 = vmatpush1.bf16.msra.mxu1 %v3401_v9  ;;  %vm475_vm2 = vcmp.gt.f32.partialorder %v443_v25, 0.0  ;;  %v507_v29 = vmul.f32 0.2, %v443_v25  ;;  %v836_v51 = vld [vmem:[#allocation2 + $0x12] sm:$0xff]  ;;  %v837_v52 = vld [vmem:[#allocation2 + $0x1a] sm:$0xff]  ;;  %888 = vst.msk [vmem:[#allocation3 + $0x8] sm:$0xff] %vm540_vm0, %v870_v48  ;;  %v735_v62 = vpack.c.bf16 %v710_v47, %v709_v46 }
  0xdc   : > { %3177 = vmatprep.subr.bf16.mxu1 %v3769_v1  ;;  %2014 = vmatpush1.bf16.msra.mxu0 %v3402_v13  ;;  %v871_v53 = vpack.c.bf16 %v837_v52, %v836_v51  ;;  %v3409_v54 = vld [vmem:[#allocation11 + $0xd0] sm:$0xff]   ;;  %v1363_v58 = vld [vmem:[#allocation2 + $0xed] sm:$0xff]  ;;  %v3411_v9 = vld [vmem:[#allocation11 + $0xd8] sm:$0xff]  }
  0xdd   : > { %1424 = vrot.lane.b32.xlu0 %v1381_v14, %s3770_s27  ;;  %v950_v14 = vpack.c.bf16 %v923_v57, %v922_v56  ;;  %vm474_vm1 = vcmp.gt.f32.partialorder %v442_v8, 0.0  ;;  %v506_v15 = vmul.f32 0.2, %v442_v8  ;;  %2015 = vmatprep.subr.bf16.mxu0 %v3769_v1  ;;  %v617_v55 = vld [vmem:[#allocation2] sm:$0xff]  ;;  %v952_v57 = vpack.c.bf16 %v927_v41, %v926_v40  ;;  %v1146_v59 = vld [vmem:[#allocation2 + $0xd4] sm:$0xff]  ;;  %v929_v7 = vld [vmem:[#allocation2 + $0xca] sm:$0xff] }
  0xde   : > { %1208 = vrot.lane.b32.xlu1 %v1165_v17, %s3770_s27  ;;  %v733_v17 = vpack.c.bf16 %v706_v3, %v705_v2  ;;  %v1362_v56 = vld [vmem:[#allocation2 + $0xe5] sm:$0xff]  ;;  %v1147_v60 = vld [vmem:[#allocation2 + $0xdc] sm:$0xff]  ;;  %889 = vst.msk [vmem:[#allocation3 + $0x30] sm:$0xff] %vm540_vm0, %v871_v53  ;;  %v619_v2 = vld [vmem:[#allocation2 + $0x10] sm:$0xff] }
  0xdf   : > { %3193 = vmatpush1.bf16.msra.mxu1 %v3403_v23  ;;  %v620_v3 = vld [vmem:[#allocation2 + $0x18] sm:$0xff]  ;;  %v928_v6 = vld [vmem:[#allocation2 + $0xc2] sm:$0xff]  ;;  %v839_v11 = vld [vmem:[#allocation2 + $0x2a] sm:$0xff]  ;;  %v1386_v12 = vpack.c.bf16 %v1363_v58, %v1362_v56 }
  0xe0   : > { %3178 = vmatprep.subr.bf16.mxu1 %v3769_v1  ;;  %2016 = vmatpush1.bf16.msra.mxu0 %v3404_v30  ;;  %v838_v10 = vld [vmem:[#allocation2 + $0x22] sm:$0xff]  ;;  %v711_v13 = vld [vmem:[#allocation2 + $0xb1] sm:$0xff]  ;;  %v841_v23 = vld [vmem:[#allocation2 + $0x3a] sm:$0xff] }
  0xe1   : > { %990 = vrot.lane.b32.xlu0 %v948_v22, %s3770_s27  ;;  %v538_v22 = vsel %vm474_vm1, %v442_v8, %v506_v15  ;;  %2017 = vmatprep.subr.bf16.mxu0 %v3769_v1  ;;  %v654_v8 = vpack.c.bf16 %v620_v3, %v619_v2  ;;  %v872_v15 = vpack.c.bf16 %v839_v11, %v838_v10  ;;  %v3412_v16 = vld [vmem:[#allocation11 + $0x78] sm:$0xff]   ;;  %v3413_v21 = vld [vmem:[#allocation11 + $0xe0] sm:$0xff]   ;;  %v1364_v30 = vld [vmem:[#allocation2 + $0xf5] sm:$0xff] }
  0xe2   : > { %773 = vrot.lane.b32.xlu1 %v731_v24, %s3770_s27  ;;  %v924_v24 = vld [vmem:[#allocation2 + $0xa2] sm:$0xff]  ;;  %615 = vst.msk [vmem:[#allocation2 + $0x121] sm:$0xff] %vm540_vm0, %v538_v22  ;;  %v840_v22 = vld [vmem:[#allocation2 + $0x32] sm:$0xff] }
  0xe3   : > { %v951_v5 = vpack.c.bf16 %v925_v4, %v924_v24  ;;  %3194 = vmatpush1.bf16.msra.mxu1 %v3405_v32  ;;  %672 = vst.msk [vmem:[#allocation3 + $0x28] sm:$0xff] %vm540_vm0, %v654_v8  ;;  %v621_v18 = vld [vmem:[#allocation2 + $0x20] sm:$0xff]  ;;  %v622_v19 = vld [vmem:[#allocation2 + $0x28] sm:$0xff]  ;;  %890 = vst.msk [vmem:[#allocation3 + $0x58] sm:$0xff] %vm540_vm0, %v872_v15  ;;  %v873_v27 = vpack.c.bf16 %v841_v23, %v840_v22 }
  0xe4   : > { %3179 = vmatprep.subr.bf16.mxu1 %v3769_v1  ;;  %v655_v20 = vpack.c.bf16 %v622_v19, %v621_v18  ;;  %v623_v24 = vld [vmem:[#allocation2 + $0x30] sm:$0xff]  ;;  %v1148_v4 = vld [vmem:[#allocation2 + $0xe4] sm:$0xff]  ;;  %v3415_v47 = vld [vmem:[#allocation11 + $0xf0] sm:$0xff]  }
  0xe5   : > { %1426 = vrot.lane.b32.xlu0 %v1382_v33, %s3770_s27  ;;  %v539_v33 = vsel %vm475_vm2, %v443_v25, %v507_v29  ;;  %v624_v25 = vld [vmem:[#allocation2 + $0x38] sm:$0xff]  ;;  %v1060_v32 = vld [vmem:[#allocation2 + $0x63] sm:$0xff]  ;;  %891 = vst.msk [vmem:[#allocation3 + $0x80] sm:$0xff] %vm540_vm0, %v873_v27  ;;  %v4326_v27 = vld [vmem:[#allocation11 + $0x100] sm:$0xff]  }
  0xe6   : > { %1210 = vrot.lane.b32.xlu1 %v1166_v37, %s3770_s27  ;;  %616 = vst.msk [vmem:[#allocation2 + $0x129] sm:$0xff] %vm540_vm0, %v539_v33  ;;  %v3406_v37 = vld [vmem:[#allocation11 + $0x60] sm:$0xff]   ;;  %673 = vst.msk [vmem:[#allocation3 + $0x50] sm:$0xff] %vm540_vm0, %v655_v20  ;;  %v1365_v31 = vld [vmem:[#allocation2 + $0xfd] sm:$0xff] }
  0xe7   : > { %2018 = vmatpush1.bf16.msra.mxu0 %v3406_v37  ;;  %3195 = vmatpush1.bf16.msra.mxu1 %v3407_v42  ;;  %v1149_v33 = vld [vmem:[#allocation2 + $0xec] sm:$0xff]  ;;  %v1387_v38 = vpack.c.bf16 %v1365_v31, %v1364_v30  ;;  %v713_v39 = vld [vmem:[#allocation2 + $0xc1] sm:$0xff]  ;;  %v1150_v56 = vld [vmem:[#allocation2 + $0xf4] sm:$0xff] }
  0xe8   : > { %2019 = vmatprep.subr.bf16.mxu0 %v3769_v1  ;;  %3180 = vmatprep.subr.bf16.mxu1 %v3769_v1  ;;  %v714_v40 = vld [vmem:[#allocation2 + $0xc9] sm:$0xff]  ;;  %v625_v43 = vld [vmem:[#allocation2 + $0x40] sm:$0xff]  ;;  %v1171_v44 = vpack.c.bf16 %v1149_v33, %v1148_v4  ;;  %v1062_v53 = vld [vmem:[#allocation2 + $0x73] sm:$0xff] }
  0xe9   : > { %992 = vrot.lane.b32.xlu0 %v949_v45, %s3770_s27  ;;  %v1385_v45 = vpack.c.bf16 %v1361_v36, %v1360_v34  ;;  %v1061_v34 = vld [vmem:[#allocation2 + $0x6b] sm:$0xff]  ;;  %v931_v36 = vld [vmem:[#allocation2 + $0xda] sm:$0xff]  ;;  %v842_v41 = vld [vmem:[#allocation2 + $0x42] sm:$0xff] }
  0xea   : > { %775 = vrot.lane.b32.xlu1 %v732_v49, %s3770_s27  ;;  %v3408_v49 = vld [vmem:[#allocation11 + $0x68] sm:$0xff]   ;;  %v1091_v37 = vpack.c.bf16 %v1061_v34, %v1060_v32  ;;  %v843_v42 = vld [vmem:[#allocation2 + $0x4a] sm:$0xff]  ;;  %v932_v8 = vld [vmem:[#allocation2 + $0xe2] sm:$0xff] }
  0xeb   : > { %2020 = vmatpush1.bf16.msra.mxu0 %v3408_v49  ;;  %3196 = vmatpush1.bf16.msra.mxu1 %v3409_v54  ;;  %v626_v46 = vld [vmem:[#allocation2 + $0x48] sm:$0xff]  ;;  %v628_v3 = vld [vmem:[#allocation2 + $0x58] sm:$0xff] }
  0xec   : > { %2021 = vmatprep.subr.bf16.mxu0 %v3769_v1  ;;  %3181 = vmatprep.subr.bf16.mxu1 %v3769_v1  ;;  %1109 = vst.msk [vmem:[#allocation3 + $0xd8] sm:$0xff] %vm540_vm0, %v1091_v37  ;;  %v657_v48 = vpack.c.bf16 %v626_v46, %v625_v43  ;;  %v1278_v49 = vld [vmem:[#allocation2 + $0x84] sm:$0xff]  ;;  %v716_v15 = vld [vmem:[#allocation2 + $0xd9] sm:$0xff]  ;;  %v1153_v32 = vld [vmem:[#allocation2 + $0x10c] sm:$0xff] }
  0xed   : > { %1428 = vrot.lane.b32.xlu0 %v1383_v61, %s3770_s27  ;;  %v618_v61 = vld [vmem:[#allocation2 + $0x8] sm:$0xff]  ;;  %v1369_v30 = vld [vmem:[#allocation2 + $0x11d] sm:$0xff]  ;;  %v1066_v33 = vld [vmem:[#allocation2 + $0x93] sm:$0xff] }
  0xee   : > { %1212 = vrot.lane.b32.xlu1 %v1167_v0, %s3770_s27  ;;  %v653_v63 = vpack.c.bf16 %v618_v61, %v617_v55  ;;  %v3410_v0 = vld [vmem:[#allocation11 + $0x70] sm:$0xff]   ;;  %v1366_v51 = vld [vmem:[#allocation2 + $0x105] sm:$0xff]  ;;  %v1367_v55 = vld [vmem:[#allocation2 + $0x10d] sm:$0xff]  ;;  %675 = vst.msk [vmem:[#allocation3 + $0xa0] sm:$0xff] %vm540_vm0, %v657_v48 }
  0xef   : > { %2022 = vmatpush1.bf16.msra.mxu0 %v3410_v0  ;;  %3197 = vmatpush1.bf16.msra.mxu1 %v3411_v9  ;;  %v3416_v58 = vld [vmem:[#allocation11 + $0xf8] sm:$0xff]   ;;  %v627_v0 = vld [vmem:[#allocation2 + $0x50] sm:$0xff]  ;;  %v1067_v34 = vld [vmem:[#allocation2 + $0x9b] sm:$0xff] }
  0xf0   : > { %671 = vst.msk [vmem:[#allocation3] sm:$0xff] %vm540_vm0, %v653_v63  ;;  %2023 = vmatprep.subr.bf16.mxu0 %v3769_v1  ;;  %3182 = vmatprep.subr.bf16.mxu1 %v3769_v1  ;;  %v845_v63 = vld [vmem:[#allocation2 + $0x5a] sm:$0xff]  ;;  %v933_v9 = vld [vmem:[#allocation2 + $0xea] sm:$0xff]  ;;  %v658_v10 = vpack.c.bf16 %v628_v3, %v627_v0  ;;  %v846_v19 = vld [vmem:[#allocation2 + $0x62] sm:$0xff]  ;;  %v1094_v37 = vpack.c.bf16 %v1067_v34, %v1066_v33 }
  0xf1   : > { %994 = vrot.lane.b32.xlu0 %v950_v14, %s3770_s27  ;;  %v712_v14 = vld [vmem:[#allocation2 + $0xb9] sm:$0xff]  ;;  %v847_v20 = vld [vmem:[#allocation2 + $0x6a] sm:$0xff] }
  0xf2   : > { %777 = vrot.lane.b32.xlu1 %v733_v17, %s3770_s27  ;;  %v1170_v17 = vpack.c.bf16 %v1147_v60, %v1146_v59  ;;  %v736_v29 = vpack.c.bf16 %v712_v14, %v711_v13  ;;  %v1063_v59 = vld [vmem:[#allocation2 + $0x7b] sm:$0xff]  ;;  %v737_v60 = vpack.c.bf16 %v714_v40, %v713_v39  ;;  %v1388_v13 = vpack.c.bf16 %v1367_v55, %v1366_v51  ;;  %v715_v14 = vld [vmem:[#allocation2 + $0xd1] sm:$0xff]  ;;  %v630_v23 = vld [vmem:[#allocation2 + $0x68] sm:$0xff] }
  0xf3   : > { %2024 = vmatpush1.bf16.msra.mxu0 %v3412_v16  ;;  %3198 = vmatpush1.bf16.msra.mxu1 %v3413_v21  ;;  %v1092_v61 = vpack.c.bf16 %v1063_v59, %v1062_v53  ;;  %v1065_v16 = vld [vmem:[#allocation2 + $0x8b] sm:$0xff]  ;;  %676 = vst.msk [vmem:[#allocation3 + $0xc8] sm:$0xff] %vm540_vm0, %v658_v10  ;;  %v629_v21 = vld [vmem:[#allocation2 + $0x60] sm:$0xff]  ;;  %v876_v22 = vpack.c.bf16 %v847_v20, %v846_v19  ;;  %v1284_v46 = vld [vmem:[#allocation2 + $0xb4] sm:$0xff] }
  0xf4   : > { %2170 = vmatprep.subr.bf16.mxu0 %v3769_v1  ;;  %3183 = vmatprep.subr.bf16.mxu1 %v3769_v1  ;;  %v1152_v31 = vld [vmem:[#allocation2 + $0x104] sm:$0xff]  ;;  %v848_v39 = vld [vmem:[#allocation2 + $0x72] sm:$0xff]  ;;  %v849_v40 = vld [vmem:[#allocation2 + $0x7a] sm:$0xff]  ;;  %1112 = vst.msk [vmem:[#allocation3 + $0x150] sm:$0xff] %vm540_vm0, %v1094_v37 }
  0xf5   : > { %1430 = vrot.lane.b32.xlu0 %v1384_v26, %s3770_s27  ;;  %v953_v26 = vpack.c.bf16 %v929_v7, %v928_v6  ;;  %v1280_v6 = vld [vmem:[#allocation2 + $0x94] sm:$0xff]  ;;  %v1281_v7 = vld [vmem:[#allocation2 + $0x9c] sm:$0xff]  ;;  %1110 = vst.msk [vmem:[#allocation3 + $0x100] sm:$0xff] %vm540_vm0, %v1092_v61  ;;  %894 = vst.msk [vmem:[#allocation3 + $0xf8] sm:$0xff] %vm540_vm0, %v876_v22 }
  0xf6   : > { %1214 = vrot.lane.b32.xlu1 %v1168_v28, %s3770_s27  ;;  %v656_v28 = vpack.c.bf16 %v624_v25, %v623_v24  ;;  %v1309_v11 = vpack.c.bf16 %v1281_v7, %v1280_v6  ;;  %v1282_v24 = vld [vmem:[#allocation2 + $0xa4] sm:$0xff]  ;;  %v1283_v25 = vld [vmem:[#allocation2 + $0xac] sm:$0xff]  ;;  %v935_v43 = vld [vmem:[#allocation2 + $0xfa] sm:$0xff] }
  0xf7   : > { %v1310_v4 = vpack.c.bf16 %v1283_v25, %v1282_v24  ;;  %v1068_v53 = vld [vmem:[#allocation2 + $0xa3] sm:$0xff]  ;;  %v1069_v55 = vld [vmem:[#allocation2 + $0xab] sm:$0xff]  ;;  %v636_v25 = vld [vmem:[#allocation2 + $0x98] sm:$0xff] }
  0xf8   : > { %674 = vst.msk [vmem:[#allocation3 + $0x78] sm:$0xff] %vm540_vm0, %v656_v28  ;;  %1327 = vst.msk [vmem:[#allocation3 + $0x130] sm:$0xff] %vm540_vm0, %v1309_v11  ;;  %v955_v28 = vpack.c.bf16 %v933_v9, %v932_v8  ;;  %v851_v61 = vld [vmem:[#allocation2 + $0x8a] sm:$0xff]  ;;  %v1154_v9 = vld [vmem:[#allocation2 + $0x114] sm:$0xff] }
  0xf9   : > { %996 = vrot.lane.b32.xlu0 %v951_v5, %s3770_s27  ;;  %v3414_v5 = vld [vmem:[#allocation11 + $0xe8] sm:$0xff]   ;;  %1328 = vst.msk [vmem:[#allocation3 + $0x158] sm:$0xff] %vm540_vm0, %v1310_v4  ;;  %v634_v0 = vld [vmem:[#allocation2 + $0x88] sm:$0xff]  ;;  %v1155_v10 = vld [vmem:[#allocation2 + $0x11c] sm:$0xff] }
  0xfa   : > { %779 = vrot.lane.b32.xlu1 %v734_v35, %s3770_s27  ;;  %v930_v35 = vld [vmem:[#allocation2 + $0xd2] sm:$0xff]  ;;  %3199 = vmatpush1.bf16.msra.mxu1 %v3414_v5  ;;  %v738_v5 = vpack.c.bf16 %v716_v15, %v715_v14  ;;  %v1370_v7 = vld [vmem:[#allocation2 + $0x125] sm:$0xff]  ;;  %v1071_v15 = vld [vmem:[#allocation2 + $0xbb] sm:$0xff] }
  0xfb   : > { %3184 = vmatprep.subr.bf16.mxu1 %v3769_v1  ;;  %v954_v54 = vpack.c.bf16 %v931_v36, %v930_v35  ;;  %v1124_v35 = vld [vmem:[#allocation2 + $0x24] sm:$0xff]  ;;  %v1125_v36 = vld [vmem:[#allocation2 + $0x2c] sm:$0xff]  ;;  %v1289_v4 = vld [vmem:[#allocation2 + $0xdc] sm:$0xff] }
  0xfc   : > { %v1287_v3 = vld [vmem:[#allocation2 + $0xcc] sm:$0xff]  ;;  %v1072_v33 = vld [vmem:[#allocation2 + $0xc3] sm:$0xff]  ;;  %v720_v37 = vld [vmem:[#allocation2 + $0xf9] sm:$0xff] }
  0xfd   : > { %1432 = vrot.lane.b32.xlu0 %v1385_v45, %s3770_s27  ;;  %v874_v45 = vpack.c.bf16 %v843_v42, %v842_v41  ;;  %v631_v41 = vld [vmem:[#allocation2 + $0x70] sm:$0xff] }
  0xfe   : > { %1216 = vrot.lane.b32.xlu1 %v1169_v50, %s3770_s27  ;;  %v1279_v50 = vld [vmem:[#allocation2 + $0x8c] sm:$0xff]  ;;  %3200 = vmatpush1.bf16.msra.mxu1 %v3415_v47  ;;  %v1285_v47 = vld [vmem:[#allocation2 + $0xbc] sm:$0xff] }
  0xff   : > { %892 = vst.msk [vmem:[#allocation3 + $0xa8] sm:$0xff] %vm540_vm0, %v874_v45  ;;  %v1308_v52 = vpack.c.bf16 %v1279_v50, %v1278_v49  ;;  %3185 = vmatprep.subr.bf16.mxu1 %v3769_v1  ;;  %v934_v42 = vld [vmem:[#allocation2 + $0xf2] sm:$0xff]  ;;  %v717_v49 = vld [vmem:[#allocation2 + $0xe1] sm:$0xff]  ;;  %v718_v50 = vld [vmem:[#allocation2 + $0xe9] sm:$0xff] }
 0x100   : > { %v632_v45 = vld [vmem:[#allocation2 + $0x78] sm:$0xff]  ;;  %v956_v6 = vpack.c.bf16 %v935_v43, %v934_v42  ;;  %v1371_v8 = vld [vmem:[#allocation2 + $0x12d] sm:$0xff]  ;;  %v739_v14 = vpack.c.bf16 %v718_v50, %v717_v49  ;;  %v854_v43 = vld [vmem:[#allocation2 + $0xa2] sm:$0xff] }
 0x101   : > { %998 = vrot.lane.b32.xlu0 %v952_v57, %s3770_s27  ;;  %v1151_v57 = vld [vmem:[#allocation2 + $0xfc] sm:$0xff]  ;;  %1326 = vst.msk [vmem:[#allocation3 + $0x108] sm:$0xff] %vm540_vm0, %v1308_v52  ;;  %v660_v51 = vpack.c.bf16 %v632_v45, %v631_v41  ;;  %v1311_v52 = vpack.c.bf16 %v1285_v47, %v1284_v46  ;;  %v852_v20 = vld [vmem:[#allocation2 + $0x92] sm:$0xff]  ;;  %v4371_v47 = vld [vmem:[#allocation2 + $0x124] sm:$0xff] }
 0x102   : > { %781 = vrot.lane.b32.xlu1 %v735_v62, %s3770_s27  ;;  %v844_v62 = vld [vmem:[#allocation2 + $0x52] sm:$0xff]  ;;  %3201 = vmatpush1.bf16.msra.mxu1 %v3416_v58  ;;  %v1095_v58 = vpack.c.bf16 %v1069_v55, %v1068_v53  ;;  %v4368_v42 = vld [vmem:[#allocation2 + $0x13d] sm:$0xff]  ;;  %v638_v50 = vld [vmem:[#allocation2 + $0xa8] sm:$0xff] }
 0x103   : > { %v875_v2 = vpack.c.bf16 %v845_v63, %v844_v62  ;;  %3126 = vmatprep.subr.bf16.mxu1 %v4326_v27  ;;  %678 = vst.msk [vmem:[#allocation3 + $0x118] sm:$0xff] %vm540_vm0, %v660_v51  ;;  %1329 = vst.msk [vmem:[#allocation3 + $0x180] sm:$0xff] %vm540_vm0, %v1311_v52  ;;  %v633_v62 = vld [vmem:[#allocation2 + $0x80] sm:$0xff]  ;;  %v635_v22 = vld [vmem:[#allocation2 + $0x90] sm:$0xff] }
 0x104   : > { %1113 = vst.msk [vmem:[#allocation3 + $0x178] sm:$0xff] %vm540_vm0, %v1095_v58  ;;  %v661_v11 = vpack.c.bf16 %v634_v0, %v633_v62  ;;  %v1073_v34 = vld [vmem:[#allocation2 + $0xcb] sm:$0xff]  ;;  %v4366_v41 = vld [vmem:[#allocation2 + $0x135] sm:$0xff]  ;;  %v637_v45 = vld [vmem:[#allocation2 + $0xa0] sm:$0xff] }
 0x105   : > { %1434 = vrot.lane.b32.xlu0 %v1386_v12, %s3770_s27  ;;  %v1064_v12 = vld [vmem:[#allocation2 + $0x83] sm:$0xff]  ;;  %893 = vst.msk [vmem:[#allocation3 + $0xd0] sm:$0xff] %vm540_vm0, %v875_v2  ;;  %v1291_v52 = vld [vmem:[#allocation2 + $0xec] sm:$0xff] }
 0x106   : > { %1218 = vrot.lane.b32.xlu1 %v1170_v17, %s3770_s27  ;;  %v1172_v17 = vpack.c.bf16 %v1151_v57, %v1150_v56  ;;  %v1093_v18 = vpack.c.bf16 %v1065_v16, %v1064_v12  ;;  %v1126_v56 = vld [vmem:[#allocation2 + $0x34] sm:$0xff]  ;;  %v1127_v57 = vld [vmem:[#allocation2 + $0x3c] sm:$0xff]  ;;  %v1286_v2 = vld [vmem:[#allocation2 + $0xc4] sm:$0xff]  ;;  %679 = vst.msk [vmem:[#allocation3 + $0x140] sm:$0xff] %vm540_vm0, %v661_v11 }
 0x107   : > { %v4344_v59 = vpack.c.bf16 %v1127_v57, %v1126_v56  ;;  %v1312_v12 = vpack.c.bf16 %v1287_v3, %v1286_v2  ;;  %v1128_v16 = vld [vmem:[#allocation2 + $0x44] sm:$0xff]  ;;  %v1074_v56 = vld [vmem:[#allocation2 + $0xd3] sm:$0xff]  ;;  %v1075_v57 = vld [vmem:[#allocation2 + $0xdb] sm:$0xff] }
 0x108   : > { %1111 = vst.msk [vmem:[#allocation3 + $0x128] sm:$0xff] %vm540_vm0, %v1093_v18  ;;  %v1290_v51 = vld [vmem:[#allocation2 + $0xe4] sm:$0xff]  ;;  %v856_v58 = vld [vmem:[#allocation2 + $0xb2] sm:$0xff]  ;;  %v4382_v2 = vld [vmem:[#allocation2 + $0x11a] sm:$0xff] }
 0x109   : > { %1000 = vrot.lane.b32.xlu0 %v953_v26, %s3770_s27  ;;  %v659_v26 = vpack.c.bf16 %v630_v23, %v629_v21  ;;  %1321 = vst.msk [vmem:[#allocation3 + $0x40] sm:$0xff] %vm540_vm0, %v4344_v59  ;;  %1330 = vst.msk [vmem:[#allocation3 + $0x1a8] sm:$0xff] %vm540_vm0, %v1312_v12  ;;  %v853_v21 = vld [vmem:[#allocation2 + $0x9a] sm:$0xff]  ;;  %v936_v23 = vld [vmem:[#allocation2 + $0x102] sm:$0xff]  ;;  %v1314_v55 = vpack.c.bf16 %v1291_v52, %v1290_v51 }
 0x10a   : > { %783 = vrot.lane.b32.xlu1 %v736_v29, %s3770_s27  ;;  %v1368_v29 = vld [vmem:[#allocation2 + $0x115] sm:$0xff]  ;;  %v879_v24 = vpack.c.bf16 %v853_v21, %v852_v20  ;;  %v4389_v11 = vld [vmem:[#allocation2 + $0x101] sm:$0xff]  ;;  %v4391_v12 = vld [vmem:[#allocation2 + $0x109] sm:$0xff] }
 0x10b   : > { %677 = vst.msk [vmem:[#allocation3 + $0xf0] sm:$0xff] %vm540_vm0, %v659_v26  ;;  %v1389_v48 = vpack.c.bf16 %v1369_v30, %v1368_v29  ;;  %v1288_v26 = vld [vmem:[#allocation2 + $0xd4] sm:$0xff]  ;;  %v937_v29 = vld [vmem:[#allocation2 + $0x10a] sm:$0xff]  ;;  %1332 = vst.msk [vmem:[#allocation3 + $0x1f8] sm:$0xff] %vm540_vm0, %v1314_v55 }
 0x10c   : > { %v719_v30 = vld [vmem:[#allocation2 + $0xf1] sm:$0xff]  ;;  %897 = vst.msk [vmem:[#allocation3 + $0x170] sm:$0xff] %vm540_vm0, %v879_v24  ;;  %v957_v46 = vpack.c.bf16 %v937_v29, %v936_v23  ;;  %v641_v21 = vld [vmem:[#allocation2 + $0xc0] sm:$0xff] }
 0x10d   : > { %1436 = vrot.lane.b32.xlu0 %v1387_v38, %s3770_s27  ;;  %v4334_v38 = vpack.c.bf16 %v1125_v36, %v1124_v35  ;;  %v1130_v35 = vld [vmem:[#allocation2 + $0x54] sm:$0xff]  ;;  %v1131_v36 = vld [vmem:[#allocation2 + $0x5c] sm:$0xff]  ;;  %v740_v53 = vpack.c.bf16 %v720_v37, %v719_v30  ;;  %v1294_v23 = vld [vmem:[#allocation2 + $0x104] sm:$0xff] }
 0x10e   : > { %1220 = vrot.lane.b32.xlu1 %v1171_v44, %s3770_s27  ;;  %v877_v44 = vpack.c.bf16 %v849_v40, %v848_v39  ;;  %v1097_v39 = vpack.c.bf16 %v1073_v34, %v1072_v33  ;;  %v4364_v40 = vpack.c.bf16 %v1131_v36, %v1130_v35  ;;  %v639_v62 = vld [vmem:[#allocation2 + $0xb0] sm:$0xff]  ;;  %v861_v33 = vld [vmem:[#allocation2 + $0xda] sm:$0xff]  ;;  %v4421_v51 = vld [vmem:[#allocation2 + $0x25] sm:$0xff] }
 0x10f   : > { %1320 = vst.msk [vmem:[#allocation3 + $0x18] sm:$0xff] %vm540_vm0, %v4334_v38  ;;  %v4380_v0 = vld [vmem:[#allocation2 + $0x112] sm:$0xff]  ;;  %v4402_v29 = vld [vmem:[#allocation2 + $0x12a] sm:$0xff]  ;;  %v645_v55 = vld [vmem:[#allocation2 + $0xe0] sm:$0xff] }
 0x110   : > { %895 = vst.msk [vmem:[#allocation3 + $0x120] sm:$0xff] %vm540_vm0, %v877_v44  ;;  %v855_v44 = vld [vmem:[#allocation2 + $0xaa] sm:$0xff]  ;;  %1115 = vst.msk [vmem:[#allocation3 + $0x1c8] sm:$0xff] %vm540_vm0, %v1097_v39  ;;  %v4411_v35 = vld [vmem:[#allocation2 + $0x119] sm:$0xff]  ;;  %v741_v39 = vpack.c.bf16 %v4391_v12, %v4389_v11 }
 0x111   : > { %1002 = vrot.lane.b32.xlu0 %v954_v54, %s3770_s27  ;;  %v1173_v54 = vpack.c.bf16 %v1153_v32, %v1152_v31  ;;  %v662_v31 = vpack.c.bf16 %v636_v25, %v635_v22  ;;  %v1313_v32 = vpack.c.bf16 %v1289_v4, %v1288_v26  ;;  %v880_v49 = vpack.c.bf16 %v855_v44, %v854_v43  ;;  %v642_v22 = vld [vmem:[#allocation2 + $0xc8] sm:$0xff]  ;;  %v1078_v26 = vld [vmem:[#allocation2 + $0xf3] sm:$0xff]  ;;  %v1079_v4 = vld [vmem:[#allocation2 + $0xfb] sm:$0xff] }
 0x112   : > { %785 = vrot.lane.b32.xlu1 %v737_v60, %s3770_s27  ;;  %v850_v60 = vld [vmem:[#allocation2 + $0x82] sm:$0xff]  ;;  %1323 = vst.msk [vmem:[#allocation3 + $0x90] sm:$0xff] %vm540_vm0, %v4364_v40  ;;  %v665_v24 = vpack.c.bf16 %v642_v22, %v641_v21  ;;  %v1295_v25 = vld [vmem:[#allocation2 + $0x10c] sm:$0xff] }
 0x113   : > { %v878_v63 = vpack.c.bf16 %v851_v61, %v850_v60  ;;  %680 = vst.msk [vmem:[#allocation3 + $0x168] sm:$0xff] %vm540_vm0, %v662_v31  ;;  %1331 = vst.msk [vmem:[#allocation3 + $0x1d0] sm:$0xff] %vm540_vm0, %v1313_v32  ;;  %v1098_v60 = vpack.c.bf16 %v1075_v57, %v1074_v56  ;;  %v857_v61 = vld [vmem:[#allocation2 + $0xba] sm:$0xff]  ;;  %v1316_v30 = vpack.c.bf16 %v1295_v25, %v1294_v23  ;;  %v860_v32 = vld [vmem:[#allocation2 + $0xd2] sm:$0xff] }
 0x114   : > { %898 = vst.msk [vmem:[#allocation3 + $0x198] sm:$0xff] %vm540_vm0, %v880_v49  ;;  %v881_v3 = vpack.c.bf16 %v857_v61, %v856_v58  ;;  %v1100_v31 = vpack.c.bf16 %v1079_v4, %v1078_v26  ;;  %v4409_v34 = vld [vmem:[#allocation2 + $0x111] sm:$0xff]  ;;  %683 = vst.msk [vmem:[#allocation3 + $0x1e0] sm:$0xff] %vm540_vm0, %v665_v24  ;;  %v883_v36 = vpack.c.bf16 %v861_v33, %v860_v32  ;;  %v1297_v43 = vld [vmem:[#allocation2 + $0x11c] sm:$0xff] }
 0x115   : > { %1438 = vrot.lane.b32.xlu0 %v1388_v13, %s3770_s27  ;;  %v1070_v13 = vld [vmem:[#allocation2 + $0xb3] sm:$0xff]  ;;  %896 = vst.msk [vmem:[#allocation3 + $0x148] sm:$0xff] %vm540_vm0, %v878_v63  ;;  %1116 = vst.msk [vmem:[#allocation3 + $0x1f0] sm:$0xff] %vm540_vm0, %v1098_v60  ;;  %v862_v49 = vld [vmem:[#allocation2 + $0xe2] sm:$0xff] }
 0x116   : > { %1222 = vrot.lane.b32.xlu1 %v1172_v17, %s3770_s27  ;;  %v1129_v17 = vld [vmem:[#allocation2 + $0x4c] sm:$0xff]  ;;  %v1096_v18 = vpack.c.bf16 %v1071_v15, %v1070_v13  ;;  %v640_v63 = vld [vmem:[#allocation2 + $0xb8] sm:$0xff]  ;;  %v858_v15 = vld [vmem:[#allocation2 + $0xc2] sm:$0xff]  ;;  %899 = vst.msk [vmem:[#allocation3 + $0x1c0] sm:$0xff] %vm540_vm0, %v881_v3  ;;  %v742_v3 = vpack.c.bf16 %v4411_v35, %v4409_v34 }
 0x117   : > { %v4354_v19 = vpack.c.bf16 %v1129_v17, %v1128_v16  ;;  %v859_v16 = vld [vmem:[#allocation2 + $0xca] sm:$0xff]  ;;  %1334 = vst.msk [vmem:[#allocation3 + $0x248] sm:$0xff] %vm540_vm0, %v1316_v30  ;;  %1118 = vst.msk [vmem:[#allocation3 + $0x240] sm:$0xff] %vm540_vm0, %v1100_v31  ;;  %v4429_v58 = vld [vmem:[#allocation2 + $0x14] sm:$0xff] }
 0x118   : > { %1114 = vst.msk [vmem:[#allocation3 + $0x1a0] sm:$0xff] %vm540_vm0, %v1096_v18  ;;  %v882_v20 = vpack.c.bf16 %v859_v16, %v858_v15  ;;  %v643_v37 = vld [vmem:[#allocation2 + $0xd0] sm:$0xff]  ;;  %901 = vst.msk [vmem:[#allocation3 + $0x210] sm:$0xff] %vm540_vm0, %v883_v36  ;;  %v646_v56 = vld [vmem:[#allocation2 + $0xe8] sm:$0xff] }
 0x119   : > { %1004 = vrot.lane.b32.xlu0 %v955_v28, %s3770_s27  ;;  %v1390_v28 = vpack.c.bf16 %v1371_v8, %v1370_v7  ;;  %1322 = vst.msk [vmem:[#allocation3 + $0x68] sm:$0xff] %vm540_vm0, %v4354_v19  ;;  %v1292_v7 = vld [vmem:[#allocation2 + $0xf4] sm:$0xff]  ;;  %v1293_v8 = vld [vmem:[#allocation2 + $0xfc] sm:$0xff]  ;;  %v1085_v21 = vld [vmem:[#allocation2 + $0x12b] sm:$0xff] }
 0x11a   : > { %787 = vrot.lane.b32.xlu1 %v738_v5, %s3770_s27  ;;  %v1174_v5 = vpack.c.bf16 %v1155_v10, %v1154_v9  ;;  %v1076_v9 = vld [vmem:[#allocation2 + $0xe3] sm:$0xff]  ;;  %v1391_v10 = vpack.c.bf16 %v4368_v42, %v4366_v41  ;;  %v1315_v13 = vpack.c.bf16 %v1293_v8, %v1292_v7  ;;  %900 = vst.msk [vmem:[#allocation3 + $0x1e8] sm:$0xff] %vm540_vm0, %v882_v20  ;;  %v644_v41 = vld [vmem:[#allocation2 + $0xd8] sm:$0xff]  ;;  %v4423_v52 = vld [vmem:[#allocation2 + $0x2d] sm:$0xff] }
 0x11b   : > { %v1296_v42 = vld [vmem:[#allocation2 + $0x114] sm:$0xff]  ;;  %v4431_v60 = vld [vmem:[#allocation2 + $0x1c] sm:$0xff]  ;;  %v1374_v22 = vpack.c.bf16 %v4423_v52, %v4421_v51 }
 0x11c   : > { %1333 = vst.msk [vmem:[#allocation3 + $0x220] sm:$0xff] %vm540_vm0, %v1315_v13  ;;  %v1083_v7 = vld [vmem:[#allocation2 + $0x11b] sm:$0xff]  ;;  %v864_v8 = vld [vmem:[#allocation2 + $0xf2] sm:$0xff]  ;;  %v1084_v20 = vld [vmem:[#allocation2 + $0x123] sm:$0xff]  ;;  %v1158_v4 = vpack.c.bf16 %v4431_v60, %v4429_v58 }
 0x11d   : > { %1440 = vrot.lane.b32.xlu0 %v1389_v48, %s3770_s27  ;;  %v4373_v48 = vld [vmem:[#allocation2 + $0x12c] sm:$0xff]  ;;  %v1300_v15 = vld [vmem:[#allocation2 + $0x134] sm:$0xff]  ;;  %v4449_v24 = vld [vmem:[#allocation2 + $0x3d] sm:$0xff]  ;;  %v1103_v26 = vpack.c.bf16 %v1085_v21, %v1084_v20 }
 0x11e   : > { %1224 = vrot.lane.b32.xlu1 %v1173_v54, %s3770_s27  ;;  %v663_v54 = vpack.c.bf16 %v638_v50, %v637_v45  ;;  %v1175_v17 = vpack.c.bf16 %v4373_v48, %v4371_v47  ;;  %v666_v45 = vpack.c.bf16 %v644_v41, %v643_v37  ;;  %v1080_v47 = vld [vmem:[#allocation2 + $0x103] sm:$0xff]  ;;  %v1081_v48 = vld [vmem:[#allocation2 + $0x10b] sm:$0xff]  ;;  %v4447_v23 = vld [vmem:[#allocation2 + $0x35] sm:$0xff] }
 0x11f   : > { %v647_v13 = vld [vmem:[#allocation2 + $0xf0] sm:$0xff]  ;;  %1121 = vst.msk [vmem:[#allocation3 + $0x2b8] sm:$0xff] %vm540_vm0, %v1103_v26  ;;  %v866_v34 = vld [vmem:[#allocation2 + $0x102] sm:$0xff] }
 0x120   : > { %681 = vst.msk [vmem:[#allocation3 + $0x190] sm:$0xff] %vm540_vm0, %v663_v54  ;;  %v863_v54 = vld [vmem:[#allocation2 + $0xea] sm:$0xff]  ;;  %684 = vst.msk [vmem:[#allocation3 + $0x208] sm:$0xff] %vm540_vm0, %v666_v45  ;;  %v1484_v30 = vld [vmem:[#allocation2 + $0x36] sm:$0xff] }
 0x121   : > { %1006 = vrot.lane.b32.xlu0 %v956_v6, %s3770_s27  ;;  %v664_v6 = vpack.c.bf16 %v640_v63, %v639_v62  ;;  %v884_v61 = vpack.c.bf16 %v863_v54, %v862_v49  ;;  %v667_v62 = vpack.c.bf16 %v646_v56, %v645_v55  ;;  %v1298_v63 = vld [vmem:[#allocation2 + $0x124] sm:$0xff]  ;;  %v1488_v51 = vld [vmem:[#allocation2 + $0x56] sm:$0xff] }
 0x122   : > { %789 = vrot.lane.b32.xlu1 %v739_v14, %s3770_s27  ;;  %v1077_v14 = vld [vmem:[#allocation2 + $0xeb] sm:$0xff]  ;;  %v649_v41 = vld [vmem:[#allocation2 + $0x100] sm:$0xff]  ;;  %v1050_v21 = vld [vmem:[#allocation2 + $0x13] sm:$0xff] }
 0x123   : > { %682 = vst.msk [vmem:[#allocation3 + $0x1b8] sm:$0xff] %vm540_vm0, %v664_v6  ;;  %v1099_v18 = vpack.c.bf16 %v1077_v14, %v1076_v9  ;;  %v865_v9 = vld [vmem:[#allocation2 + $0xfa] sm:$0xff]  ;;  %902 = vst.msk [vmem:[#allocation3 + $0x238] sm:$0xff] %vm540_vm0, %v884_v61  ;;  %v650_v45 = vld [vmem:[#allocation2 + $0x108] sm:$0xff] }
 0x124   : > { %685 = vst.msk [vmem:[#allocation3 + $0x230] sm:$0xff] %vm540_vm0, %v667_v62  ;;  %v885_v12 = vpack.c.bf16 %v865_v9, %v864_v8  ;;  %v648_v14 = vld [vmem:[#allocation2 + $0xf8] sm:$0xff]  ;;  %v669_v49 = vpack.c.bf16 %v650_v45, %v649_v41  ;;  %v651_v58 = vld [vmem:[#allocation2 + $0x110] sm:$0xff]  ;;  %v1052_v45 = vld [vmem:[#allocation2 + $0x23] sm:$0xff] }
 0x125   : > { %1442 = vrot.lane.b32.xlu0 %v1390_v28, %s3770_s27  ;;  %v4400_v28 = vld [vmem:[#allocation2 + $0x122] sm:$0xff]  ;;  %1117 = vst.msk [vmem:[#allocation3 + $0x218] sm:$0xff] %vm540_vm0, %v1099_v18  ;;  %v652_v62 = vld [vmem:[#allocation2 + $0x118] sm:$0xff] }
 0x126   : > { %1226 = vrot.lane.b32.xlu1 %v1174_v5, %s3770_s27  ;;  %v958_v5 = vpack.c.bf16 %v4382_v2, %v4380_v0  ;;  %v959_v57 = vpack.c.bf16 %v4402_v29, %v4400_v28  ;;  %v1299_v0 = vld [vmem:[#allocation2 + $0x12c] sm:$0xff]  ;;  %v1301_v18 = vld [vmem:[#allocation2 + $0x13c] sm:$0xff]  ;;  %903 = vst.msk [vmem:[#allocation3 + $0x260] sm:$0xff] %vm540_vm0, %v885_v12  ;;  %687 = vst.msk [vmem:[#allocation3 + $0x280] sm:$0xff] %vm540_vm0, %v669_v49 }
 0x127   : > { %v1082_v2 = vld [vmem:[#allocation2 + $0x113] sm:$0xff]  ;;  %v1318_v6 = vpack.c.bf16 %v1299_v0, %v1298_v63  ;;  %v1319_v25 = vpack.c.bf16 %v1301_v18, %v1300_v15  ;;  %v1482_v28 = vld [vmem:[#allocation2 + $0x26] sm:$0xff]  ;;  %v1489_v52 = vld [vmem:[#allocation2 + $0x5e] sm:$0xff] }
 0x128   : > { %v1102_v11 = vpack.c.bf16 %v1083_v7, %v1082_v2  ;;  %v1483_v29 = vld [vmem:[#allocation2 + $0x2e] sm:$0xff]  ;;  %v1521_v56 = vpack.c.bf16 %v1489_v52, %v1488_v51  ;;  %v1490_v63 = vld [vmem:[#allocation2 + $0x66] sm:$0xff]  ;;  %v670_v2 = vpack.c.bf16 %v652_v62, %v651_v58  ;;  %v1493_v7 = vld [vmem:[#allocation2 + $0x7e] sm:$0xff] }
 0x129   : > { %1008 = vrot.lane.b32.xlu0 %v957_v46, %s3770_s27  ;;  %v1317_v46 = vpack.c.bf16 %v1297_v43, %v1296_v42  ;;  %1336 = vst.msk [vmem:[#allocation3 + $0x298] sm:$0xff] %vm540_vm0, %v1318_v6  ;;  %1337 = vst.msk [vmem:[#allocation3 + $0x2c0] sm:$0xff] %vm540_vm0, %v1319_v25  ;;  %v1518_v33 = vpack.c.bf16 %v1483_v29, %v1482_v28  ;;  %v4462_v42 = vld [vmem:[#allocation2 + $0x45] sm:$0xff]  ;;  %v4464_v43 = vld [vmem:[#allocation2 + $0x4d] sm:$0xff] }
 0x12a   : > { %791 = vrot.lane.b32.xlu1 %v740_v53, %s3770_s27  ;;  %v1101_v53 = vpack.c.bf16 %v1081_v48, %v1080_v47  ;;  %1120 = vst.msk [vmem:[#allocation3 + $0x290] sm:$0xff] %vm540_vm0, %v1102_v11  ;;  %v1487_v47 = vld [vmem:[#allocation2 + $0x4e] sm:$0xff]  ;;  %v1375_v48 = vpack.c.bf16 %v4449_v24, %v4447_v23  ;;  %1539 = vst.msk [vmem:[#allocation3 + $0x98] sm:$0xff] %vm540_vm0, %v1521_v56  ;;  %v1492_v6 = vld [vmem:[#allocation2 + $0x76] sm:$0xff]  ;;  %v1376_v8 = vpack.c.bf16 %v4464_v43, %v4462_v42 }
 0x12b   : > { %1335 = vst.msk [vmem:[#allocation3 + $0x270] sm:$0xff] %vm540_vm0, %v1317_v46  ;;  %1536 = vst.msk [vmem:[#allocation3 + $0x20] sm:$0xff] %vm540_vm0, %v1518_v33  ;;  %v1486_v46 = vld [vmem:[#allocation2 + $0x46] sm:$0xff]  ;;  %v1495_v12 = vld [vmem:[#allocation2 + $0x8e] sm:$0xff] }
 0x12c   : > { %1119 = vst.msk [vmem:[#allocation3 + $0x268] sm:$0xff] %vm540_vm0, %v1101_v53  ;;  %v868_v53 = vld [vmem:[#allocation2 + $0x112] sm:$0xff]  ;;  %v1494_v11 = vld [vmem:[#allocation2 + $0x86] sm:$0xff]  ;;  %688 = vst.msk [vmem:[#allocation3 + $0x2a8] sm:$0xff] %vm540_vm0, %v670_v2 }
 0x12d   : > { %1444 = vrot.lane.b32.xlu0 %v1391_v10, %s3770_s27  ;;  %v3493_v0 = vld [vmem:[#allocation11 + $0x80] sm:$0xff]   ;;  %v1344_v15 = vld [vmem:[#allocation2 + $0x55] sm:$0xff]  ;;  %v1497_v18 = vld [vmem:[#allocation2 + $0x9e] sm:$0xff] }
 0x12e   : > { %1228 = vrot.lane.b32.xlu1 %v1175_v17, %s3770_s27  ;;  %v668_v17 = vpack.c.bf16 %v648_v14, %v647_v13  ;;  %v1496_v13 = vld [vmem:[#allocation2 + $0x96] sm:$0xff]  ;;  %v1498_v33 = vld [vmem:[#allocation2 + $0xa6] sm:$0xff]  ;;  %v1505_v56 = vld [vmem:[#allocation2 + $0xde] sm:$0xff] }
 0x12f   : > { %v979_v44 = vpop.permute.xlu0 %978  ;;  %v3494_v24 = vld [vmem:[#allocation11 + $0x88] sm:$0xff]   ;;  %v3419_v51 = vld [vmem:[#allocation11 + $0x110] sm:$0xff]  }
 0x130   : > { %1032 = vst.msk [vmem:[#allocation3 + $0x8] sm:$0xff] %vm815_vm3, %v979_v44  ;;  %v981_v50 = vpop.permute.xlu1 %980 }
 0x131   : > { %1033 = vst.msk [vmem:[#allocation3 + $0x30] sm:$0xff] %vm815_vm3, %v981_v50  ;;  %1010 = vrot.lane.b32.xlu0 %v958_v5, %s3770_s27  ;;  %v1485_v5 = vld [vmem:[#allocation2 + $0x3e] sm:$0xff]  ;;  %v1520_v50 = vpack.c.bf16 %v1487_v47, %v1486_v46 }
 0x132   : > { %793 = vrot.lane.b32.xlu1 %v741_v39, %s3770_s27  ;;  %686 = vst.msk [vmem:[#allocation3 + $0x258] sm:$0xff] %vm540_vm0, %v668_v17  ;;  %v1519_v37 = vpack.c.bf16 %v1485_v5, %v1484_v30  ;;  %v867_v39 = vld [vmem:[#allocation2 + $0x10a] sm:$0xff]  ;;  %v1524_v17 = vpack.c.bf16 %v1495_v12, %v1494_v11  ;;  %v3499_v11 = vld [vmem:[#allocation11 + $0xb0] sm:$0xff]  }
 0x133   : > { %v762_v10 = vpop.permute.xlu0 %761  ;;  %v886_v44 = vpack.c.bf16 %v867_v39, %v866_v34  ;;  %1538 = vst.msk [vmem:[#allocation3 + $0x70] sm:$0xff] %vm540_vm0, %v1520_v50  ;;  %v1346_v30 = vld [vmem:[#allocation2 + $0x65] sm:$0xff]  ;;  %v1499_v5 = vld [vmem:[#allocation2 + $0xae] sm:$0xff]  ;;  %v1500_v34 = vld [vmem:[#allocation2 + $0xb6] sm:$0xff] }
 0x134   : > { %816 = vst.msk [vmem:[#allocation3] sm:$0xff] %vm815_vm3, %v762_v10  ;;  %v764_v16 = vpop.permute.xlu1 %763  ;;  %v1523_v10 = vpack.c.bf16 %v1493_v7, %v1492_v6  ;;  %v3496_v47 = vld [vmem:[#allocation11 + $0x98] sm:$0xff]   ;;  %v1055_v6 = vld [vmem:[#allocation2 + $0x3b] sm:$0xff] }
 0x135   : > { %817 = vst.msk [vmem:[#allocation3 + $0x28] sm:$0xff] %vm815_vm3, %v764_v16  ;;  %1012 = vrot.lane.b32.xlu0 %v959_v57, %s3770_s27  ;;  %v869_v57 = vld [vmem:[#allocation2 + $0x11a] sm:$0xff]  ;;  %v1506_v12 = vld [vmem:[#allocation2 + $0xe6] sm:$0xff] }
 0x136   : > { %795 = vrot.lane.b32.xlu1 %v742_v3, %s3770_s27  ;;  %1537 = vst.msk [vmem:[#allocation3 + $0x48] sm:$0xff] %vm540_vm0, %v1519_v37  ;;  %904 = vst.msk [vmem:[#allocation3 + $0x288] sm:$0xff] %vm540_vm0, %v886_v44  ;;  %v887_v61 = vpack.c.bf16 %v869_v57, %v868_v53  ;;  %v1491_v3 = vld [vmem:[#allocation2 + $0x6e] sm:$0xff]  ;;  %v1345_v16 = vld [vmem:[#allocation2 + $0x5d] sm:$0xff] }
 0x137   : > { %v983_v31 = vpop.permute.xlu0 %982  ;;  %v1555_v32 = vld [vmem:[#allocation3 + $0x8] sm:$0xff]  ;;  %v1522_v9 = vpack.c.bf16 %v1491_v3, %v1490_v63  ;;  %1541 = vst.msk [vmem:[#allocation3 + $0xe8] sm:$0xff] %vm540_vm0, %v1523_v10  ;;  %1542 = vst.msk [vmem:[#allocation3 + $0x110] sm:$0xff] %vm540_vm0, %v1524_v17  ;;  %v1377_v26 = vpack.c.bf16 %v1345_v16, %v1344_v15  ;;  %v3418_v44 = vld [vmem:[#allocation11 + $0x108] sm:$0xff]  }
 0x138   : > { %1034 = vst.msk [vmem:[#allocation3 + $0x58] sm:$0xff] %vm815_vm3, %v983_v31  ;;  %2025 = vmatprep.mubr.bf16.mxu0 %v1555_v32  ;;  %v766_v35 = vpop.permute.xlu1 %765  ;;  %v1560_v36 = vld [vmem:[#allocation3 + $0x30] sm:$0xff]  ;;  %v3495_v32 = vld [vmem:[#allocation11 + $0x90] sm:$0xff]   ;;  %v3498_v3 = vld [vmem:[#allocation11 + $0xa8] sm:$0xff]  }
 0x139   : > { %818 = vst.msk [vmem:[#allocation3 + $0x50] sm:$0xff] %vm815_vm3, %v766_v35  ;;  %1410 = vrot.lane.b32.xlu0 %v1374_v22, %s3770_s27  ;;  %v1525_v22 = vpack.c.bf16 %v1497_v18, %v1496_v13  ;;  %v1347_v31 = vld [vmem:[#allocation2 + $0x6d] sm:$0xff]  ;;  %v1501_v35 = vld [vmem:[#allocation2 + $0xbe] sm:$0xff]  ;;  %v1508_v15 = vld [vmem:[#allocation2 + $0xf6] sm:$0xff] }
 0x13a   : > { %1194 = vrot.lane.b32.xlu1 %v1158_v4, %s3770_s27  ;;  %905 = vst.msk [vmem:[#allocation3 + $0x2b0] sm:$0xff] %vm540_vm0, %v887_v61  ;;  %1540 = vst.msk [vmem:[#allocation3 + $0xc0] sm:$0xff] %vm540_vm0, %v1522_v9  ;;  %v1378_v39 = vpack.c.bf16 %v1347_v31, %v1346_v30  ;;  %v1527_v41 = vpack.c.bf16 %v1501_v35, %v1500_v34  ;;  %v1502_v53 = vld [vmem:[#allocation2 + $0xc6] sm:$0xff]  ;;  %v1507_v13 = vld [vmem:[#allocation2 + $0xee] sm:$0xff] }
 0x13b   : > { %v985_v54 = vpop.permute.xlu0 %984  ;;  %v1554_v55 = vld [vmem:[#allocation3] sm:$0xff]  ;;  %1543 = vst.msk [vmem:[#allocation3 + $0x138] sm:$0xff] %vm540_vm0, %v1525_v22  ;;  %v3501_v30 = vld [vmem:[#allocation11 + $0xc0] sm:$0xff]  }
 0x13c   : > { %1035 = vst.msk [vmem:[#allocation3 + $0x80] sm:$0xff] %vm815_vm3, %v985_v54  ;;  %2026 = vmatmul.mubr.bf16.vlgmr.msra.gmra.mrb[0].mxu0 %v1554_v55  ;;  %v768_v60 = vpop.permute.xlu1 %767  ;;  %v1559_v23 = vld [vmem:[#allocation3 + $0x28] sm:$0xff]  ;;  %v1503_v54 = vld [vmem:[#allocation2 + $0xce] sm:$0xff] }
 0x13d   : > { %2171 = vmatpush1.bf16.msra.mxu0 %v3493_v0  ;;  %819 = vst.msk [vmem:[#allocation3 + $0x78] sm:$0xff] %vm815_vm3, %v768_v60  ;;  %2033 = vmatprep.mubr.bf16.mxu0 %v1560_v36  ;;  %v1528_v55 = vpack.c.bf16 %v1503_v54, %v1502_v53  ;;  %v3420_v60 = vld [vmem:[#allocation11 + $0x118] sm:$0xff]   ;;  %v1054_v0 = vld [vmem:[#allocation2 + $0x33] sm:$0xff] }
 0x13e   : > { %2172 = vmatprep.subr.bf16.mxu0 %v3769_v1  ;;  %1412 = vrot.lane.b32.xlu0 %v1375_v48, %s3770_s27  ;;  %v1053_v48 = vld [vmem:[#allocation2 + $0x2b] sm:$0xff]  ;;  %1545 = vst.msk [vmem:[#allocation3 + $0x188] sm:$0xff] %vm540_vm0, %v1527_v41  ;;  %v1509_v16 = vld [vmem:[#allocation2 + $0xfe] sm:$0xff]  ;;  %v1516_v54 = vld [vmem:[#allocation2 + $0x136] sm:$0xff] }
 0x13f   : > { %v1421_v14 = vpop.permute.xlu0 %1420  ;;  %1196 = vrot.lane.b32.xlu1 %v4334_v38, %s3770_s27  ;;  %v1051_v38 = vld [vmem:[#allocation2 + $0x1b] sm:$0xff]  ;;  %v1565_v25 = vld [vmem:[#allocation3 + $0x58] sm:$0xff]  ;;  %v1087_v49 = vpack.c.bf16 %v1053_v48, %v1052_v45  ;;  %1546 = vst.msk [vmem:[#allocation3 + $0x1b0] sm:$0xff] %vm540_vm0, %v1528_v55  ;;  %v1510_v31 = vld [vmem:[#allocation2 + $0x106] sm:$0xff] }
 0x140   : > { %1469 = vst.msk [vmem:[#allocation3 + $0xe0] sm:$0xff] %vm815_vm3, %v1421_v14  ;;  %v1205_v20 = vpop.permute.xlu1 %1204  ;;  %v1086_v4 = vpack.c.bf16 %v1051_v38, %v1050_v21  ;;  %v1564_v46 = vld [vmem:[#allocation3 + $0x50] sm:$0xff]  ;;  %v1530_v14 = vpack.c.bf16 %v1507_v13, %v1506_v12  ;;  %v1517_v55 = vld [vmem:[#allocation2 + $0x13e] sm:$0xff] }
 0x141   : > { %1253 = vst.msk [vmem:[#allocation3 + $0xd8] sm:$0xff] %vm815_vm3, %v1205_v20  ;;  %2173 = vmatpush1.bf16.msra.mxu0 %v3494_v24  ;;  %v1531_v20 = vpack.c.bf16 %v1509_v16, %v1508_v15  ;;  %v3500_v38 = vld [vmem:[#allocation11 + $0xb8] sm:$0xff]   ;;  %v3507_v15 = vld [vmem:[#allocation11 + $0xf0] sm:$0xff]  }
 0x142   : > { %2174 = vmatprep.subr.bf16.mxu0 %v3769_v1  ;;  %1414 = vrot.lane.b32.xlu0 %v1376_v8, %s3770_s27  ;;  %1104 = vst.msk [vmem:[#allocation3 + $0x10] sm:$0xff] %vm540_vm0, %v1086_v4  ;;  %1105 = vst.msk [vmem:[#allocation3 + $0x38] sm:$0xff] %vm540_vm0, %v1087_v49  ;;  %v1088_v8 = vpack.c.bf16 %v1055_v6, %v1054_v0 }
 0x143   : > { %v987_v28 = vpop.permute.xlu0 %986  ;;  %1198 = vrot.lane.b32.xlu1 %v4344_v59, %s3770_s27  ;;  %v1526_v59 = vpack.c.bf16 %v1499_v5, %v1498_v33  ;;  %1548 = vst.msk [vmem:[#allocation3 + $0x200] sm:$0xff] %vm540_vm0, %v1530_v14  ;;  %1549 = vst.msk [vmem:[#allocation3 + $0x228] sm:$0xff] %vm540_vm0, %v1531_v20  ;;  %v1512_v5 = vld [vmem:[#allocation2 + $0x116] sm:$0xff] }
 0x144   : > { %1036 = vst.msk [vmem:[#allocation3 + $0xa8] sm:$0xff] %vm815_vm3, %v987_v28  ;;  %v770_v29 = vpop.permute.xlu1 %769  ;;  %2034 = vmatmul.mubr.bf16.gmra.mrb[4].mxu0 %v1559_v23  ;;  %v1569_v2 = vld [vmem:[#allocation3 + $0x78] sm:$0xff]  ;;  %v1056_v23 = vld [vmem:[#allocation2 + $0x43] sm:$0xff] }
 0x145   : > { %820 = vst.msk [vmem:[#allocation3 + $0xa0] sm:$0xff] %vm815_vm3, %v770_v29  ;;  %2041 = vmatprep.mubr.bf16.mxu0 %v1565_v25  ;;  %2175 = vmatpush1.bf16.msra.mxu0 %v3495_v32  ;;  %v1057_v25 = vld [vmem:[#allocation2 + $0x4b] sm:$0xff] }
 0x146   : > { %2176 = vmatprep.subr.bf16.mxu0 %v3769_v1  ;;  %1416 = vrot.lane.b32.xlu0 %v1377_v26, %s3770_s27  ;;  %1544 = vst.msk [vmem:[#allocation3 + $0x160] sm:$0xff] %vm540_vm0, %v1526_v59  ;;  %1106 = vst.msk [vmem:[#allocation3 + $0x60] sm:$0xff] %vm540_vm0, %v1088_v8  ;;  %v1089_v4 = vpack.c.bf16 %v1057_v25, %v1056_v23  ;;  %v1511_v32 = vld [vmem:[#allocation2 + $0x10e] sm:$0xff]  ;;  %v1513_v59 = vld [vmem:[#allocation2 + $0x11e] sm:$0xff] }
 0x147   : > { %v1423_v36 = vpop.permute.xlu0 %1422  ;;  %v1582_v37 = vld [vmem:[#allocation3 + $0xe0] sm:$0xff]  ;;  %1200 = vrot.lane.b32.xlu1 %v4354_v19, %s3770_s27  ;;  %v1532_v33 = vpack.c.bf16 %v1511_v32, %v1510_v31 }
 0x148   : > { %1470 = vst.msk [vmem:[#allocation3 + $0x108] sm:$0xff] %vm815_vm3, %v1423_v36  ;;  %2242 = vmatprep.mubr.bf16.mxu1 %v1582_v37  ;;  %v1207_v42 = vpop.permute.xlu1 %1206  ;;  %v1581_v43 = vld [vmem:[#allocation3 + $0xd8] sm:$0xff]  ;;  %v1570_v19 = vld [vmem:[#allocation3 + $0x80] sm:$0xff]  ;;  %v1274_v36 = vld [vmem:[#allocation2 + $0x64] sm:$0xff]  ;;  %v1533_v37 = vpack.c.bf16 %v1513_v59, %v1512_v5 }
 0x149   : > { %1254 = vst.msk [vmem:[#allocation3 + $0x100] sm:$0xff] %vm815_vm3, %v1207_v42  ;;  %2243 = vmatmul.mubr.bf16.vlgmr.msra.gmra.mrb[0].mxu1 %v1581_v43  ;;  %2177 = vmatpush1.bf16.msra.mxu0 %v3496_v47  ;;  %v1275_v42 = vld [vmem:[#allocation2 + $0x6c] sm:$0xff]  ;;  %v1059_v47 = vld [vmem:[#allocation2 + $0x5b] sm:$0xff] }
 0x14a   : > { %3127 = vmatpush3.bf16.msra.mxu1 %v4326_v27  ;;  %2178 = vmatprep.subr.bf16.mxu0 %v3769_v1  ;;  %v3497_v27 = vld [vmem:[#allocation11 + $0xa0] sm:$0xff]   ;;  %1107 = vst.msk [vmem:[#allocation3 + $0x88] sm:$0xff] %vm540_vm0, %v1089_v4  ;;  %1550 = vst.msk [vmem:[#allocation3 + $0x250] sm:$0xff] %vm540_vm0, %v1532_v33  ;;  %v1306_v45 = vpack.c.bf16 %v1275_v42, %v1274_v36 }
 0x14b   : > { %v989_v50 = vpop.permute.xlu0 %988  ;;  %1418 = vrot.lane.b32.xlu0 %v1378_v39, %s3770_s27  ;;  %1202 = vrot.lane.b32.xlu1 %v4364_v40, %s3770_s27  ;;  %v1504_v40 = vld [vmem:[#allocation2 + $0xd6] sm:$0xff]  ;;  %v1575_v7 = vld [vmem:[#allocation3 + $0xa8] sm:$0xff]  ;;  %1551 = vst.msk [vmem:[#allocation3 + $0x278] sm:$0xff] %vm540_vm0, %v1533_v37 }
 0x14c   : > { %1037 = vst.msk [vmem:[#allocation3 + $0xd0] sm:$0xff] %vm815_vm3, %v989_v50  ;;  %v772_v52 = vpop.permute.xlu1 %771  ;;  %2042 = vmatmul.mubr.bf16.gmra.mrb[8].mxu0 %v1564_v46  ;;  %3128 = vmatprep.subr.bf16.mxu1 %v3418_v44  ;;  %v1529_v61 = vpack.c.bf16 %v1505_v56, %v1504_v40  ;;  %v1574_v24 = vld [vmem:[#allocation3 + $0xa0] sm:$0xff] }
 0x14d   : > { %821 = vst.msk [vmem:[#allocation3 + $0xc8] sm:$0xff] %vm815_vm3, %v772_v52  ;;  %2049 = vmatprep.mubr.bf16.mxu0 %v1570_v19  ;;  %2179 = vmatpush1.bf16.msra.mxu0 %v3497_v27  ;;  %v1058_v46 = vld [vmem:[#allocation2 + $0x53] sm:$0xff]  ;;  %v1514_v52 = vld [vmem:[#allocation2 + $0x126] sm:$0xff] }
 0x14e   : > { %2180 = vmatprep.subr.bf16.mxu0 %v3769_v1  ;;  %3129 = vmatpush3.bf16.msra.mxu1 %v3418_v44  ;;  %1547 = vst.msk [vmem:[#allocation3 + $0x1d8] sm:$0xff] %vm540_vm0, %v1529_v61  ;;  %v3502_v44 = vld [vmem:[#allocation11 + $0xc8] sm:$0xff]   ;;  %v1090_v19 = vpack.c.bf16 %v1059_v47, %v1058_v46  ;;  %1324 = vst.msk [vmem:[#allocation3 + $0xb8] sm:$0xff] %vm540_vm0, %v1306_v45 }
 0x14f   : > { %v1425_v57 = vpop.permute.xlu0 %1424  ;;  %v1587_v58 = vld [vmem:[#allocation3 + $0x108] sm:$0xff]  ;;  %3130 = vmatprep.subr.bf16.mxu1 %v3419_v51  ;;  %v1515_v27 = vld [vmem:[#allocation2 + $0x12e] sm:$0xff] }
 0x150   : > { %1471 = vst.msk [vmem:[#allocation3 + $0x130] sm:$0xff] %vm815_vm3, %v1425_v57  ;;  %2250 = vmatprep.mubr.bf16.mxu1 %v1587_v58  ;;  %v1209_v62 = vpop.permute.xlu1 %1208  ;;  %v1586_v63 = vld [vmem:[#allocation3 + $0x100] sm:$0xff]  ;;  %v1534_v53 = vpack.c.bf16 %v1515_v27, %v1514_v52  ;;  %v1535_v57 = vpack.c.bf16 %v1517_v55, %v1516_v54 }
 0x151   : > { %1255 = vst.msk [vmem:[#allocation3 + $0x128] sm:$0xff] %vm815_vm3, %v1209_v62  ;;  %2251 = vmatmul.mubr.bf16.gmra.mrb[4].mxu1 %v1586_v63  ;;  %2181 = vmatpush1.bf16.msra.mxu0 %v3498_v3  ;;  %v3504_v62 = vld [vmem:[#allocation11 + $0xd8] sm:$0xff]   ;;  %v3505_v3 = vld [vmem:[#allocation11 + $0xe0] sm:$0xff]  }
 0x152   : > { %2182 = vmatprep.subr.bf16.mxu0 %v3769_v1  ;;  %3131 = vmatpush3.bf16.msra.mxu1 %v3419_v51  ;;  %1108 = vst.msk [vmem:[#allocation3 + $0xb0] sm:$0xff] %vm540_vm0, %v1090_v19  ;;  %v3503_v51 = vld [vmem:[#allocation11 + $0xd0] sm:$0xff]   ;;  %1552 = vst.msk [vmem:[#allocation3 + $0x2a0] sm:$0xff] %vm540_vm0, %v1534_v53 }
 0x153   : > { %v991_v9 = vpop.permute.xlu0 %990  ;;  %3132 = vmatprep.subr.bf16.mxu1 %v3420_v60  ;;  %v1580_v26 = vld [vmem:[#allocation3 + $0xd0] sm:$0xff]  ;;  %1553 = vst.msk [vmem:[#allocation3 + $0x2c8] sm:$0xff] %vm540_vm0, %v1535_v57 }
 0x154   : > { %1038 = vst.msk [vmem:[#allocation3 + $0xf8] sm:$0xff] %vm815_vm3, %v991_v9  ;;  %v774_v10 = vpop.permute.xlu1 %773  ;;  %2050 = vmatmul.mubr.bf16.gmra.mrb[12].mxu0 %v1569_v2  ;;  %v1579_v43 = vld [vmem:[#allocation3 + $0xc8] sm:$0xff] }
 0x155   : > { %822 = vst.msk [vmem:[#allocation3 + $0xf0] sm:$0xff] %vm815_vm3, %v774_v10  ;;  %2057 = vmatprep.mubr.bf16.mxu0 %v1575_v7  ;;  %2183 = vmatpush1.bf16.msra.mxu0 %v3499_v11  ;;  %v3506_v11 = vld [vmem:[#allocation11 + $0xe8] sm:$0xff]  }
 0x156   : > { %2184 = vmatprep.subr.bf16.mxu0 %v3769_v1  ;;  %3133 = vmatpush3.bf16.msra.mxu1 %v3420_v60 }
 0x157   : > { %v1427_v17 = vpop.permute.xlu0 %1426  ;;  %v1592_v18 = vld [vmem:[#allocation3 + $0x130] sm:$0xff] }
 0x158   : > { %1472 = vst.msk [vmem:[#allocation3 + $0x158] sm:$0xff] %vm815_vm3, %v1427_v17  ;;  %2258 = vmatprep.mubr.bf16.mxu1 %v1592_v18  ;;  %v1211_v21 = vpop.permute.xlu1 %1210  ;;  %v1591_v22 = vld [vmem:[#allocation3 + $0x128] sm:$0xff] }
 0x159   : > { %1256 = vst.msk [vmem:[#allocation3 + $0x150] sm:$0xff] %vm815_vm3, %v1211_v21  ;;  %2259 = vmatmul.mubr.bf16.gmra.mrb[8].mxu1 %v1591_v22  ;;  %2185 = vmatpush1.bf16.msra.mxu0 %v3500_v38  ;;  %v3508_v22 = vld [vmem:[#allocation11 + $0xf8] sm:$0xff]  }
 0x15a   : > { %2186 = vmatprep.subr.bf16.mxu0 %v3769_v1 }
 0x15b   : > { %v993_v28 = vpop.permute.xlu0 %992  ;;  %v1585_v48 = vld [vmem:[#allocation3 + $0xf8] sm:$0xff] }
 0x15c   : > { %1039 = vst.msk [vmem:[#allocation3 + $0x120] sm:$0xff] %vm815_vm3, %v993_v28  ;;  %v776_v29 = vpop.permute.xlu1 %775  ;;  %2058 = vmatmul.mubr.bf16.gmra.mrb[16].mxu0 %v1574_v24  ;;  %v1584_v61 = vld [vmem:[#allocation3 + $0xf0] sm:$0xff] }
 0x15d   : > { %823 = vst.msk [vmem:[#allocation3 + $0x118] sm:$0xff] %vm815_vm3, %v776_v29  ;;  %2065 = vmatprep.mubr.bf16.mxu0 %v1580_v26  ;;  %2187 = vmatpush1.bf16.msra.mxu0 %v3501_v30 }
 0x15e   : > { %2188 = vmatprep.subr.bf16.mxu0 %v3769_v1 }
 0x15f   : > { %v1429_v34 = vpop.permute.xlu0 %1428  ;;  %v1597_v35 = vld [vmem:[#allocation3 + $0x158] sm:$0xff] }
 0x160   : > { %1473 = vst.msk [vmem:[#allocation3 + $0x180] sm:$0xff] %vm815_vm3, %v1429_v34  ;;  %2266 = vmatprep.mubr.bf16.mxu1 %v1597_v35  ;;  %v1213_v39 = vpop.permute.xlu1 %1212  ;;  %v1596_v41 = vld [vmem:[#allocation3 + $0x150] sm:$0xff] }
 0x161   : > { %1257 = vst.msk [vmem:[#allocation3 + $0x178] sm:$0xff] %vm815_vm3, %v1213_v39  ;;  %2267 = vmatmul.mubr.bf16.gmra.mrb[12].mxu1 %v1596_v41  ;;  %2189 = vmatpush1.bf16.msra.mxu0 %v3502_v44 }
 0x162   : > { %2190 = vmatprep.subr.bf16.mxu0 %v3769_v1 }
 0x163   : > { %v995_v49 = vpop.permute.xlu0 %994  ;;  %v1590_v63 = vld [vmem:[#allocation3 + $0x120] sm:$0xff] }
 0x164   : > { %1040 = vst.msk [vmem:[#allocation3 + $0x148] sm:$0xff] %vm815_vm3, %v995_v49  ;;  %v778_v50 = vpop.permute.xlu1 %777  ;;  %2066 = vmatmul.mubr.bf16.gmra.mrb[20].mxu0 %v1579_v43  ;;  %v1589_v10 = vld [vmem:[#allocation3 + $0x118] sm:$0xff] }
 0x165   : > { %824 = vst.msk [vmem:[#allocation3 + $0x140] sm:$0xff] %vm815_vm3, %v778_v50  ;;  %2073 = vmatprep.mubr.bf16.mxu0 %v1585_v48  ;;  %2191 = vmatpush1.bf16.msra.mxu0 %v3503_v51 }
 0x166   : > { %2192 = vmatprep.subr.bf16.mxu0 %v3769_v1 }
 0x167   : > { %v1431_v40 = vpop.permute.xlu0 %1430  ;;  %v1602_v56 = vld [vmem:[#allocation3 + $0x180] sm:$0xff] }
 0x168   : > { %1474 = vst.msk [vmem:[#allocation3 + $0x1a8] sm:$0xff] %vm815_vm3, %v1431_v40  ;;  %2274 = vmatprep.mubr.bf16.mxu1 %v1602_v56  ;;  %v1215_v58 = vpop.permute.xlu1 %1214  ;;  %v1601_v60 = vld [vmem:[#allocation3 + $0x178] sm:$0xff] }
 0x169   : > { %1258 = vst.msk [vmem:[#allocation3 + $0x1a0] sm:$0xff] %vm815_vm3, %v1215_v58  ;;  %2275 = vmatmul.mubr.bf16.gmra.mrb[16].mxu1 %v1601_v60  ;;  %2193 = vmatpush1.bf16.msra.mxu0 %v3504_v62 }
 0x16a   : > { %2194 = vmatprep.subr.bf16.mxu0 %v3769_v1 }
 0x16b   : > { %v997_v0 = vpop.permute.xlu0 %996  ;;  %v1595_v12 = vld [vmem:[#allocation3 + $0x148] sm:$0xff] }
 0x16c   : > { %1041 = vst.msk [vmem:[#allocation3 + $0x170] sm:$0xff] %vm815_vm3, %v997_v0  ;;  %v780_v2 = vpop.permute.xlu1 %779  ;;  %2074 = vmatmul.mubr.bf16.gmra.mrb[24].mxu0 %v1584_v61  ;;  %v1594_v21 = vld [vmem:[#allocation3 + $0x140] sm:$0xff] }
 0x16d   : > { %825 = vst.msk [vmem:[#allocation3 + $0x168] sm:$0xff] %vm815_vm3, %v780_v2  ;;  %2081 = vmatprep.mubr.bf16.mxu0 %v1590_v63  ;;  %2195 = vmatpush1.bf16.msra.mxu0 %v3505_v3  ;;  %v1558_v63 = vld [vmem:[#allocation3 + $0x20] sm:$0xff] }
 0x16e   : > { %2196 = vmatprep.subr.bf16.mxu0 %v3769_v1 }
 0x16f   : > { %v1433_v6 = vpop.permute.xlu0 %1432  ;;  %v1607_v7 = vld [vmem:[#allocation3 + $0x1a8] sm:$0xff] }
 0x170   : > { %1475 = vst.msk [vmem:[#allocation3 + $0x1d0] sm:$0xff] %vm815_vm3, %v1433_v6  ;;  %2282 = vmatprep.mubr.bf16.mxu1 %v1607_v7  ;;  %v1217_v8 = vpop.permute.xlu1 %1216  ;;  %v1606_v9 = vld [vmem:[#allocation3 + $0x1a0] sm:$0xff] }
 0x171   : > { %1259 = vst.msk [vmem:[#allocation3 + $0x1c8] sm:$0xff] %vm815_vm3, %v1217_v8  ;;  %2283 = vmatmul.mubr.bf16.gmra.mrb[20].mxu1 %v1606_v9  ;;  %2197 = vmatpush1.bf16.msra.mxu0 %v3506_v11  ;;  %v1568_v11 = vld [vmem:[#allocation3 + $0x70] sm:$0xff] }
 0x172   : > { %2198 = vmatprep.subr.bf16.mxu0 %v3769_v1 }
 0x173   : > { %v999_v13 = vpop.permute.xlu0 %998  ;;  %v1600_v23 = vld [vmem:[#allocation3 + $0x170] sm:$0xff] }
 0x174   : > { %1042 = vst.msk [vmem:[#allocation3 + $0x198] sm:$0xff] %vm815_vm3, %v999_v13  ;;  %v782_v14 = vpop.permute.xlu1 %781  ;;  %2082 = vmatmul.mubr.bf16.gmra.mrb[28].mxu0 %v1589_v10  ;;  %v1599_v28 = vld [vmem:[#allocation3 + $0x168] sm:$0xff] }
 0x175   : > { %826 = vst.msk [vmem:[#allocation3 + $0x190] sm:$0xff] %vm815_vm3, %v782_v14  ;;  %2089 = vmatprep.mubr.bf16.mxu0 %v1595_v12  ;;  %2199 = vmatpush1.bf16.msra.mxu0 %v3507_v15  ;;  %v1563_v10 = vld [vmem:[#allocation3 + $0x48] sm:$0xff] }
 0x176   : > { %2200 = vmatprep.subr.bf16.mxu0 %v3769_v1 }
 0x177   : > { %v1435_v16 = vpop.permute.xlu0 %1434  ;;  %v1612_v17 = vld [vmem:[#allocation3 + $0x1d0] sm:$0xff] }
 0x178   : > { %1476 = vst.msk [vmem:[#allocation3 + $0x1f8] sm:$0xff] %vm815_vm3, %v1435_v16  ;;  %2290 = vmatprep.mubr.bf16.mxu1 %v1612_v17  ;;  %v1219_v18 = vpop.permute.xlu1 %1218  ;;  %v1611_v20 = vld [vmem:[#allocation3 + $0x1c8] sm:$0xff] }
 0x179   : > { %1260 = vst.msk [vmem:[#allocation3 + $0x1f0] sm:$0xff] %vm815_vm3, %v1219_v18  ;;  %2291 = vmatmul.mubr.bf16.gmra.mrb[24].mxu1 %v1611_v20  ;;  %2201 = vmatpush1.bf16.msra.mxu0 %v3508_v22  ;;  %v1573_v18 = vld [vmem:[#allocation3 + $0x98] sm:$0xff]  ;;  %v1578_v20 = vld [vmem:[#allocation3 + $0xc0] sm:$0xff] }
 0x17b   : > { %v1001_v24 = vpop.permute.xlu0 %1000  ;;  %v1605_v29 = vld [vmem:[#allocation3 + $0x198] sm:$0xff] }
 0x17c   : > { %1043 = vst.msk [vmem:[#allocation3 + $0x1c0] sm:$0xff] %vm815_vm3, %v1001_v24  ;;  %v784_v38 = vpop.permute.xlu1 %783  ;;  %2090 = vmatmul.mubr.bf16.gmra.mrb[32].mxu0 %v1594_v21  ;;  %v1604_v34 = vld [vmem:[#allocation3 + $0x190] sm:$0xff] }
 0x17d   : > { %827 = vst.msk [vmem:[#allocation3 + $0x1b8] sm:$0xff] %vm815_vm3, %v784_v38  ;;  %2097 = vmatprep.mubr.bf16.mxu0 %v1600_v23 }
 0x17f   : > { %v1437_v1 = vpop.permute.xlu0 %1436  ;;  %v1617_v25 = vld [vmem:[#allocation3 + $0x1f8] sm:$0xff] }
 0x180   : > { %1477 = vst.msk [vmem:[#allocation3 + $0x220] sm:$0xff] %vm815_vm3, %v1437_v1  ;;  %2298 = vmatprep.mubr.bf16.mxu1 %v1617_v25  ;;  %v1221_v26 = vpop.permute.xlu1 %1220  ;;  %v1616_v4 = vld [vmem:[#allocation3 + $0x1f0] sm:$0xff]  ;;  %v1583_v25 = vld [vmem:[#allocation3 + $0xe8] sm:$0xff] }
 0x181   : > { %1261 = vst.msk [vmem:[#allocation3 + $0x218] sm:$0xff] %vm815_vm3, %v1221_v26  ;;  %2299 = vmatmul.mubr.bf16.gmra.mrb[28].mxu1 %v1616_v4  ;;  %v1588_v26 = vld [vmem:[#allocation3 + $0x110] sm:$0xff] }
 0x183   : > { %v1003_v30 = vpop.permute.xlu0 %1002  ;;  %v1610_v35 = vld [vmem:[#allocation3 + $0x1c0] sm:$0xff] }
 0x184   : > { %1044 = vst.msk [vmem:[#allocation3 + $0x1e8] sm:$0xff] %vm815_vm3, %v1003_v30  ;;  %v786_v31 = vpop.permute.xlu1 %785  ;;  %2098 = vmatmul.mubr.bf16.gmra.mrb[36].mxu0 %v1599_v28  ;;  %v1609_v44 = vld [vmem:[#allocation3 + $0x1b8] sm:$0xff]  ;;  %v1598_v30 = vld [vmem:[#allocation3 + $0x160] sm:$0xff] }
 0x185   : > { %828 = vst.msk [vmem:[#allocation3 + $0x1e0] sm:$0xff] %vm815_vm3, %v786_v31  ;;  %2105 = vmatprep.mubr.bf16.mxu0 %v1605_v29  ;;  %v1593_v29 = vld [vmem:[#allocation3 + $0x138] sm:$0xff] }
 0x187   : > { %v1439_v32 = vpop.permute.xlu0 %1438  ;;  %v1622_v33 = vld [vmem:[#allocation3 + $0x220] sm:$0xff] }
 0x188   : > { %1478 = vst.msk [vmem:[#allocation3 + $0x248] sm:$0xff] %vm815_vm3, %v1439_v32  ;;  %2306 = vmatprep.mubr.bf16.mxu1 %v1622_v33  ;;  %v1223_v5 = vpop.permute.xlu1 %1222  ;;  %v1621_v59 = vld [vmem:[#allocation3 + $0x218] sm:$0xff]  ;;  %v1603_v33 = vld [vmem:[#allocation3 + $0x188] sm:$0xff] }
 0x189   : > { %1262 = vst.msk [vmem:[#allocation3 + $0x240] sm:$0xff] %vm815_vm3, %v1223_v5  ;;  %2307 = vmatmul.mubr.bf16.gmra.mrb[32].mxu1 %v1621_v59  ;;  %v1608_v5 = vld [vmem:[#allocation3 + $0x1b0] sm:$0xff] }
 0x18b   : > { %v1005_v36 = vpop.permute.xlu0 %1004  ;;  %v1615_v45 = vld [vmem:[#allocation3 + $0x1e8] sm:$0xff] }
 0x18c   : > { %1045 = vst.msk [vmem:[#allocation3 + $0x210] sm:$0xff] %vm815_vm3, %v1005_v36  ;;  %v788_v37 = vpop.permute.xlu1 %787  ;;  %2106 = vmatmul.mubr.bf16.gmra.mrb[40].mxu0 %v1604_v34  ;;  %v1614_v51 = vld [vmem:[#allocation3 + $0x1e0] sm:$0xff] }
 0x18d   : > { %829 = vst.msk [vmem:[#allocation3 + $0x208] sm:$0xff] %vm815_vm3, %v788_v37  ;;  %2113 = vmatprep.mubr.bf16.mxu0 %v1610_v35  ;;  %v1613_v35 = vld [vmem:[#allocation3 + $0x1d8] sm:$0xff]  ;;  %v1618_v36 = vld [vmem:[#allocation3 + $0x200] sm:$0xff] }
 0x18f   : > { %v1441_v39 = vpop.permute.xlu0 %1440  ;;  %v1627_v41 = vld [vmem:[#allocation3 + $0x248] sm:$0xff] }
 0x190   : > { %1479 = vst.msk [vmem:[#allocation3 + $0x270] sm:$0xff] %vm815_vm3, %v1441_v39  ;;  %2314 = vmatprep.mubr.bf16.mxu1 %v1627_v41  ;;  %v1225_v42 = vpop.permute.xlu1 %1224  ;;  %v1626_v43 = vld [vmem:[#allocation3 + $0x240] sm:$0xff]  ;;  %v1623_v41 = vld [vmem:[#allocation3 + $0x228] sm:$0xff] }
 0x191   : > { %1263 = vst.msk [vmem:[#allocation3 + $0x268] sm:$0xff] %vm815_vm3, %v1225_v42  ;;  %2315 = vmatmul.mubr.bf16.gmra.mrb[36].mxu1 %v1626_v43  ;;  %v1628_v42 = vld [vmem:[#allocation3 + $0x250] sm:$0xff] }
 0x193   : > { %v1007_v46 = vpop.permute.xlu0 %1006  ;;  %v1620_v52 = vld [vmem:[#allocation3 + $0x210] sm:$0xff] }
 0x194   : > { %1046 = vst.msk [vmem:[#allocation3 + $0x238] sm:$0xff] %vm815_vm3, %v1007_v46  ;;  %v790_v47 = vpop.permute.xlu1 %789  ;;  %2114 = vmatmul.mubr.bf16.gmra.mrb[44].mxu0 %v1609_v44  ;;  %v1619_v57 = vld [vmem:[#allocation3 + $0x208] sm:$0xff]  ;;  %v1638_v46 = vld [vmem:[#allocation3 + $0x2a0] sm:$0xff] }
 0x195   : > { %830 = vst.msk [vmem:[#allocation3 + $0x230] sm:$0xff] %vm815_vm3, %v790_v47  ;;  %2121 = vmatprep.mubr.bf16.mxu0 %v1615_v45  ;;  %v1633_v45 = vld [vmem:[#allocation3 + $0x278] sm:$0xff] }
 0x197   : > { %v1443_v48 = vpop.permute.xlu0 %1442  ;;  %v1632_v19 = vld [vmem:[#allocation3 + $0x270] sm:$0xff] }
 0x198   : > { %1480 = vst.msk [vmem:[#allocation3 + $0x298] sm:$0xff] %vm815_vm3, %v1443_v48  ;;  %2322 = vmatprep.mubr.bf16.mxu1 %v1632_v19  ;;  %v1227_v49 = vpop.permute.xlu1 %1226  ;;  %v1631_v50 = vld [vmem:[#allocation3 + $0x268] sm:$0xff] }
 0x199   : > { %1264 = vst.msk [vmem:[#allocation3 + $0x290] sm:$0xff] %vm815_vm3, %v1227_v49  ;;  %2323 = vmatmul.mubr.bf16.gmra.mrb[40].mxu1 %v1631_v50  ;;  %v1643_v48 = vld [vmem:[#allocation3 + $0x2c8] sm:$0xff] }
 0x19b   : > { %v1009_v27 = vpop.permute.xlu0 %1008  ;;  %v1625_v58 = vld [vmem:[#allocation3 + $0x238] sm:$0xff] }
 0x19c   : > { %1047 = vst.msk [vmem:[#allocation3 + $0x260] sm:$0xff] %vm815_vm3, %v1009_v27  ;;  %v792_v53 = vpop.permute.xlu1 %791  ;;  %2122 = vmatmul.mubr.bf16.gmra.mrb[48].mxu0 %v1614_v51  ;;  %v1624_v6 = vld [vmem:[#allocation3 + $0x230] sm:$0xff] }
 0x19d   : > { %831 = vst.msk [vmem:[#allocation3 + $0x258] sm:$0xff] %vm815_vm3, %v792_v53  ;;  %2129 = vmatprep.mubr.bf16.mxu0 %v1620_v52 }
 0x19f   : > { %v1445_v54 = vpop.permute.xlu0 %1444  ;;  %v1637_v55 = vld [vmem:[#allocation3 + $0x298] sm:$0xff] }
 0x1a0   : > { %1481 = vst.msk [vmem:[#allocation3 + $0x2c0] sm:$0xff] %vm815_vm3, %v1445_v54  ;;  %2330 = vmatprep.mubr.bf16.mxu1 %v1637_v55  ;;  %v1229_v40 = vpop.permute.xlu1 %1228  ;;  %v1636_v56 = vld [vmem:[#allocation3 + $0x290] sm:$0xff] }
 0x1a1   : > { %1265 = vst.msk [vmem:[#allocation3 + $0x2b8] sm:$0xff] %vm815_vm3, %v1229_v40  ;;  %2331 = vmatmul.mubr.bf16.gmra.mrb[44].mxu1 %v1636_v56 }
 0x1a3   : > { %v1011_v60 = vpop.permute.xlu0 %1010  ;;  %v1630_v7 = vld [vmem:[#allocation3 + $0x260] sm:$0xff] }
 0x1a4   : > { %2130 = vmatmul.mubr.bf16.gmra.mrb[52].mxu0 %v1619_v57  ;;  %1048 = vst.msk [vmem:[#allocation3 + $0x288] sm:$0xff] %vm815_vm3, %v1011_v60  ;;  %v794_v61 = vpop.permute.xlu1 %793  ;;  %v1629_v13 = vld [vmem:[#allocation3 + $0x258] sm:$0xff]  ;;  %v4611_v60 = vld [vmem:[#allocation13] ss:$0 sm:$0xff] }
 0x1a5   : > { %2137 = vmatprep.mubr.bf16.mxu0 %v1625_v58  ;;  %832 = vst.msk [vmem:[#allocation3 + $0x280] sm:$0xff] %vm815_vm3, %v794_v61 }
 0x1a7   : > { %v1642_v62 = vld [vmem:[#allocation3 + $0x2c0] sm:$0xff]  ;;  %v1013_v0 = vpop.permute.xlu0 %1012 }
 0x1a8   : > { %2338 = vmatprep.mubr.bf16.mxu1 %v1642_v62  ;;  %v1641_v2 = vld [vmem:[#allocation3 + $0x2b8] sm:$0xff]  ;;  %1049 = vst.msk [vmem:[#allocation3 + $0x2b0] sm:$0xff] %vm815_vm3, %v1013_v0  ;;  %v796_v3 = vpop.permute.xlu1 %795 }
 0x1a9   : > { %2339 = vmatmul.mubr.bf16.gmra.mrb[48].mxu1 %v1641_v2  ;;  %833 = vst.msk [vmem:[#allocation3 + $0x2a8] sm:$0xff] %vm815_vm3, %v796_v3 }
 0x1aa   : > { %3134 = vmatprep.mubr.msk.bf16.mxu1 %vm540_vm0, %v1558_v63 }
 0x1ab   : > { %v1411_v8 = vpop.permute.xlu0 %1410  ;;  %v1635_v15 = vld [vmem:[#allocation3 + $0x288] sm:$0xff] }
 0x1ac   : > { %2138 = vmatmul.mubr.bf16.gmra.mrb[56].mxu0 %v1624_v6  ;;  %1464 = vst.msk [vmem:[#allocation3 + $0x18] sm:$0xff] %vm815_vm3, %v1411_v8  ;;  %v1195_v9 = vpop.permute.xlu1 %1194  ;;  %v1634_v22 = vld [vmem:[#allocation3 + $0x280] sm:$0xff] }
 0x1ad   : > { %2145 = vmatprep.mubr.bf16.mxu0 %v1630_v7  ;;  %1248 = vst.msk [vmem:[#allocation3 + $0x10] sm:$0xff] %vm815_vm3, %v1195_v9 }
 0x1af   : > { %v1640_v24 = vld [vmem:[#allocation3 + $0x2b0] sm:$0xff] }
 0x1b0   : > { %v1413_v12 = vpop.permute.xlu0 %1412  ;;  %v1639_v4 = vld [vmem:[#allocation3 + $0x2a8] sm:$0xff] }
 0x1b1   : > { %3135 = vmatmul.mubr.msk.bf16.vlgmr.msra.gmra.mrb[52].mxu1 %vm540_vm0, %v1563_v10  ;;  %1465 = vst.msk [vmem:[#allocation3 + $0x40] sm:$0xff] %vm815_vm3, %v1413_v12  ;;  %v1197_v14 = vpop.permute.xlu1 %1196 }
 0x1b2   : > { %3138 = vmatprep.mubr.msk.bf16.mxu1 %vm540_vm0, %v1568_v11  ;;  %1249 = vst.msk [vmem:[#allocation3 + $0x38] sm:$0xff] %vm815_vm3, %v1197_v14 }
 0x1b3   : > { %v1557_v28 = vld [vmem:[#allocation3 + $0x18] sm:$0xff] }
 0x1b4   : > { %2146 = vmatmul.mubr.bf16.gmra.mrb[60].mxu0 %v1629_v13  ;;  %v1415_v16 = vpop.permute.xlu0 %1414  ;;  %v1556_v31 = vld [vmem:[#allocation3 + $0x10] sm:$0xff] }
 0x1b5   : > { %2153 = vmatprep.mubr.bf16.mxu0 %v1635_v15  ;;  %1466 = vst.msk [vmem:[#allocation3 + $0x68] sm:$0xff] %vm815_vm3, %v1415_v16  ;;  %v1199_v17 = vpop.permute.xlu1 %1198 }
 0x1b6   : > { %1250 = vst.msk [vmem:[#allocation3 + $0x60] sm:$0xff] %vm815_vm3, %v1199_v17 }
 0x1b8   : > { %v1417_v21 = vpop.permute.xlu0 %1416  ;;  %v1562_v32 = vld [vmem:[#allocation3 + $0x40] sm:$0xff] }
 0x1b9   : > { %3139 = vmatmul.mubr.msk.bf16.gmra.mrb[56].mxu1 %vm540_vm0, %v1573_v18  ;;  %1467 = vst.msk [vmem:[#allocation3 + $0x90] sm:$0xff] %vm815_vm3, %v1417_v21  ;;  %v1201_v23 = vpop.permute.xlu1 %1200  ;;  %v1561_v59 = vld [vmem:[#allocation3 + $0x38] sm:$0xff] }
 0x1ba   : > { %3142 = vmatprep.mubr.msk.bf16.mxu1 %vm540_vm0, %v1578_v20  ;;  %1251 = vst.msk [vmem:[#allocation3 + $0x88] sm:$0xff] %vm815_vm3, %v1201_v23 }
 0x1bc   : > { %2154 = vmatmul.mubr.bf16.gmra.mrb[64].mxu0 %v1634_v22  ;;  %v1567_v34 = vld [vmem:[#allocation3 + $0x68] sm:$0xff] }
 0x1bd   : > { %2161 = vmatprep.mubr.bf16.mxu0 %v1640_v24  ;;  %v1419_v38 = vpop.permute.xlu0 %1418  ;;  %v1203_v1 = vpop.permute.xlu1 %1202  ;;  %v1566_v37 = vld [vmem:[#allocation3 + $0x60] sm:$0xff] }
 0x1be   : > { %1468 = vst.msk [vmem:[#allocation3 + $0xb8] sm:$0xff] %vm815_vm3, %v1419_v38  ;;  %1252 = vst.msk [vmem:[#allocation3 + $0xb0] sm:$0xff] %vm815_vm3, %v1203_v1 }
 0x1c0   : > { %v1572_v39 = vld [vmem:[#allocation3 + $0x90] sm:$0xff] }
 0x1c1   : > { %3143 = vmatmul.mubr.msk.bf16.gmra.mrb[60].mxu1 %vm540_vm0, %v1583_v25  ;;  %v1571_v43 = vld [vmem:[#allocation3 + $0x88] sm:$0xff] }
 0x1c2   : > { %3146 = vmatprep.mubr.msk.bf16.mxu1 %vm540_vm0, %v1588_v26 }
 0x1c4   : > { %2162 = vmatmul.mubr.bf16.gmra.mrb[68].mxu0 %v1639_v4 }
 0x1c5   : > { %2202 = vmatprep.mubr.bf16.mxu0 %v1557_v28  ;;  %v1577_v44 = vld [vmem:[#allocation3 + $0xb8] sm:$0xff]  ;;  %v1576_v47 = vld [vmem:[#allocation3 + $0xb0] sm:$0xff] }
 0x1c9   : > { %3147 = vmatmul.mubr.msk.bf16.gmra.mrb[64].mxu1 %vm540_vm0, %v1593_v29 }
 0x1ca   : > { %3150 = vmatprep.mubr.msk.bf16.mxu1 %vm540_vm0, %v1598_v30 }
 0x1cc   : > { %2203 = vmatmul.mubr.bf16.vlgmr.msra.gmra.mrb[0].mxu0 %v1556_v31 }
 0x1cd   : > { %2210 = vmatprep.mubr.bf16.mxu0 %v1562_v32 }
 0x1d1   : > { %3151 = vmatmul.mubr.msk.bf16.gmra.mrb[68].mxu1 %vm540_vm0, %v1603_v33 }
 0x1d2   : > { %3154 = vmatprep.mubr.msk.bf16.mxu1 %vm540_vm0, %v1608_v5 }
 0x1d4   : > { %2211 = vmatmul.mubr.bf16.gmra.mrb[4].mxu0 %v1561_v59 }
 0x1d5   : > { %2218 = vmatprep.mubr.bf16.mxu0 %v1567_v34 }
 0x1d9   : > { %3155 = vmatmul.mubr.msk.bf16.gmra.mrb[72].mxu1 %vm540_vm0, %v1613_v35 }
 0x1da   : > { %3158 = vmatprep.mubr.msk.bf16.mxu1 %vm540_vm0, %v1618_v36 }
 0x1dc   : > { %2219 = vmatmul.mubr.bf16.gmra.mrb[8].mxu0 %v1566_v37 }
 0x1dd   : > { %2226 = vmatprep.mubr.bf16.mxu0 %v1572_v39 }
 0x1e1   : > { %3159 = vmatmul.mubr.msk.bf16.gmra.mrb[76].mxu1 %vm540_vm0, %v1623_v41 }
 0x1e2   : > { %3162 = vmatprep.mubr.msk.bf16.mxu1 %vm540_vm0, %v1628_v42 }
 0x1e4   : > { %2227 = vmatmul.mubr.bf16.gmra.mrb[12].mxu0 %v1571_v43 }
 0x1e5   : > { %2234 = vmatprep.mubr.bf16.mxu0 %v1577_v44 }
 0x1e9   : > { %3163 = vmatmul.mubr.msk.bf16.gmra.mrb[80].mxu1 %vm540_vm0, %v1633_v45 }
 0x1ea   : > { %3166 = vmatprep.mubr.msk.bf16.mxu1 %vm540_vm0, %v1638_v46 }
 0x1ec   : > { %2235 = vmatmul.mubr.bf16.gmra.mrb[16].mxu0 %v1576_v47 }
 0x1f1   : > { %3167 = vmatmul.mubr.msk.bf16.gmra.mrb[84].mxu1 %vm540_vm0, %v1643_v48 }
 0x21c   : > { %v2244_v19 = vpop.f32.mrb[0].mxu1 }
 0x21d   : > { %v2246_v49 = vpop.f32.mrb[1].mxu1 }
 0x21e   : > { %v2247_v50 = vpop.f32.mrb[2].mxu1 }
 0x21f   : > { %v2249_v51 = vpop.f32.mrb[3].mxu1 }
 0x224   : > { %v2252_v52 = vpop.f32.mrb[4].mxu1 }
 0x225   : > { %v2254_v27 = vpop.f32.mrb[5].mxu1 }
 0x226   : > { %v2255_v53 = vpop.f32.mrb[6].mxu1 }
 0x227   : > { %v2257_v54 = vpop.f32.mrb[7].mxu1 }
 0x22c   : > { %v2260_v55 = vpop.f32.mrb[8].mxu1 }
 0x22d   : > { %v2262_v40 = vpop.f32.mrb[9].mxu1 }
 0x22e   : > { %v2263_v56 = vpop.f32.mrb[10].mxu1 }
 0x22f   : > { %v2265_v57 = vpop.f32.mrb[11].mxu1 }
 0x234   : > { %v2268_v58 = vpop.f32.mrb[12].mxu1 }
 0x235   : > { %v2270_v61 = vpop.f32.mrb[13].mxu1 }
 0x236   : > { %v2271_v62 = vpop.f32.mrb[14].mxu1 }
 0x237   : > { %v2067_v63 = vpop.f32.mrb[20].mxu0  ;;  %v2273_v0 = vpop.f32.mrb[15].mxu1 }
 0x238   : > { %v2068_v2 = vadd.f32 %v4611_v60, %v2067_v63  ;;  %v2069_v3 = vpop.f32.mrb[21].mxu0 }
 0x239   : > { %v2070_v6 = vpop.f32.mrb[22].mxu0 }
 0x23a   : > { %v2071_v7 = vadd.f32 %v4611_v60, %v2070_v6  ;;  %v2072_v8 = vpop.f32.mrb[23].mxu0  ;;  %v4615_v9 = vadd.f32 %v2244_v19, %v2068_v2 }
 0x23c   : > { %v2276_v10 = vpop.f32.mrb[16].mxu1  ;;  %v4617_v11 = vadd.f32 %v2247_v50, %v2071_v7 }
 0x23d   : > { %v2278_v12 = vpop.f32.mrb[17].mxu1 }
 0x23e   : > { %v2279_v13 = vpop.f32.mrb[18].mxu1 }
 0x23f   : > { %v2075_v14 = vpop.f32.mrb[24].mxu0  ;;  %v2281_v15 = vpop.f32.mrb[19].mxu1 }
 0x240   : > { %v2076_v16 = vadd.f32 %v4611_v60, %v2075_v14  ;;  %v2077_v17 = vpop.f32.mrb[25].mxu0 }
 0x241   : > { %v2078_v18 = vpop.f32.mrb[26].mxu0 }
 0x242   : > { %v2079_v20 = vadd.f32 %v4611_v60, %v2078_v18  ;;  %v2080_v21 = vpop.f32.mrb[27].mxu0  ;;  %v4621_v22 = vadd.f32 %v2252_v52, %v2076_v16 }
 0x244   : > { %v2284_v23 = vpop.f32.mrb[20].mxu1  ;;  %v4623_v24 = vadd.f32 %v2255_v53, %v2079_v20 }
 0x245   : > { %v2286_v38 = vpop.f32.mrb[21].mxu1 }
 0x246   : > { %v2287_v1 = vpop.f32.mrb[22].mxu1 }
 0x247   : > { %v2083_v25 = vpop.f32.mrb[28].mxu0  ;;  %v2289_v26 = vpop.f32.mrb[23].mxu1 }
 0x248   : > { %v2084_v4 = vadd.f32 %v4611_v60, %v2083_v25  ;;  %v2085_v28 = vpop.f32.mrb[29].mxu0 }
 0x249   : > { %v2086_v29 = vpop.f32.mrb[30].mxu0 }
 0x24a   : > { %v2087_v30 = vadd.f32 %v4611_v60, %v2086_v29  ;;  %v2088_v31 = vpop.f32.mrb[31].mxu0  ;;  %v4627_v32 = vadd.f32 %v2260_v55, %v2084_v4 }
 0x24c   : > { %v2292_v33 = vpop.f32.mrb[24].mxu1  ;;  %v4629_v5 = vadd.f32 %v2263_v56, %v2087_v30 }
 0x24d   : > { %v2294_v59 = vpop.f32.mrb[25].mxu1 }
 0x24e   : > { %v2295_v34 = vpop.f32.mrb[26].mxu1 }
 0x24f   : > { %v2091_v35 = vpop.f32.mrb[32].mxu0  ;;  %v2297_v36 = vpop.f32.mrb[27].mxu1 }
 0x250   : > { %v2092_v37 = vadd.f32 %v4611_v60, %v2091_v35  ;;  %v2093_v39 = vpop.f32.mrb[33].mxu0 }
 0x251   : > { %v2094_v41 = vpop.f32.mrb[34].mxu0 }
 0x252   : > { %v2095_v42 = vadd.f32 %v4611_v60, %v2094_v41  ;;  %v2096_v43 = vpop.f32.mrb[35].mxu0  ;;  %v4633_v44 = vadd.f32 %v2268_v58, %v2092_v37 }
 0x254   : > { %v2300_v45 = vpop.f32.mrb[28].mxu1  ;;  %v4635_v46 = vadd.f32 %v2271_v62, %v2095_v42 }
 0x255   : > { %v2302_v47 = vpop.f32.mrb[29].mxu1 }
 0x256   : > { %v2303_v48 = vpop.f32.mrb[30].mxu1 }
 0x257   : > { %v2099_v19 = vpop.f32.mrb[36].mxu0  ;;  %v2305_v49 = vpop.f32.mrb[31].mxu1 }
 0x258   : > { %v2100_v50 = vadd.f32 %v4611_v60, %v2099_v19  ;;  %v2101_v51 = vpop.f32.mrb[37].mxu0 }
 0x259   : > { %v2102_v52 = vpop.f32.mrb[38].mxu0 }
 0x25a   : > { %v2103_v27 = vadd.f32 %v4611_v60, %v2102_v52  ;;  %v2104_v53 = vpop.f32.mrb[39].mxu0  ;;  %v4639_v54 = vadd.f32 %v2276_v10, %v2100_v50 }
 0x25c   : > { %v2308_v55 = vpop.f32.mrb[32].mxu1  ;;  %v4641_v40 = vadd.f32 %v2279_v13, %v2103_v27 }
 0x25d   : > { %v2310_v56 = vpop.f32.mrb[33].mxu1 }
 0x25e   : > { %v2311_v57 = vpop.f32.mrb[34].mxu1 }
 0x25f   : > { %v2107_v58 = vpop.f32.mrb[40].mxu0  ;;  %v2313_v61 = vpop.f32.mrb[35].mxu1 }
 0x260   : > { %v2108_v62 = vadd.f32 %v4611_v60, %v2107_v58  ;;  %v2109_v63 = vpop.f32.mrb[41].mxu0 }
 0x261   : > { %v2110_v0 = vpop.f32.mrb[42].mxu0 }
 0x262   : > { %v2111_v2 = vadd.f32 %v4611_v60, %v2110_v0  ;;  %v2112_v3 = vpop.f32.mrb[43].mxu0  ;;  %v4645_v6 = vadd.f32 %v2284_v23, %v2108_v62 }
 0x264   : > { %v2316_v7 = vpop.f32.mrb[36].mxu1  ;;  %v4647_v8 = vadd.f32 %v2287_v1, %v2111_v2 }
 0x265   : > { %v2318_v10 = vpop.f32.mrb[37].mxu1 }
 0x266   : > { %v2319_v12 = vpop.f32.mrb[38].mxu1 }
 0x267   : > { %v2115_v13 = vpop.f32.mrb[44].mxu0  ;;  %v2321_v14 = vpop.f32.mrb[39].mxu1 }
 0x268   : > { %v2116_v15 = vadd.f32 %v4611_v60, %v2115_v13  ;;  %v2117_v16 = vpop.f32.mrb[45].mxu0 }
 0x269   : > { %v2118_v17 = vpop.f32.mrb[46].mxu0 }
 0x26a   : > { %v2119_v18 = vadd.f32 %v4611_v60, %v2118_v17  ;;  %v2120_v20 = vpop.f32.mrb[47].mxu0  ;;  %v4651_v21 = vadd.f32 %v2292_v33, %v2116_v15 }
 0x26c   : > { %v2324_v38 = vpop.f32.mrb[40].mxu1  ;;  %v4653_v25 = vadd.f32 %v2295_v34, %v2119_v18 }
 0x26d   : > { %v2326_v23 = vpop.f32.mrb[41].mxu1 }
 0x26e   : > { %v2327_v26 = vpop.f32.mrb[42].mxu1 }
 0x26f   : > { %v2123_v1 = vpop.f32.mrb[48].mxu0  ;;  %v2329_v4 = vpop.f32.mrb[43].mxu1 }
 0x270   : > { %v2124_v28 = vadd.f32 %v4611_v60, %v2123_v1  ;;  %v2125_v29 = vpop.f32.mrb[49].mxu0 }
 0x271   : > { %v2126_v30 = vpop.f32.mrb[50].mxu0 }
 0x272   : > { %v2127_v31 = vadd.f32 %v4611_v60, %v2126_v30  ;;  %v2128_v59 = vpop.f32.mrb[51].mxu0  ;;  %v4657_v35 = vadd.f32 %v2300_v45, %v2124_v28 }
 0x274   : > { %v2332_v36 = vpop.f32.mrb[44].mxu1  ;;  %v4659_v37 = vadd.f32 %v2303_v48, %v2127_v31 }
 0x275   : > { %v2334_v33 = vpop.f32.mrb[45].mxu1 }
 0x276   : > { %v2335_v39 = vpop.f32.mrb[46].mxu1 }
 0x277   : > { %v2131_v34 = vpop.f32.mrb[52].mxu0  ;;  %v2337_v41 = vpop.f32.mrb[47].mxu1 }
 0x278   : > { %v2132_v42 = vadd.f32 %v4611_v60, %v2131_v34  ;;  %v2133_v43 = vpop.f32.mrb[53].mxu0 }
 0x279   : > { %v2134_v47 = vpop.f32.mrb[54].mxu0 }
 0x27a   : > { %v2135_v19 = vadd.f32 %v4611_v60, %v2134_v47  ;;  %v2136_v49 = vpop.f32.mrb[55].mxu0  ;;  %v4663_v50 = vadd.f32 %v2308_v55, %v2132_v42 }
 0x27c   : > { %v2340_v51 = vpop.f32.mrb[48].mxu1  ;;  %v4665_v52 = vadd.f32 %v2311_v57, %v2135_v19 }
 0x27d   : > { %v2342_v45 = vpop.f32.mrb[49].mxu1 }
 0x27e   : > { %v2343_v27 = vpop.f32.mrb[50].mxu1 }
 0x27f   : > { %v2139_v48 = vpop.f32.mrb[56].mxu0  ;;  %v2345_v53 = vpop.f32.mrb[51].mxu1 }
 0x280   : > { %v2140_v56 = vadd.f32 %v4611_v60, %v2139_v48  ;;  %v2141_v58 = vpop.f32.mrb[57].mxu0 }
 0x281   : > { %v2142_v61 = vpop.f32.mrb[58].mxu0 }
 0x282   : > { %v2143_v62 = vadd.f32 %v4611_v60, %v2142_v61  ;;  %v2144_v63 = vpop.f32.mrb[59].mxu0  ;;  %v4669_v0 = vadd.f32 %v2316_v7, %v2140_v56 }
 0x284   : > { %v4671_v2 = vpop.f32.mrb[52].mxu1  ;;  %v4673_v55 = vadd.f32 %v2319_v12, %v2143_v62 }
 0x285   : > { %v2381_v3 = vpop.f32.mrb[53].mxu1 }
 0x286   : > { %v4675_v57 = vpop.f32.mrb[54].mxu1 }
 0x287   : > { %v2147_v10 = vpop.f32.mrb[60].mxu0  ;;  %v2384_v13 = vpop.f32.mrb[55].mxu1 }
 0x288   : > { %v2148_v14 = vadd.f32 %v4611_v60, %v2147_v10  ;;  %v2149_v15 = vpop.f32.mrb[61].mxu0 }
 0x289   : > { %v2150_v16 = vpop.f32.mrb[62].mxu0 }
 0x28a   : > { %v2151_v17 = vadd.f32 %v4611_v60, %v2150_v16  ;;  %v2152_v18 = vpop.f32.mrb[63].mxu0  ;;  %v4679_v20 = vadd.f32 %v2324_v38, %v2148_v14 }
 0x28c   : > { %v4681_v7 = vpop.f32.mrb[56].mxu1  ;;  %v4683_v23 = vadd.f32 %v2327_v26, %v2151_v17 }
 0x28d   : > { %v4685_v12 = vpop.f32.mrb[57].mxu1 }
 0x28e   : > { %v4687_v1 = vpop.f32.mrb[58].mxu1 }
 0x28f   : > { %v2155_v4 = vpop.f32.mrb[64].mxu0  ;;  %v4689_v28 = vpop.f32.mrb[59].mxu1 }
 0x290   : > { %v2156_v29 = vadd.f32 %v4611_v60, %v2155_v4  ;;  %v2157_v30 = vpop.f32.mrb[65].mxu0 }
 0x291   : > { %v2158_v31 = vpop.f32.mrb[66].mxu0 }
 0x292   : > { %v2159_v59 = vadd.f32 %v4611_v60, %v2158_v31  ;;  %v2160_v33 = vpop.f32.mrb[67].mxu0  ;;  %v4693_v38 = vadd.f32 %v2332_v36, %v2156_v29 }
 0x294   : > { %v3144_v34 = vpop.f32.mrb[60].mxu1  ;;  %v4695_v41 = vadd.f32 %v2335_v39, %v2159_v59 }
 0x295   : > { %v2422_v26 = vadd.f32 %v3144_v34, %v4615_v9  ;;  %v4698_v42 = vpop.f32.mrb[61].mxu1 }
 0x296   : > { %v3145_v43 = vpop.f32.mrb[62].mxu1 }
 0x297   : > { %3421 = vtanh.f32 %v2422_v26  ;;  %v2425_v47 = vadd.f32 %v3145_v43, %v4617_v11  ;;  %v2163_v19 = vpop.f32.mrb[68].mxu0  ;;  %v4701_v49 = vpop.f32.mrb[63].mxu1 }
 0x298   : > { %v2164_v45 = vadd.f32 %v4611_v60, %v2163_v19  ;;  %v2165_v48 = vpop.f32.mrb[69].mxu0 }
 0x299   : > { %3423 = vtanh.f32 %v2425_v47  ;;  %v2166_v36 = vpop.f32.mrb[70].mxu0 }
 0x29a   : > { %v2167_v53 = vadd.f32 %v4611_v60, %v2166_v36  ;;  %v2168_v39 = vpop.f32.mrb[71].mxu0  ;;  %v4705_v56 = vadd.f32 %v2340_v51, %v2164_v45 }
 0x29c   : > { %v3148_v9 = vpop.f32.mrb[64].mxu1  ;;  %v4707_v58 = vadd.f32 %v2343_v27, %v2167_v53 }
 0x29d   : > { %v2438_v61 = vadd.f32 %v3148_v9, %v4627_v32  ;;  %v2429_v11 = vpop.f32.mrb[65].mxu1 }
 0x29e   : > { %v2430_v62 = vadd.f32 %v2429_v11, %v4621_v22  ;;  %v3149_v63 = vpop.f32.mrb[66].mxu1 }
 0x29f   : > { %3425 = vtanh.f32 %v2438_v61  ;;  %v2441_v10 = vadd.f32 %v3149_v63, %v4629_v5  ;;  %v2204_v14 = vpop.f32.mrb[0].mxu0  ;;  %v2432_v15 = vpop.f32.mrb[67].mxu1 }
 0x2a0   : > { %3427 = vtanh.f32 %v2430_v62  ;;  %v3202_v16 = vadd.f32 %v4611_v60, %v2204_v14  ;;  %v2433_v51 = vadd.f32 %v2432_v15, %v4623_v24  ;;  %v2206_v17 = vpop.f32.mrb[1].mxu0 }
 0x2a1   : > { %v3422_v27 = vpop.eup %3421  ;;  %3429 = vtanh.f32 %v2441_v10  ;;  %v2207_v18 = vpop.f32.mrb[2].mxu0 }
 0x2a2   : > { %3072 = vst [vmem:[%s4716_s29 + $0x48] sm:$0xff] %v3422_v27  ;;  %v2382_v22 = vadd.f32 %v3202_v16, %v2381_v3  ;;  %3431 = vtanh.f32 %v2433_v51  ;;  %v3203_v32 = vadd.f32 %v4611_v60, %v2207_v18  ;;  %v2209_v5 = vpop.f32.mrb[3].mxu0 }
 0x2a3   : > { %v3424_v4 = vpop.eup %3423 }
 0x2a4   : > { %2571 = vst [vmem:[#allocation4 + $0x58] sm:$0xff] %v3424_v4  ;;  %3433 = vtanh.f32 %v2382_v22  ;;  %v2385_v29 = vadd.f32 %v3203_v32, %v2384_v13  ;;  %v3152_v30 = vpop.f32.mrb[68].mxu1 }
 0x2a5   : > { %v2454_v24 = vadd.f32 %v3152_v30, %v4639_v54  ;;  %v2445_v31 = vpop.f32.mrb[69].mxu1 }
 0x2a6   : > { %3435 = vtanh.f32 %v2385_v29  ;;  %v2446_v59 = vadd.f32 %v2445_v31, %v4633_v44  ;;  %v3153_v33 = vpop.f32.mrb[70].mxu1 }
 0x2a7   : > { %3437 = vtanh.f32 %v2454_v24  ;;  %v2457_v34 = vadd.f32 %v3153_v33, %v4641_v40  ;;  %v2212_v3 = vpop.f32.mrb[4].mxu0  ;;  %v2448_v26 = vpop.f32.mrb[71].mxu1 }
 0x2a8   : > { %3439 = vtanh.f32 %v2446_v59  ;;  %v3204_v43 = vadd.f32 %v4611_v60, %v2212_v3  ;;  %v2449_v47 = vadd.f32 %v2448_v26, %v4635_v46  ;;  %v2214_v19 = vpop.f32.mrb[5].mxu0 }
 0x2a9   : > { %v3426_v13 = vpop.eup %3425  ;;  %3441 = vtanh.f32 %v2457_v34  ;;  %v2215_v45 = vpop.f32.mrb[6].mxu0 }
 0x2aa   : > { %v3428_v54 = vpop.eup %3427  ;;  %2574 = vst [vmem:[#allocation4 + $0x70] sm:$0xff] %v3426_v13  ;;  %v2390_v48 = vadd.f32 %v3204_v43, %v4671_v2  ;;  %3443 = vtanh.f32 %v2449_v47  ;;  %v3205_v44 = vadd.f32 %v4611_v60, %v2215_v45  ;;  %v2217_v40 = vpop.f32.mrb[7].mxu0 }
 0x2ab   : > { %v3430_v36 = vpop.eup %3429  ;;  %2572 = vst [vmem:[#allocation4 + $0x60] sm:$0xff] %v3428_v54 }
 0x2ac   : > { %v3432_v53 = vpop.eup %3431  ;;  %2575 = vst [vmem:[#allocation4 + $0x78] sm:$0xff] %v3430_v36  ;;  %3445 = vtanh.f32 %v2390_v48  ;;  %v2393_v46 = vadd.f32 %v3205_v44, %v4675_v57  ;;  %v3156_v39 = vpop.f32.mrb[72].mxu1 }
 0x2ad   : > { %2573 = vst [vmem:[#allocation4 + $0x68] sm:$0xff] %v3432_v53  ;;  %v2470_v9 = vadd.f32 %v3156_v39, %v4651_v21  ;;  %v2461_v61 = vpop.f32.mrb[73].mxu1 }
 0x2ae   : > { %v3434_v11 = vpop.eup %3433  ;;  %3447 = vtanh.f32 %v2393_v46  ;;  %v2462_v2 = vadd.f32 %v2461_v61, %v4645_v6  ;;  %v3157_v62 = vpop.f32.mrb[74].mxu1 }
 0x2af   : > { %2598 = vst [vmem:[%s4716_s29] sm:$0xff] %v3434_v11  ;;  %3449 = vtanh.f32 %v2470_v9  ;;  %v2473_v63 = vadd.f32 %v3157_v62, %v4653_v25  ;;  %v2220_v10 = vpop.f32.mrb[8].mxu0  ;;  %v2464_v14 = vpop.f32.mrb[75].mxu1 }
 0x2b0   : > { %v3436_v15 = vpop.eup %3435  ;;  %3451 = vtanh.f32 %v2462_v2  ;;  %v3206_v57 = vadd.f32 %v4611_v60, %v2220_v10  ;;  %v2465_v21 = vadd.f32 %v2464_v14, %v4647_v8  ;;  %v2222_v16 = vpop.f32.mrb[9].mxu0 }
 0x2b1   : > { %v3438_v51 = vpop.eup %3437  ;;  %2599 = vst [vmem:[%s4716_s29 + $0x8] sm:$0xff] %v3436_v15  ;;  %3453 = vtanh.f32 %v2473_v63  ;;  %v2223_v6 = vpop.f32.mrb[10].mxu0 }
 0x2b2   : > { %v3440_v17 = vpop.eup %3439  ;;  %v2620_v27 = vld [vmem:[#allocation4 + $0x5a] sm:$0xff]  ;;  %3079 = vst [vmem:[%s4716_s29 + $0x80] sm:$0xff] %v3438_v51  ;;  %v2398_v25 = vadd.f32 %v3206_v57, %v4685_v12  ;;  %3455 = vtanh.f32 %v2465_v21  ;;  %v3207_v18 = vadd.f32 %v4611_v60, %v2223_v6  ;;  %v2225_v22 = vpop.f32.mrb[11].mxu0 }
 0x2b3   : > { %v3442_v32 = vpop.eup %3441  ;;  %3073 = vst [vmem:[%s4716_s29 + $0x50] sm:$0xff] %v2620_v27  ;;  %v2626_v8 = vld [vmem:[#allocation4 + $0x74] sm:$0xff]  ;;  %2576 = vst [vmem:[#allocation4 + $0x80] sm:$0xff] %v3440_v17 }
 0x2b4   : > { %v3444_v5 = vpop.eup %3443  ;;  %3076 = vst [vmem:[%s4716_s29 + $0x68] sm:$0xff] %v2626_v8  ;;  %v2621_v4 = vld [vmem:[#allocation4 + $0x62] sm:$0xff]  ;;  %v2625_v29 = vld [vmem:[#allocation4 + $0x6c] sm:$0xff]  ;;  %3080 = vst [vmem:[%s4716_s29 + $0x88] sm:$0xff] %v3442_v32  ;;  %3457 = vtanh.f32 %v2398_v25  ;;  %v2401_v30 = vadd.f32 %v3207_v18, %v4689_v28  ;;  %v3160_v24 = vpop.f32.mrb[76].mxu1 }
 0x2b5   : > { %3074 = vst [vmem:[%s4716_s29 + $0x58] sm:$0xff] %v2621_v4  ;;  %3075 = vst [vmem:[%s4716_s29 + $0x60] sm:$0xff] %v2625_v29  ;;  %v2486_v12 = vadd.f32 %v3160_v24, %v4663_v50  ;;  %v2477_v31 = vpop.f32.mrb[77].mxu1 }
 0x2b6   : > { %2577 = vst [vmem:[#allocation4 + $0x88] sm:$0xff] %v3444_v5  ;;  %v3446_v59 = vpop.eup %3445  ;;  %3459 = vtanh.f32 %v2401_v30  ;;  %v2478_v33 = vadd.f32 %v2477_v31, %v4657_v35  ;;  %v3161_v34 = vpop.f32.mrb[78].mxu1 }
 0x2b7   : > { %2562 = vst [vmem:[#allocation4 + $0x10] sm:$0xff] %v3446_v59  ;;  %3461 = vtanh.f32 %v2486_v12  ;;  %v2489_v3 = vadd.f32 %v3161_v34, %v4665_v52  ;;  %v2228_v26 = vpop.f32.mrb[12].mxu0  ;;  %v2480_v43 = vpop.f32.mrb[79].mxu1 }
 0x2b8   : > { %v3448_v47 = vpop.eup %3447  ;;  %3463 = vtanh.f32 %v2478_v33  ;;  %v3208_v28 = vadd.f32 %v4611_v60, %v2228_v26  ;;  %v2481_v19 = vadd.f32 %v2480_v43, %v4659_v37  ;;  %v2230_v50 = vpop.f32.mrb[13].mxu0 }
 0x2b9   : > { %v3450_v13 = vpop.eup %3449  ;;  %2563 = vst [vmem:[#allocation4 + $0x18] sm:$0xff] %v3448_v47  ;;  %3465 = vtanh.f32 %v2489_v3  ;;  %v2231_v45 = vpop.f32.mrb[14].mxu0  ;;  %v2675_v50 = vld [vmem:[%s4716_s29] sm:$0xff] }
 0x2ba   : > { %v3452_v35 = vpop.eup %3451  ;;  %v2630_v54 = vld [vmem:[#allocation4 + $0x7e] sm:$0xff]  ;;  %2582 = vst [vmem:[#allocation4 + $0xb0] sm:$0xff] %v3450_v13  ;;  %v2406_v52 = vadd.f32 %v3208_v28, %v4681_v7  ;;  %3467 = vtanh.f32 %v2481_v19  ;;  %v3209_v48 = vadd.f32 %v4611_v60, %v2231_v45  ;;  %v2233_v44 = vpop.f32.mrb[15].mxu0 }
 0x2bb   : > { %v3454_v40 = vpop.eup %3453  ;;  %3077 = vst [vmem:[%s4716_s29 + $0x70] sm:$0xff] %v2630_v54  ;;  %2580 = vst [vmem:[#allocation4 + $0xa0] sm:$0xff] %v3452_v35 }
 0x2bc   : > { %v3456_v36 = vpop.eup %3455  ;;  %2583 = vst [vmem:[#allocation4 + $0xb8] sm:$0xff] %v3454_v40  ;;  %3469 = vtanh.f32 %v2406_v52  ;;  %v2409_v53 = vadd.f32 %v3209_v48, %v4687_v1  ;;  %v3164_v46 = vpop.f32.mrb[80].mxu1  ;;  %v2744_v40 = vmul.f32 %v2675_v50, %v2675_v50 }
 0x2bd   : > { %v2631_v37 = vld [vmem:[#allocation4 + $0x86] sm:$0xff]  ;;  %2581 = vst [vmem:[#allocation4 + $0xa8] sm:$0xff] %v3456_v36  ;;  %v2502_v39 = vadd.f32 %v3164_v46, %v4679_v20  ;;  %v2493_v9 = vpop.f32.mrb[81].mxu1 }
 0x2be   : > { %3078 = vst [vmem:[%s4716_s29 + $0x78] sm:$0xff] %v2631_v37  ;;  %v3458_v7 = vpop.eup %3457  ;;  %3471 = vtanh.f32 %v2409_v53  ;;  %v2494_v61 = vadd.f32 %v2493_v9, %v4669_v0  ;;  %v3165_v11 = vpop.f32.mrb[82].mxu1 }
 0x2bf   : > { %2564 = vst [vmem:[#allocation4 + $0x20] sm:$0xff] %v3458_v7  ;;  %3473 = vtanh.f32 %v2502_v39  ;;  %v2505_v2 = vadd.f32 %v3165_v11, %v4683_v23  ;;  %v2236_v62 = vpop.f32.mrb[16].mxu0  ;;  %v2496_v63 = vpop.f32.mrb[83].mxu1 }
 0x2c0   : > { %v3460_v10 = vpop.eup %3459  ;;  %v2600_v1 = vld [vmem:[#allocation4 + $0x12] sm:$0xff]  ;;  %3475 = vtanh.f32 %v2494_v61  ;;  %v3210_v14 = vadd.f32 %v4611_v60, %v2236_v62  ;;  %v2497_v20 = vadd.f32 %v2496_v63, %v4673_v55  ;;  %v2238_v15 = vpop.f32.mrb[17].mxu0 }
 0x2c1   : > { %v3462_v57 = vpop.eup %3461  ;;  %3065 = vst [vmem:[%s4716_s29 + $0x10] sm:$0xff] %v2600_v1  ;;  %2565 = vst [vmem:[#allocation4 + $0x28] sm:$0xff] %v3460_v10  ;;  %3477 = vtanh.f32 %v2505_v2  ;;  %v2239_v0 = vpop.f32.mrb[18].mxu0  ;;  %v2676_v61 = vld [vmem:[%s4716_s29 + $0x8] sm:$0xff]  ;;  %v2685_v1 = vld [vmem:[%s4716_s29 + $0x50] sm:$0xff] }
 0x2c2   : > { %v3464_v21 = vpop.eup %3463  ;;  %2586 = vst [vmem:[#allocation4 + $0xd0] sm:$0xff] %v3462_v57  ;;  %v2414_v23 = vadd.f32 %v3210_v14, %v4698_v42  ;;  %3479 = vtanh.f32 %v2497_v20  ;;  %v3211_v16 = vadd.f32 %v4611_v60, %v2239_v0  ;;  %v2241_v51 = vpop.f32.mrb[19].mxu0 }
 0x2c3   : > { %v3466_v6 = vpop.eup %3465  ;;  %v2645_v55 = vld [vmem:[#allocation4 + $0xb4] sm:$0xff]  ;;  %2584 = vst [vmem:[#allocation4 + $0xc0] sm:$0xff] %v3464_v21 }
 0x2c4   : > { %v3468_v17 = vpop.eup %3467  ;;  %3083 = vst [vmem:[%s4716_s29 + $0xa0] sm:$0xff] %v2645_v55  ;;  %v2640_v27 = vld [vmem:[#allocation4 + $0xa2] sm:$0xff]  ;;  %v2641_v25 = vld [vmem:[#allocation4 + $0xaa] sm:$0xff]  ;;  %3087 = vst [vmem:[%s4716_s29 + $0xc0] sm:$0xff] %v3466_v6  ;;  %3481 = vtanh.f32 %v2414_v23  ;;  %v2417_v18 = vadd.f32 %v3211_v16, %v4701_v49  ;;  %v3168_v22 = vpop.f32.mrb[84].mxu1  ;;  %v2745_v6 = vmul.f32 %v2676_v61, %v2676_v61 }
 0x2c5   : > { %3081 = vst [vmem:[%s4716_s29 + $0x90] sm:$0xff] %v2640_v27  ;;  %3082 = vst [vmem:[%s4716_s29 + $0x98] sm:$0xff] %v2641_v25  ;;  %v2518_v42 = vadd.f32 %v3168_v22, %v4705_v56  ;;  %v2509_v60 = vpop.f32.mrb[85].mxu1  ;;  %v2687_v16 = vld [vmem:[%s4716_s29 + $0x60] sm:$0xff]  ;;  %v2754_v25 = vmul.f32 %v2685_v1, %v2685_v1 }
 0x2c6   : > { %2585 = vst [vmem:[#allocation4 + $0xc8] sm:$0xff] %v3468_v17  ;;  %v3470_v32 = vpop.eup %3469  ;;  %v2601_v8 = vld [vmem:[#allocation4 + $0x1a] sm:$0xff]  ;;  %3483 = vtanh.f32 %v2417_v18  ;;  %v2510_v5 = vadd.f32 %v2509_v60, %v4693_v38  ;;  %v3169_v4 = vpop.f32.mrb[86].mxu1 }
 0x2c7   : > { %3066 = vst [vmem:[%s4716_s29 + $0x18] sm:$0xff] %v2601_v8  ;;  %2566 = vst [vmem:[#allocation4 + $0x30] sm:$0xff] %v3470_v32  ;;  %3485 = vtanh.f32 %v2518_v42  ;;  %v2521_v49 = vadd.f32 %v3169_v4, %v4707_v58  ;;  %v2512_v29 = vpop.f32.mrb[87].mxu1  ;;  %v2689_v17 = vld [vmem:[%s4716_s29 + $0x70] sm:$0xff] }
 0x2c8   : > { %v3472_v30 = vpop.eup %3471  ;;  %v2605_v24 = vld [vmem:[#allocation4 + $0x24] sm:$0xff]  ;;  %3487 = vtanh.f32 %v2510_v5  ;;  %v2513_v56 = vadd.f32 %v2512_v29, %v4695_v41  ;;  %v2677_v47 = vld [vmem:[%s4716_s29 + $0x10] sm:$0xff] }
 0x2c9   : > { %v3474_v12 = vpop.eup %3473  ;;  %3067 = vst [vmem:[%s4716_s29 + $0x20] sm:$0xff] %v2605_v24  ;;  %2567 = vst [vmem:[#allocation4 + $0x38] sm:$0xff] %v3472_v30  ;;  %3489 = vtanh.f32 %v2521_v49  ;;  %v2746_v54 = vmul.f32 %v2677_v47, %v2677_v47  ;;  %v2707_v44 = vadd.f32 %v2677_v47, %v2675_v50 }
 0x2ca   : > { %v3476_v38 = vpop.eup %3475  ;;  %v2646_v31 = vld [vmem:[#allocation4 + $0xbc] sm:$0xff]  ;;  %2590 = vst [vmem:[#allocation4 + $0xf0] sm:$0xff] %v3474_v12  ;;  %3491 = vtanh.f32 %v2513_v56 }
 0x2cb   : > { %v3478_v59 = vpop.eup %3477  ;;  %3084 = vst [vmem:[%s4716_s29 + $0xa8] sm:$0xff] %v2646_v31  ;;  %3088 = vst [vmem:[%s4716_s29 + $0xc8] sm:$0xff] %v3476_v38  ;;  %v2776_v39 = vadd.f32 %v2746_v54, %v2744_v40 }
 0x2cc   : > { %v3480_v58 = vpop.eup %3479  ;;  %2591 = vst [vmem:[#allocation4 + $0xf8] sm:$0xff] %v3478_v59 }
 0x2cd   : > { %v2650_v33 = vld [vmem:[#allocation4 + $0xc6] sm:$0xff]  ;;  %v2651_v41 = vld [vmem:[#allocation4 + $0xce] sm:$0xff]  ;;  %2589 = vst [vmem:[#allocation4 + $0xe8] sm:$0xff] %v3480_v58 }
 0x2ce   : > { %3085 = vst [vmem:[%s4716_s29 + $0xb0] sm:$0xff] %v2650_v33  ;;  %3086 = vst [vmem:[%s4716_s29 + $0xb8] sm:$0xff] %v2651_v41  ;;  %v3482_v34 = vpop.eup %3481  ;;  %v2606_v3 = vld [vmem:[#allocation4 + $0x2c] sm:$0xff]  ;;  %v2678_v53 = vld [vmem:[%s4716_s29 + $0x18] sm:$0xff] }
 0x2cf   : > { %3068 = vst [vmem:[%s4716_s29 + $0x28] sm:$0xff] %v2606_v3  ;;  %2568 = vst [vmem:[#allocation4 + $0x40] sm:$0xff] %v3482_v34  ;;  %v2747_v14 = vmul.f32 %v2678_v53, %v2678_v53  ;;  %v2722_v51 = vadd.f32 %v2678_v53, %v2676_v61 }
 0x2d0   : > { %v3484_v26 = vpop.eup %3483  ;;  %v2610_v43 = vld [vmem:[#allocation4 + $0x36] sm:$0xff]  ;;  %v2679_v13 = vld [vmem:[%s4716_s29 + $0x20] sm:$0xff] }
 0x2d1   : > { %v3486_v28 = vpop.eup %3485  ;;  %3069 = vst [vmem:[%s4716_s29 + $0x30] sm:$0xff] %v2610_v43  ;;  %3071 = vst [vmem:[%s4716_s29 + $0x40] sm:$0xff] %v3484_v26  ;;  %v2748_v36 = vmul.f32 %v2679_v13, %v2679_v13  ;;  %v2708_v46 = vadd.f32 %v2707_v44, %v2679_v13 }
 0x2d2   : > { %v3488_v19 = vpop.eup %3487  ;;  %2594 = vst [vmem:[#allocation4 + $0x110] sm:$0xff] %v3486_v28 }
 0x2d3   : > { %v3490_v45 = vpop.eup %3489  ;;  %v2661_v35 = vld [vmem:[#allocation4 + $0xf2] sm:$0xff]  ;;  %2592 = vst [vmem:[#allocation4 + $0x100] sm:$0xff] %v3488_v19  ;;  %v2777_v63 = vadd.f32 %v2776_v39, %v2748_v36 }
 0x2d4   : > { %v3492_v52 = vpop.eup %3491  ;;  %3090 = vst [vmem:[%s4716_s29 + $0xd8] sm:$0xff] %v2661_v35  ;;  %v2660_v48 = vld [vmem:[#allocation4 + $0xea] sm:$0xff]  ;;  %2595 = vst [vmem:[#allocation4 + $0x118] sm:$0xff] %v3490_v45 }
 0x2d5   : > { %3089 = vst [vmem:[%s4716_s29 + $0xd0] sm:$0xff] %v2660_v48  ;;  %2593 = vst [vmem:[#allocation4 + $0x108] sm:$0xff] %v3492_v52 }
 0x2d6   : > { %v2611_v37 = vld [vmem:[#allocation4 + $0x3e] sm:$0xff]  ;;  %v2680_v11 = vld [vmem:[%s4716_s29 + $0x28] sm:$0xff] }
 0x2d7   : > { %3070 = vst [vmem:[%s4716_s29 + $0x38] sm:$0xff] %v2611_v37  ;;  %v2749_v55 = vmul.f32 %v2680_v11, %v2680_v11 }
 0x2d8   : > { %v2681_v9 = vld [vmem:[%s4716_s29 + $0x30] sm:$0xff]  ;;  %v2683_v7 = vld [vmem:[%s4716_s29 + $0x40] sm:$0xff] }
 0x2d9   : > { %v2709_v2 = vadd.f32 %v2708_v46, %v2681_v9  ;;  %v2750_v62 = vmul.f32 %v2681_v9, %v2681_v9  ;;  %v2752_v57 = vmul.f32 %v2683_v7, %v2683_v7 }
 0x2da   : > { %v2665_v10 = vld [vmem:[#allocation4 + $0xfc] sm:$0xff] }
 0x2db   : > { %3091 = vst [vmem:[%s4716_s29 + $0xe0] sm:$0xff] %v2665_v10  ;;  %v2671_v20 = vld [vmem:[#allocation4 + $0x116] sm:$0xff]  ;;  %v2710_v15 = vadd.f32 %v2709_v2, %v2683_v7  ;;  %v2778_v0 = vadd.f32 %v2777_v63, %v2750_v62 }
 0x2dc   : > { %3094 = vst [vmem:[%s4716_s29 + $0xf8] sm:$0xff] %v2671_v20  ;;  %v2666_v21 = vld [vmem:[#allocation4 + $0x104] sm:$0xff]  ;;  %v2670_v23 = vld [vmem:[#allocation4 + $0x10e] sm:$0xff] }
 0x2dd   : > { %3092 = vst [vmem:[%s4716_s29 + $0xe8] sm:$0xff] %v2666_v21  ;;  %3093 = vst [vmem:[%s4716_s29 + $0xf0] sm:$0xff] %v2670_v23  ;;  %v2711_v27 = vadd.f32 %v2710_v15, %v2685_v1  ;;  %v2779_v18 = vadd.f32 %v2778_v0, %v2752_v57 }
 0x2de   : > { %3664 = shalt.err (!%p3661_p13)
}
 0x2df   : > { %s3665_s16 = scalar_lea.hbm %s4796_s17, 4096  ;;  %s3669_s19 = scalar_lea.hbm %s4906_s5, 8192 }
 0x2e0   : > { %p3666_p0 = scmp.ne.s32.totalorder %s4796_s17, %s3665_s16  ;;  %p3670_p9 = scmp.lt.u32.totalorder %s4796_s17, %s4906_s5 }
 0x2e1   : > { %p3671_p12 = scmp.lt.u32.totalorder %s3669_s19, %s3665_s16  ;;  %p3673_p4 = scmp.lt.u32.totalorder %s3665_s16, %s4796_s17 }
 0x2e2   : > { %p3667_p5 = pnand %p3666_p0, %p3962_p1 }
 0x2e3   : > { %p3672_p2 = por %p3671_p12, %p3670_p9 }
 0x2e4   : > { %p3668_p11 = pneg %p3667_p5 }
 0x2e5   : > { %p3674_p6 = por %p3673_p4, %p3672_p2 }
 0x2e7   : > { %p3675_p8 = pnand %p3674_p6, %p3668_p11 }
 0x2e9   : > { %3678 = shalt.err (!%p3675_p8)
}
 0x2ea   : > { %s3772_s30 = smov 128   ;;  %s3773_s26 = smov 8   ;;  %v2723_v22 = vadd.f32 %v2722_v51, %v2680_v11  ;;  %v2791_v42 = vadd.f32 %v2747_v14, %v2745_v6  ;;  %v2682_v60 = vld [vmem:[%s4716_s29 + $0x38] sm:$0xff]  ;;  %v2684_v32 = vld [vmem:[%s4716_s29 + $0x48] sm:$0xff]  ;;  %v2712_v8 = vadd.f32 %v2711_v27, %v2687_v16  ;;  %v2756_v5 = vmul.f32 %v2687_v16, %v2687_v16  ;;  %v2691_v49 = vld [vmem:[%s4716_s29 + $0x80] sm:$0xff] }
 0x2eb   : > { %3302 = dma.vmem_to_hbm [thread:$0]  (%p3962_p1), %s4798_s12, 4096, %s4796_s17, %s2816_s20, %s3772_s30, %s3772_s30, %s3773_s26   ;;  %v2780_v4 = vadd.f32 %v2779_v18, %v2754_v25  ;;  %v2751_v30 = vmul.f32 %v2682_v60, %v2682_v60  ;;  %v2758_v38 = vmul.f32 %v2689_v17, %v2689_v17  ;;  %v2753_v33 = vmul.f32 %v2684_v32, %v2684_v32 }
 0x2ec   : > { %v2724_v29 = vadd.f32 %v2723_v22, %v2682_v60  ;;  %v2792_v24 = vadd.f32 %v2791_v42, %v2749_v55  ;;  %v2686_v56 = vld [vmem:[%s4716_s29 + $0x58] sm:$0xff]  ;;  %v2713_v12 = vadd.f32 %v2712_v8, %v2689_v17  ;;  %v2693_v59 = vld [vmem:[%s4716_s29 + $0x90] sm:$0xff]  ;;  %v2688_v34 = vld [vmem:[%s4716_s29 + $0x68] sm:$0xff]  ;;  %v2760_v26 = vmul.f32 %v2691_v49, %v2691_v49  ;;  %s3007_s12 = sshll.u32 %s4014_s15, 1  ;;  %s2821_s14 = scalar_lea.sflag [#allocation16], %s4014_s15 }
 0x2ed   : > { %v2781_v31 = vadd.f32 %v2780_v4, %v2756_v5  ;;  %v2695_v47 = vld [vmem:[%s4716_s29 + $0xa0] sm:$0xff]  ;;  %v2755_v19 = vmul.f32 %v2686_v56, %v2686_v56  ;;  %v2690_v13 = vld [vmem:[%s4716_s29 + $0x78] sm:$0xff]  ;;  %v2762_v35 = vmul.f32 %v2693_v59, %v2693_v59  ;;  %v2697_v52 = vld [vmem:[%s4716_s29 + $0xb0] sm:$0xff]  ;;  %v2757_v44 = vmul.f32 %v2688_v34, %v2688_v34  ;;  %s332_s17 = scalar_lea.vmem [#allocation15], %s3007_s12 }
 0x2ee   : > { %v2725_v58 = vadd.f32 %v2724_v29, %v2684_v32  ;;  %v2793_v41 = vadd.f32 %v2792_v24, %v2751_v30  ;;  %v2714_v3 = vadd.f32 %v2713_v12, %v2691_v49  ;;  %v2692_v36 = vld [vmem:[%s4716_s29 + $0x88] sm:$0xff]  ;;  %v2764_v53 = vmul.f32 %v2695_v47, %v2695_v47  ;;  %v2699_v39 = vld [vmem:[%s4716_s29 + $0xc0] sm:$0xff]  ;;  %v2694_v11 = vld [vmem:[%s4716_s29 + $0x98] sm:$0xff]  ;;  %s2850_s20 = sshll.u32 %s332_s17, 4  ;;  %s4859_s20 = int_to_ptr.vmem [resolvable:$true] %s2850_s20 }
 0x2ef   : > { %v2782_v43 = vadd.f32 %v2781_v31, %v2758_v38  ;;  %v2759_v7 = vmul.f32 %v2690_v13, %v2690_v13  ;;  %v2766_v62 = vmul.f32 %v2697_v52, %v2697_v52  ;;  %v2761_v1 = vmul.f32 %v2692_v36, %v2692_v36  ;;  %v2696_v20 = vld [vmem:[%s4716_s29 + $0xa8] sm:$0xff]  ;;  %v2698_v0 = vld [vmem:[%s4716_s29 + $0xb8] sm:$0xff]  ;;  %v2701_v6 = vld [vmem:[%s4716_s29 + $0xd0] sm:$0xff]  ;;  %s3679_s27 = scalar_lea.vmem %s4859_s20, 32 }
 0x2f0   : > { %v2726_v28 = vadd.f32 %v2725_v58, %v2686_v56  ;;  %v2794_v50 = vadd.f32 %v2793_v41, %v2753_v33  ;;  %v2715_v45 = vadd.f32 %v2714_v3, %v2693_v59  ;;  %v2768_v15 = vmul.f32 %v2699_v39, %v2699_v39  ;;  %v2700_v18 = vld [vmem:[%s4716_s29 + $0xc8] sm:$0xff]  ;;  %v2702_v42 = vld [vmem:[%s4716_s29 + $0xd8] sm:$0xff]  ;;  %v2703_v4 = vld [vmem:[%s4716_s29 + $0xe0] sm:$0xff]  ;;  %p3680_p3 = scmp.ne.s32.totalorder %s4859_s20, %s3679_s27 }
 0x2f1   : > { %v2783_v54 = vadd.f32 %v2782_v43, %v2760_v26  ;;  %v2763_v16 = vmul.f32 %v2694_v11, %v2694_v11  ;;  %v2765_v17 = vmul.f32 %v2696_v20, %v2696_v20  ;;  %v2767_v22 = vmul.f32 %v2698_v0, %v2698_v0  ;;  %v2704_v56 = vld [vmem:[%s4716_s29 + $0xe8] sm:$0xff]  ;;  %v2706_v38 = vld [vmem:[%s4716_s29 + $0xf8] sm:$0xff]  ;;  %v2705_v41 = vld [vmem:[%s4716_s29 + $0xf0] sm:$0xff]  ;;  %s3099_s29 = sshll.u32 %s3831_s25, 5  ;;  %s3774_s25 = smov [#allocation15]  }
 0x2f2   : > { %v2727_v48 = vadd.f32 %v2726_v28, %v2688_v34  ;;  %v2795_v40 = vadd.f32 %v2794_v50, %v2755_v19  ;;  %v2716_v37 = vadd.f32 %v2715_v45, %v2695_v47  ;;  %v2770_v8 = vmul.f32 %v2701_v6, %v2701_v6  ;;  %s4857_s16 = scalar_lea.hbm %s4907_s6, %s3099_s29  ;;  %p3681_p7 = pnand %p3680_p3, %p3962_p1 }
 0x2f3   : > { %v2784_v46 = vadd.f32 %v2783_v54, %v2762_v35  ;;  %v2769_v29 = vmul.f32 %v2700_v18, %v2700_v18  ;;  %v2771_v12 = vmul.f32 %v2702_v42, %v2702_v42  ;;  %v2772_v58 = vmul.f32 %v2703_v4, %v2703_v4  ;;  %s3683_s19 = sshll.u32 %s3774_s25, 4  ;;  %s3684_s19 = int_to_ptr.vmem [resolvable:$false] %s3683_s19 }
 0x2f4   : > { %v2728_v9 = vadd.f32 %v2727_v48, %v2690_v13  ;;  %v2796_v61 = vadd.f32 %v2795_v40, %v2757_v44  ;;  %v2717_v2 = vadd.f32 %v2716_v37, %v2697_v52  ;;  %v2773_v3 = vmul.f32 %v2704_v56, %v2704_v56  ;;  %p3682_p10 = pneg %p3681_p7  ;;  %s3685_s7 = scalar_lea.vmem %s3684_s19, 64 }
 0x2f5   : > { %v2785_v63 = vadd.f32 %v2784_v46, %v2764_v53  ;;  %v2775_v47 = vmul.f32 %v2706_v38, %v2706_v38  ;;  %v2774_v50 = vmul.f32 %v2705_v41, %v2705_v41  ;;  %p3686_p13 = scmp.lt.s32.totalorder %s4859_s20, %s3684_s19  ;;  %p3687_p0 = scmp.lt.s32.totalorder %s3685_s7, %s3679_s27 }
 0x2f6   : > { %v2729_v10 = vadd.f32 %v2728_v9, %v2692_v36  ;;  %v2797_v14 = vadd.f32 %v2796_v61, %v2759_v7  ;;  %v2718_v21 = vadd.f32 %v2717_v2, %v2699_v39 }
 0x2f7   : > { %v2786_v57 = vadd.f32 %v2785_v63, %v2766_v62  ;;  %p3688_p5 = por %p3687_p0, %p3686_p13 }
 0x2f8   : > { %v2730_v23 = vadd.f32 %v2729_v10, %v2694_v11  ;;  %v2798_v51 = vadd.f32 %v2797_v14, %v2761_v1  ;;  %v2719_v60 = vadd.f32 %v2718_v21, %v2701_v6 }
 0x2f9   : > { %v2787_v27 = vadd.f32 %v2786_v57, %v2768_v15  ;;  %p3689_p11 = pnand %p3688_p5, %p3682_p10 }
 0x2fa   : > { %v2731_v55 = vadd.f32 %v2730_v23, %v2696_v20  ;;  %v2799_v25 = vadd.f32 %v2798_v51, %v2763_v16  ;;  %v2720_v31 = vadd.f32 %v2719_v60, %v2703_v4 }
 0x2fb   : > { %v2788_v30 = vadd.f32 %v2787_v27, %v2770_v8 }
 0x2fc   : > { %v2732_v32 = vadd.f32 %v2731_v55, %v2698_v0  ;;  %v2800_v5 = vadd.f32 %v2799_v25, %v2765_v17  ;;  %v2721_v28 = vadd.f32 %v2720_v31, %v2705_v41 }
 0x2fd   : > { %v2789_v26 = vadd.f32 %v2788_v30, %v2772_v58 }
 0x2fe   : > { %v2733_v49 = vadd.f32 %v2732_v32, %v2700_v18  ;;  %v2801_v24 = vadd.f32 %v2800_v5, %v2767_v22 }
 0x2ff   : > { %v2790_v35 = vadd.f32 %v2789_v26, %v2774_v50 }
 0x300   : > { %v2734_v59 = vadd.f32 %v2733_v49, %v2702_v42  ;;  %v2802_v33 = vadd.f32 %v2801_v24, %v2769_v29 }
 0x302   : > { %v2735_v34 = vadd.f32 %v2734_v59, %v2704_v56  ;;  %v2803_v43 = vadd.f32 %v2802_v33, %v2771_v12 }
 0x304   : > { %v2736_v19 = vadd.f32 %v2735_v34, %v2706_v38  ;;  %v2804_v13 = vadd.f32 %v2803_v43, %v2773_v3 }
 0x306   : > { %v2737_v45 = vadd.f32 %v2736_v19, %v2721_v28  ;;  %v2805_v54 = vadd.f32 %v2804_v13, %v2775_v47 }
 0x308   : > { %v2738_v52 = vrot.slane %v2737_v45, 4  ;;  %v2806_v48 = vadd.f32 %v2805_v54, %v2790_v35 }
 0x30a   : > { %v2739_v44 = vadd.f32 %v2738_v52, %v2737_v45  ;;  %v2807_v40 = vrot.slane %v2806_v48, 4 }
 0x30c   : > { %v2740_v36 = vrot.slane %v2739_v44, 2  ;;  %v2808_v37 = vadd.f32 %v2807_v40, %v2806_v48 }
 0x30e   : > { %v2741_v53 = vadd.f32 %v2740_v36, %v2739_v44  ;;  %v2809_v46 = vrot.slane %v2808_v37, 2 }
 0x310   : > { %v2742_v39 = vrot.slane %v2741_v53, 1  ;;  %v2810_v9 = vadd.f32 %v2809_v46, %v2808_v37 }
 0x312   : > { %v2743_v7 = vadd.f32 %v2742_v39, %v2741_v53  ;;  %v2811_v61 = vrot.slane %v2810_v9, 1 }
 0x314   : > { %v2812_v11 = vadd.f32 %v2811_v61, %v2810_v9  ;;  %2813 = vst [vmem:[%s332_s17] sm:$0x1] %v2743_v7 }
 0x316   : > { %2814 = vst [vmem:[%s332_s17 + $0x1] sm:$0x1] %v2812_v11 }
 0x317   : > { %3692 = shalt.err (!%p3689_p11)
}
 0x318   : > { %s3693_s15 = scalar_lea.hbm %s4857_s16, 32  ;;  %s3697_s26 = scalar_lea.hbm %s4907_s6, 64 }
 0x319   : > { %p3694_p9 = scmp.ne.s32.totalorder %s4857_s16, %s3693_s15  ;;  %p3698_p4 = scmp.lt.u32.totalorder %s4857_s16, %s4907_s6 }
 0x31a   : > { %p3699_p6 = scmp.lt.u32.totalorder %s3697_s26, %s3693_s15  ;;  %p3701_p3 = scmp.lt.u32.totalorder %s3693_s15, %s4857_s16 }
 0x31b   : > { %p3695_p12 = pnand %p3694_p9, %p3962_p1 }
 0x31c   : > { %p3700_p8 = por %p3699_p6, %p3698_p4 }
 0x31d   : > { %p3696_p2 = pneg %p3695_p12 }
 0x31e   : > { %p3702_p7 = por %p3701_p3, %p3700_p8 }
 0x320   : > { %p3703_p10 = pnand %p3702_p7, %p3696_p2 }
 0x322   : > { %3706 = shalt.err (!%p3703_p10)
}
 0x323   : > { %3303 = dma.vmem_to_hbm [thread:$0]  (%p3962_p1), %s4859_s20, 32, %s4857_s16, %s2821_s14  }
 0x324 PF: > { %s2862_s17 = sand.u32 1, %s3745_s21   ;;  %p4925_p13 = scmp.ne.s32.totalorder %s4912_s28, 0 }
 0x325   : > { %p4926_p0 = scmp.ge.s32.totalorder %s3757_s24, 2  ;;  %s2863_s10 = scalar_lea.sflag [#allocation7], %s2862_s17 }
 0x327   : > { %p3324_p5 = pnand %p4926_p0, %p4925_p13 }
 0x329   : > { %3736 = dma.done.wait (!%p3324_p5), %s2863_s10, 4096  }
 0x32a   : > { %3738 = vsyncadd (!%p3324_p5), %s2863_s10, 4294963200  ;;  %s2872_s11 = scalar_lea.sflag [#allocation16], %s2862_s17 }
 0x32b   : > { %3740 = dma.done.wait (!%p3324_p5), %s2872_s11, 32  }
 0x32c   : > { %3742 = vsyncadd (!%p3324_p5), %s2872_s11, 4294967264  ;;  %p25_p1 = scmp.ge.s32.totalorder %s3952_s18, 4   ;;  %s4927_s21 = smov %s3749_s22 }
 0x32d   : > { %s4928_s22 = smov %s3753_s23  ;;  %s4929_s23 = smov %s3968_s13 }
 0x32e   : > { %s4930_s24 = smov %s3952_s18  ;;  %27 = sbr.rel (!%p25_p1) target bundleno = 9 (0x9), region = 133 }
 0x335   :  { %2877 = vsyncpa [#allocation6], 1 }
 0x336   :  { %2879 = vsyncpa [#allocation6 + $0x1], 1 }
 0x337   :  { %2880 = vsyncpa [#allocation9], 1 }
 0x338   :  { %2881 = vsyncpa [#allocation12], 1 }
 0x339   :  { %2882 = vsyncpa [#allocation7], 1 }
 0x33a   :  { %2884 = vsyncpa [#allocation7 + $0x1], 1 }
 0x33b   :  { %2885 = vsyncpa [#allocation16], 1 }
 0x33c   :  { %2887 = vsyncpa [#allocation16 + $0x1], 1 }

</bundles_post_ra>
